<compile_context>
chip_gen: v7x
topology: tpu7x:2x2x1
jax: 0.10.0
libtpu: 0.0.40
codegen_flags: <defaults>
</compile_context>

<pallas_src>
import jax
import jax.numpy as jnp
from jax.experimental import pallas as pl
from jax.experimental.pallas import tpu as pltpu


def _round_up(x, m):
    return (x + m - 1) // m * m


def _pad_gate_cols(w, H, Hp):
    """Pad the last dim [..., 4*H] -> [..., 4*Hp] per-gate (i|f|g|o) with zeros."""
    lead = w.shape[:-1]
    w4 = w.reshape(lead + (4, H))
    w4 = jnp.pad(w4, [(0, 0)] * len(lead) + [(0, 0), (0, Hp - H)])
    return w4.reshape(lead + (4 * Hp,))


def _pad_rows(w, R, Rp):
    return jnp.pad(w, [(0, Rp - R)] + [(0, 0)] * (w.ndim - 1))


# ----------------------------------------------------------------------------
# Generic tiled matmul-plus-bias kernel:  out = x @ w + b
# Grid axes (M-tiles, N-tiles, K-tiles) with M/N "parallel" (v7x second TC) and
# K "arbitrary" (accumulator). Inputs are zero-padded to tile multiples in the
# wrapper, so edges are exact.
# ----------------------------------------------------------------------------
def _matmul_bias_kernel(x_ref, w_ref, b_ref, o_ref, acc_ref):
    @pl.when(pl.program_id(2) == 0)
    def _():
        acc_ref[...] = jnp.zeros_like(acc_ref)

    acc_ref[...] += jnp.dot(x_ref[...], w_ref[...],
                            preferred_element_type=jnp.float32)

    @pl.when(pl.program_id(2) == pl.num_programs(2) - 1)
    def _():
        o_ref[...] = (acc_ref[...] + b_ref[...]).astype(o_ref.dtype)


def matmul_bias(x, w, b, *, tm=256, tn=512, tk=512):
    M, K = x.shape
    _, N = w.shape
    tm = min(tm, _round_up(M, 8))
    tn = min(tn, _round_up(N, 128))
    tk = min(tk, _round_up(K, 128))
    Mp, Np, Kp = _round_up(M, tm), _round_up(N, tn), _round_up(K, tk)

    xp = jnp.pad(x, ((0, Mp - M), (0, Kp - K)))
    wp = jnp.pad(w, ((0, Kp - K), (0, Np - N)))
    bp = jnp.pad(b.reshape(1, -1), ((0, 0), (0, Np - N)))

    out = pl.pallas_call(
        _matmul_bias_kernel,
        out_shape=jax.ShapeDtypeStruct((Mp, Np), jnp.float32),
        grid_spec=pltpu.PrefetchScalarGridSpec(
            num_scalar_prefetch=0,
            grid=(Mp // tm, Np // tn, Kp // tk),
            in_specs=[
                pl.BlockSpec((tm, tk), lambda i, j, k: (i, k)),
                pl.BlockSpec((tk, tn), lambda i, j, k: (k, j)),
                pl.BlockSpec((1, tn), lambda i, j, k: (0, j)),
            ],
            out_specs=pl.BlockSpec((tm, tn), lambda i, j, k: (i, j)),
            scratch_shapes=[pltpu.VMEM((tm, tn), jnp.float32)],
        ),
        compiler_params=pltpu.CompilerParams(
            dimension_semantics=("parallel", "parallel", "arbitrary")),
    )(xp, wp, bp)
    return out[:M, :N]


# ----------------------------------------------------------------------------
# Encoder bridge kernel: Linear(2048 -> E) + BatchNorm1d (training-mode batch
# statistics, eps = 1e-5), fused with the time-invariant layer-1 gate
# contribution  enc @ w_ih1[E:2E, :]  (constant over the caption length).
# Output: [B, 4*Hp].
# ----------------------------------------------------------------------------
def _encoder_gate_kernel(f_ref, wb_ref, bb_ref, gamma_ref, beta_ref, wg_ref, o_ref):
    f = f_ref[...]                                              # [B, 2048]
    z = jnp.dot(f, wb_ref[...], preferred_element_type=jnp.float32) + bb_ref[...]
    mean = jnp.mean(z, axis=0, keepdims=True)                   # batch stats
    var = jnp.mean((z - mean) ** 2, axis=0, keepdims=True)
    enc = gamma_ref[...] * (z - mean) * jax.lax.rsqrt(var + 1e-5) + beta_ref[...]
    o_ref[...] = jnp.dot(enc, wg_ref[...], preferred_element_type=jnp.float32)


def encoder_bridge_gate(features, w_bridge, b_bridge, gamma, beta, wih1_enc):
    B = features.shape[0]
    fourHp = wih1_enc.shape[1]

    def full(shape):
        n = len(shape)
        return pl.BlockSpec(shape, lambda i, _n=n: (0,) * _n)

    return pl.pallas_call(
        _encoder_gate_kernel,
        out_shape=jax.ShapeDtypeStruct((B, fourHp), jnp.float32),
        grid_spec=pltpu.PrefetchScalarGridSpec(
            num_scalar_prefetch=0,
            grid=(1,),
            in_specs=[full(features.shape), full(w_bridge.shape),
                      full(b_bridge.shape), full(gamma.shape),
                      full(beta.shape), full(wih1_enc.shape)],
            out_specs=full((B, fourHp)),
        ),
        compiler_params=pltpu.CompilerParams(dimension_semantics=("arbitrary",)),
    )(features, w_bridge, b_bridge, gamma, beta, wih1_enc)


# ----------------------------------------------------------------------------
# Recurrent decoder kernel: 2-layer LSTM (PyTorch gate order i, f, g, o).
# The layer-1 *input* pre-activations (emb @ w_ih1_emb + b1) arrive precomputed
# as xg_all [S, B, 4Hp]; the encoder contribution cg [B, 4Hp] is constant over
# time. Only the recurrent h @ w_hh (and layer-2 input) matmuls run per step.
# Emits h2 per step into [S, B, Hp]; the vocab projection is deferred.
# ----------------------------------------------------------------------------
def _decoder_kernel(xg_ref, cg_ref, whh1_ref, wih2_ref, whh2_ref, b2_ref, h_out_ref):
    S, Bp, fourHp = xg_ref.shape
    Hp = fourHp // 4

    whh1 = whh1_ref[...]
    wih2 = wih2_ref[...]
    whh2 = whh2_ref[...]
    cg = cg_ref[...]
    b2 = b2_ref[...]

    def gate_update(pre, c):
        # 128-aligned gate slices (Hp is a multiple of 128): whole-vreg views.
        i = jax.nn.sigmoid(pre[:, 0:Hp])
        f = jax.nn.sigmoid(pre[:, Hp:2 * Hp])
        g = jnp.tanh(pre[:, 2 * Hp:3 * Hp])
        o = jax.nn.sigmoid(pre[:, 3 * Hp:4 * Hp])
        c_new = f * c + i * g
        return o * jnp.tanh(c_new), c_new

    def step(t, carry):
        h1, c1, h2, c2 = carry
        g1 = xg_ref[t] + cg + jnp.dot(h1, whh1, preferred_element_type=jnp.float32)
        h1n, c1n = gate_update(g1, c1)
        g2 = (jnp.dot(h1n, wih2, preferred_element_type=jnp.float32)
              + jnp.dot(h2, whh2, preferred_element_type=jnp.float32) + b2)
        h2n, c2n = gate_update(g2, c2)
        h_out_ref[t] = h2n
        return (h1n, c1n, h2n, c2n)

    zero = jnp.zeros((Bp, Hp), jnp.float32)
    jax.lax.fori_loop(0, S, step, (zero, zero, zero, zero), unroll=True)


def lstm_decoder(xg_all, cg, whh1, wih2, whh2, b2):
    S, Bp, fourHp = xg_all.shape
    Hp = fourHp // 4

    def full(shape):
        n = len(shape)
        return pl.BlockSpec(shape, lambda i, _n=n: (0,) * _n)

    return pl.pallas_call(
        _decoder_kernel,
        out_shape=jax.ShapeDtypeStruct((S, Bp, Hp), jnp.float32),
        grid_spec=pltpu.PrefetchScalarGridSpec(
            num_scalar_prefetch=0,
            grid=(1,),
            in_specs=[full(xg_all.shape), full(cg.shape), full(whh1.shape),
                      full(wih2.shape), full(whh2.shape), full(b2.shape)],
            out_specs=full((S, Bp, Hp)),
        ),
        compiler_params=pltpu.CompilerParams(dimension_semantics=("arbitrary",)),
    )(xg_all, cg, whh1, wih2, whh2, b2)


# ----------------------------------------------------------------------------
# BaseLine2.forward
# ----------------------------------------------------------------------------
def baseline2_forward(image, caption, params):
    """image: [B, 3, H, W] f32 (NCHW); caption: [B, S] int32 -> [B, S, V] f32."""
    B = image.shape[0]
    S = caption.shape[1]
    E = params["we"].shape[1]
    H = params["whh1"].shape[0]
    V = params["wp"].shape[1]

    Hp = _round_up(H, 128)        # 128-lane-aligned hidden / gate blocks
    Bp = _round_up(B, 8)          # sublane-aligned batch

    # ---- Pad decoder weights to the aligned layout (zero padding keeps math exact) ----
    wih1 = params["wih1"]                                   # [2E, 4H]
    wih1_emb = _pad_gate_cols(wih1[:E], H, Hp)              # [E, 4Hp]  (token side)
    wih1_enc = _pad_gate_cols(wih1[E:], H, Hp)              # [E, 4Hp]  (encoder side)
    b1 = _pad_gate_cols(params["b1"], H, Hp)                # [1, 4Hp]
    whh1 = _pad_gate_cols(_pad_rows(params["whh1"], H, Hp), H, Hp)   # [Hp, 4Hp]
    wih2 = _pad_gate_cols(_pad_rows(params["wih2"], H, Hp), H, Hp)   # [Hp, 4Hp]
    whh2 = _pad_gate_cols(_pad_rows(params["whh2"], H, Hp), H, Hp)   # [Hp, 4Hp]
    b2 = _pad_gate_cols(params["b2"], H, Hp)                # [1, 4Hp]
    wp = _pad_rows(params["wp"], H, Hp)                     # [Hp, V]

    # ---- Encoder (ResNet stand-in) + fused bridge/BN/enc-gate Pallas kernel ----
    pooled = jnp.mean(image, axis=(2, 3))                   # [B, 3]
    features = pooled @ params["w_feat"]                    # [B, 2048]
    cg = encoder_bridge_gate(features, params["w_bridge"], params["b_bridge"],
                             params["bn_gamma"], params["bn_beta"], wih1_enc)  # [B, 4Hp]
    cg = jnp.pad(cg, ((0, Bp - B), (0, 0)))                 # [Bp, 4Hp]

    # ---- Embedding of [<pad>, caption[:, :-1]] (glue: gather in plain JAX) ----
    padded_tok = jnp.concatenate(
        [jnp.zeros((B, 1), dtype=jnp.int32), caption], axis=1)[:, :S]    # [B, S]
    emb = jnp.take(params["we"], padded_tok, axis=0)        # [B, S, E]
    emb_sbe = jnp.transpose(emb, (1, 0, 2)).astype(jnp.float32)          # [S, B, E]
    emb_sbe = jnp.pad(emb_sbe, ((0, 0), (0, Bp - B), (0, 0)))            # [S, Bp, E]

    # ---- Hoisted layer-1 input projection: one batched matmul over S*Bp rows ----
    xg_flat = matmul_bias(emb_sbe.reshape(S * Bp, E), wih1_emb, b1)      # [S*Bp, 4Hp]
    xg_all = xg_flat.reshape(S, Bp, 4 * Hp)

    # ---- Recurrent-only decoder (states + weights resident in VMEM) ----
    h_all = lstm_decoder(xg_all, cg, whh1, wih2, whh2, b2)               # [S, Bp, Hp]

    # ---- Deferred vocab projection: one batched lane-dense matmul ----
    logits_flat = matmul_bias(h_all.reshape(S * Bp, Hp), wp, params["bp"])  # [S*Bp, V]
    scores = logits_flat.reshape(S, Bp, V)[:, :B, :]                     # [S, B, V]
    return jnp.transpose(scores, (1, 0, 2))                              # [B, S, V]


# ----------------------------------------------------------------------------
# Pure-JAX reference (same math, unpadded) to sanity-check the kernels.
# ----------------------------------------------------------------------------
def baseline2_ref(image, caption, params):
    B = image.shape[0]
    S = caption.shape[1]
    H = params["whh1"].shape[0]

    pooled = jnp.mean(image, axis=(2, 3))
    features = pooled @ params["w_feat"]
    z = features @ params["w_bridge"] + params["b_bridge"]
    mean = jnp.mean(z, axis=0, keepdims=True)
    var = jnp.mean((z - mean) ** 2, axis=0, keepdims=True)
    enc = params["bn_gamma"] * (z - mean) / jnp.sqrt(var + 1e-5) + params["bn_beta"]

    padded = jnp.concatenate([jnp.zeros((B, 1), jnp.int32), caption], axis=1)[:, :S]
    emb = jnp.take(params["we"], padded, axis=0)

    def cell(x, h, c, wih, whh, b):
        g = x @ wih + h @ whh + b
        i, f, gg, o = (jax.nn.sigmoid(g[:, :H]), jax.nn.sigmoid(g[:, H:2 * H]),
                       jnp.tanh(g[:, 2 * H:3 * H]), jax.nn.sigmoid(g[:, 3 * H:]))
        c = f * c + i * gg
        return o * jnp.tanh(c), c

    h1 = c1 = h2 = c2 = jnp.zeros((B, H), jnp.float32)
    outs = []
    for t in range(S):
        x = jnp.concatenate([emb[:, t, :], enc], axis=1)
        h1, c1 = cell(x, h1, c1, params["wih1"], params["whh1"], params["b1"])
        h2, c2 = cell(h1, h2, c2, params["wih2"], params["whh2"], params["b2"])
        outs.append(h2 @ params["wp"] + params["bp"])
    return jnp.stack(outs, axis=1)


# ----------------------------------------------------------------------------
# Deterministic parameter construction (shapes from BaseLine2.__init__).
# ----------------------------------------------------------------------------
def make_params(key, vocab_size, embed_size, h_size):
    ks = jax.random.split(key, 12)
    sc = 0.05
    twoE, fourH = 2 * embed_size, 4 * h_size
    return {
        "we":       sc * jax.random.normal(ks[0], (vocab_size, embed_size), jnp.float32),
        "w_feat":   sc * jax.random.normal(ks[1], (3, 2048), jnp.float32),
        "w_bridge": sc * jax.random.normal(ks[2], (2048, embed_size), jnp.float32),
        "b_bridge": sc * jax.random.normal(ks[3], (1, embed_size), jnp.float32),
        "bn_gamma": jnp.ones((1, embed_size), jnp.float32),
        "bn_beta":  jnp.zeros((1, embed_size), jnp.float32),
        # LSTM layer 1 (input = 2E): stored pre-transposed as [in, 4H]; b = b_ih + b_hh
        "wih1": sc * jax.random.normal(ks[4], (twoE, fourH), jnp.float32),
        "whh1": sc * jax.random.normal(ks[5], (h_size, fourH), jnp.float32),
        "b1":   sc * jax.random.normal(ks[6], (1, fourH), jnp.float32),
        # LSTM layer 2 (input = H)
        "wih2": sc * jax.random.normal(ks[7], (h_size, fourH), jnp.float32),
        "whh2": sc * jax.random.normal(ks[8], (h_size, fourH), jnp.float32),
        "b2":   sc * jax.random.normal(ks[9], (1, fourH), jnp.float32),
        # projection H -> V
        "wp":   sc * jax.random.normal(ks[10], (h_size, vocab_size), jnp.float32),
        "bp":   sc * jax.random.normal(ks[11], (1, vocab_size), jnp.float32),
    }


if __name__ == "__main__":
    VOCAB, EMBED, HSIZE = 32, 16, 32
    B, SEQ, SPATIAL = 2, 8, 16

    key = jax.random.PRNGKey(0)
    k_img, k_cap, k_par = jax.random.split(key, 3)

    image = jax.random.normal(k_img, (B, 3, SPATIAL, SPATIAL), jnp.float32)
    caption = jax.random.randint(k_cap, (B, SEQ), 0, VOCAB, dtype=jnp.int32)
    params = make_params(k_par, VOCAB, EMBED, HSIZE)

    scores = jax.jit(baseline2_forward)(image, caption, params)
    scores = jax.block_until_ready(scores)

    ref = baseline2_ref(image, caption, params)
    assert scores.shape == (B, SEQ, VOCAB)
    assert jnp.allclose(scores, ref, rtol=1e-4, atol=1e-4), "mismatch vs reference"

    print("KERNEL_OK")
</pallas_src>

<mosaic_0001>
module attributes {stable_mosaic.version = 11 : i64} {
  func.func @_matmul_bias_kernel(%arg0: i32, %arg1: i32, %arg2: i32, %arg3: memref<64x128xf32, #tpu.memory_space<vmem>>, %arg4: memref<128x512xf32, #tpu.memory_space<vmem>>, %arg5: memref<1x512xf32, #tpu.memory_space<vmem>>, %arg6: memref<64x512xf32, #tpu.memory_space<vmem>>, %arg7: memref<64x512xf32, #tpu.memory_space<vmem>>) attributes {dimension_semantics = [#tpu.dimension_semantics<parallel>, #tpu.dimension_semantics<parallel>, #tpu.dimension_semantics<arbitrary>], iteration_bounds = array<i64: 1, 1, 1>, scalar_prefetch = 0 : i64, scratch_operands = 1 : i64, tpu.core_type = #tpu.core_type<tc>, window_params = [{transform_indices = @transform_0, window_bounds = array<i64: 64, 128>}, {transform_indices = @transform_1, window_bounds = array<i64: 128, 512>}, {transform_indices = @transform_2, window_bounds = array<i64: 1, 512>}, {transform_indices = @transform_3, window_bounds = array<i64: 64, 512>}]} {
    %c0_i32 = arith.constant 0 : i32
    %0 = arith.cmpi eq, %arg2, %c0_i32 : i32
    %1 = arith.extui %0 : i1 to i32
    %c0_i32_0 = arith.constant 0 : i32
    %2 = arith.cmpi ne, %1, %c0_i32_0 : i32
    scf.if %2 {
      %cst_10 = arith.constant 0.000000e+00 : f32
      %12 = vector.broadcast %cst_10 : f32 to vector<64x512xf32>
      %c0_11 = arith.constant 0 : index
      %c0_12 = arith.constant 0 : index
      %13 = vector.load %arg7[%c0_11, %c0_12] : memref<64x512xf32, #tpu.memory_space<vmem>>, vector<64x512xf32>
      tpu.vector_store %arg7[%c0_11, %c0_12], %12 {strides = array<i32>} : memref<64x512xf32, #tpu.memory_space<vmem>>, vector<64x512xf32>,
    } else {
    }
    %c0 = arith.constant 0 : index
    %c0_1 = arith.constant 0 : index
    %3 = vector.load %arg7[%c0, %c0_1] : memref<64x512xf32, #tpu.memory_space<vmem>>, vector<64x512xf32>
    %c0_2 = arith.constant 0 : index
    %c0_3 = arith.constant 0 : index
    %4 = vector.load %arg3[%c0_2, %c0_3] : memref<64x128xf32, #tpu.memory_space<vmem>>, vector<64x128xf32>
    %c0_4 = arith.constant 0 : index
    %c0_5 = arith.constant 0 : index
    %5 = vector.load %arg4[%c0_4, %c0_5] : memref<128x512xf32, #tpu.memory_space<vmem>>, vector<128x512xf32>
    %cst = arith.constant dense<0.000000e+00> : vector<64x512xf32>
    %6 = tpu.matmul %4, %5, %cst {dimension_numbers = #tpu.dot_dimension_numbers<[1], [0], [0], [1], [0, 0, 1, 1], [], []>} : vector<64x128xf32>, vector<128x512xf32>, vector<64x512xf32> -> vector<64x512xf32>
    %7 = arith.addf %3, %6 : vector<64x512xf32>
    %c0_6 = arith.constant 0 : index
    %c0_7 = arith.constant 0 : index
    %8 = vector.load %arg7[%c0_6, %c0_7] : memref<64x512xf32, #tpu.memory_space<vmem>>, vector<64x512xf32>
    tpu.vector_store %arg7[%c0_6, %c0_7], %7 {strides = array<i32>} : memref<64x512xf32, #tpu.memory_space<vmem>>, vector<64x512xf32>,
    %c0_i32_8 = arith.constant 0 : i32
    %9 = arith.cmpi eq, %arg2, %c0_i32_8 : i32
    %10 = arith.extui %9 : i1 to i32
    %c0_i32_9 = arith.constant 0 : i32
    %11 = arith.cmpi ne, %10, %c0_i32_9 : i32
    scf.if %11 {
      %c0_10 = arith.constant 0 : index
      %c0_11 = arith.constant 0 : index
      %12 = vector.load %arg7[%c0_10, %c0_11] : memref<64x512xf32, #tpu.memory_space<vmem>>, vector<64x512xf32>
      %c0_12 = arith.constant 0 : index
      %c0_13 = arith.constant 0 : index
      %13 = vector.load %arg5[%c0_12, %c0_13] : memref<1x512xf32, #tpu.memory_space<vmem>>, vector<1x512xf32>
      %14 = vector.broadcast %13 : vector<1x512xf32> to vector<64x512xf32>
      %15 = arith.addf %12, %14 : vector<64x512xf32>
      %c0_14 = arith.constant 0 : index
      %c0_15 = arith.constant 0 : index
      %16 = vector.load %arg6[%c0_14, %c0_15] : memref<64x512xf32, #tpu.memory_space<vmem>>, vector<64x512xf32>
      tpu.vector_store %arg6[%c0_14, %c0_15], %15 {strides = array<i32>} : memref<64x512xf32, #tpu.memory_space<vmem>>, vector<64x512xf32>,
    } else {
    }
    return
  }
  func.func @transform_0(%arg0: i32, %arg1: i32, %arg2: i32) -> (i32, i32) {
    %c0_i32 = arith.constant 0 : i32
    return %arg0, %arg2 : i32, i32
  }
  func.func @transform_1(%arg0: i32, %arg1: i32, %arg2: i32) -> (i32, i32) {
    %c0_i32 = arith.constant 0 : i32
    return %arg2, %arg1 : i32, i32
  }
  func.func @transform_2(%arg0: i32, %arg1: i32, %arg2: i32) -> (i32, i32) {
    %c0_i32 = arith.constant 0 : i32
    %c0_i32_0 = arith.constant 0 : i32
    return %c0_i32, %arg1 : i32, i32
  }
  func.func @transform_3(%arg0: i32, %arg1: i32, %arg2: i32) -> (i32, i32) {
    %c0_i32 = arith.constant 0 : i32
    return %arg0, %arg1 : i32, i32
  }
}

module attributes {stable_mosaic.version = 11 : i64} {
  func.func @_encoder_gate_kernel(%arg0: i32, %arg1: memref<2x2048xf32, #tpu.memory_space<vmem>>, %arg2: memref<2048x16xf32, #tpu.memory_space<vmem>>, %arg3: memref<1x16xf32, #tpu.memory_space<vmem>>, %arg4: memref<1x16xf32, #tpu.memory_space<vmem>>, %arg5: memref<1x16xf32, #tpu.memory_space<vmem>>, %arg6: memref<16x512xf32, #tpu.memory_space<vmem>>, %arg7: memref<2x512xf32, #tpu.memory_space<vmem>>) attributes {dimension_semantics = [#tpu.dimension_semantics<arbitrary>], iteration_bounds = array<i64: 1>, scalar_prefetch = 0 : i64, scratch_operands = 0 : i64, tpu.core_type = #tpu.core_type<tc>, window_params = [{pipeline_mode = #tpu.pipeline_mode<synchronous>, transform_indices = @transform_0, window_bounds = array<i64: 2, 2048>}, {pipeline_mode = #tpu.pipeline_mode<synchronous>, transform_indices = @transform_1, window_bounds = array<i64: 2048, 16>}, {pipeline_mode = #tpu.pipeline_mode<synchronous>, transform_indices = @transform_2, window_bounds = array<i64: 1, 16>}, {pipeline_mode = #tpu.pipeline_mode<synchronous>, transform_indices = @transform_3, window_bounds = array<i64: 1, 16>}, {pipeline_mode = #tpu.pipeline_mode<synchronous>, transform_indices = @transform_4, window_bounds = array<i64: 1, 16>}, {pipeline_mode = #tpu.pipeline_mode<synchronous>, transform_indices = @transform_5, window_bounds = array<i64: 16, 512>}, {pipeline_mode = #tpu.pipeline_mode<synchronous>, transform_indices = @transform_6, window_bounds = array<i64: 2, 512>}]} {
    %c0 = arith.constant 0 : index
    %c0_0 = arith.constant 0 : index
    %0 = vector.load %arg1[%c0, %c0_0] : memref<2x2048xf32, #tpu.memory_space<vmem>>, vector<2x2048xf32>
    %c0_1 = arith.constant 0 : index
    %c0_2 = arith.constant 0 : index
    %1 = vector.load %arg2[%c0_1, %c0_2] : memref<2048x16xf32, #tpu.memory_space<vmem>>, vector<2048x16xf32>
    %cst = arith.constant dense<0.000000e+00> : vector<2x16xf32>
    %2 = tpu.matmul %0, %1, %cst {dimension_numbers = #tpu.dot_dimension_numbers<[1], [0], [0], [1], [0, 0, 1, 1], [], []>} : vector<2x2048xf32>, vector<2048x16xf32>, vector<2x16xf32> -> vector<2x16xf32>
    %c0_3 = arith.constant 0 : index
    %c0_4 = arith.constant 0 : index
    %3 = vector.load %arg3[%c0_3, %c0_4] : memref<1x16xf32, #tpu.memory_space<vmem>>, vector<1x16xf32>
    %4 = vector.broadcast %3 : vector<1x16xf32> to vector<2x16xf32>
    %5 = arith.addf %2, %4 : vector<2x16xf32>
    %cst_5 = arith.constant dense<0.000000e+00> : vector<16xf32>
    %6 = vector.multi_reduction <add>, %5, %cst_5 [0] : vector<2x16xf32> to vector<16xf32>
    %7 = vector.shape_cast %6 : vector<16xf32> to vector<1x16xf32>
    %cst_6 = arith.constant 2.000000e+00 : f32
    %8 = vector.broadcast %cst_6 : f32 to vector<1x16xf32>
    %9 = arith.divf %7, %8 : vector<1x16xf32>
    %10 = vector.broadcast %9 : vector<1x16xf32> to vector<2x16xf32>
    %11 = arith.subf %5, %10 : vector<2x16xf32>
    %12 = arith.mulf %11, %11 : vector<2x16xf32>
    %cst_7 = arith.constant dense<0.000000e+00> : vector<16xf32>
    %13 = vector.multi_reduction <add>, %12, %cst_7 [0] : vector<2x16xf32> to vector<16xf32>
    %14 = vector.shape_cast %13 : vector<16xf32> to vector<1x16xf32>
    %cst_8 = arith.constant 2.000000e+00 : f32
    %15 = vector.broadcast %cst_8 : f32 to vector<1x16xf32>
    %16 = arith.divf %14, %15 : vector<1x16xf32>
    %c0_9 = arith.constant 0 : index
    %c0_10 = arith.constant 0 : index
    %17 = vector.load %arg4[%c0_9, %c0_10] : memref<1x16xf32, #tpu.memory_space<vmem>>, vector<1x16xf32>
    %18 = vector.broadcast %9 : vector<1x16xf32> to vector<2x16xf32>
    %19 = arith.subf %5, %18 : vector<2x16xf32>
    %20 = vector.broadcast %17 : vector<1x16xf32> to vector<2x16xf32>
    %21 = arith.mulf %20, %19 : vector<2x16xf32>
    %cst_11 = arith.constant 9.99999974E-6 : f32
    %22 = vector.broadcast %cst_11 : f32 to vector<1x16xf32>
    %23 = arith.addf %16, %22 : vector<1x16xf32>
    %24 = math.rsqrt %23 : vector<1x16xf32>
    %25 = vector.broadcast %24 : vector<1x16xf32> to vector<2x16xf32>
    %26 = arith.mulf %21, %25 : vector<2x16xf32>
    %c0_12 = arith.constant 0 : index
    %c0_13 = arith.constant 0 : index
    %27 = vector.load %arg5[%c0_12, %c0_13] : memref<1x16xf32, #tpu.memory_space<vmem>>, vector<1x16xf32>
    %28 = vector.broadcast %27 : vector<1x16xf32> to vector<2x16xf32>
    %29 = arith.addf %26, %28 : vector<2x16xf32>
    %c0_14 = arith.constant 0 : index
    %c0_15 = arith.constant 0 : index
    %30 = vector.load %arg6[%c0_14, %c0_15] : memref<16x512xf32, #tpu.memory_space<vmem>>, vector<16x512xf32>
    %cst_16 = arith.constant dense<0.000000e+00> : vector<2x512xf32>
    %31 = tpu.matmul %29, %30, %cst_16 {dimension_numbers = #tpu.dot_dimension_numbers<[1], [0], [0], [1], [0, 0, 1, 1], [], []>} : vector<2x16xf32>, vector<16x512xf32>, vector<2x512xf32> -> vector<2x512xf32>
    %c0_17 = arith.constant 0 : index
    %c0_18 = arith.constant 0 : index
    %32 = vector.load %arg7[%c0_17, %c0_18] : memref<2x512xf32, #tpu.memory_space<vmem>>, vector<2x512xf32>
    tpu.vector_store %arg7[%c0_17, %c0_18], %31 {strides = array<i32>} : memref<2x512xf32, #tpu.memory_space<vmem>>, vector<2x512xf32>,
    return
  }
  func.func @transform_0(%arg0: i32) -> (i32, i32) {
    %c0_i32 = arith.constant 0 : i32
    %c0_i32_0 = arith.constant 0 : i32
    %c0_i32_1 = arith.constant 0 : i32
    return %c0_i32, %c0_i32_0 : i32, i32
  }
  func.func @transform_1(%arg0: i32) -> (i32, i32) {
    %c0_i32 = arith.constant 0 : i32
    %c0_i32_0 = arith.constant 0 : i32
    %c0_i32_1 = arith.constant 0 : i32
    return %c0_i32, %c0_i32_0 : i32, i32
  }
  func.func @transform_2(%arg0: i32) -> (i32, i32) {
    %c0_i32 = arith.constant 0 : i32
    %c0_i32_0 = arith.constant 0 : i32
    %c0_i32_1 = arith.constant 0 : i32
    return %c0_i32, %c0_i32_0 : i32, i32
  }
  func.func @transform_3(%arg0: i32) -> (i32, i32) {
    %c0_i32 = arith.constant 0 : i32
    %c0_i32_0 = arith.constant 0 : i32
    %c0_i32_1 = arith.constant 0 : i32
    return %c0_i32, %c0_i32_0 : i32, i32
  }
  func.func @transform_4(%arg0: i32) -> (i32, i32) {
    %c0_i32 = arith.constant 0 : i32
    %c0_i32_0 = arith.constant 0 : i32
    %c0_i32_1 = arith.constant 0 : i32
    return %c0_i32, %c0_i32_0 : i32, i32
  }
  func.func @transform_5(%arg0: i32) -> (i32, i32) {
    %c0_i32 = arith.constant 0 : i32
    %c0_i32_0 = arith.constant 0 : i32
    %c0_i32_1 = arith.constant 0 : i32
    return %c0_i32, %c0_i32_0 : i32, i32
  }
  func.func @transform_6(%arg0: i32) -> (i32, i32) {
    %c0_i32 = arith.constant 0 : i32
    %c0_i32_0 = arith.constant 0 : i32
    %c0_i32_1 = arith.constant 0 : i32
    return %c0_i32, %c0_i32_0 : i32, i32
  }
}

module attributes {stable_mosaic.version = 11 : i64} {
  func.func @_decoder_kernel(%arg0: i32, %arg1: memref<8x8x512xf32, #tpu.memory_space<vmem>>, %arg2: memref<8x512xf32, #tpu.memory_space<vmem>>, %arg3: memref<128x512xf32, #tpu.memory_space<vmem>>, %arg4: memref<128x512xf32, #tpu.memory_space<vmem>>, %arg5: memref<128x512xf32, #tpu.memory_space<vmem>>, %arg6: memref<1x512xf32, #tpu.memory_space<vmem>>, %arg7: memref<8x8x128xf32, #tpu.memory_space<vmem>>) attributes {dimension_semantics = [#tpu.dimension_semantics<arbitrary>], iteration_bounds = array<i64: 1>, scalar_prefetch = 0 : i64, scratch_operands = 0 : i64, tpu.core_type = #tpu.core_type<tc>, window_params = [{pipeline_mode = #tpu.pipeline_mode<synchronous>, transform_indices = @transform_0, window_bounds = array<i64: 8, 8, 512>}, {pipeline_mode = #tpu.pipeline_mode<synchronous>, transform_indices = @transform_1, window_bounds = array<i64: 8, 512>}, {pipeline_mode = #tpu.pipeline_mode<synchronous>, transform_indices = @transform_2, window_bounds = array<i64: 128, 512>}, {pipeline_mode = #tpu.pipeline_mode<synchronous>, transform_indices = @transform_3, window_bounds = array<i64: 128, 512>}, {pipeline_mode = #tpu.pipeline_mode<synchronous>, transform_indices = @transform_4, window_bounds = array<i64: 128, 512>}, {pipeline_mode = #tpu.pipeline_mode<synchronous>, transform_indices = @transform_5, window_bounds = array<i64: 1, 512>}, {pipeline_mode = #tpu.pipeline_mode<synchronous>, transform_indices = @transform_6, window_bounds = array<i64: 8, 8, 128>}]} {
    %c0 = arith.constant 0 : index
    %c0_0 = arith.constant 0 : index
    %0 = vector.load %arg3[%c0, %c0_0] : memref<128x512xf32, #tpu.memory_space<vmem>>, vector<128x512xf32>
    %c0_1 = arith.constant 0 : index
    %c0_2 = arith.constant 0 : index
    %1 = vector.load %arg4[%c0_1, %c0_2] : memref<128x512xf32, #tpu.memory_space<vmem>>, vector<128x512xf32>
    %c0_3 = arith.constant 0 : index
    %c0_4 = arith.constant 0 : index
    %2 = vector.load %arg5[%c0_3, %c0_4] : memref<128x512xf32, #tpu.memory_space<vmem>>, vector<128x512xf32>
    %c0_5 = arith.constant 0 : index
    %c0_6 = arith.constant 0 : index
    %3 = vector.load %arg2[%c0_5, %c0_6] : memref<8x512xf32, #tpu.memory_space<vmem>>, vector<8x512xf32>
    %c0_7 = arith.constant 0 : index
    %c0_8 = arith.constant 0 : index
    %4 = vector.load %arg6[%c0_7, %c0_8] : memref<1x512xf32, #tpu.memory_space<vmem>>, vector<1x512xf32>
    %cst = arith.constant 0.000000e+00 : f32
    %5 = vector.broadcast %cst : f32 to vector<8x128xf32>
    %c0_i32 = arith.constant 0 : i32
    %6 = arith.index_cast %c0_i32 : i32 to index
    %c0_9 = arith.constant 0 : index
    %c0_10 = arith.constant 0 : index
    %7 = vector.load %arg1[%6, %c0_9, %c0_10] : memref<8x8x512xf32, #tpu.memory_space<vmem>>, vector<1x8x512xf32>
    %8 = vector.shape_cast %7 : vector<1x8x512xf32> to vector<8x512xf32>
    %9 = arith.addf %8, %3 : vector<8x512xf32>
    %cst_11 = arith.constant dense<0.000000e+00> : vector<8x512xf32>
    %10 = tpu.matmul %5, %0, %cst_11 {dimension_numbers = #tpu.dot_dimension_numbers<[1], [0], [0], [1], [0, 0, 1, 1], [], []>} : vector<8x128xf32>, vector<128x512xf32>, vector<8x512xf32> -> vector<8x512xf32>
    %11 = arith.addf %9, %10 : vector<8x512xf32>
    %12 = vector.extract_strided_slice %11 {offsets = [0, 0], sizes = [8, 128], strides = [1, 1]} : vector<8x512xf32> to vector<8x128xf32>
    %13 = arith.negf %12 : vector<8x128xf32>
    %14 = math.exp %13 : vector<8x128xf32>
    %cst_12 = arith.constant 1.000000e+00 : f32
    %15 = vector.broadcast %cst_12 : f32 to vector<8x128xf32>
    %16 = arith.addf %15, %14 : vector<8x128xf32>
    %17 = arith.divf %15, %16 : vector<8x128xf32>
    %18 = vector.extract_strided_slice %11 {offsets = [0, 128], sizes = [8, 128], strides = [1, 1]} : vector<8x512xf32> to vector<8x128xf32>
    %19 = arith.negf %18 : vector<8x128xf32>
    %20 = math.exp %19 : vector<8x128xf32>
    %cst_13 = arith.constant 1.000000e+00 : f32
    %21 = vector.broadcast %cst_13 : f32 to vector<8x128xf32>
    %22 = arith.addf %21, %20 : vector<8x128xf32>
    %23 = arith.divf %21, %22 : vector<8x128xf32>
    %24 = vector.extract_strided_slice %11 {offsets = [0, 256], sizes = [8, 128], strides = [1, 1]} : vector<8x512xf32> to vector<8x128xf32>
    %25 = math.tanh %24 : vector<8x128xf32>
    %26 = vector.extract_strided_slice %11 {offsets = [0, 384], sizes = [8, 128], strides = [1, 1]} : vector<8x512xf32> to vector<8x128xf32>
    %27 = arith.negf %26 : vector<8x128xf32>
    %28 = math.exp %27 : vector<8x128xf32>
    %cst_14 = arith.constant 1.000000e+00 : f32
    %29 = vector.broadcast %cst_14 : f32 to vector<8x128xf32>
    %30 = arith.addf %29, %28 : vector<8x128xf32>
    %31 = arith.divf %29, %30 : vector<8x128xf32>
    %32 = arith.mulf %23, %5 : vector<8x128xf32>
    %33 = arith.mulf %17, %25 : vector<8x128xf32>
    %34 = arith.addf %32, %33 : vector<8x128xf32>
    %35 = math.tanh %34 : vector<8x128xf32>
    %36 = arith.mulf %31, %35 : vector<8x128xf32>
    %cst_15 = arith.constant dense<0.000000e+00> : vector<8x512xf32>
    %37 = tpu.matmul %36, %1, %cst_15 {dimension_numbers = #tpu.dot_dimension_numbers<[1], [0], [0], [1], [0, 0, 1, 1], [], []>} : vector<8x128xf32>, vector<128x512xf32>, vector<8x512xf32> -> vector<8x512xf32>
    %cst_16 = arith.constant dense<0.000000e+00> : vector<8x512xf32>
    %38 = tpu.matmul %5, %2, %cst_16 {dimension_numbers = #tpu.dot_dimension_numbers<[1], [0], [0], [1], [0, 0, 1, 1], [], []>} : vector<8x128xf32>, vector<128x512xf32>, vector<8x512xf32> -> vector<8x512xf32>
    %39 = arith.addf %37, %38 : vector<8x512xf32>
    %40 = vector.broadcast %4 : vector<1x512xf32> to vector<8x512xf32>
    %41 = arith.addf %39, %40 : vector<8x512xf32>
    %42 = vector.extract_strided_slice %41 {offsets = [0, 0], sizes = [8, 128], strides = [1, 1]} : vector<8x512xf32> to vector<8x128xf32>
    %43 = arith.negf %42 : vector<8x128xf32>
    %44 = math.exp %43 : vector<8x128xf32>
    %cst_17 = arith.constant 1.000000e+00 : f32
    %45 = vector.broadcast %cst_17 : f32 to vector<8x128xf32>
    %46 = arith.addf %45, %44 : vector<8x128xf32>
    %47 = arith.divf %45, %46 : vector<8x128xf32>
    %48 = vector.extract_strided_slice %41 {offsets = [0, 128], sizes = [8, 128], strides = [1, 1]} : vector<8x512xf32> to vector<8x128xf32>
    %49 = arith.negf %48 : vector<8x128xf32>
    %50 = math.exp %49 : vector<8x128xf32>
    %cst_18 = arith.constant 1.000000e+00 : f32
    %51 = vector.broadcast %cst_18 : f32 to vector<8x128xf32>
    %52 = arith.addf %51, %50 : vector<8x128xf32>
    %53 = arith.divf %51, %52 : vector<8x128xf32>
    %54 = vector.extract_strided_slice %41 {offsets = [0, 256], sizes = [8, 128], strides = [1, 1]} : vector<8x512xf32> to vector<8x128xf32>
    %55 = math.tanh %54 : vector<8x128xf32>
    %56 = vector.extract_strided_slice %41 {offsets = [0, 384], sizes = [8, 128], strides = [1, 1]} : vector<8x512xf32> to vector<8x128xf32>
    %57 = arith.negf %56 : vector<8x128xf32>
    %58 = math.exp %57 : vector<8x128xf32>
    %cst_19 = arith.constant 1.000000e+00 : f32
    %59 = vector.broadcast %cst_19 : f32 to vector<8x128xf32>
    %60 = arith.addf %59, %58 : vector<8x128xf32>
    %61 = arith.divf %59, %60 : vector<8x128xf32>
    %62 = arith.mulf %53, %5 : vector<8x128xf32>
    %63 = arith.mulf %47, %55 : vector<8x128xf32>
    %64 = arith.addf %62, %63 : vector<8x128xf32>
    %65 = math.tanh %64 : vector<8x128xf32>
    %66 = arith.mulf %61, %65 : vector<8x128xf32>
    %67 = arith.index_cast %c0_i32 : i32 to index
    %c0_20 = arith.constant 0 : index
    %c0_21 = arith.constant 0 : index
    %68 = vector.load %arg7[%67, %c0_20, %c0_21] : memref<8x8x128xf32, #tpu.memory_space<vmem>>, vector<1x8x128xf32>
    %69 = vector.shape_cast %68 : vector<1x8x128xf32> to vector<8x128xf32>
    %70 = vector.shape_cast %66 : vector<8x128xf32> to vector<1x8x128xf32>
    tpu.vector_store %arg7[%67, %c0_20, %c0_21], %70 {strides = array<i32>} : memref<8x8x128xf32, #tpu.memory_space<vmem>>, vector<1x8x128xf32>,
    %c1_i32 = arith.constant 1 : i32
    %71 = arith.index_cast %c1_i32 : i32 to index
    %c0_22 = arith.constant 0 : index
    %c0_23 = arith.constant 0 : index
    %72 = vector.load %arg1[%71, %c0_22, %c0_23] : memref<8x8x512xf32, #tpu.memory_space<vmem>>, vector<1x8x512xf32>
    %73 = vector.shape_cast %72 : vector<1x8x512xf32> to vector<8x512xf32>
    %74 = arith.addf %73, %3 : vector<8x512xf32>
    %cst_24 = arith.constant dense<0.000000e+00> : vector<8x512xf32>
    %75 = tpu.matmul %36, %0, %cst_24 {dimension_numbers = #tpu.dot_dimension_numbers<[1], [0], [0], [1], [0, 0, 1, 1], [], []>} : vector<8x128xf32>, vector<128x512xf32>, vector<8x512xf32> -> vector<8x512xf32>
    %76 = arith.addf %74, %75 : vector<8x512xf32>
    %77 = vector.extract_strided_slice %76 {offsets = [0, 0], sizes = [8, 128], strides = [1, 1]} : vector<8x512xf32> to vector<8x128xf32>
    %78 = arith.negf %77 : vector<8x128xf32>
    %79 = math.exp %78 : vector<8x128xf32>
    %cst_25 = arith.constant 1.000000e+00 : f32
    %80 = vector.broadcast %cst_25 : f32 to vector<8x128xf32>
    %81 = arith.addf %80, %79 : vector<8x128xf32>
    %82 = arith.divf %80, %81 : vector<8x128xf32>
    %83 = vector.extract_strided_slice %76 {offsets = [0, 128], sizes = [8, 128], strides = [1, 1]} : vector<8x512xf32> to vector<8x128xf32>
    %84 = arith.negf %83 : vector<8x128xf32>
    %85 = math.exp %84 : vector<8x128xf32>
    %cst_26 = arith.constant 1.000000e+00 : f32
    %86 = vector.broadcast %cst_26 : f32 to vector<8x128xf32>
    %87 = arith.addf %86, %85 : vector<8x128xf32>
    %88 = arith.divf %86, %87 : vector<8x128xf32>
    %89 = vector.extract_strided_slice %76 {offsets = [0, 256], sizes = [8, 128], strides = [1, 1]} : vector<8x512xf32> to vector<8x128xf32>
    %90 = math.tanh %89 : vector<8x128xf32>
    %91 = vector.extract_strided_slice %76 {offsets = [0, 384], sizes = [8, 128], strides = [1, 1]} : vector<8x512xf32> to vector<8x128xf32>
    %92 = arith.negf %91 : vector<8x128xf32>
    %93 = math.exp %92 : vector<8x128xf32>
    %cst_27 = arith.constant 1.000000e+00 : f32
    %94 = vector.broadcast %cst_27 : f32 to vector<8x128xf32>
    %95 = arith.addf %94, %93 : vector<8x128xf32>
    %96 = arith.divf %94, %95 : vector<8x128xf32>
    %97 = arith.mulf %88, %34 : vector<8x128xf32>
    %98 = arith.mulf %82, %90 : vector<8x128xf32>
    %99 = arith.addf %97, %98 : vector<8x128xf32>
    %100 = math.tanh %99 : vector<8x128xf32>
    %101 = arith.mulf %96, %100 : vector<8x128xf32>
    %cst_28 = arith.constant dense<0.000000e+00> : vector<8x512xf32>
    %102 = tpu.matmul %101, %1, %cst_28 {dimension_numbers = #tpu.dot_dimension_numbers<[1], [0], [0], [1], [0, 0, 1, 1], [], []>} : vector<8x128xf32>, vector<128x512xf32>, vector<8x512xf32> -> vector<8x512xf32>
    %cst_29 = arith.constant dense<0.000000e+00> : vector<8x512xf32>
    %103 = tpu.matmul %66, %2, %cst_29 {dimension_numbers = #tpu.dot_dimension_numbers<[1], [0], [0], [1], [0, 0, 1, 1], [], []>} : vector<8x128xf32>, vector<128x512xf32>, vector<8x512xf32> -> vector<8x512xf32>
    %104 = arith.addf %102, %103 : vector<8x512xf32>
    %105 = vector.broadcast %4 : vector<1x512xf32> to vector<8x512xf32>
    %106 = arith.addf %104, %105 : vector<8x512xf32>
    %107 = vector.extract_strided_slice %106 {offsets = [0, 0], sizes = [8, 128], strides = [1, 1]} : vector<8x512xf32> to vector<8x128xf32>
    %108 = arith.negf %107 : vector<8x128xf32>
    %109 = math.exp %108 : vector<8x128xf32>
    %cst_30 = arith.constant 1.000000e+00 : f32
    %110 = vector.broadcast %cst_30 : f32 to vector<8x128xf32>
    %111 = arith.addf %110, %109 : vector<8x128xf32>
    %112 = arith.divf %110, %111 : vector<8x128xf32>
    %113 = vector.extract_strided_slice %106 {offsets = [0, 128], sizes = [8, 128], strides = [1, 1]} : vector<8x512xf32> to vector<8x128xf32>
    %114 = arith.negf %113 : vector<8x128xf32>
    %115 = math.exp %114 : vector<8x128xf32>
    %cst_31 = arith.constant 1.000000e+00 : f32
    %116 = vector.broadcast %cst_31 : f32 to vector<8x128xf32>
    %117 = arith.addf %116, %115 : vector<8x128xf32>
    %118 = arith.divf %116, %117 : vector<8x128xf32>
    %119 = vector.extract_strided_slice %106 {offsets = [0, 256], sizes = [8, 128], strides = [1, 1]} : vector<8x512xf32> to vector<8x128xf32>
    %120 = math.tanh %119 : vector<8x128xf32>
    %121 = vector.extract_strided_slice %106 {offsets = [0, 384], sizes = [8, 128], strides = [1, 1]} : vector<8x512xf32> to vector<8x128xf32>
    %122 = arith.negf %121 : vector<8x128xf32>
    %123 = math.exp %122 : vector<8x128xf32>
    %cst_32 = arith.constant 1.000000e+00 : f32
    %124 = vector.broadcast %cst_32 : f32 to vector<8x128xf32>
    %125 = arith.addf %124, %123 : vector<8x128xf32>
    %126 = arith.divf %124, %125 : vector<8x128xf32>
    %127 = arith.mulf %118, %64 : vector<8x128xf32>
    %128 = arith.mulf %112, %120 : vector<8x128xf32>
    %129 = arith.addf %127, %128 : vector<8x128xf32>
    %130 = math.tanh %129 : vector<8x128xf32>
    %131 = arith.mulf %126, %130 : vector<8x128xf32>
    %132 = arith.index_cast %c1_i32 : i32 to index
    %c0_33 = arith.constant 0 : index
    %c0_34 = arith.constant 0 : index
    %133 = vector.load %arg7[%132, %c0_33, %c0_34] : memref<8x8x128xf32, #tpu.memory_space<vmem>>, vector<1x8x128xf32>
    %134 = vector.shape_cast %133 : vector<1x8x128xf32> to vector<8x128xf32>
    %135 = vector.shape_cast %131 : vector<8x128xf32> to vector<1x8x128xf32>
    tpu.vector_store %arg7[%132, %c0_33, %c0_34], %135 {strides = array<i32>} : memref<8x8x128xf32, #tpu.memory_space<vmem>>, vector<1x8x128xf32>,
    %c2_i32 = arith.constant 2 : i32
    %136 = arith.index_cast %c2_i32 : i32 to index
    %c0_35 = arith.constant 0 : index
    %c0_36 = arith.constant 0 : index
    %137 = vector.load %arg1[%136, %c0_35, %c0_36] : memref<8x8x512xf32, #tpu.memory_space<vmem>>, vector<1x8x512xf32>
    %138 = vector.shape_cast %137 : vector<1x8x512xf32> to vector<8x512xf32>
    %139 = arith.addf %138, %3 : vector<8x512xf32>
    %cst_37 = arith.constant dense<0.000000e+00> : vector<8x512xf32>
    %140 = tpu.matmul %101, %0, %cst_37 {dimension_numbers = #tpu.dot_dimension_numbers<[1], [0], [0], [1], [0, 0, 1, 1], [], []>} : vector<8x128xf32>, vector<128x512xf32>, vector<8x512xf32> -> vector<8x512xf32>
    %141 = arith.addf %139, %140 : vector<8x512xf32>
    %142 = vector.extract_strided_slice %141 {offsets = [0, 0], sizes = [8, 128], strides = [1, 1]} : vector<8x512xf32> to vector<8x128xf32>
    %143 = arith.negf %142 : vector<8x128xf32>
    %144 = math.exp %143 : vector<8x128xf32>
    %cst_38 = arith.constant 1.000000e+00 : f32
    %145 = vector.broadcast %cst_38 : f32 to vector<8x128xf32>
    %146 = arith.addf %145, %144 : vector<8x128xf32>
    %147 = arith.divf %145, %146 : vector<8x128xf32>
    %148 = vector.extract_strided_slice %141 {offsets = [0, 128], sizes = [8, 128], strides = [1, 1]} : vector<8x512xf32> to vector<8x128xf32>
    %149 = arith.negf %148 : vector<8x128xf32>
    %150 = math.exp %149 : vector<8x128xf32>
    %cst_39 = arith.constant 1.000000e+00 : f32
    %151 = vector.broadcast %cst_39 : f32 to vector<8x128xf32>
    %152 = arith.addf %151, %150 : vector<8x128xf32>
    %153 = arith.divf %151, %152 : vector<8x128xf32>
    %154 = vector.extract_strided_slice %141 {offsets = [0, 256], sizes = [8, 128], strides = [1, 1]} : vector<8x512xf32> to vector<8x128xf32>
    %155 = math.tanh %154 : vector<8x128xf32>
    %156 = vector.extract_strided_slice %141 {offsets = [0, 384], sizes = [8, 128], strides = [1, 1]} : vector<8x512xf32> to vector<8x128xf32>
    %157 = arith.negf %156 : vector<8x128xf32>
    %158 = math.exp %157 : vector<8x128xf32>
    %cst_40 = arith.constant 1.000000e+00 : f32
    %159 = vector.broadcast %cst_40 : f32 to vector<8x128xf32>
    %160 = arith.addf %159, %158 : vector<8x128xf32>
    %161 = arith.divf %159, %160 : vector<8x128xf32>
    %162 = arith.mulf %153, %99 : vector<8x128xf32>
    %163 = arith.mulf %147, %155 : vector<8x128xf32>
    %164 = arith.addf %162, %163 : vector<8x128xf32>
    %165 = math.tanh %164 : vector<8x128xf32>
    %166 = arith.mulf %161, %165 : vector<8x128xf32>
    %cst_41 = arith.constant dense<0.000000e+00> : vector<8x512xf32>
    %167 = tpu.matmul %166, %1, %cst_41 {dimension_numbers = #tpu.dot_dimension_numbers<[1], [0], [0], [1], [0, 0, 1, 1], [], []>} : vector<8x128xf32>, vector<128x512xf32>, vector<8x512xf32> -> vector<8x512xf32>
    %cst_42 = arith.constant dense<0.000000e+00> : vector<8x512xf32>
    %168 = tpu.matmul %131, %2, %cst_42 {dimension_numbers = #tpu.dot_dimension_numbers<[1], [0], [0], [1], [0, 0, 1, 1], [], []>} : vector<8x128xf32>, vector<128x512xf32>, vector<8x512xf32> -> vector<8x512xf32>
    %169 = arith.addf %167, %168 : vector<8x512xf32>
    %170 = vector.broadcast %4 : vector<1x512xf32> to vector<8x512xf32>
    %171 = arith.addf %169, %170 : vector<8x512xf32>
    %172 = vector.extract_strided_slice %171 {offsets = [0, 0], sizes = [8, 128], strides = [1, 1]} : vector<8x512xf32> to vector<8x128xf32>
    %173 = arith.negf %172 : vector<8x128xf32>
    %174 = math.exp %173 : vector<8x128xf32>
    %cst_43 = arith.constant 1.000000e+00 : f32
    %175 = vector.broadcast %cst_43 : f32 to vector<8x128xf32>
    %176 = arith.addf %175, %174 : vector<8x128xf32>
    %177 = arith.divf %175, %176 : vector<8x128xf32>
    %178 = vector.extract_strided_slice %171 {offsets = [0, 128], sizes = [8, 128], strides = [1, 1]} : vector<8x512xf32> to vector<8x128xf32>
    %179 = arith.negf %178 : vector<8x128xf32>
    %180 = math.exp %179 : vector<8x128xf32>
    %cst_44 = arith.constant 1.000000e+00 : f32
    %181 = vector.broadcast %cst_44 : f32 to vector<8x128xf32>
    %182 = arith.addf %181, %180 : vector<8x128xf32>
    %183 = arith.divf %181, %182 : vector<8x128xf32>
    %184 = vector.extract_strided_slice %171 {offsets = [0, 256], sizes = [8, 128], strides = [1, 1]} : vector<8x512xf32> to vector<8x128xf32>
    %185 = math.tanh %184 : vector<8x128xf32>
    %186 = vector.extract_strided_slice %171 {offsets = [0, 384], sizes = [8, 128], strides = [1, 1]} : vector<8x512xf32> to vector<8x128xf32>
    %187 = arith.negf %186 : vector<8x128xf32>
    %188 = math.exp %187 : vector<8x128xf32>
    %cst_45 = arith.constant 1.000000e+00 : f32
    %189 = vector.broadcast %cst_45 : f32 to vector<8x128xf32>
    %190 = arith.addf %189, %188 : vector<8x128xf32>
    %191 = arith.divf %189, %190 : vector<8x128xf32>
    %192 = arith.mulf %183, %129 : vector<8x128xf32>
    %193 = arith.mulf %177, %185 : vector<8x128xf32>
    %194 = arith.addf %192, %193 : vector<8x128xf32>
    %195 = math.tanh %194 : vector<8x128xf32>
    %196 = arith.mulf %191, %195 : vector<8x128xf32>
    %197 = arith.index_cast %c2_i32 : i32 to index
    %c0_46 = arith.constant 0 : index
    %c0_47 = arith.constant 0 : index
    %198 = vector.load %arg7[%197, %c0_46, %c0_47] : memref<8x8x128xf32, #tpu.memory_space<vmem>>, vector<1x8x128xf32>
    %199 = vector.shape_cast %198 : vector<1x8x128xf32> to vector<8x128xf32>
    %200 = vector.shape_cast %196 : vector<8x128xf32> to vector<1x8x128xf32>
    tpu.vector_store %arg7[%197, %c0_46, %c0_47], %200 {strides = array<i32>} : memref<8x8x128xf32, #tpu.memory_space<vmem>>, vector<1x8x128xf32>,
    %c3_i32 = arith.constant 3 : i32
    %201 = arith.index_cast %c3_i32 : i32 to index
    %c0_48 = arith.constant 0 : index
    %c0_49 = arith.constant 0 : index
    %202 = vector.load %arg1[%201, %c0_48, %c0_49] : memref<8x8x512xf32, #tpu.memory_space<vmem>>, vector<1x8x512xf32>
    %203 = vector.shape_cast %202 : vector<1x8x512xf32> to vector<8x512xf32>
    %204 = arith.addf %203, %3 : vector<8x512xf32>
    %cst_50 = arith.constant dense<0.000000e+00> : vector<8x512xf32>
    %205 = tpu.matmul %166, %0, %cst_50 {dimension_numbers = #tpu.dot_dimension_numbers<[1], [0], [0], [1], [0, 0, 1, 1], [], []>} : vector<8x128xf32>, vector<128x512xf32>, vector<8x512xf32> -> vector<8x512xf32>
    %206 = arith.addf %204, %205 : vector<8x512xf32>
    %207 = vector.extract_strided_slice %206 {offsets = [0, 0], sizes = [8, 128], strides = [1, 1]} : vector<8x512xf32> to vector<8x128xf32>
    %208 = arith.negf %207 : vector<8x128xf32>
    %209 = math.exp %208 : vector<8x128xf32>
    %cst_51 = arith.constant 1.000000e+00 : f32
    %210 = vector.broadcast %cst_51 : f32 to vector<8x128xf32>
    %211 = arith.addf %210, %209 : vector<8x128xf32>
    %212 = arith.divf %210, %211 : vector<8x128xf32>
    %213 = vector.extract_strided_slice %206 {offsets = [0, 128], sizes = [8, 128], strides = [1, 1]} : vector<8x512xf32> to vector<8x128xf32>
    %214 = arith.negf %213 : vector<8x128xf32>
    %215 = math.exp %214 : vector<8x128xf32>
    %cst_52 = arith.constant 1.000000e+00 : f32
    %216 = vector.broadcast %cst_52 : f32 to vector<8x128xf32>
    %217 = arith.addf %216, %215 : vector<8x128xf32>
    %218 = arith.divf %216, %217 : vector<8x128xf32>
    %219 = vector.extract_strided_slice %206 {offsets = [0, 256], sizes = [8, 128], strides = [1, 1]} : vector<8x512xf32> to vector<8x128xf32>
    %220 = math.tanh %219 : vector<8x128xf32>
    %221 = vector.extract_strided_slice %206 {offsets = [0, 384], sizes = [8, 128], strides = [1, 1]} : vector<8x512xf32> to vector<8x128xf32>
    %222 = arith.negf %221 : vector<8x128xf32>
    %223 = math.exp %222 : vector<8x128xf32>
    %cst_53 = arith.constant 1.000000e+00 : f32
    %224 = vector.broadcast %cst_53 : f32 to vector<8x128xf32>
    %225 = arith.addf %224, %223 : vector<8x128xf32>
    %226 = arith.divf %224, %225 : vector<8x128xf32>
    %227 = arith.mulf %218, %164 : vector<8x128xf32>
    %228 = arith.mulf %212, %220 : vector<8x128xf32>
    %229 = arith.addf %227, %228 : vector<8x128xf32>
    %230 = math.tanh %229 : vector<8x128xf32>
    %231 = arith.mulf %226, %230 : vector<8x128xf32>
    %cst_54 = arith.constant dense<0.000000e+00> : vector<8x512xf32>
    %232 = tpu.matmul %231, %1, %cst_54 {dimension_numbers = #tpu.dot_dimension_numbers<[1], [0], [0], [1], [0, 0, 1, 1], [], []>} : vector<8x128xf32>, vector<128x512xf32>, vector<8x512xf32> -> vector<8x512xf32>
    %cst_55 = arith.constant dense<0.000000e+00> : vector<8x512xf32>
    %233 = tpu.matmul %196, %2, %cst_55 {dimension_numbers = #tpu.dot_dimension_numbers<[1], [0], [0], [1], [0, 0, 1, 1], [], []>} : vector<8x128xf32>, vector<128x512xf32>, vector<8x512xf32> -> vector<8x512xf32>
    %234 = arith.addf %232, %233 : vector<8x512xf32>
    %235 = vector.broadcast %4 : vector<1x512xf32> to vector<8x512xf32>
    %236 = arith.addf %234, %235 : vector<8x512xf32>
    %237 = vector.extract_strided_slice %236 {offsets = [0, 0], sizes = [8, 128], strides = [1, 1]} : vector<8x512xf32> to vector<8x128xf32>
    %238 = arith.negf %237 : vector<8x128xf32>
    %239 = math.exp %238 : vector<8x128xf32>
    %cst_56 = arith.constant 1.000000e+00 : f32
    %240 = vector.broadcast %cst_56 : f32 to vector<8x128xf32>
    %241 = arith.addf %240, %239 : vector<8x128xf32>
    %242 = arith.divf %240, %241 : vector<8x128xf32>
    %243 = vector.extract_strided_slice %236 {offsets = [0, 128], sizes = [8, 128], strides = [1, 1]} : vector<8x512xf32> to vector<8x128xf32>
    %244 = arith.negf %243 : vector<8x128xf32>
    %245 = math.exp %244 : vector<8x128xf32>
    %cst_57 = arith.constant 1.000000e+00 : f32
    %246 = vector.broadcast %cst_57 : f32 to vector<8x128xf32>
    %247 = arith.addf %246, %245 : vector<8x128xf32>
    %248 = arith.divf %246, %247 : vector<8x128xf32>
    %249 = vector.extract_strided_slice %236 {offsets = [0, 256], sizes = [8, 128], strides = [1, 1]} : vector<8x512xf32> to vector<8x128xf32>
    %250 = math.tanh %249 : vector<8x128xf32>
    %251 = vector.extract_strided_slice %236 {offsets = [0, 384], sizes = [8, 128], strides = [1, 1]} : vector<8x512xf32> to vector<8x128xf32>
    %252 = arith.negf %251 : vector<8x128xf32>
    %253 = math.exp %252 : vector<8x128xf32>
    %cst_58 = arith.constant 1.000000e+00 : f32
    %254 = vector.broadcast %cst_58 : f32 to vector<8x128xf32>
    %255 = arith.addf %254, %253 : vector<8x128xf32>
    %256 = arith.divf %254, %255 : vector<8x128xf32>
    %257 = arith.mulf %248, %194 : vector<8x128xf32>
    %258 = arith.mulf %242, %250 : vector<8x128xf32>
    %259 = arith.addf %257, %258 : vector<8x128xf32>
    %260 = math.tanh %259 : vector<8x128xf32>
    %261 = arith.mulf %256, %260 : vector<8x128xf32>
    %262 = arith.index_cast %c3_i32 : i32 to index
    %c0_59 = arith.constant 0 : index
    %c0_60 = arith.constant 0 : index
    %263 = vector.load %arg7[%262, %c0_59, %c0_60] : memref<8x8x128xf32, #tpu.memory_space<vmem>>, vector<1x8x128xf32>
    %264 = vector.shape_cast %263 : vector<1x8x128xf32> to vector<8x128xf32>
    %265 = vector.shape_cast %261 : vector<8x128xf32> to vector<1x8x128xf32>
    tpu.vector_store %arg7[%262, %c0_59, %c0_60], %265 {strides = array<i32>} : memref<8x8x128xf32, #tpu.memory_space<vmem>>, vector<1x8x128xf32>,
    %c4_i32 = arith.constant 4 : i32
    %266 = arith.index_cast %c4_i32 : i32 to index
    %c0_61 = arith.constant 0 : index
    %c0_62 = arith.constant 0 : index
    %267 = vector.load %arg1[%266, %c0_61, %c0_62] : memref<8x8x512xf32, #tpu.memory_space<vmem>>, vector<1x8x512xf32>
    %268 = vector.shape_cast %267 : vector<1x8x512xf32> to vector<8x512xf32>
    %269 = arith.addf %268, %3 : vector<8x512xf32>
    %cst_63 = arith.constant dense<0.000000e+00> : vector<8x512xf32>
    %270 = tpu.matmul %231, %0, %cst_63 {dimension_numbers = #tpu.dot_dimension_numbers<[1], [0], [0], [1], [0, 0, 1, 1], [], []>} : vector<8x128xf32>, vector<128x512xf32>, vector<8x512xf32> -> vector<8x512xf32>
    %271 = arith.addf %269, %270 : vector<8x512xf32>
    %272 = vector.extract_strided_slice %271 {offsets = [0, 0], sizes = [8, 128], strides = [1, 1]} : vector<8x512xf32> to vector<8x128xf32>
    %273 = arith.negf %272 : vector<8x128xf32>
    %274 = math.exp %273 : vector<8x128xf32>
    %cst_64 = arith.constant 1.000000e+00 : f32
    %275 = vector.broadcast %cst_64 : f32 to vector<8x128xf32>
    %276 = arith.addf %275, %274 : vector<8x128xf32>
    %277 = arith.divf %275, %276 : vector<8x128xf32>
    %278 = vector.extract_strided_slice %271 {offsets = [0, 128], sizes = [8, 128], strides = [1, 1]} : vector<8x512xf32> to vector<8x128xf32>
    %279 = arith.negf %278 : vector<8x128xf32>
    %280 = math.exp %279 : vector<8x128xf32>
    %cst_65 = arith.constant 1.000000e+00 : f32
    %281 = vector.broadcast %cst_65 : f32 to vector<8x128xf32>
    %282 = arith.addf %281, %280 : vector<8x128xf32>
    %283 = arith.divf %281, %282 : vector<8x128xf32>
    %284 = vector.extract_strided_slice %271 {offsets = [0, 256], sizes = [8, 128], strides = [1, 1]} : vector<8x512xf32> to vector<8x128xf32>
    %285 = math.tanh %284 : vector<8x128xf32>
    %286 = vector.extract_strided_slice %271 {offsets = [0, 384], sizes = [8, 128], strides = [1, 1]} : vector<8x512xf32> to vector<8x128xf32>
    %287 = arith.negf %286 : vector<8x128xf32>
    %288 = math.exp %287 : vector<8x128xf32>
    %cst_66 = arith.constant 1.000000e+00 : f32
    %289 = vector.broadcast %cst_66 : f32 to vector<8x128xf32>
    %290 = arith.addf %289, %288 : vector<8x128xf32>
    %291 = arith.divf %289, %290 : vector<8x128xf32>
    %292 = arith.mulf %283, %229 : vector<8x128xf32>
    %293 = arith.mulf %277, %285 : vector<8x128xf32>
    %294 = arith.addf %292, %293 : vector<8x128xf32>
    %295 = math.tanh %294 : vector<8x128xf32>
    %296 = arith.mulf %291, %295 : vector<8x128xf32>
    %cst_67 = arith.constant dense<0.000000e+00> : vector<8x512xf32>
    %297 = tpu.matmul %296, %1, %cst_67 {dimension_numbers = #tpu.dot_dimension_numbers<[1], [0], [0], [1], [0, 0, 1, 1], [], []>} : vector<8x128xf32>, vector<128x512xf32>, vector<8x512xf32> -> vector<8x512xf32>
    %cst_68 = arith.constant dense<0.000000e+00> : vector<8x512xf32>
    %298 = tpu.matmul %261, %2, %cst_68 {dimension_numbers = #tpu.dot_dimension_numbers<[1], [0], [0], [1], [0, 0, 1, 1], [], []>} : vector<8x128xf32>, vector<128x512xf32>, vector<8x512xf32> -> vector<8x512xf32>
    %299 = arith.addf %297, %298 : vector<8x512xf32>
    %300 = vector.broadcast %4 : vector<1x512xf32> to vector<8x512xf32>
    %301 = arith.addf %299, %300 : vector<8x512xf32>
    %302 = vector.extract_strided_slice %301 {offsets = [0, 0], sizes = [8, 128], strides = [1, 1]} : vector<8x512xf32> to vector<8x128xf32>
    %303 = arith.negf %302 : vector<8x128xf32>
    %304 = math.exp %303 : vector<8x128xf32>
    %cst_69 = arith.constant 1.000000e+00 : f32
    %305 = vector.broadcast %cst_69 : f32 to vector<8x128xf32>
    %306 = arith.addf %305, %304 : vector<8x128xf32>
    %307 = arith.divf %305, %306 : vector<8x128xf32>
    %308 = vector.extract_strided_slice %301 {offsets = [0, 128], sizes = [8, 128], strides = [1, 1]} : vector<8x512xf32> to vector<8x128xf32>
    %309 = arith.negf %308 : vector<8x128xf32>
    %310 = math.exp %309 : vector<8x128xf32>
    %cst_70 = arith.constant 1.000000e+00 : f32
    %311 = vector.broadcast %cst_70 : f32 to vector<8x128xf32>
    %312 = arith.addf %311, %310 : vector<8x128xf32>
    %313 = arith.divf %311, %312 : vector<8x128xf32>
    %314 = vector.extract_strided_slice %301 {offsets = [0, 256], sizes = [8, 128], strides = [1, 1]} : vector<8x512xf32> to vector<8x128xf32>
    %315 = math.tanh %314 : vector<8x128xf32>
    %316 = vector.extract_strided_slice %301 {offsets = [0, 384], sizes = [8, 128], strides = [1, 1]} : vector<8x512xf32> to vector<8x128xf32>
    %317 = arith.negf %316 : vector<8x128xf32>
    %318 = math.exp %317 : vector<8x128xf32>
    %cst_71 = arith.constant 1.000000e+00 : f32
    %319 = vector.broadcast %cst_71 : f32 to vector<8x128xf32>
    %320 = arith.addf %319, %318 : vector<8x128xf32>
    %321 = arith.divf %319, %320 : vector<8x128xf32>
    %322 = arith.mulf %313, %259 : vector<8x128xf32>
    %323 = arith.mulf %307, %315 : vector<8x128xf32>
    %324 = arith.addf %322, %323 : vector<8x128xf32>
    %325 = math.tanh %324 : vector<8x128xf32>
    %326 = arith.mulf %321, %325 : vector<8x128xf32>
    %327 = arith.index_cast %c4_i32 : i32 to index
    %c0_72 = arith.constant 0 : index
    %c0_73 = arith.constant 0 : index
    %328 = vector.load %arg7[%327, %c0_72, %c0_73] : memref<8x8x128xf32, #tpu.memory_space<vmem>>, vector<1x8x128xf32>
    %329 = vector.shape_cast %328 : vector<1x8x128xf32> to vector<8x128xf32>
    %330 = vector.shape_cast %326 : vector<8x128xf32> to vector<1x8x128xf32>
    tpu.vector_store %arg7[%327, %c0_72, %c0_73], %330 {strides = array<i32>} : memref<8x8x128xf32, #tpu.memory_space<vmem>>, vector<1x8x128xf32>,
    %c5_i32 = arith.constant 5 : i32
    %331 = arith.index_cast %c5_i32 : i32 to index
    %c0_74 = arith.constant 0 : index
    %c0_75 = arith.constant 0 : index
    %332 = vector.load %arg1[%331, %c0_74, %c0_75] : memref<8x8x512xf32, #tpu.memory_space<vmem>>, vector<1x8x512xf32>
    %333 = vector.shape_cast %332 : vector<1x8x512xf32> to vector<8x512xf32>
    %334 = arith.addf %333, %3 : vector<8x512xf32>
    %cst_76 = arith.constant dense<0.000000e+00> : vector<8x512xf32>
    %335 = tpu.matmul %296, %0, %cst_76 {dimension_numbers = #tpu.dot_dimension_numbers<[1], [0], [0], [1], [0, 0, 1, 1], [], []>} : vector<8x128xf32>, vector<128x512xf32>, vector<8x512xf32> -> vector<8x512xf32>
    %336 = arith.addf %334, %335 : vector<8x512xf32>
    %337 = vector.extract_strided_slice %336 {offsets = [0, 0], sizes = [8, 128], strides = [1, 1]} : vector<8x512xf32> to vector<8x128xf32>
    %338 = arith.negf %337 : vector<8x128xf32>
    %339 = math.exp %338 : vector<8x128xf32>
    %cst_77 = arith.constant 1.000000e+00 : f32
    %340 = vector.broadcast %cst_77 : f32 to vector<8x128xf32>
    %341 = arith.addf %340, %339 : vector<8x128xf32>
    %342 = arith.divf %340, %341 : vector<8x128xf32>
    %343 = vector.extract_strided_slice %336 {offsets = [0, 128], sizes = [8, 128], strides = [1, 1]} : vector<8x512xf32> to vector<8x128xf32>
    %344 = arith.negf %343 : vector<8x128xf32>
    %345 = math.exp %344 : vector<8x128xf32>
    %cst_78 = arith.constant 1.000000e+00 : f32
    %346 = vector.broadcast %cst_78 : f32 to vector<8x128xf32>
    %347 = arith.addf %346, %345 : vector<8x128xf32>
    %348 = arith.divf %346, %347 : vector<8x128xf32>
    %349 = vector.extract_strided_slice %336 {offsets = [0, 256], sizes = [8, 128], strides = [1, 1]} : vector<8x512xf32> to vector<8x128xf32>
    %350 = math.tanh %349 : vector<8x128xf32>
    %351 = vector.extract_strided_slice %336 {offsets = [0, 384], sizes = [8, 128], strides = [1, 1]} : vector<8x512xf32> to vector<8x128xf32>
    %352 = arith.negf %351 : vector<8x128xf32>
    %353 = math.exp %352 : vector<8x128xf32>
    %cst_79 = arith.constant 1.000000e+00 : f32
    %354 = vector.broadcast %cst_79 : f32 to vector<8x128xf32>
    %355 = arith.addf %354, %353 : vector<8x128xf32>
    %356 = arith.divf %354, %355 : vector<8x128xf32>
    %357 = arith.mulf %348, %294 : vector<8x128xf32>
    %358 = arith.mulf %342, %350 : vector<8x128xf32>
    %359 = arith.addf %357, %358 : vector<8x128xf32>
    %360 = math.tanh %359 : vector<8x128xf32>
    %361 = arith.mulf %356, %360 : vector<8x128xf32>
    %cst_80 = arith.constant dense<0.000000e+00> : vector<8x512xf32>
    %362 = tpu.matmul %361, %1, %cst_80 {dimension_numbers = #tpu.dot_dimension_numbers<[1], [0], [0], [1], [0, 0, 1, 1], [], []>} : vector<8x128xf32>, vector<128x512xf32>, vector<8x512xf32> -> vector<8x512xf32>
    %cst_81 = arith.constant dense<0.000000e+00> : vector<8x512xf32>
    %363 = tpu.matmul %326, %2, %cst_81 {dimension_numbers = #tpu.dot_dimension_numbers<[1], [0], [0], [1], [0, 0, 1, 1], [], []>} : vector<8x128xf32>, vector<128x512xf32>, vector<8x512xf32> -> vector<8x512xf32>
    %364 = arith.addf %362, %363 : vector<8x512xf32>
    %365 = vector.broadcast %4 : vector<1x512xf32> to vector<8x512xf32>
    %366 = arith.addf %364, %365 : vector<8x512xf32>
    %367 = vector.extract_strided_slice %366 {offsets = [0, 0], sizes = [8, 128], strides = [1, 1]} : vector<8x512xf32> to vector<8x128xf32>
    %368 = arith.negf %367 : vector<8x128xf32>
    %369 = math.exp %368 : vector<8x128xf32>
    %cst_82 = arith.constant 1.000000e+00 : f32
    %370 = vector.broadcast %cst_82 : f32 to vector<8x128xf32>
    %371 = arith.addf %370, %369 : vector<8x128xf32>
    %372 = arith.divf %370, %371 : vector<8x128xf32>
    %373 = vector.extract_strided_slice %366 {offsets = [0, 128], sizes = [8, 128], strides = [1, 1]} : vector<8x512xf32> to vector<8x128xf32>
    %374 = arith.negf %373 : vector<8x128xf32>
    %375 = math.exp %374 : vector<8x128xf32>
    %cst_83 = arith.constant 1.000000e+00 : f32
    %376 = vector.broadcast %cst_83 : f32 to vector<8x128xf32>
    %377 = arith.addf %376, %375 : vector<8x128xf32>
    %378 = arith.divf %376, %377 : vector<8x128xf32>
    %379 = vector.extract_strided_slice %366 {offsets = [0, 256], sizes = [8, 128], strides = [1, 1]} : vector<8x512xf32> to vector<8x128xf32>
    %380 = math.tanh %379 : vector<8x128xf32>
    %381 = vector.extract_strided_slice %366 {offsets = [0, 384], sizes = [8, 128], strides = [1, 1]} : vector<8x512xf32> to vector<8x128xf32>
    %382 = arith.negf %381 : vector<8x128xf32>
    %383 = math.exp %382 : vector<8x128xf32>
    %cst_84 = arith.constant 1.000000e+00 : f32
    %384 = vector.broadcast %cst_84 : f32 to vector<8x128xf32>
    %385 = arith.addf %384, %383 : vector<8x128xf32>
    %386 = arith.divf %384, %385 : vector<8x128xf32>
    %387 = arith.mulf %378, %324 : vector<8x128xf32>
    %388 = arith.mulf %372, %380 : vector<8x128xf32>
    %389 = arith.addf %387, %388 : vector<8x128xf32>
    %390 = math.tanh %389 : vector<8x128xf32>
    %391 = arith.mulf %386, %390 : vector<8x128xf32>
    %392 = arith.index_cast %c5_i32 : i32 to index
    %c0_85 = arith.constant 0 : index
    %c0_86 = arith.constant 0 : index
    %393 = vector.load %arg7[%392, %c0_85, %c0_86] : memref<8x8x128xf32, #tpu.memory_space<vmem>>, vector<1x8x128xf32>
    %394 = vector.shape_cast %393 : vector<1x8x128xf32> to vector<8x128xf32>
    %395 = vector.shape_cast %391 : vector<8x128xf32> to vector<1x8x128xf32>
    tpu.vector_store %arg7[%392, %c0_85, %c0_86], %395 {strides = array<i32>} : memref<8x8x128xf32, #tpu.memory_space<vmem>>, vector<1x8x128xf32>,
    %c6_i32 = arith.constant 6 : i32
    %396 = arith.index_cast %c6_i32 : i32 to index
    %c0_87 = arith.constant 0 : index
    %c0_88 = arith.constant 0 : index
    %397 = vector.load %arg1[%396, %c0_87, %c0_88] : memref<8x8x512xf32, #tpu.memory_space<vmem>>, vector<1x8x512xf32>
    %398 = vector.shape_cast %397 : vector<1x8x512xf32> to vector<8x512xf32>
    %399 = arith.addf %398, %3 : vector<8x512xf32>
    %cst_89 = arith.constant dense<0.000000e+00> : vector<8x512xf32>
    %400 = tpu.matmul %361, %0, %cst_89 {dimension_numbers = #tpu.dot_dimension_numbers<[1], [0], [0], [1], [0, 0, 1, 1], [], []>} : vector<8x128xf32>, vector<128x512xf32>, vector<8x512xf32> -> vector<8x512xf32>
    %401 = arith.addf %399, %400 : vector<8x512xf32>
    %402 = vector.extract_strided_slice %401 {offsets = [0, 0], sizes = [8, 128], strides = [1, 1]} : vector<8x512xf32> to vector<8x128xf32>
    %403 = arith.negf %402 : vector<8x128xf32>
    %404 = math.exp %403 : vector<8x128xf32>
    %cst_90 = arith.constant 1.000000e+00 : f32
    %405 = vector.broadcast %cst_90 : f32 to vector<8x128xf32>
    %406 = arith.addf %405, %404 : vector<8x128xf32>
    %407 = arith.divf %405, %406 : vector<8x128xf32>
    %408 = vector.extract_strided_slice %401 {offsets = [0, 128], sizes = [8, 128], strides = [1, 1]} : vector<8x512xf32> to vector<8x128xf32>
    %409 = arith.negf %408 : vector<8x128xf32>
    %410 = math.exp %409 : vector<8x128xf32>
    %cst_91 = arith.constant 1.000000e+00 : f32
    %411 = vector.broadcast %cst_91 : f32 to vector<8x128xf32>
    %412 = arith.addf %411, %410 : vector<8x128xf32>
    %413 = arith.divf %411, %412 : vector<8x128xf32>
    %414 = vector.extract_strided_slice %401 {offsets = [0, 256], sizes = [8, 128], strides = [1, 1]} : vector<8x512xf32> to vector<8x128xf32>
    %415 = math.tanh %414 : vector<8x128xf32>
    %416 = vector.extract_strided_slice %401 {offsets = [0, 384], sizes = [8, 128], strides = [1, 1]} : vector<8x512xf32> to vector<8x128xf32>
    %417 = arith.negf %416 : vector<8x128xf32>
    %418 = math.exp %417 : vector<8x128xf32>
    %cst_92 = arith.constant 1.000000e+00 : f32
    %419 = vector.broadcast %cst_92 : f32 to vector<8x128xf32>
    %420 = arith.addf %419, %418 : vector<8x128xf32>
    %421 = arith.divf %419, %420 : vector<8x128xf32>
    %422 = arith.mulf %413, %359 : vector<8x128xf32>
    %423 = arith.mulf %407, %415 : vector<8x128xf32>
    %424 = arith.addf %422, %423 : vector<8x128xf32>
    %425 = math.tanh %424 : vector<8x128xf32>
    %426 = arith.mulf %421, %425 : vector<8x128xf32>
    %cst_93 = arith.constant dense<0.000000e+00> : vector<8x512xf32>
    %427 = tpu.matmul %426, %1, %cst_93 {dimension_numbers = #tpu.dot_dimension_numbers<[1], [0], [0], [1], [0, 0, 1, 1], [], []>} : vector<8x128xf32>, vector<128x512xf32>, vector<8x512xf32> -> vector<8x512xf32>
    %cst_94 = arith.constant dense<0.000000e+00> : vector<8x512xf32>
    %428 = tpu.matmul %391, %2, %cst_94 {dimension_numbers = #tpu.dot_dimension_numbers<[1], [0], [0], [1], [0, 0, 1, 1], [], []>} : vector<8x128xf32>, vector<128x512xf32>, vector<8x512xf32> -> vector<8x512xf32>
    %429 = arith.addf %427, %428 : vector<8x512xf32>
    %430 = vector.broadcast %4 : vector<1x512xf32> to vector<8x512xf32>
    %431 = arith.addf %429, %430 : vector<8x512xf32>
    %432 = vector.extract_strided_slice %431 {offsets = [0, 0], sizes = [8, 128], strides = [1, 1]} : vector<8x512xf32> to vector<8x128xf32>
    %433 = arith.negf %432 : vector<8x128xf32>
    %434 = math.exp %433 : vector<8x128xf32>
    %cst_95 = arith.constant 1.000000e+00 : f32
    %435 = vector.broadcast %cst_95 : f32 to vector<8x128xf32>
    %436 = arith.addf %435, %434 : vector<8x128xf32>
    %437 = arith.divf %435, %436 : vector<8x128xf32>
    %438 = vector.extract_strided_slice %431 {offsets = [0, 128], sizes = [8, 128], strides = [1, 1]} : vector<8x512xf32> to vector<8x128xf32>
    %439 = arith.negf %438 : vector<8x128xf32>
    %440 = math.exp %439 : vector<8x128xf32>
    %cst_96 = arith.constant 1.000000e+00 : f32
    %441 = vector.broadcast %cst_96 : f32 to vector<8x128xf32>
    %442 = arith.addf %441, %440 : vector<8x128xf32>
    %443 = arith.divf %441, %442 : vector<8x128xf32>
    %444 = vector.extract_strided_slice %431 {offsets = [0, 256], sizes = [8, 128], strides = [1, 1]} : vector<8x512xf32> to vector<8x128xf32>
    %445 = math.tanh %444 : vector<8x128xf32>
    %446 = vector.extract_strided_slice %431 {offsets = [0, 384], sizes = [8, 128], strides = [1, 1]} : vector<8x512xf32> to vector<8x128xf32>
    %447 = arith.negf %446 : vector<8x128xf32>
    %448 = math.exp %447 : vector<8x128xf32>
    %cst_97 = arith.constant 1.000000e+00 : f32
    %449 = vector.broadcast %cst_97 : f32 to vector<8x128xf32>
    %450 = arith.addf %449, %448 : vector<8x128xf32>
    %451 = arith.divf %449, %450 : vector<8x128xf32>
    %452 = arith.mulf %443, %389 : vector<8x128xf32>
    %453 = arith.mulf %437, %445 : vector<8x128xf32>
    %454 = arith.addf %452, %453 : vector<8x128xf32>
    %455 = math.tanh %454 : vector<8x128xf32>
    %456 = arith.mulf %451, %455 : vector<8x128xf32>
    %457 = arith.index_cast %c6_i32 : i32 to index
    %c0_98 = arith.constant 0 : index
    %c0_99 = arith.constant 0 : index
    %458 = vector.load %arg7[%457, %c0_98, %c0_99] : memref<8x8x128xf32, #tpu.memory_space<vmem>>, vector<1x8x128xf32>
    %459 = vector.shape_cast %458 : vector<1x8x128xf32> to vector<8x128xf32>
    %460 = vector.shape_cast %456 : vector<8x128xf32> to vector<1x8x128xf32>
    tpu.vector_store %arg7[%457, %c0_98, %c0_99], %460 {strides = array<i32>} : memref<8x8x128xf32, #tpu.memory_space<vmem>>, vector<1x8x128xf32>,
    %c7_i32 = arith.constant 7 : i32
    %461 = arith.index_cast %c7_i32 : i32 to index
    %c0_100 = arith.constant 0 : index
    %c0_101 = arith.constant 0 : index
    %462 = vector.load %arg1[%461, %c0_100, %c0_101] : memref<8x8x512xf32, #tpu.memory_space<vmem>>, vector<1x8x512xf32>
    %463 = vector.shape_cast %462 : vector<1x8x512xf32> to vector<8x512xf32>
    %464 = arith.addf %463, %3 : vector<8x512xf32>
    %cst_102 = arith.constant dense<0.000000e+00> : vector<8x512xf32>
    %465 = tpu.matmul %426, %0, %cst_102 {dimension_numbers = #tpu.dot_dimension_numbers<[1], [0], [0], [1], [0, 0, 1, 1], [], []>} : vector<8x128xf32>, vector<128x512xf32>, vector<8x512xf32> -> vector<8x512xf32>
    %466 = arith.addf %464, %465 : vector<8x512xf32>
    %467 = vector.extract_strided_slice %466 {offsets = [0, 0], sizes = [8, 128], strides = [1, 1]} : vector<8x512xf32> to vector<8x128xf32>
    %468 = arith.negf %467 : vector<8x128xf32>
    %469 = math.exp %468 : vector<8x128xf32>
    %cst_103 = arith.constant 1.000000e+00 : f32
    %470 = vector.broadcast %cst_103 : f32 to vector<8x128xf32>
    %471 = arith.addf %470, %469 : vector<8x128xf32>
    %472 = arith.divf %470, %471 : vector<8x128xf32>
    %473 = vector.extract_strided_slice %466 {offsets = [0, 128], sizes = [8, 128], strides = [1, 1]} : vector<8x512xf32> to vector<8x128xf32>
    %474 = arith.negf %473 : vector<8x128xf32>
    %475 = math.exp %474 : vector<8x128xf32>
    %cst_104 = arith.constant 1.000000e+00 : f32
    %476 = vector.broadcast %cst_104 : f32 to vector<8x128xf32>
    %477 = arith.addf %476, %475 : vector<8x128xf32>
    %478 = arith.divf %476, %477 : vector<8x128xf32>
    %479 = vector.extract_strided_slice %466 {offsets = [0, 256], sizes = [8, 128], strides = [1, 1]} : vector<8x512xf32> to vector<8x128xf32>
    %480 = math.tanh %479 : vector<8x128xf32>
    %481 = vector.extract_strided_slice %466 {offsets = [0, 384], sizes = [8, 128], strides = [1, 1]} : vector<8x512xf32> to vector<8x128xf32>
    %482 = arith.negf %481 : vector<8x128xf32>
    %483 = math.exp %482 : vector<8x128xf32>
    %cst_105 = arith.constant 1.000000e+00 : f32
    %484 = vector.broadcast %cst_105 : f32 to vector<8x128xf32>
    %485 = arith.addf %484, %483 : vector<8x128xf32>
    %486 = arith.divf %484, %485 : vector<8x128xf32>
    %487 = arith.mulf %478, %424 : vector<8x128xf32>
    %488 = arith.mulf %472, %480 : vector<8x128xf32>
    %489 = arith.addf %487, %488 : vector<8x128xf32>
    %490 = math.tanh %489 : vector<8x128xf32>
    %491 = arith.mulf %486, %490 : vector<8x128xf32>
    %cst_106 = arith.constant dense<0.000000e+00> : vector<8x512xf32>
    %492 = tpu.matmul %491, %1, %cst_106 {dimension_numbers = #tpu.dot_dimension_numbers<[1], [0], [0], [1], [0, 0, 1, 1], [], []>} : vector<8x128xf32>, vector<128x512xf32>, vector<8x512xf32> -> vector<8x512xf32>
    %cst_107 = arith.constant dense<0.000000e+00> : vector<8x512xf32>
    %493 = tpu.matmul %456, %2, %cst_107 {dimension_numbers = #tpu.dot_dimension_numbers<[1], [0], [0], [1], [0, 0, 1, 1], [], []>} : vector<8x128xf32>, vector<128x512xf32>, vector<8x512xf32> -> vector<8x512xf32>
    %494 = arith.addf %492, %493 : vector<8x512xf32>
    %495 = vector.broadcast %4 : vector<1x512xf32> to vector<8x512xf32>
    %496 = arith.addf %494, %495 : vector<8x512xf32>
    %497 = vector.extract_strided_slice %496 {offsets = [0, 0], sizes = [8, 128], strides = [1, 1]} : vector<8x512xf32> to vector<8x128xf32>
    %498 = arith.negf %497 : vector<8x128xf32>
    %499 = math.exp %498 : vector<8x128xf32>
    %cst_108 = arith.constant 1.000000e+00 : f32
    %500 = vector.broadcast %cst_108 : f32 to vector<8x128xf32>
    %501 = arith.addf %500, %499 : vector<8x128xf32>
    %502 = arith.divf %500, %501 : vector<8x128xf32>
    %503 = vector.extract_strided_slice %496 {offsets = [0, 128], sizes = [8, 128], strides = [1, 1]} : vector<8x512xf32> to vector<8x128xf32>
    %504 = arith.negf %503 : vector<8x128xf32>
    %505 = math.exp %504 : vector<8x128xf32>
    %cst_109 = arith.constant 1.000000e+00 : f32
    %506 = vector.broadcast %cst_109 : f32 to vector<8x128xf32>
    %507 = arith.addf %506, %505 : vector<8x128xf32>
    %508 = arith.divf %506, %507 : vector<8x128xf32>
    %509 = vector.extract_strided_slice %496 {offsets = [0, 256], sizes = [8, 128], strides = [1, 1]} : vector<8x512xf32> to vector<8x128xf32>
    %510 = math.tanh %509 : vector<8x128xf32>
    %511 = vector.extract_strided_slice %496 {offsets = [0, 384], sizes = [8, 128], strides = [1, 1]} : vector<8x512xf32> to vector<8x128xf32>
    %512 = arith.negf %511 : vector<8x128xf32>
    %513 = math.exp %512 : vector<8x128xf32>
    %cst_110 = arith.constant 1.000000e+00 : f32
    %514 = vector.broadcast %cst_110 : f32 to vector<8x128xf32>
    %515 = arith.addf %514, %513 : vector<8x128xf32>
    %516 = arith.divf %514, %515 : vector<8x128xf32>
    %517 = arith.mulf %508, %454 : vector<8x128xf32>
    %518 = arith.mulf %502, %510 : vector<8x128xf32>
    %519 = arith.addf %517, %518 : vector<8x128xf32>
    %520 = math.tanh %519 : vector<8x128xf32>
    %521 = arith.mulf %516, %520 : vector<8x128xf32>
    %522 = arith.index_cast %c7_i32 : i32 to index
    %c0_111 = arith.constant 0 : index
    %c0_112 = arith.constant 0 : index
    %523 = vector.load %arg7[%522, %c0_111, %c0_112] : memref<8x8x128xf32, #tpu.memory_space<vmem>>, vector<1x8x128xf32>
    %524 = vector.shape_cast %523 : vector<1x8x128xf32> to vector<8x128xf32>
    %525 = vector.shape_cast %521 : vector<8x128xf32> to vector<1x8x128xf32>
    tpu.vector_store %arg7[%522, %c0_111, %c0_112], %525 {strides = array<i32>} : memref<8x8x128xf32, #tpu.memory_space<vmem>>, vector<1x8x128xf32>,
    %c8_i32 = arith.constant 8 : i32
    return
  }
  func.func @transform_0(%arg0: i32) -> (i32, i32, i32) {
    %c0_i32 = arith.constant 0 : i32
    %c0_i32_0 = arith.constant 0 : i32
    %c0_i32_1 = arith.constant 0 : i32
    %c0_i32_2 = arith.constant 0 : i32
    return %c0_i32, %c0_i32_0, %c0_i32_1 : i32, i32, i32
  }
  func.func @transform_1(%arg0: i32) -> (i32, i32) {
    %c0_i32 = arith.constant 0 : i32
    %c0_i32_0 = arith.constant 0 : i32
    %c0_i32_1 = arith.constant 0 : i32
    return %c0_i32, %c0_i32_0 : i32, i32
  }
  func.func @transform_2(%arg0: i32) -> (i32, i32) {
    %c0_i32 = arith.constant 0 : i32
    %c0_i32_0 = arith.constant 0 : i32
    %c0_i32_1 = arith.constant 0 : i32
    return %c0_i32, %c0_i32_0 : i32, i32
  }
  func.func @transform_3(%arg0: i32) -> (i32, i32) {
    %c0_i32 = arith.constant 0 : i32
    %c0_i32_0 = arith.constant 0 : i32
    %c0_i32_1 = arith.constant 0 : i32
    return %c0_i32, %c0_i32_0 : i32, i32
  }
  func.func @transform_4(%arg0: i32) -> (i32, i32) {
    %c0_i32 = arith.constant 0 : i32
    %c0_i32_0 = arith.constant 0 : i32
    %c0_i32_1 = arith.constant 0 : i32
    return %c0_i32, %c0_i32_0 : i32, i32
  }
  func.func @transform_5(%arg0: i32) -> (i32, i32) {
    %c0_i32 = arith.constant 0 : i32
    %c0_i32_0 = arith.constant 0 : i32
    %c0_i32_1 = arith.constant 0 : i32
    return %c0_i32, %c0_i32_0 : i32, i32
  }
  func.func @transform_6(%arg0: i32) -> (i32, i32, i32) {
    %c0_i32 = arith.constant 0 : i32
    %c0_i32_0 = arith.constant 0 : i32
    %c0_i32_1 = arith.constant 0 : i32
    %c0_i32_2 = arith.constant 0 : i32
    return %c0_i32, %c0_i32_0, %c0_i32_1 : i32, i32, i32
  }
}

module attributes {stable_mosaic.version = 11 : i64} {
  func.func @_matmul_bias_kernel(%arg0: i32, %arg1: i32, %arg2: i32, %arg3: memref<64x128xf32, #tpu.memory_space<vmem>>, %arg4: memref<128x128xf32, #tpu.memory_space<vmem>>, %arg5: memref<1x128xf32, #tpu.memory_space<vmem>>, %arg6: memref<64x128xf32, #tpu.memory_space<vmem>>, %arg7: memref<64x128xf32, #tpu.memory_space<vmem>>) attributes {dimension_semantics = [#tpu.dimension_semantics<parallel>, #tpu.dimension_semantics<parallel>, #tpu.dimension_semantics<arbitrary>], iteration_bounds = array<i64: 1, 1, 1>, scalar_prefetch = 0 : i64, scratch_operands = 1 : i64, tpu.core_type = #tpu.core_type<tc>, window_params = [{transform_indices = @transform_0, window_bounds = array<i64: 64, 128>}, {transform_indices = @transform_1, window_bounds = array<i64: 128, 128>}, {transform_indices = @transform_2, window_bounds = array<i64: 1, 128>}, {transform_indices = @transform_3, window_bounds = array<i64: 64, 128>}]} {
    %c0_i32 = arith.constant 0 : i32
    %0 = arith.cmpi eq, %arg2, %c0_i32 : i32
    %1 = arith.extui %0 : i1 to i32
    %c0_i32_0 = arith.constant 0 : i32
    %2 = arith.cmpi ne, %1, %c0_i32_0 : i32
    scf.if %2 {
      %cst_10 = arith.constant 0.000000e+00 : f32
      %12 = vector.broadcast %cst_10 : f32 to vector<64x128xf32>
      %c0_11 = arith.constant 0 : index
      %c0_12 = arith.constant 0 : index
      %13 = vector.load %arg7[%c0_11, %c0_12] : memref<64x128xf32, #tpu.memory_space<vmem>>, vector<64x128xf32>
      tpu.vector_store %arg7[%c0_11, %c0_12], %12 {strides = array<i32>} : memref<64x128xf32, #tpu.memory_space<vmem>>, vector<64x128xf32>,
    } else {
    }
    %c0 = arith.constant 0 : index
    %c0_1 = arith.constant 0 : index
    %3 = vector.load %arg7[%c0, %c0_1] : memref<64x128xf32, #tpu.memory_space<vmem>>, vector<64x128xf32>
    %c0_2 = arith.constant 0 : index
    %c0_3 = arith.constant 0 : index
    %4 = vector.load %arg3[%c0_2, %c0_3] : memref<64x128xf32, #tpu.memory_space<vmem>>, vector<64x128xf32>
    %c0_4 = arith.constant 0 : index
    %c0_5 = arith.constant 0 : index
    %5 = vector.load %arg4[%c0_4, %c0_5] : memref<128x128xf32, #tpu.memory_space<vmem>>, vector<128x128xf32>
    %cst = arith.constant dense<0.000000e+00> : vector<64x128xf32>
    %6 = tpu.matmul %4, %5, %cst {dimension_numbers = #tpu.dot_dimension_numbers<[1], [0], [0], [1], [0, 0, 1, 1], [], []>} : vector<64x128xf32>, vector<128x128xf32>, vector<64x128xf32> -> vector<64x128xf32>
    %7 = arith.addf %3, %6 : vector<64x128xf32>
    %c0_6 = arith.constant 0 : index
    %c0_7 = arith.constant 0 : index
    %8 = vector.load %arg7[%c0_6, %c0_7] : memref<64x128xf32, #tpu.memory_space<vmem>>, vector<64x128xf32>
    tpu.vector_store %arg7[%c0_6, %c0_7], %7 {strides = array<i32>} : memref<64x128xf32, #tpu.memory_space<vmem>>, vector<64x128xf32>,
    %c0_i32_8 = arith.constant 0 : i32
    %9 = arith.cmpi eq, %arg2, %c0_i32_8 : i32
    %10 = arith.extui %9 : i1 to i32
    %c0_i32_9 = arith.constant 0 : i32
    %11 = arith.cmpi ne, %10, %c0_i32_9 : i32
    scf.if %11 {
      %c0_10 = arith.constant 0 : index
      %c0_11 = arith.constant 0 : index
      %12 = vector.load %arg7[%c0_10, %c0_11] : memref<64x128xf32, #tpu.memory_space<vmem>>, vector<64x128xf32>
      %c0_12 = arith.constant 0 : index
      %c0_13 = arith.constant 0 : index
      %13 = vector.load %arg5[%c0_12, %c0_13] : memref<1x128xf32, #tpu.memory_space<vmem>>, vector<1x128xf32>
      %14 = vector.broadcast %13 : vector<1x128xf32> to vector<64x128xf32>
      %15 = arith.addf %12, %14 : vector<64x128xf32>
      %c0_14 = arith.constant 0 : index
      %c0_15 = arith.constant 0 : index
      %16 = vector.load %arg6[%c0_14, %c0_15] : memref<64x128xf32, #tpu.memory_space<vmem>>, vector<64x128xf32>
      tpu.vector_store %arg6[%c0_14, %c0_15], %15 {strides = array<i32>} : memref<64x128xf32, #tpu.memory_space<vmem>>, vector<64x128xf32>,
    } else {
    }
    return
  }
  func.func @transform_0(%arg0: i32, %arg1: i32, %arg2: i32) -> (i32, i32) {
    %c0_i32 = arith.constant 0 : i32
    return %arg0, %arg2 : i32, i32
  }
  func.func @transform_1(%arg0: i32, %arg1: i32, %arg2: i32) -> (i32, i32) {
    %c0_i32 = arith.constant 0 : i32
    return %arg2, %arg1 : i32, i32
  }
  func.func @transform_2(%arg0: i32, %arg1: i32, %arg2: i32) -> (i32, i32) {
    %c0_i32 = arith.constant 0 : i32
    %c0_i32_0 = arith.constant 0 : i32
    return %c0_i32, %arg1 : i32, i32
  }
  func.func @transform_3(%arg0: i32, %arg1: i32, %arg2: i32) -> (i32, i32) {
    %c0_i32 = arith.constant 0 : i32
    return %arg0, %arg1 : i32, i32
  }
}

</mosaic_0001>

<bundles_post_ra>
// kernel: baseline2_forward.5
= control target key start
LH: loop header
LB: loop body
LE: loop exit
PB: predicated region body
PF: predicated region fallthrough
CT: control target
= control target key end

     0   :  { %v634_v3 = vmov 0.0   ;;  %s1026_s1 = inlined_call_operand.vmem [shape: f32[128,512], index: 1, kind: input, shape index: {}]   ;;  %s1027_s0 = inlined_call_operand.vmem [shape: f32[64,128], index: 0, kind: input, shape index: {}]   ;;  %s1028_s2 = inlined_call_operand.vmem [shape: f32[1,512], index: 2, kind: input, shape index: {}]   ;;  %s1029_s3 = inlined_call_operand.vmem [shape: f32[64,512], index: 3, kind: output, shape index: {}]  }
   0x1   :  { %v91_v0 = vld [vmem:[%s1026_s1 + $0x8] sm:$0xff]  ;;  %v93_v2 = vld [vmem:[%s1026_s1 + $0x18] sm:$0xff]  ;;  %218 = vmatprep.mubr.f32.mxu0 %v634_v3  ;;  %331 = vmatprep.mubr.f32.mxu1 %v634_v3  ;;  %v90_v6 = vld [vmem:[%s1026_s1] sm:$0xff] }
   0x2   :  { %v95_v1 = vld [vmem:[%s1026_s1 + $0x28] sm:$0xff]  ;;  %v97_v5 = vld [vmem:[%s1026_s1 + $0x38] sm:$0xff]  ;;  %v94_v7 = vld [vmem:[%s1026_s1 + $0x20] sm:$0xff] }
   0x3   :  { %v569_v4 = vpack.c.bf16 %v95_v1, %v91_v0  ;;  %v601_v8 = vpack.c.bf16 %v97_v5, %v93_v2  ;;  %v571_v9 = vpack.c.bf16 %v94_v7, %v90_v6  ;;  %v92_v10 = vld [vmem:[%s1026_s1 + $0x10] sm:$0xff]  ;;  %v99_v12 = vld [vmem:[%s1026_s1 + $0x48] sm:$0xff]  ;;  %v101_v15 = vld [vmem:[%s1026_s1 + $0x58] sm:$0xff] }
   0x4   :  { %v96_v11 = vld [vmem:[%s1026_s1 + $0x30] sm:$0xff]  ;;  %v103_v14 = vld [vmem:[%s1026_s1 + $0x68] sm:$0xff]  ;;  %v105_v16 = vld [vmem:[%s1026_s1 + $0x78] sm:$0xff] }
   0x5   :  { %570 = vmatprep.subr.bf16.mxu0 %v569_v4  ;;  %v603_v13 = vpack.c.bf16 %v96_v11, %v92_v10  ;;  %602 = vmatprep.subr.bf16.mxu1 %v601_v8  ;;  %v573_v17 = vpack.c.bf16 %v103_v14, %v99_v12  ;;  %v605_v18 = vpack.c.bf16 %v105_v16, %v101_v15  ;;  %v98_v19 = vld [vmem:[%s1026_s1 + $0x40] sm:$0xff]  ;;  %v100_v21 = vld [vmem:[%s1026_s1 + $0x50] sm:$0xff]  ;;  %v107_v24 = vld [vmem:[%s1026_s1 + $0x88] sm:$0xff] }
   0x6   :  { %572 = vmatpush1.bf16.msra.mxu0 %v571_v9  ;;  %v102_v20 = vld [vmem:[%s1026_s1 + $0x60] sm:$0xff]  ;;  %v104_v23 = vld [vmem:[%s1026_s1 + $0x70] sm:$0xff]  ;;  %v111_v25 = vld [vmem:[%s1026_s1 + $0xa8] sm:$0xff] }
   0x7   :  { %604 = vmatpush1.bf16.msra.mxu1 %v603_v13  ;;  %v575_v22 = vpack.c.bf16 %v102_v20, %v98_v19  ;;  %574 = vmatprep.subr.bf16.mxu0 %v573_v17  ;;  %v607_v26 = vpack.c.bf16 %v104_v23, %v100_v21  ;;  %v577_v27 = vpack.c.bf16 %v111_v25, %v107_v24  ;;  %v109_v28 = vld [vmem:[%s1026_s1 + $0x98] sm:$0xff]  ;;  %v106_v30 = vld [vmem:[%s1026_s1 + $0x80] sm:$0xff]  ;;  %v108_v33 = vld [vmem:[%s1026_s1 + $0x90] sm:$0xff] }
   0x8   :  { %606 = vmatprep.subr.bf16.mxu1 %v605_v18  ;;  %v113_v29 = vld [vmem:[%s1026_s1 + $0xb8] sm:$0xff]  ;;  %v110_v32 = vld [vmem:[%s1026_s1 + $0xa0] sm:$0xff]  ;;  %v112_v34 = vld [vmem:[%s1026_s1 + $0xb0] sm:$0xff] }
   0x9   :  { %v609_v31 = vpack.c.bf16 %v113_v29, %v109_v28  ;;  %v579_v35 = vpack.c.bf16 %v110_v32, %v106_v30  ;;  %v115_v36 = vld [vmem:[%s1026_s1 + $0xc8] sm:$0xff]  ;;  %v117_v38 = vld [vmem:[%s1026_s1 + $0xd8] sm:$0xff]  ;;  %v611_v39 = vpack.c.bf16 %v112_v34, %v108_v33  ;;  %v114_v42 = vld [vmem:[%s1026_s1 + $0xc0] sm:$0xff] }
   0xa   :  { %576 = vmatpush1.bf16.msra.mxu0 %v575_v22  ;;  %v119_v37 = vld [vmem:[%s1026_s1 + $0xe8] sm:$0xff]  ;;  %v121_v41 = vld [vmem:[%s1026_s1 + $0xf8] sm:$0xff]  ;;  %v118_v43 = vld [vmem:[%s1026_s1 + $0xe0] sm:$0xff] }
   0xb   :  { %608 = vmatpush1.bf16.msra.mxu1 %v607_v26  ;;  %578 = vmatprep.subr.bf16.mxu0 %v577_v27  ;;  %v581_v40 = vpack.c.bf16 %v119_v37, %v115_v36  ;;  %v613_v44 = vpack.c.bf16 %v121_v41, %v117_v38  ;;  %v116_v45 = vld [vmem:[%s1026_s1 + $0xd0] sm:$0xff]  ;;  %v123_v47 = vld [vmem:[%s1026_s1 + $0x108] sm:$0xff]  ;;  %v125_v49 = vld [vmem:[%s1026_s1 + $0x118] sm:$0xff]  ;;  %v583_v51 = vpack.c.bf16 %v118_v43, %v114_v42  ;;  %v481_v42 = vlaneseq }
   0xc   :  { %610 = vmatprep.subr.bf16.mxu1 %v609_v31  ;;  %v120_v46 = vld [vmem:[%s1026_s1 + $0xf0] sm:$0xff]  ;;  %v127_v48 = vld [vmem:[%s1026_s1 + $0x128] sm:$0xff]  ;;  %v129_v50 = vld [vmem:[%s1026_s1 + $0x138] sm:$0xff] }
   0xd   :  { %v615_v52 = vpack.c.bf16 %v120_v46, %v116_v45  ;;  %v585_v53 = vpack.c.bf16 %v127_v48, %v123_v47  ;;  %v122_v54 = vld [vmem:[%s1026_s1 + $0x100] sm:$0xff]  ;;  %v124_v56 = vld [vmem:[%s1026_s1 + $0x110] sm:$0xff]  ;;  %v617_v57 = vpack.c.bf16 %v129_v50, %v125_v49  ;;  %v131_v59 = vld [vmem:[%s1026_s1 + $0x148] sm:$0xff]  ;;  %v482_v43 = vshrl.u32 %v481_v42, 7 }
   0xe   :  { %580 = vmatpush1.bf16.msra.mxu0 %v579_v35  ;;  %v126_v55 = vld [vmem:[%s1026_s1 + $0x120] sm:$0xff]  ;;  %v128_v58 = vld [vmem:[%s1026_s1 + $0x130] sm:$0xff]  ;;  %v135_v60 = vld [vmem:[%s1026_s1 + $0x168] sm:$0xff] }
   0xf   :  { %612 = vmatpush1.bf16.msra.mxu1 %v611_v39  ;;  %582 = vmatprep.subr.bf16.mxu0 %v581_v40  ;;  %v133_v61 = vld [vmem:[%s1026_s1 + $0x158] sm:$0xff]  ;;  %v587_v63 = vpack.c.bf16 %v126_v55, %v122_v54  ;;  %v619_v0 = vpack.c.bf16 %v128_v58, %v124_v56  ;;  %v589_v1 = vpack.c.bf16 %v135_v60, %v131_v59  ;;  %v130_v2 = vld [vmem:[%s1026_s1 + $0x140] sm:$0xff]  ;;  %v132_v5 = vld [vmem:[%s1026_s1 + $0x150] sm:$0xff]  ;;  %v491_v46 = vsub.s32 2, %v482_v43 }
  0x10   :  { %614 = vmatprep.subr.bf16.mxu1 %v613_v44  ;;  %v137_v62 = vld [vmem:[%s1026_s1 + $0x178] sm:$0xff]  ;;  %v134_v4 = vld [vmem:[%s1026_s1 + $0x160] sm:$0xff]  ;;  %v136_v7 = vld [vmem:[%s1026_s1 + $0x170] sm:$0xff]  ;;  %v483_v44 = vsub.s32 0, %v482_v43  ;;  %v487_v47 = vsub.s32 1, %v482_v43  ;;  %v495_v48 = vsub.s32 3, %v482_v43 }
  0x11   :  { %v621_v6 = vpack.c.bf16 %v137_v62, %v133_v61  ;;  %v139_v8 = vld [vmem:[%s1026_s1 + $0x188] sm:$0xff]  ;;  %v141_v10 = vld [vmem:[%s1026_s1 + $0x198] sm:$0xff]  ;;  %v591_v12 = vpack.c.bf16 %v134_v4, %v130_v2  ;;  %v623_v13 = vpack.c.bf16 %v136_v7, %v132_v5  ;;  %v138_v15 = vld [vmem:[%s1026_s1 + $0x180] sm:$0xff] }
  0x12   :  { %584 = vmatpush1.bf16.msra.mxu0 %v583_v51  ;;  %v143_v9 = vld [vmem:[%s1026_s1 + $0x1a8] sm:$0xff]  ;;  %v145_v11 = vld [vmem:[%s1026_s1 + $0x1b8] sm:$0xff]  ;;  %v142_v16 = vld [vmem:[%s1026_s1 + $0x1a0] sm:$0xff] }
  0x13   :  { %616 = vmatpush1.bf16.msra.mxu1 %v615_v52  ;;  %586 = vmatprep.subr.bf16.mxu0 %v585_v53  ;;  %v593_v14 = vpack.c.bf16 %v143_v9, %v139_v8  ;;  %v140_v17 = vld [vmem:[%s1026_s1 + $0x190] sm:$0xff]  ;;  %v625_v18 = vpack.c.bf16 %v145_v11, %v141_v10  ;;  %v147_v20 = vld [vmem:[%s1026_s1 + $0x1c8] sm:$0xff]  ;;  %v149_v22 = vld [vmem:[%s1026_s1 + $0x1d8] sm:$0xff]  ;;  %v595_v24 = vpack.c.bf16 %v142_v16, %v138_v15 }
  0x14   :  { %618 = vmatprep.subr.bf16.mxu1 %v617_v57  ;;  %v144_v19 = vld [vmem:[%s1026_s1 + $0x1b0] sm:$0xff]  ;;  %v151_v21 = vld [vmem:[%s1026_s1 + $0x1e8] sm:$0xff]  ;;  %v153_v23 = vld [vmem:[%s1026_s1 + $0x1f8] sm:$0xff] }
  0x15   :  { %v627_v25 = vpack.c.bf16 %v144_v19, %v140_v17  ;;  %v597_v26 = vpack.c.bf16 %v151_v21, %v147_v20  ;;  %v146_v27 = vld [vmem:[%s1026_s1 + $0x1c0] sm:$0xff]  ;;  %v629_v29 = vpack.c.bf16 %v153_v23, %v149_v22  ;;  %v148_v30 = vld [vmem:[%s1026_s1 + $0x1d0] sm:$0xff]  ;;  %v83_v35 = vld [vmem:[%s1027_s0 + $0x8] sm:$0xff] }
  0x16   :  { %588 = vmatpush1.bf16.msra.mxu0 %v587_v63  ;;  %v150_v28 = vld [vmem:[%s1026_s1 + $0x1e0] sm:$0xff]  ;;  %v152_v31 = vld [vmem:[%s1026_s1 + $0x1f0] sm:$0xff]  ;;  %v85_v37 = vld [vmem:[%s1027_s0 + $0x18] sm:$0xff] }
  0x17   :  { %620 = vmatpush1.bf16.msra.mxu1 %v619_v0  ;;  %590 = vmatprep.subr.bf16.mxu0 %v589_v1  ;;  %v599_v32 = vpack.c.bf16 %v150_v28, %v146_v27  ;;  %v631_v33 = vpack.c.bf16 %v152_v31, %v148_v30  ;;  %v82_v34 = vld [vmem:[%s1027_s0] sm:$0xff]  ;;  %v84_v36 = vld [vmem:[%s1027_s0 + $0x10] sm:$0xff]  ;;  %v87_v39 = vld [vmem:[%s1027_s0 + $0x28] sm:$0xff] }
  0x18   :  { %622 = vmatprep.subr.bf16.mxu1 %v621_v6  ;;  %v86_v38 = vld [vmem:[%s1027_s0 + $0x20] sm:$0xff]  ;;  %v88_v40 = vld [vmem:[%s1027_s0 + $0x30] sm:$0xff]  ;;  %v89_v41 = vld [vmem:[%s1027_s0 + $0x38] sm:$0xff] }
  0x19   :  { %v479_v45 = vld [vmem:[%s1028_s2] sm:$0xf] }
  0x1a   :  { %592 = vmatpush1.bf16.msra.mxu0 %v591_v12  ;;  %v890_v49 = vrot.slane %v479_v45, %v483_v44  ;;  %v892_v50 = vrot.slane %v479_v45, %v491_v46  ;;  %v894_v51 = vrot.slane %v479_v45, %v487_v47  ;;  %v896_v52 = vrot.slane %v479_v45, %v495_v48 }
  0x1b   :  { %624 = vmatpush1.bf16.msra.mxu1 %v623_v13  ;;  %594 = vmatprep.subr.bf16.mxu0 %v593_v14 }
  0x1c   :  { %626 = vmatprep.subr.bf16.mxu1 %v625_v18 }
  0x1e   :  { %596 = vmatpush1.bf16.msra.mxu0 %v595_v24 }
  0x1f   :  { %628 = vmatpush1.bf16.msra.mxu1 %v627_v25  ;;  %598 = vmatprep.subr.bf16.mxu0 %v597_v26 }
  0x20   :  { %630 = vmatprep.subr.bf16.mxu1 %v629_v29 }
  0x22   :  { %600 = vmatpush1.bf16.msra.mxu0 %v599_v32 }
  0x23   :  { %632 = vmatpush1.bf16.msra.mxu1 %v631_v33 }
  0x25   :  { %219 = vmatmul.mubr.f32.vlgmr.msra.gmra.mrb[0].mxu0 %v82_v34 }
  0x26   :  { %332 = vmatmul.mubr.f32.vlgmr.msra.gmra.mrb[0].mxu1 %v82_v34  ;;  %224 = vmatprep.mubr.f32.mxu0 %v634_v3 }
  0x27   :  { %337 = vmatprep.mubr.f32.mxu1 %v634_v3 }
  0x29   :  { %225 = vmatmul.mubr.f32.gmra.mrb[2].mxu0 %v83_v35 }
  0x2a   :  { %338 = vmatmul.mubr.f32.gmra.mrb[2].mxu1 %v83_v35  ;;  %230 = vmatprep.mubr.f32.mxu0 %v634_v3 }
  0x2b   :  { %343 = vmatprep.mubr.f32.mxu1 %v634_v3 }
  0x2d   :  { %231 = vmatmul.mubr.f32.gmra.mrb[4].mxu0 %v84_v36 }
  0x2e   :  { %344 = vmatmul.mubr.f32.gmra.mrb[4].mxu1 %v84_v36  ;;  %236 = vmatprep.mubr.f32.mxu0 %v634_v3 }
  0x2f   :  { %349 = vmatprep.mubr.f32.mxu1 %v634_v3 }
  0x31   :  { %237 = vmatmul.mubr.f32.gmra.mrb[6].mxu0 %v85_v37 }
  0x32   :  { %350 = vmatmul.mubr.f32.gmra.mrb[6].mxu1 %v85_v37  ;;  %242 = vmatprep.mubr.f32.mxu0 %v634_v3 }
  0x33   :  { %355 = vmatprep.mubr.f32.mxu1 %v634_v3 }
  0x35   :  { %243 = vmatmul.mubr.f32.gmra.mrb[8].mxu0 %v86_v38 }
  0x36   :  { %356 = vmatmul.mubr.f32.gmra.mrb[8].mxu1 %v86_v38  ;;  %248 = vmatprep.mubr.f32.mxu0 %v634_v3 }
  0x37   :  { %361 = vmatprep.mubr.f32.mxu1 %v634_v3 }
  0x39   :  { %249 = vmatmul.mubr.f32.gmra.mrb[10].mxu0 %v87_v39 }
  0x3a   :  { %362 = vmatmul.mubr.f32.gmra.mrb[10].mxu1 %v87_v39  ;;  %254 = vmatprep.mubr.f32.mxu0 %v634_v3 }
  0x3b   :  { %367 = vmatprep.mubr.f32.mxu1 %v634_v3 }
  0x3d   :  { %255 = vmatmul.mubr.f32.gmra.mrb[12].mxu0 %v88_v40 }
  0x3e   :  { %368 = vmatmul.mubr.f32.gmra.mrb[12].mxu1 %v88_v40  ;;  %260 = vmatprep.mubr.f32.mxu0 %v634_v3 }
  0x3f   :  { %373 = vmatprep.mubr.f32.mxu1 %v634_v3 }
  0x41   :  { %261 = vmatmul.mubr.f32.gmra.mrb[14].mxu0 %v89_v41 }
  0x42   :  { %374 = vmatmul.mubr.f32.gmra.mrb[14].mxu1 %v89_v41 }
  0xf8   :  { %v220_v3 = vpop.f32.mrb[0].mxu0 }
  0xf9   :  { %v501_v53 = vadd.f32 %v890_v49, %v220_v3  ;;  %v333_v54 = vpop.f32.mrb[0].mxu1  ;;  %v222_v55 = vpop.f32.mrb[1].mxu0 }
  0xfa   :  { %v503_v56 = vadd.f32 %v892_v50, %v333_v54  ;;  %v502_v57 = vadd.f32 %v894_v51, %v222_v55  ;;  %v335_v58 = vpop.f32.mrb[1].mxu1 }
  0xfb   :  { %533 = vst [vmem:[%s1029_s3] sm:$0xff] %v501_v53  ;;  %v504_v59 = vadd.f32 %v896_v52, %v335_v58 }
  0xfc   :  { %535 = vst [vmem:[%s1029_s3 + $0x10] sm:$0xff] %v503_v56  ;;  %534 = vst [vmem:[%s1029_s3 + $0x8] sm:$0xff] %v502_v57  ;;  %v226_v60 = vpop.f32.mrb[2].mxu0 }
  0xfd   :  { %536 = vst [vmem:[%s1029_s3 + $0x18] sm:$0xff] %v504_v59  ;;  %v505_v61 = vadd.f32 %v890_v49, %v226_v60  ;;  %v339_v62 = vpop.f32.mrb[2].mxu1  ;;  %v228_v63 = vpop.f32.mrb[3].mxu0 }
  0xfe   :  { %v507_v0 = vadd.f32 %v892_v50, %v339_v62  ;;  %v506_v1 = vadd.f32 %v894_v51, %v228_v63  ;;  %v341_v2 = vpop.f32.mrb[3].mxu1 }
  0xff   :  { %537 = vst [vmem:[%s1029_s3 + $0x20] sm:$0xff] %v505_v61  ;;  %v508_v4 = vadd.f32 %v896_v52, %v341_v2 }
 0x100   :  { %539 = vst [vmem:[%s1029_s3 + $0x30] sm:$0xff] %v507_v0  ;;  %538 = vst [vmem:[%s1029_s3 + $0x28] sm:$0xff] %v506_v1  ;;  %v232_v5 = vpop.f32.mrb[4].mxu0 }
 0x101   :  { %540 = vst [vmem:[%s1029_s3 + $0x38] sm:$0xff] %v508_v4  ;;  %v509_v6 = vadd.f32 %v890_v49, %v232_v5  ;;  %v345_v7 = vpop.f32.mrb[4].mxu1  ;;  %v234_v8 = vpop.f32.mrb[5].mxu0 }
 0x102   :  { %v511_v9 = vadd.f32 %v892_v50, %v345_v7  ;;  %v510_v10 = vadd.f32 %v894_v51, %v234_v8  ;;  %v347_v11 = vpop.f32.mrb[5].mxu1 }
 0x103   :  { %541 = vst [vmem:[%s1029_s3 + $0x40] sm:$0xff] %v509_v6  ;;  %v512_v12 = vadd.f32 %v896_v52, %v347_v11 }
 0x104   :  { %543 = vst [vmem:[%s1029_s3 + $0x50] sm:$0xff] %v511_v9  ;;  %542 = vst [vmem:[%s1029_s3 + $0x48] sm:$0xff] %v510_v10  ;;  %v238_v13 = vpop.f32.mrb[6].mxu0 }
 0x105   :  { %544 = vst [vmem:[%s1029_s3 + $0x58] sm:$0xff] %v512_v12  ;;  %v513_v14 = vadd.f32 %v890_v49, %v238_v13  ;;  %v351_v15 = vpop.f32.mrb[6].mxu1  ;;  %v240_v16 = vpop.f32.mrb[7].mxu0 }
 0x106   :  { %v515_v17 = vadd.f32 %v892_v50, %v351_v15  ;;  %v514_v18 = vadd.f32 %v894_v51, %v240_v16  ;;  %v353_v19 = vpop.f32.mrb[7].mxu1 }
 0x107   :  { %545 = vst [vmem:[%s1029_s3 + $0x60] sm:$0xff] %v513_v14  ;;  %v516_v20 = vadd.f32 %v896_v52, %v353_v19 }
 0x108   :  { %547 = vst [vmem:[%s1029_s3 + $0x70] sm:$0xff] %v515_v17  ;;  %546 = vst [vmem:[%s1029_s3 + $0x68] sm:$0xff] %v514_v18  ;;  %v244_v21 = vpop.f32.mrb[8].mxu0 }
 0x109   :  { %548 = vst [vmem:[%s1029_s3 + $0x78] sm:$0xff] %v516_v20  ;;  %v517_v22 = vadd.f32 %v890_v49, %v244_v21  ;;  %v357_v23 = vpop.f32.mrb[8].mxu1  ;;  %v246_v24 = vpop.f32.mrb[9].mxu0 }
 0x10a   :  { %v519_v25 = vadd.f32 %v892_v50, %v357_v23  ;;  %v518_v26 = vadd.f32 %v894_v51, %v246_v24  ;;  %v359_v27 = vpop.f32.mrb[9].mxu1 }
 0x10b   :  { %549 = vst [vmem:[%s1029_s3 + $0x80] sm:$0xff] %v517_v22  ;;  %v520_v28 = vadd.f32 %v896_v52, %v359_v27 }
 0x10c   :  { %551 = vst [vmem:[%s1029_s3 + $0x90] sm:$0xff] %v519_v25  ;;  %550 = vst [vmem:[%s1029_s3 + $0x88] sm:$0xff] %v518_v26  ;;  %v250_v29 = vpop.f32.mrb[10].mxu0 }
 0x10d   :  { %552 = vst [vmem:[%s1029_s3 + $0x98] sm:$0xff] %v520_v28  ;;  %v521_v30 = vadd.f32 %v890_v49, %v250_v29  ;;  %v363_v31 = vpop.f32.mrb[10].mxu1  ;;  %v252_v32 = vpop.f32.mrb[11].mxu0 }
 0x10e   :  { %v523_v33 = vadd.f32 %v892_v50, %v363_v31  ;;  %v522_v34 = vadd.f32 %v894_v51, %v252_v32  ;;  %v365_v35 = vpop.f32.mrb[11].mxu1 }
 0x10f   :  { %553 = vst [vmem:[%s1029_s3 + $0xa0] sm:$0xff] %v521_v30  ;;  %v524_v36 = vadd.f32 %v896_v52, %v365_v35 }
 0x110   :  { %555 = vst [vmem:[%s1029_s3 + $0xb0] sm:$0xff] %v523_v33  ;;  %554 = vst [vmem:[%s1029_s3 + $0xa8] sm:$0xff] %v522_v34  ;;  %v256_v37 = vpop.f32.mrb[12].mxu0 }
 0x111   :  { %556 = vst [vmem:[%s1029_s3 + $0xb8] sm:$0xff] %v524_v36  ;;  %v525_v38 = vadd.f32 %v890_v49, %v256_v37  ;;  %v369_v39 = vpop.f32.mrb[12].mxu1  ;;  %v258_v40 = vpop.f32.mrb[13].mxu0 }
 0x112   :  { %v527_v41 = vadd.f32 %v892_v50, %v369_v39  ;;  %v526_v42 = vadd.f32 %v894_v51, %v258_v40  ;;  %v371_v43 = vpop.f32.mrb[13].mxu1 }
 0x113   :  { %557 = vst [vmem:[%s1029_s3 + $0xc0] sm:$0xff] %v525_v38  ;;  %v528_v44 = vadd.f32 %v896_v52, %v371_v43 }
 0x114   :  { %559 = vst [vmem:[%s1029_s3 + $0xd0] sm:$0xff] %v527_v41  ;;  %558 = vst [vmem:[%s1029_s3 + $0xc8] sm:$0xff] %v526_v42  ;;  %v262_v45 = vpop.f32.mrb[14].mxu0 }
 0x115   :  { %560 = vst [vmem:[%s1029_s3 + $0xd8] sm:$0xff] %v528_v44  ;;  %v529_v46 = vadd.f32 %v890_v49, %v262_v45  ;;  %v375_v47 = vpop.f32.mrb[14].mxu1  ;;  %v264_v48 = vpop.f32.mrb[15].mxu0 }
 0x116   :  { %v531_v3 = vadd.f32 %v892_v50, %v375_v47  ;;  %v530_v53 = vadd.f32 %v894_v51, %v264_v48  ;;  %v377_v54 = vpop.f32.mrb[15].mxu1 }
 0x117   :  { %561 = vst [vmem:[%s1029_s3 + $0xe0] sm:$0xff] %v529_v46  ;;  %v532_v55 = vadd.f32 %v896_v52, %v377_v54 }
 0x118   :  { %563 = vst [vmem:[%s1029_s3 + $0xf0] sm:$0xff] %v531_v3  ;;  %562 = vst [vmem:[%s1029_s3 + $0xe8] sm:$0xff] %v530_v53 }
 0x119   :  { %564 = vst [vmem:[%s1029_s3 + $0xf8] sm:$0xff] %v532_v55 }

// kernel: baseline2_forward.7
= control target key start
LH: loop header
LB: loop body
LE: loop exit
PB: predicated region body
PF: predicated region fallthrough
CT: control target
= control target key end

     0   :  { %s453_s1 = inlined_call_operand.vmem [shape: f32[128,128], index: 1, kind: input, shape index: {}]   ;;  %s454_s0 = inlined_call_operand.vmem [shape: f32[64,128], index: 0, kind: input, shape index: {}]   ;;  %s455_s2 = inlined_call_operand.vmem [shape: f32[1,128], index: 2, kind: input, shape index: {}]   ;;  %s456_s3 = inlined_call_operand.vmem [shape: f32[64,128], index: 3, kind: output, shape index: {}]  }
   0x1   :  { %v42_v0 = vld [vmem:[%s453_s1] sm:$0xff]  ;;  %v43_v1 = vld [vmem:[%s453_s1 + $0x8] sm:$0xff]  ;;  %v44_v2 = vld [vmem:[%s453_s1 + $0x10] sm:$0xff] }
   0x2   :  { %v286_v3 = vpack.c.bf16 %v43_v1, %v42_v0  ;;  %v45_v4 = vld [vmem:[%s453_s1 + $0x18] sm:$0xff]  ;;  %v46_v6 = vld [vmem:[%s453_s1 + $0x20] sm:$0xff]  ;;  %v47_v7 = vld [vmem:[%s453_s1 + $0x28] sm:$0xff] }
   0x3   :  { %v290_v5 = vpack.c.bf16 %v45_v4, %v44_v2  ;;  %v294_v8 = vpack.c.bf16 %v47_v7, %v46_v6  ;;  %v34_v9 = vld [vmem:[%s454_s0] sm:$0xff]  ;;  %v48_v11 = vld [vmem:[%s453_s1 + $0x30] sm:$0xff]  ;;  %v49_v12 = vld [vmem:[%s453_s1 + $0x38] sm:$0xff] }
   0x4   :  { %287 = vmatprep.subr.bf16.mxu0 %v286_v3  ;;  %318 = vmatprep.subr.bf16.mxu1 %v286_v3  ;;  %v38_v10 = vld [vmem:[%s454_s0 + $0x20] sm:$0xff]  ;;  %v298_v13 = vpack.c.bf16 %v49_v12, %v48_v11  ;;  %v51_v15 = vld [vmem:[%s453_s1 + $0x48] sm:$0xff]  ;;  %v52_v17 = vld [vmem:[%s453_s1 + $0x50] sm:$0xff] }
   0x5   :  { %289 = vmatpush3.bf16.msra.mxu0 %v286_v3  ;;  %326 = vmatpush3.bf16.msra.mxu1 %v286_v3  ;;  %v50_v14 = vld [vmem:[%s453_s1 + $0x40] sm:$0xff]  ;;  %v53_v18 = vld [vmem:[%s453_s1 + $0x58] sm:$0xff]  ;;  %v55_v21 = vld [vmem:[%s453_s1 + $0x68] sm:$0xff] }
   0x6   :  { %291 = vmatprep.subr.bf16.mxu0 %v290_v5  ;;  %319 = vmatprep.subr.bf16.mxu1 %v290_v5  ;;  %v302_v16 = vpack.c.bf16 %v51_v15, %v50_v14  ;;  %v306_v19 = vpack.c.bf16 %v53_v18, %v52_v17  ;;  %v54_v20 = vld [vmem:[%s453_s1 + $0x60] sm:$0xff]  ;;  %v56_v23 = vld [vmem:[%s453_s1 + $0x70] sm:$0xff]  ;;  %v57_v24 = vld [vmem:[%s453_s1 + $0x78] sm:$0xff] }
   0x7   :  { %274 = vmatprep.mubr.f32.mxu0 %v34_v9  ;;  %280 = vmatprep.mubr.f32.mxu1 %v38_v10  ;;  %v310_v22 = vpack.c.bf16 %v55_v21, %v54_v20  ;;  %v314_v25 = vpack.c.bf16 %v57_v24, %v56_v23  ;;  %v35_v26 = vld [vmem:[%s454_s0 + $0x8] sm:$0xff]  ;;  %v36_v28 = vld [vmem:[%s454_s0 + $0x10] sm:$0xff]  ;;  %v37_v30 = vld [vmem:[%s454_s0 + $0x18] sm:$0xff] }
   0x8   :  { %v39_v27 = vld [vmem:[%s454_s0 + $0x28] sm:$0xff]  ;;  %v40_v29 = vld [vmem:[%s454_s0 + $0x30] sm:$0xff]  ;;  %v41_v31 = vld [vmem:[%s454_s0 + $0x38] sm:$0xff] }
   0x9   :  { %293 = vmatpush3.bf16.msra.mxu0 %v290_v5  ;;  %327 = vmatpush3.bf16.msra.mxu1 %v290_v5  ;;  %v217_v32 = vld [vmem:[%s455_s2] ss:$0 sm:$0xff] }
   0xa   :  { %295 = vmatprep.subr.bf16.mxu0 %v294_v8  ;;  %320 = vmatprep.subr.bf16.mxu1 %v294_v8 }
   0xd   :  { %297 = vmatpush3.bf16.msra.mxu0 %v294_v8  ;;  %328 = vmatpush3.bf16.msra.mxu1 %v294_v8 }
   0xe   :  { %299 = vmatprep.subr.bf16.mxu0 %v298_v13  ;;  %321 = vmatprep.subr.bf16.mxu1 %v298_v13 }
  0x11   :  { %301 = vmatpush3.bf16.msra.mxu0 %v298_v13  ;;  %329 = vmatpush3.bf16.msra.mxu1 %v298_v13 }
  0x12   :  { %303 = vmatprep.subr.bf16.mxu0 %v302_v16  ;;  %322 = vmatprep.subr.bf16.mxu1 %v302_v16 }
  0x15   :  { %305 = vmatpush3.bf16.msra.mxu0 %v302_v16  ;;  %330 = vmatpush3.bf16.msra.mxu1 %v302_v16 }
  0x16   :  { %307 = vmatprep.subr.bf16.mxu0 %v306_v19  ;;  %323 = vmatprep.subr.bf16.mxu1 %v306_v19 }
  0x19   :  { %309 = vmatpush3.bf16.msra.mxu0 %v306_v19  ;;  %331 = vmatpush3.bf16.msra.mxu1 %v306_v19 }
  0x1a   :  { %311 = vmatprep.subr.bf16.mxu0 %v310_v22  ;;  %324 = vmatprep.subr.bf16.mxu1 %v310_v22 }
  0x1d   :  { %313 = vmatpush3.bf16.msra.mxu0 %v310_v22  ;;  %332 = vmatpush3.bf16.msra.mxu1 %v310_v22 }
  0x1e   :  { %315 = vmatprep.subr.bf16.mxu0 %v314_v25  ;;  %325 = vmatprep.subr.bf16.mxu1 %v314_v25 }
  0x21   :  { %317 = vmatpush3.bf16.msra.mxu0 %v314_v25  ;;  %333 = vmatpush3.bf16.msra.mxu1 %v314_v25 }
  0x24   :  { %275 = vmatmul.mubr.f32.vlgmr.msra.gmra.mrb[0].mxu0 %v35_v26  ;;  %281 = vmatmul.mubr.f32.vlgmr.msra.gmra.mrb[0].mxu1 %v39_v27 }
  0x25   :  { %277 = vmatprep.mubr.f32.mxu0 %v36_v28  ;;  %283 = vmatprep.mubr.f32.mxu1 %v40_v29 }
  0x28   :  { %278 = vmatmul.mubr.f32.gmra.mrb[2].mxu0 %v37_v30  ;;  %284 = vmatmul.mubr.f32.gmra.mrb[2].mxu1 %v41_v31 }
  0xf7   :  { %v276_v33 = vpop.f32.mrb[0].mxu0  ;;  %v282_v34 = vpop.f32.mrb[0].mxu1 }
  0xf8   :  { %v198_v35 = vadd.f32 %v276_v33, %v217_v32  ;;  %v202_v36 = vadd.f32 %v282_v34, %v217_v32  ;;  %v124_v37 = vpop.f32.mrb[1].mxu0  ;;  %v144_v38 = vpop.f32.mrb[1].mxu1 }
  0xf9   :  { %v197_v39 = vadd.f32 %v217_v32, %v124_v37  ;;  %v201_v40 = vadd.f32 %v217_v32, %v144_v38 }
  0xfa   :  { %206 = vst [vmem:[%s456_s3 + $0x8] sm:$0xff] %v198_v35  ;;  %210 = vst [vmem:[%s456_s3 + $0x28] sm:$0xff] %v202_v36 }
  0xfb   :  { %205 = vst [vmem:[%s456_s3] sm:$0xff] %v197_v39  ;;  %209 = vst [vmem:[%s456_s3 + $0x20] sm:$0xff] %v201_v40  ;;  %v279_v41 = vpop.f32.mrb[2].mxu0  ;;  %v285_v42 = vpop.f32.mrb[2].mxu1 }
  0xfc   :  { %v200_v43 = vadd.f32 %v279_v41, %v217_v32  ;;  %v204_v44 = vadd.f32 %v285_v42, %v217_v32  ;;  %v134_v45 = vpop.f32.mrb[3].mxu0  ;;  %v154_v46 = vpop.f32.mrb[3].mxu1 }
  0xfd   :  { %v199_v47 = vadd.f32 %v217_v32, %v134_v45  ;;  %v203_v48 = vadd.f32 %v217_v32, %v154_v46 }
  0xfe   :  { %208 = vst [vmem:[%s456_s3 + $0x18] sm:$0xff] %v200_v43  ;;  %212 = vst [vmem:[%s456_s3 + $0x38] sm:$0xff] %v204_v44 }
  0xff   :  { %207 = vst [vmem:[%s456_s3 + $0x10] sm:$0xff] %v199_v47  ;;  %211 = vst [vmem:[%s456_s3 + $0x30] sm:$0xff] %v203_v48 }

// kernel: baseline2_forward.4
= control target key start
LH: loop header
LB: loop body
LE: loop exit
PB: predicated region body
PF: predicated region fallthrough
CT: control target
= control target key end

     0   :  { %v1715_v47 = vmov 1983009808   ;;  %v298_v49 = vlaneseq  ;;  %vm938_vm0 = vcmask 123904   ;;  %vm985_vm1 = vcmask 130048   ;;  %s2610_s1 = inlined_call_operand.vmem [shape: f32[2048,16], index: 1, kind: input, shape index: {}]   ;;  %s2611_s0 = inlined_call_operand.vmem [shape: f32[2,2048], index: 0, kind: input, shape index: {}]   ;;  %s2612_s2 = inlined_call_operand.vmem [shape: f32[1,16], index: 2, kind: input, shape index: {}]   ;;  %s2613_s5 = inlined_call_operand.vmem [shape: f32[16,512], index: 5, kind: input, shape index: {}]   ;;  %s2614_s3 = inlined_call_operand.vmem [shape: f32[1,16], index: 3, kind: input, shape index: {}]   ;;  %s2615_s4 = inlined_call_operand.vmem [shape: f32[1,16], index: 4, kind: input, shape index: {}]   ;;  %s2616_s6 = inlined_call_operand.vmem [shape: f32[2,512], index: 6, kind: output, shape index: {}]  }
   0x1   :  { %v43_v0 = vld [vmem:[%s2610_s1 + $0x80] sm:$0xff]  ;;  %v44_v1 = vld [vmem:[%s2610_s1 + $0x88] sm:$0xff]  ;;  %v45_v11 = vld [vmem:[%s2610_s1 + $0x90] sm:$0xff]  ;;  %v296_v48 = vunpack.c.l.s4 %v1715_v47 }
   0x2   :  { %v27_v2 = vld [vmem:[%s2610_s1] sm:$0xff]  ;;  %v1443_v3 = vpack.c.bf16 %v44_v1, %v43_v0  ;;  %v28_v4 = vld [vmem:[%s2610_s1 + $0x8] sm:$0xff]  ;;  %v46_v13 = vld [vmem:[%s2610_s1 + $0x98] sm:$0xff]  ;;  %v299_v0 = vshrl.u32 %v298_v49, 7 }
   0x3   :  { %v75_v5 = vld [vmem:[%s2610_s1 + $0x180] sm:$0xff]  ;;  %v76_v6 = vld [vmem:[%s2610_s1 + $0x188] sm:$0xff]  ;;  %v1445_v7 = vpack.c.bf16 %v28_v4, %v27_v2  ;;  %v29_v14 = vld [vmem:[%s2610_s1 + $0x10] sm:$0xff]  ;;  %v1447_v16 = vpack.c.bf16 %v46_v13, %v45_v11  ;;  %v297_v63 = vunpack.c.0.s8 %v296_v48 }
   0x4   :  { %v1475_v8 = vpack.c.bf16 %v76_v6, %v75_v5  ;;  %v59_v9 = vld [vmem:[%s2610_s1 + $0x100] sm:$0xff]  ;;  %v60_v10 = vld [vmem:[%s2610_s1 + $0x108] sm:$0xff]  ;;  %1444 = vmatprep.subr.bf16.mxu0 %v1443_v3  ;;  %v30_v15 = vld [vmem:[%s2610_s1 + $0x18] sm:$0xff] }
   0x5   :  { %v1477_v12 = vpack.c.bf16 %v60_v10, %v59_v9  ;;  %1446 = vmatpush3.bf16.msra.mxu0 %v1445_v7  ;;  %v1449_v17 = vpack.c.bf16 %v30_v15, %v29_v14  ;;  %v77_v18 = vld [vmem:[%s2610_s1 + $0x190] sm:$0xff]  ;;  %v78_v19 = vld [vmem:[%s2610_s1 + $0x198] sm:$0xff]  ;;  %v47_v23 = vld [vmem:[%s2610_s1 + $0xa0] sm:$0xff]  ;;  %v1902_v13 = vsub.s32 %v297_v63, %v299_v0 }
   0x6   :  { %1476 = vmatprep.subr.bf16.mxu1 %v1475_v8  ;;  %v61_v20 = vld [vmem:[%s2610_s1 + $0x110] sm:$0xff]  ;;  %v1479_v21 = vpack.c.bf16 %v78_v19, %v77_v18  ;;  %v62_v22 = vld [vmem:[%s2610_s1 + $0x118] sm:$0xff]  ;;  %v48_v24 = vld [vmem:[%s2610_s1 + $0xa8] sm:$0xff]  ;;  %1448 = vmatprep.subr.bf16.mxu0 %v1447_v16 }
   0x7   :  { %1478 = vmatpush3.bf16.msra.mxu1 %v1477_v12  ;;  %v1481_v25 = vpack.c.bf16 %v62_v22, %v61_v20  ;;  %v1451_v26 = vpack.c.bf16 %v48_v24, %v47_v23  ;;  %v31_v27 = vld [vmem:[%s2610_s1 + $0x20] sm:$0xff]  ;;  %v32_v28 = vld [vmem:[%s2610_s1 + $0x28] sm:$0xff]  ;;  %v49_v35 = vld [vmem:[%s2610_s1 + $0xb0] sm:$0xff] }
   0x8   :  { %v79_v29 = vld [vmem:[%s2610_s1 + $0x1a0] sm:$0xff]  ;;  %1480 = vmatprep.subr.bf16.mxu1 %v1479_v21  ;;  %v80_v30 = vld [vmem:[%s2610_s1 + $0x1a8] sm:$0xff]  ;;  %v1453_v33 = vpack.c.bf16 %v32_v28, %v31_v27  ;;  %v50_v36 = vld [vmem:[%s2610_s1 + $0xb8] sm:$0xff] }
   0x9   :  { %v63_v31 = vld [vmem:[%s2610_s1 + $0x120] sm:$0xff]  ;;  %v64_v32 = vld [vmem:[%s2610_s1 + $0x128] sm:$0xff]  ;;  %1450 = vmatpush3.bf16.msra.mxu0 %v1449_v17  ;;  %v1483_v34 = vpack.c.bf16 %v80_v30, %v79_v29  ;;  %v33_v37 = vld [vmem:[%s2610_s1 + $0x30] sm:$0xff]  ;;  %v1455_v39 = vpack.c.bf16 %v50_v36, %v49_v35 }
   0xa   :  { %1452 = vmatprep.subr.bf16.mxu0 %v1451_v26  ;;  %v1485_v38 = vpack.c.bf16 %v64_v32, %v63_v31  ;;  %v34_v40 = vld [vmem:[%s2610_s1 + $0x38] sm:$0xff]  ;;  %v81_v41 = vld [vmem:[%s2610_s1 + $0x1b0] sm:$0xff]  ;;  %v51_v46 = vld [vmem:[%s2610_s1 + $0xc0] sm:$0xff] }
   0xb   :  { %1482 = vmatpush3.bf16.msra.mxu1 %v1481_v25  ;;  %v82_v42 = vld [vmem:[%s2610_s1 + $0x1b8] sm:$0xff]  ;;  %v65_v44 = vld [vmem:[%s2610_s1 + $0x130] sm:$0xff]  ;;  %v52_v50 = vld [vmem:[%s2610_s1 + $0xc8] sm:$0xff]  ;;  %v1457_v51 = vpack.c.bf16 %v34_v40, %v33_v37 }
   0xc   :  { %1484 = vmatprep.subr.bf16.mxu1 %v1483_v34  ;;  %v1487_v43 = vpack.c.bf16 %v82_v42, %v81_v41  ;;  %v66_v45 = vld [vmem:[%s2610_s1 + $0x138] sm:$0xff]  ;;  %v83_v52 = vld [vmem:[%s2610_s1 + $0x1c0] sm:$0xff]  ;;  %v84_v53 = vld [vmem:[%s2610_s1 + $0x1c8] sm:$0xff]  ;;  %v1459_v55 = vpack.c.bf16 %v52_v50, %v51_v46 }
   0xd   :  { %1454 = vmatpush3.bf16.msra.mxu0 %v1453_v33  ;;  %v1489_v54 = vpack.c.bf16 %v66_v45, %v65_v44  ;;  %v35_v56 = vld [vmem:[%s2610_s1 + $0x40] sm:$0xff]  ;;  %v36_v57 = vld [vmem:[%s2610_s1 + $0x48] sm:$0xff]  ;;  %v1491_v59 = vpack.c.bf16 %v84_v53, %v83_v52  ;;  %v53_v61 = vld [vmem:[%s2610_s1 + $0xd0] sm:$0xff] }
   0xe   :  { %1456 = vmatprep.subr.bf16.mxu0 %v1455_v39  ;;  %v67_v58 = vld [vmem:[%s2610_s1 + $0x140] sm:$0xff]  ;;  %v68_v60 = vld [vmem:[%s2610_s1 + $0x148] sm:$0xff]  ;;  %v54_v62 = vld [vmem:[%s2610_s1 + $0xd8] sm:$0xff]  ;;  %v1461_v3 = vpack.c.bf16 %v36_v57, %v35_v56 }
   0xf   :  { %1486 = vmatpush3.bf16.msra.mxu1 %v1485_v38  ;;  %v85_v1 = vld [vmem:[%s2610_s1 + $0x1d0] sm:$0xff]  ;;  %v86_v2 = vld [vmem:[%s2610_s1 + $0x1d8] sm:$0xff]  ;;  %v1493_v4 = vpack.c.bf16 %v68_v60, %v67_v58  ;;  %v1463_v5 = vpack.c.bf16 %v54_v62, %v53_v61  ;;  %v55_v11 = vld [vmem:[%s2610_s1 + $0xe0] sm:$0xff] }
  0x10   :  { %1488 = vmatprep.subr.bf16.mxu1 %v1487_v43  ;;  %v37_v6 = vld [vmem:[%s2610_s1 + $0x50] sm:$0xff]  ;;  %v38_v7 = vld [vmem:[%s2610_s1 + $0x58] sm:$0xff]  ;;  %v1495_v9 = vpack.c.bf16 %v86_v2, %v85_v1  ;;  %v56_v12 = vld [vmem:[%s2610_s1 + $0xe8] sm:$0xff] }
  0x11   :  { %1458 = vmatpush3.bf16.msra.mxu0 %v1457_v51  ;;  %v69_v8 = vld [vmem:[%s2610_s1 + $0x150] sm:$0xff]  ;;  %v70_v10 = vld [vmem:[%s2610_s1 + $0x158] sm:$0xff]  ;;  %v87_v14 = vld [vmem:[%s2610_s1 + $0x1e0] sm:$0xff]  ;;  %v1465_v16 = vpack.c.bf16 %v38_v7, %v37_v6  ;;  %v1467_v19 = vpack.c.bf16 %v56_v12, %v55_v11 }
  0x12   :  { %1460 = vmatprep.subr.bf16.mxu0 %v1459_v55  ;;  %v88_v15 = vld [vmem:[%s2610_s1 + $0x1e8] sm:$0xff]  ;;  %v39_v17 = vld [vmem:[%s2610_s1 + $0x60] sm:$0xff]  ;;  %v1497_v18 = vpack.c.bf16 %v70_v10, %v69_v8  ;;  %v57_v25 = vld [vmem:[%s2610_s1 + $0xf0] sm:$0xff] }
  0x13   :  { %1490 = vmatpush3.bf16.msra.mxu1 %v1489_v54  ;;  %v40_v20 = vld [vmem:[%s2610_s1 + $0x68] sm:$0xff]  ;;  %v71_v21 = vld [vmem:[%s2610_s1 + $0x160] sm:$0xff]  ;;  %v1499_v23 = vpack.c.bf16 %v88_v15, %v87_v14  ;;  %v58_v26 = vld [vmem:[%s2610_s1 + $0xf8] sm:$0xff] }
  0x14   :  { %1492 = vmatprep.subr.bf16.mxu1 %v1491_v59  ;;  %v23_v22 = vld [vmem:[%s2611_s0] sm:$0xff]  ;;  %v72_v24 = vld [vmem:[%s2610_s1 + $0x168] sm:$0xff]  ;;  %v89_v29 = vld [vmem:[%s2610_s1 + $0x1f0] sm:$0xff]  ;;  %v1469_v31 = vpack.c.bf16 %v40_v20, %v39_v17  ;;  %v1471_v35 = vpack.c.bf16 %v58_v26, %v57_v25 }
  0x15   :  { %1462 = vmatpush3.bf16.msra.mxu0 %v1461_v3  ;;  %v301_v27 = vrot.slane %v23_v22, %v1902_v13  ;;  %v294_v28 = vcombine.high %v23_v22, %v23_v22  ;;  %v90_v30 = vld [vmem:[%s2610_s1 + $0x1f8] sm:$0xff]  ;;  %v1501_v34 = vpack.c.bf16 %v72_v24, %v71_v21  ;;  %v41_v36 = vld [vmem:[%s2610_s1 + $0x70] sm:$0xff]  ;;  %v107_v41 = vld [vmem:[%s2610_s1 + $0x280] sm:$0xff] }
  0x16   :  { %1464 = vmatprep.subr.bf16.mxu0 %v1463_v5  ;;  %v42_v37 = vld [vmem:[%s2610_s1 + $0x78] sm:$0xff]  ;;  %v73_v38 = vld [vmem:[%s2610_s1 + $0x170] sm:$0xff]  ;;  %v1503_v39 = vpack.c.bf16 %v90_v30, %v89_v29  ;;  %v108_v42 = vld [vmem:[%s2610_s1 + $0x288] sm:$0xff] }
  0x17   :  { %1494 = vmatpush3.bf16.msra.mxu1 %v1493_v4  ;;  %v309_v32 = vcombine.high %v301_v27, %v301_v27  ;;  %v308_v33 = vrot.slane %v294_v28, %v1902_v13  ;;  %v74_v40 = vld [vmem:[%s2610_s1 + $0x178] sm:$0xff]  ;;  %v139_v44 = vld [vmem:[%s2610_s1 + $0x380] sm:$0xff]  ;;  %v140_v45 = vld [vmem:[%s2610_s1 + $0x388] sm:$0xff]  ;;  %v1473_v46 = vpack.c.bf16 %v42_v37, %v41_v36  ;;  %v1507_v48 = vpack.c.bf16 %v108_v42, %v107_v41 }
  0x18   :  { %1496 = vmatprep.subr.bf16.mxu1 %v1495_v9  ;;  %v1505_v47 = vpack.c.bf16 %v74_v40, %v73_v38  ;;  %v91_v49 = vld [vmem:[%s2610_s1 + $0x200] sm:$0xff]  ;;  %v92_v50 = vld [vmem:[%s2610_s1 + $0x208] sm:$0xff]  ;;  %v1539_v52 = vpack.c.bf16 %v140_v45, %v139_v44  ;;  %v109_v54 = vld [vmem:[%s2610_s1 + $0x290] sm:$0xff] }
  0x19   :  { %1466 = vmatpush3.bf16.msra.mxu0 %v1465_v16  ;;  %442 = vmatprep.mubr.f32.mxu0 %v309_v32  ;;  %v310_v43 = vcombine.high %v308_v33, %v308_v33  ;;  %v123_v51 = vld [vmem:[%s2610_s1 + $0x300] sm:$0xff]  ;;  %v124_v53 = vld [vmem:[%s2610_s1 + $0x308] sm:$0xff]  ;;  %v110_v55 = vld [vmem:[%s2610_s1 + $0x298] sm:$0xff]  ;;  %v1509_v58 = vpack.c.bf16 %v92_v50, %v91_v49 }
  0x1a   :  { %1468 = vmatprep.subr.bf16.mxu0 %v1467_v19  ;;  %v141_v56 = vld [vmem:[%s2610_s1 + $0x390] sm:$0xff]  ;;  %v142_v57 = vld [vmem:[%s2610_s1 + $0x398] sm:$0xff]  ;;  %v1541_v59 = vpack.c.bf16 %v124_v53, %v123_v51  ;;  %v1511_v60 = vpack.c.bf16 %v110_v55, %v109_v54  ;;  %v111_v2 = vld [vmem:[%s2610_s1 + $0x2a0] sm:$0xff] }
  0x1b   :  { %1498 = vmatpush3.bf16.msra.mxu1 %v1497_v18  ;;  %512 = vmatprep.mubr.f32.mxu1 %v310_v43  ;;  %v93_v61 = vld [vmem:[%s2610_s1 + $0x210] sm:$0xff]  ;;  %v94_v62 = vld [vmem:[%s2610_s1 + $0x218] sm:$0xff]  ;;  %v1543_v0 = vpack.c.bf16 %v142_v57, %v141_v56  ;;  %v112_v3 = vld [vmem:[%s2610_s1 + $0x2a8] sm:$0xff] }
  0x1c   :  { %1500 = vmatprep.subr.bf16.mxu1 %v1499_v23  ;;  %v125_v63 = vld [vmem:[%s2610_s1 + $0x310] sm:$0xff]  ;;  %v126_v1 = vld [vmem:[%s2610_s1 + $0x318] sm:$0xff]  ;;  %v143_v4 = vld [vmem:[%s2610_s1 + $0x3a0] sm:$0xff]  ;;  %v1513_v6 = vpack.c.bf16 %v94_v62, %v93_v61  ;;  %v1515_v8 = vpack.c.bf16 %v112_v3, %v111_v2 }
  0x1d   :  { %1470 = vmatpush3.bf16.msra.mxu0 %v1469_v31  ;;  %v144_v5 = vld [vmem:[%s2610_s1 + $0x3a8] sm:$0xff]  ;;  %v1545_v7 = vpack.c.bf16 %v126_v1, %v125_v63  ;;  %v95_v9 = vld [vmem:[%s2610_s1 + $0x220] sm:$0xff]  ;;  %v113_v15 = vld [vmem:[%s2610_s1 + $0x2b0] sm:$0xff] }
  0x1e   :  { %1472 = vmatprep.subr.bf16.mxu0 %v1471_v35  ;;  %v96_v10 = vld [vmem:[%s2610_s1 + $0x228] sm:$0xff]  ;;  %v127_v11 = vld [vmem:[%s2610_s1 + $0x320] sm:$0xff]  ;;  %v1547_v12 = vpack.c.bf16 %v144_v5, %v143_v4  ;;  %v114_v16 = vld [vmem:[%s2610_s1 + $0x2b8] sm:$0xff] }
  0x1f   :  { %1502 = vmatpush3.bf16.msra.mxu1 %v1501_v34  ;;  %v128_v14 = vld [vmem:[%s2610_s1 + $0x328] sm:$0xff]  ;;  %v145_v17 = vld [vmem:[%s2610_s1 + $0x3b0] sm:$0xff]  ;;  %v146_v18 = vld [vmem:[%s2610_s1 + $0x3b8] sm:$0xff]  ;;  %v1517_v19 = vpack.c.bf16 %v96_v10, %v95_v9  ;;  %v1519_v21 = vpack.c.bf16 %v114_v16, %v113_v15 }
  0x20   :  { %1504 = vmatprep.subr.bf16.mxu1 %v1503_v39  ;;  %v1549_v20 = vpack.c.bf16 %v128_v14, %v127_v11  ;;  %v97_v22 = vld [vmem:[%s2610_s1 + $0x230] sm:$0xff]  ;;  %v98_v23 = vld [vmem:[%s2610_s1 + $0x238] sm:$0xff]  ;;  %v1551_v25 = vpack.c.bf16 %v146_v18, %v145_v17  ;;  %v116_v28 = vld [vmem:[%s2610_s1 + $0x2c8] sm:$0xff] }
  0x21   :  { %1474 = vmatpush3.bf16.msra.mxu0 %v1473_v46  ;;  %v129_v24 = vld [vmem:[%s2610_s1 + $0x330] sm:$0xff]  ;;  %v130_v26 = vld [vmem:[%s2610_s1 + $0x338] sm:$0xff]  ;;  %v147_v29 = vld [vmem:[%s2610_s1 + $0x3c0] sm:$0xff]  ;;  %v1521_v32 = vpack.c.bf16 %v98_v23, %v97_v22 }
  0x22   :  { %1508 = vmatprep.subr.bf16.mxu0 %v1507_v48  ;;  %v148_v30 = vld [vmem:[%s2610_s1 + $0x3c8] sm:$0xff]  ;;  %v1553_v35 = vpack.c.bf16 %v130_v26, %v129_v24  ;;  %v99_v37 = vld [vmem:[%s2610_s1 + $0x240] sm:$0xff]  ;;  %v117_v42 = vld [vmem:[%s2610_s1 + $0x2d0] sm:$0xff] }
  0x23   :  { %1506 = vmatpush3.bf16.msra.mxu1 %v1505_v47  ;;  %v24_v31 = vld [vmem:[%s2611_s0 + $0x8] sm:$0xff]  ;;  %v131_v39 = vld [vmem:[%s2610_s1 + $0x340] sm:$0xff]  ;;  %v1555_v40 = vpack.c.bf16 %v148_v30, %v147_v29  ;;  %v118_v43 = vld [vmem:[%s2610_s1 + $0x2d8] sm:$0xff] }
  0x24   :  { %1540 = vmatprep.subr.bf16.mxu1 %v1539_v52  ;;  %443 = vmatmul.mubr.f32.vlgmr.msra.gmra.mrb[0].mxu0 %v301_v27  ;;  %v115_v27 = vld [vmem:[%s2610_s1 + $0x2c0] sm:$0xff]  ;;  %v311_v34 = vcombine.high %v24_v31, %v24_v31  ;;  %v100_v38 = vld [vmem:[%s2610_s1 + $0x248] sm:$0xff]  ;;  %v149_v46 = vld [vmem:[%s2610_s1 + $0x3d0] sm:$0xff]  ;;  %v1527_v51 = vpack.c.bf16 %v118_v43, %v117_v42 }
  0x25   :  { %1510 = vmatpush3.bf16.msra.mxu0 %v1509_v58  ;;  %v1523_v36 = vpack.c.bf16 %v116_v28, %v115_v27  ;;  %v132_v41 = vld [vmem:[%s2610_s1 + $0x348] sm:$0xff]  ;;  %v150_v47 = vld [vmem:[%s2610_s1 + $0x3d8] sm:$0xff]  ;;  %v1525_v48 = vpack.c.bf16 %v100_v38, %v99_v37  ;;  %v101_v52 = vld [vmem:[%s2610_s1 + $0x250] sm:$0xff] }
  0x26   :  { %513 = vmatmul.mubr.f32.vlgmr.msra.gmra.mrb[0].mxu1 %v308_v33  ;;  %1512 = vmatprep.subr.bf16.mxu0 %v1511_v60  ;;  %v2063_v33 = vrot.slane %v24_v31, %v1902_v13  ;;  %v2086_v45 = vrot.slane %v311_v34, %v1902_v13  ;;  %v1557_v50 = vpack.c.bf16 %v132_v41, %v131_v39  ;;  %v102_v53 = vld [vmem:[%s2610_s1 + $0x258] sm:$0xff]  ;;  %v133_v54 = vld [vmem:[%s2610_s1 + $0x350] sm:$0xff]  ;;  %v119_v57 = vld [vmem:[%s2610_s1 + $0x2e0] sm:$0xff] }
  0x27   :  { %1542 = vmatpush3.bf16.msra.mxu1 %v1541_v59  ;;  %v1559_v55 = vpack.c.bf16 %v150_v47, %v149_v46  ;;  %v134_v56 = vld [vmem:[%s2610_s1 + $0x358] sm:$0xff]  ;;  %v120_v58 = vld [vmem:[%s2610_s1 + $0x2e8] sm:$0xff]  ;;  %v151_v59 = vld [vmem:[%s2610_s1 + $0x3e0] sm:$0xff]  ;;  %v1529_v61 = vpack.c.bf16 %v102_v53, %v101_v52 }
  0x28   :  { %1544 = vmatprep.subr.bf16.mxu1 %v1543_v0  ;;  %v326_v44 = vcombine.high %v2063_v33, %v2063_v33  ;;  %v327_v49 = vcombine.high %v2086_v45, %v2086_v45  ;;  %v152_v60 = vld [vmem:[%s2610_s1 + $0x3e8] sm:$0xff]  ;;  %v1561_v62 = vpack.c.bf16 %v134_v56, %v133_v54  ;;  %v1531_v63 = vpack.c.bf16 %v120_v58, %v119_v57  ;;  %v103_v0 = vld [vmem:[%s2610_s1 + $0x260] sm:$0xff]  ;;  %v121_v5 = vld [vmem:[%s2610_s1 + $0x2f0] sm:$0xff] }
  0x29   :  { %1514 = vmatpush3.bf16.msra.mxu0 %v1513_v6  ;;  %v104_v1 = vld [vmem:[%s2610_s1 + $0x268] sm:$0xff]  ;;  %v135_v2 = vld [vmem:[%s2610_s1 + $0x360] sm:$0xff]  ;;  %v1563_v3 = vpack.c.bf16 %v152_v60, %v151_v59  ;;  %v122_v6 = vld [vmem:[%s2610_s1 + $0x2f8] sm:$0xff] }
  0x2a   :  { %1516 = vmatprep.subr.bf16.mxu0 %v1515_v8  ;;  %582 = vmatprep.mubr.f32.mxu0 %v326_v44  ;;  %v136_v4 = vld [vmem:[%s2610_s1 + $0x368] sm:$0xff]  ;;  %v154_v8 = vld [vmem:[%s2610_s1 + $0x3f8] sm:$0xff]  ;;  %v1533_v9 = vpack.c.bf16 %v104_v1, %v103_v0  ;;  %v1535_v11 = vpack.c.bf16 %v122_v6, %v121_v5  ;;  %v137_v15 = vld [vmem:[%s2610_s1 + $0x370] sm:$0xff] }
  0x2b   :  { %1546 = vmatpush3.bf16.msra.mxu1 %v1545_v7  ;;  %652 = vmatprep.mubr.f32.mxu1 %v327_v49  ;;  %v153_v7 = vld [vmem:[%s2610_s1 + $0x3f0] sm:$0xff]  ;;  %v1565_v10 = vpack.c.bf16 %v136_v4, %v135_v2  ;;  %v106_v14 = vld [vmem:[%s2610_s1 + $0x278] sm:$0xff]  ;;  %v171_v18 = vld [vmem:[%s2610_s1 + $0x480] sm:$0xff] }
  0x2c   :  { %1548 = vmatprep.subr.bf16.mxu1 %v1547_v12  ;;  %v105_v12 = vld [vmem:[%s2610_s1 + $0x270] sm:$0xff]  ;;  %v1567_v16 = vpack.c.bf16 %v154_v8, %v153_v7  ;;  %v138_v17 = vld [vmem:[%s2610_s1 + $0x378] sm:$0xff]  ;;  %v155_v23 = vld [vmem:[%s2610_s1 + $0x400] sm:$0xff] }
  0x2d   :  { %1518 = vmatpush3.bf16.msra.mxu0 %v1517_v19  ;;  %v172_v19 = vld [vmem:[%s2610_s1 + $0x488] sm:$0xff]  ;;  %v1537_v22 = vpack.c.bf16 %v106_v14, %v105_v12  ;;  %v1569_v24 = vpack.c.bf16 %v138_v17, %v137_v15  ;;  %v187_v27 = vld [vmem:[%s2610_s1 + $0x500] sm:$0xff]  ;;  %v173_v30 = vld [vmem:[%s2610_s1 + $0x490] sm:$0xff] }
  0x2e   :  { %1520 = vmatprep.subr.bf16.mxu0 %v1519_v21  ;;  %v204_v21 = vld [vmem:[%s2610_s1 + $0x588] sm:$0xff]  ;;  %v174_v31 = vld [vmem:[%s2610_s1 + $0x498] sm:$0xff]  ;;  %v25_v37 = vld [vmem:[%s2611_s0 + $0x10] sm:$0xff] }
  0x2f   :  { %1550 = vmatpush3.bf16.msra.mxu1 %v1549_v20  ;;  %v203_v20 = vld [vmem:[%s2610_s1 + $0x580] sm:$0xff]  ;;  %v156_v26 = vld [vmem:[%s2610_s1 + $0x408] sm:$0xff]  ;;  %v206_v34 = vld [vmem:[%s2610_s1 + $0x598] sm:$0xff]  ;;  %v1575_v38 = vpack.c.bf16 %v174_v31, %v173_v30  ;;  %v2205_v42 = vrot.slane %v25_v37, %v1902_v13  ;;  %v328_v43 = vcombine.high %v25_v37, %v25_v37 }
  0x30   :  { %1552 = vmatprep.subr.bf16.mxu1 %v1551_v25  ;;  %v1571_v25 = vpack.c.bf16 %v172_v19, %v171_v18  ;;  %v188_v28 = vld [vmem:[%s2610_s1 + $0x508] sm:$0xff]  ;;  %v1603_v29 = vpack.c.bf16 %v204_v21, %v203_v20  ;;  %v157_v39 = vld [vmem:[%s2610_s1 + $0x410] sm:$0xff]  ;;  %v190_v46 = vld [vmem:[%s2610_s1 + $0x518] sm:$0xff] }
  0x31   :  { %1522 = vmatpush3.bf16.msra.mxu0 %v1521_v32  ;;  %v205_v32 = vld [vmem:[%s2610_s1 + $0x590] sm:$0xff]  ;;  %v175_v47 = vld [vmem:[%s2610_s1 + $0x4a0] sm:$0xff]  ;;  %v2226_v52 = vrot.slane %v328_v43, %v1902_v13  ;;  %v160_v56 = vld [vmem:[%s2610_s1 + $0x428] sm:$0xff] }
  0x32   :  { %1524 = vmatprep.subr.bf16.mxu0 %v1523_v36  ;;  %v1605_v36 = vpack.c.bf16 %v188_v28, %v187_v27  ;;  %v189_v41 = vld [vmem:[%s2610_s1 + $0x510] sm:$0xff]  ;;  %v1607_v44 = vpack.c.bf16 %v206_v34, %v205_v32  ;;  %v207_v49 = vld [vmem:[%s2610_s1 + $0x5a0] sm:$0xff]  ;;  %v192_v59 = vld [vmem:[%s2610_s1 + $0x528] sm:$0xff] }
  0x33   :  { %1554 = vmatpush3.bf16.msra.mxu1 %v1553_v35  ;;  %v1573_v35 = vpack.c.bf16 %v156_v26, %v155_v23  ;;  %v191_v57 = vld [vmem:[%s2610_s1 + $0x520] sm:$0xff]  ;;  %v177_v60 = vld [vmem:[%s2610_s1 + $0x4b0] sm:$0xff]  ;;  %v162_v4 = vld [vmem:[%s2610_s1 + $0x438] sm:$0xff] }
  0x34   :  { %1556 = vmatprep.subr.bf16.mxu1 %v1555_v40  ;;  %v158_v40 = vld [vmem:[%s2610_s1 + $0x418] sm:$0xff]  ;;  %v1613_v1 = vpack.c.bf16 %v192_v59, %v191_v57  ;;  %v193_v5 = vld [vmem:[%s2610_s1 + $0x530] sm:$0xff]  ;;  %v179_v8 = vld [vmem:[%s2610_s1 + $0x4c0] sm:$0xff] }
  0x35   :  { %1526 = vmatpush3.bf16.msra.mxu0 %v1525_v48  ;;  %v176_v48 = vld [vmem:[%s2610_s1 + $0x4a8] sm:$0xff]  ;;  %v1577_v53 = vpack.c.bf16 %v158_v40, %v157_v39  ;;  %v194_v7 = vld [vmem:[%s2610_s1 + $0x538] sm:$0xff]  ;;  %v195_v18 = vld [vmem:[%s2610_s1 + $0x540] sm:$0xff] }
  0x36   :  { %1528 = vmatprep.subr.bf16.mxu0 %v1527_v51  ;;  %v343_v51 = vcombine.high %v2205_v42, %v2205_v42  ;;  %v1579_v54 = vpack.c.bf16 %v176_v48, %v175_v47  ;;  %v1617_v14 = vpack.c.bf16 %v194_v7, %v193_v5  ;;  %v164_v17 = vld [vmem:[%s2610_s1 + $0x448] sm:$0xff]  ;;  %v181_v21 = vld [vmem:[%s2610_s1 + $0x4d0] sm:$0xff]  ;;  %v198_v32 = vld [vmem:[%s2610_s1 + $0x558] sm:$0xff] }
  0x37   :  { %1558 = vmatpush3.bf16.msra.mxu1 %v1557_v50  ;;  %v208_v50 = vld [vmem:[%s2610_s1 + $0x5a8] sm:$0xff]  ;;  %v213_v23 = vld [vmem:[%s2610_s1 + $0x5d0] sm:$0xff]  ;;  %v183_v34 = vld [vmem:[%s2610_s1 + $0x4e0] sm:$0xff] }
  0x38   :  { %1560 = vmatprep.subr.bf16.mxu1 %v1559_v55  ;;  %v159_v55 = vld [vmem:[%s2610_s1 + $0x420] sm:$0xff]  ;;  %v1611_v58 = vpack.c.bf16 %v208_v50, %v207_v49  ;;  %v196_v20 = vld [vmem:[%s2610_s1 + $0x548] sm:$0xff]  ;;  %v165_v28 = vld [vmem:[%s2610_s1 + $0x450] sm:$0xff] }
  0x39   :  { %1530 = vmatpush3.bf16.msra.mxu0 %v1529_v61  ;;  %v178_v61 = vld [vmem:[%s2610_s1 + $0x4b8] sm:$0xff]  ;;  %v1581_v0 = vpack.c.bf16 %v160_v56, %v159_v55  ;;  %v1621_v26 = vpack.c.bf16 %v196_v20, %v195_v18  ;;  %v197_v30 = vld [vmem:[%s2610_s1 + $0x550] sm:$0xff]  ;;  %v216_v37 = vld [vmem:[%s2610_s1 + $0x5e8] sm:$0xff] }
  0x3a   :  { %1532 = vmatprep.subr.bf16.mxu0 %v1531_v63  ;;  %v210_v63 = vld [vmem:[%s2610_s1 + $0x5b8] sm:$0xff]  ;;  %v1583_v2 = vpack.c.bf16 %v178_v61, %v177_v60  ;;  %v1625_v39 = vpack.c.bf16 %v198_v32, %v197_v30  ;;  %v168_v43 = vld [vmem:[%s2610_s1 + $0x468] sm:$0xff]  ;;  %v185_v48 = vld [vmem:[%s2610_s1 + $0x4f0] sm:$0xff] }
  0x3b   :  { %1562 = vmatpush3.bf16.msra.mxu1 %v1561_v62  ;;  %v209_v62 = vld [vmem:[%s2610_s1 + $0x5b0] sm:$0xff]  ;;  %v200_v47 = vld [vmem:[%s2610_s1 + $0x568] sm:$0xff]  ;;  %v186_v49 = vld [vmem:[%s2610_s1 + $0x4f8] sm:$0xff] }
  0x3c   :  { %1564 = vmatprep.subr.bf16.mxu1 %v1563_v3  ;;  %v161_v3 = vld [vmem:[%s2610_s1 + $0x430] sm:$0xff]  ;;  %v1615_v6 = vpack.c.bf16 %v210_v63, %v209_v62  ;;  %v1599_v55 = vpack.c.bf16 %v186_v49, %v185_v48  ;;  %v170_v57 = vld [vmem:[%s2610_s1 + $0x478] sm:$0xff]  ;;  %v235_v60 = vld [vmem:[%s2610_s1 + $0x680] sm:$0xff] }
  0x3d   :  { %1534 = vmatpush3.bf16.msra.mxu0 %v1533_v9  ;;  %v180_v9 = vld [vmem:[%s2610_s1 + $0x4c8] sm:$0xff]  ;;  %v1585_v12 = vpack.c.bf16 %v162_v4, %v161_v3  ;;  %v217_v50 = vld [vmem:[%s2610_s1 + $0x5f0] sm:$0xff]  ;;  %v202_v59 = vld [vmem:[%s2610_s1 + $0x578] sm:$0xff] }
  0x3e   :  { %1536 = vmatprep.subr.bf16.mxu0 %v1535_v11  ;;  %v212_v11 = vld [vmem:[%s2610_s1 + $0x5c8] sm:$0xff]  ;;  %v1587_v15 = vpack.c.bf16 %v180_v9, %v179_v8  ;;  %v169_v56 = vld [vmem:[%s2610_s1 + $0x470] sm:$0xff]  ;;  %v267_v62 = vld [vmem:[%s2610_s1 + $0x780] sm:$0xff] }
  0x3f   :  { %1566 = vmatpush3.bf16.msra.mxu1 %v1565_v10  ;;  %v211_v10 = vld [vmem:[%s2610_s1 + $0x5c0] sm:$0xff]  ;;  %v236_v61 = vld [vmem:[%s2610_s1 + $0x688] sm:$0xff]  ;;  %v237_v9 = vld [vmem:[%s2610_s1 + $0x690] sm:$0xff] }
  0x40   :  { %1568 = vmatprep.subr.bf16.mxu1 %v1567_v16  ;;  %v163_v16 = vld [vmem:[%s2610_s1 + $0x440] sm:$0xff]  ;;  %v1619_v19 = vpack.c.bf16 %v212_v11, %v211_v10  ;;  %v268_v63 = vld [vmem:[%s2610_s1 + $0x788] sm:$0xff]  ;;  %v1635_v3 = vpack.c.bf16 %v236_v61, %v235_v60  ;;  %v238_v10 = vld [vmem:[%s2610_s1 + $0x698] sm:$0xff] }
  0x41   :  { %1538 = vmatpush3.bf16.msra.mxu0 %v1537_v22  ;;  %v182_v22 = vld [vmem:[%s2610_s1 + $0x4d8] sm:$0xff]  ;;  %v219_v4 = vld [vmem:[%s2610_s1 + $0x600] sm:$0xff]  ;;  %v220_v5 = vld [vmem:[%s2610_s1 + $0x608] sm:$0xff]  ;;  %v1667_v7 = vpack.c.bf16 %v268_v63, %v267_v62  ;;  %v1639_v18 = vpack.c.bf16 %v238_v10, %v237_v9 }
  0x42   :  { %1572 = vmatprep.subr.bf16.mxu0 %v1571_v25  ;;  %v1589_v25 = vpack.c.bf16 %v164_v17, %v163_v16  ;;  %v1591_v27 = vpack.c.bf16 %v182_v22, %v181_v21  ;;  %v252_v8 = vld [vmem:[%s2610_s1 + $0x708] sm:$0xff]  ;;  %v1637_v16 = vpack.c.bf16 %v220_v5, %v219_v4  ;;  %v222_v20 = vld [vmem:[%s2610_s1 + $0x618] sm:$0xff]  ;;  %v253_v21 = vld [vmem:[%s2610_s1 + $0x710] sm:$0xff] }
  0x43   :  { %1570 = vmatpush3.bf16.msra.mxu1 %v1569_v24  ;;  %v214_v24 = vld [vmem:[%s2610_s1 + $0x5d8] sm:$0xff]  ;;  %v257_v48 = vld [vmem:[%s2610_s1 + $0x730] sm:$0xff]  ;;  %v260_v61 = vld [vmem:[%s2610_s1 + $0x748] sm:$0xff] }
  0x44   :  { %1604 = vmatprep.subr.bf16.mxu1 %v1603_v29  ;;  %583 = vmatmul.mubr.f32.vlgmr.msra.gmra.mrb[2].mxu0 %v2063_v33  ;;  %v1609_v33 = vpack.c.bf16 %v190_v46, %v189_v41  ;;  %v166_v29 = vld [vmem:[%s2610_s1 + $0x458] sm:$0xff]  ;;  %v1623_v31 = vpack.c.bf16 %v214_v24, %v213_v23  ;;  %v167_v41 = vld [vmem:[%s2610_s1 + $0x460] sm:$0xff]  ;;  %v245_v62 = vld [vmem:[%s2610_s1 + $0x6d0] sm:$0xff] }
  0x45   :  { %1574 = vmatpush3.bf16.msra.mxu0 %v1573_v35  ;;  %722 = vmatprep.mubr.f32.mxu0 %v343_v51  ;;  %v184_v35 = vld [vmem:[%s2610_s1 + $0x4e8] sm:$0xff]  ;;  %v218_v51 = vld [vmem:[%s2610_s1 + $0x5f8] sm:$0xff]  ;;  %v239_v24 = vld [vmem:[%s2610_s1 + $0x6a0] sm:$0xff] }
  0x46   :  { %653 = vmatmul.mubr.f32.vlgmr.msra.gmra.mrb[2].mxu1 %v2086_v45  ;;  %1576 = vmatprep.subr.bf16.mxu0 %v1575_v38  ;;  %v344_v45 = vcombine.high %v2226_v52, %v2226_v52  ;;  %v1593_v38 = vpack.c.bf16 %v166_v29, %v165_v28  ;;  %v1595_v40 = vpack.c.bf16 %v184_v35, %v183_v34  ;;  %v254_v23 = vld [vmem:[%s2610_s1 + $0x718] sm:$0xff]  ;;  %v272_v28 = vld [vmem:[%s2610_s1 + $0x7a8] sm:$0xff]  ;;  %v255_v35 = vld [vmem:[%s2610_s1 + $0x720] sm:$0xff] }
  0x47   :  { %1606 = vmatpush3.bf16.msra.mxu1 %v1605_v36  ;;  %v215_v36 = vld [vmem:[%s2610_s1 + $0x5e0] sm:$0xff]  ;;  %v224_v34 = vld [vmem:[%s2610_s1 + $0x628] sm:$0xff]  ;;  %v246_v63 = vld [vmem:[%s2610_s1 + $0x6d8] sm:$0xff] }
  0x48   :  { %1608 = vmatprep.subr.bf16.mxu1 %v1607_v44  ;;  %792 = vmatprep.mubr.f32.mxu1 %v344_v45  ;;  %v199_v44 = vld [vmem:[%s2610_s1 + $0x560] sm:$0xff]  ;;  %v1627_v46 = vpack.c.bf16 %v216_v37, %v215_v36  ;;  %v201_v45 = vld [vmem:[%s2610_s1 + $0x570] sm:$0xff]  ;;  %v1655_v4 = vpack.c.bf16 %v246_v63, %v245_v62  ;;  %v262_v9 = vld [vmem:[%s2610_s1 + $0x758] sm:$0xff] }
  0x49   :  { %1578 = vmatpush3.bf16.msra.mxu0 %v1577_v53  ;;  %v1597_v53 = vpack.c.bf16 %v168_v43, %v167_v41  ;;  %v241_v37 = vld [vmem:[%s2610_s1 + $0x6b0] sm:$0xff]  ;;  %v247_v10 = vld [vmem:[%s2610_s1 + $0x6e0] sm:$0xff] }
  0x4a   :  { %1580 = vmatprep.subr.bf16.mxu0 %v1579_v54  ;;  %v1629_v54 = vpack.c.bf16 %v200_v47, %v199_v44  ;;  %v226_v47 = vld [vmem:[%s2610_s1 + $0x638] sm:$0xff]  ;;  %v229_v5 = vld [vmem:[%s2610_s1 + $0x650] sm:$0xff] }
  0x4b   :  { %1610 = vmatpush3.bf16.msra.mxu1 %v1609_v33  ;;  %v26_v33 = vld [vmem:[%s2611_s0 + $0x18] sm:$0xff] }
  0x4c   :  { %1612 = vmatprep.subr.bf16.mxu1 %v1611_v58  ;;  %v1631_v58 = vpack.c.bf16 %v218_v51, %v217_v50  ;;  %v2397_v11 = vrot.slane %v26_v33, %v1902_v13  ;;  %v258_v50 = vld [vmem:[%s2610_s1 + $0x738] sm:$0xff]  ;;  %v243_v51 = vld [vmem:[%s2610_s1 + $0x6c0] sm:$0xff] }
  0x4d   :  { %1582 = vmatpush3.bf16.msra.mxu0 %v1581_v0  ;;  %v345_v0 = vcombine.high %v26_v33, %v26_v33  ;;  %v275_v33 = vld [vmem:[%s2610_s1 + $0x7c0] sm:$0xff] }
  0x4e   :  { %1584 = vmatprep.subr.bf16.mxu0 %v1583_v2  ;;  %v1633_v2 = vpack.c.bf16 %v202_v59, %v201_v45  ;;  %v227_v45 = vld [vmem:[%s2610_s1 + $0x640] sm:$0xff] }
  0x4f   :  { %1614 = vmatpush3.bf16.msra.mxu1 %v1613_v1  ;;  %v1601_v1 = vpack.c.bf16 %v170_v57, %v169_v56  ;;  %v1681_v56 = vpack.c.bf16 %v258_v50, %v257_v48  ;;  %v259_v59 = vld [vmem:[%s2610_s1 + $0x740] sm:$0xff] }
  0x50   :  { %1616 = vmatprep.subr.bf16.mxu1 %v1615_v6  ;;  %v251_v6 = vld [vmem:[%s2610_s1 + $0x700] sm:$0xff] }
  0x51   :  { %1586 = vmatpush3.bf16.msra.mxu0 %v1585_v12  ;;  %v269_v12 = vld [vmem:[%s2610_s1 + $0x790] sm:$0xff]  ;;  %v1669_v17 = vpack.c.bf16 %v252_v8, %v251_v6  ;;  %v230_v6 = vld [vmem:[%s2610_s1 + $0x658] sm:$0xff] }
  0x52   :  { %1588 = vmatprep.subr.bf16.mxu0 %v1587_v15  ;;  %v2406_v15 = vrot.slane %v345_v0, %v1902_v13  ;;  %v277_v0 = vld [vmem:[%s2610_s1 + $0x7d0] sm:$0xff] }
  0x53   :  { %1618 = vmatpush3.bf16.msra.mxu1 %v1617_v14  ;;  %v270_v14 = vld [vmem:[%s2610_s1 + $0x798] sm:$0xff] }
  0x54   :  { %1620 = vmatprep.subr.bf16.mxu1 %v1619_v19  ;;  %v221_v19 = vld [vmem:[%s2610_s1 + $0x610] sm:$0xff]  ;;  %v1671_v22 = vpack.c.bf16 %v270_v14, %v269_v12  ;;  %v361_v29 = vcombine.high %v2406_v15, %v2406_v15  ;;  %v248_v12 = vld [vmem:[%s2610_s1 + $0x6e8] sm:$0xff]  ;;  %v279_v14 = vld [vmem:[%s2610_s1 + $0x7e0] sm:$0xff] }
  0x55   :  { %1590 = vmatpush3.bf16.msra.mxu0 %v1589_v25  ;;  %v240_v25 = vld [vmem:[%s2610_s1 + $0x6a8] sm:$0xff]  ;;  %v1641_v30 = vpack.c.bf16 %v222_v20, %v221_v19  ;;  %v1659_v19 = vpack.c.bf16 %v248_v12, %v247_v10  ;;  %v231_v20 = vld [vmem:[%s2610_s1 + $0x660] sm:$0xff] }
  0x56   :  { %1592 = vmatprep.subr.bf16.mxu0 %v1591_v27  ;;  %v271_v27 = vld [vmem:[%s2610_s1 + $0x7a0] sm:$0xff]  ;;  %v1643_v32 = vpack.c.bf16 %v240_v25, %v239_v24  ;;  %v264_v24 = vld [vmem:[%s2610_s1 + $0x768] sm:$0xff]  ;;  %v249_v25 = vld [vmem:[%s2610_s1 + $0x6f0] sm:$0xff] }
  0x57   :  { %1622 = vmatpush3.bf16.msra.mxu1 %v1621_v26  ;;  %v360_v26 = vcombine.high %v2397_v11, %v2397_v11  ;;  %v1675_v36 = vpack.c.bf16 %v272_v28, %v271_v27  ;;  %v281_v27 = vld [vmem:[%s2610_s1 + $0x7f0] sm:$0xff]  ;;  %v282_v28 = vld [vmem:[%s2610_s1 + $0x7f8] sm:$0xff] }
  0x58   :  { %1624 = vmatprep.subr.bf16.mxu1 %v1623_v31  ;;  %v1673_v31 = vpack.c.bf16 %v254_v23, %v253_v21  ;;  %v232_v21 = vld [vmem:[%s2610_s1 + $0x668] sm:$0xff] }
  0x59   :  { %1594 = vmatpush3.bf16.msra.mxu0 %v1593_v38  ;;  %v242_v38 = vld [vmem:[%s2610_s1 + $0x6b8] sm:$0xff] }
  0x5a   :  { %1596 = vmatprep.subr.bf16.mxu0 %v1595_v40  ;;  %v274_v40 = vld [vmem:[%s2610_s1 + $0x7b8] sm:$0xff]  ;;  %v1647_v44 = vpack.c.bf16 %v242_v38, %v241_v37 }
  0x5b   :  { %1626 = vmatpush3.bf16.msra.mxu1 %v1625_v39  ;;  %v273_v39 = vld [vmem:[%s2610_s1 + $0x7b0] sm:$0xff] }
  0x5c   :  { %1628 = vmatprep.subr.bf16.mxu1 %v1627_v46  ;;  %v225_v46 = vld [vmem:[%s2610_s1 + $0x630] sm:$0xff]  ;;  %v1679_v49 = vpack.c.bf16 %v274_v40, %v273_v39  ;;  %v1158_v39 = vld [vmem:[%s2612_s2] ss:$0 sm:$0xff] }
  0x5d   :  { %1598 = vmatpush3.bf16.msra.mxu0 %v1597_v53  ;;  %v244_v53 = vld [vmem:[%s2610_s1 + $0x6c8] sm:$0xff] }
  0x5e   :  { %1600 = vmatprep.subr.bf16.mxu0 %v1599_v55  ;;  %v1649_v55 = vpack.c.bf16 %v226_v47, %v225_v46  ;;  %v1651_v57 = vpack.c.bf16 %v244_v53, %v243_v51  ;;  %v984_v51 = vld [vmem:[%s2613_s5 + $0x38] sm:$0xff]  ;;  %v977_v53 = vld [vmem:[%s2613_s5] sm:$0xff] }
  0x5f   :  { %1630 = vmatpush3.bf16.msra.mxu1 %v1629_v54  ;;  %v276_v54 = vld [vmem:[%s2610_s1 + $0x7c8] sm:$0xff] }
  0x60   :  { %1632 = vmatprep.subr.bf16.mxu1 %v1631_v58  ;;  %v228_v58 = vld [vmem:[%s2610_s1 + $0x648] sm:$0xff]  ;;  %v1683_v60 = vpack.c.bf16 %v276_v54, %v275_v33  ;;  %v981_v33 = vld [vmem:[%s2613_s5 + $0x20] sm:$0xff] }
  0x61   :  { %1602 = vmatpush3.bf16.msra.mxu0 %v1601_v1  ;;  %v278_v1 = vld [vmem:[%s2610_s1 + $0x7d8] sm:$0xff] }
  0x62   :  { %1636 = vmatprep.subr.bf16.mxu0 %v1635_v3  ;;  %v1685_v3 = vpack.c.bf16 %v260_v61, %v259_v59  ;;  %v1687_v8 = vpack.c.bf16 %v278_v1, %v277_v0 }
  0x63   :  { %1634 = vmatpush3.bf16.msra.mxu1 %v1633_v2  ;;  %v1653_v2 = vpack.c.bf16 %v228_v58, %v227_v45  ;;  %v1716_v58 = vmov 0.0  }
  0x64   :  { %1668 = vmatprep.subr.bf16.mxu1 %v1667_v7  ;;  %723 = vmatmul.mubr.f32.vlgmr.msra.gmra.mrb[4].mxu0 %v2205_v42  ;;  %v223_v42 = vld [vmem:[%s2610_s1 + $0x620] sm:$0xff]  ;;  %v261_v7 = vld [vmem:[%s2610_s1 + $0x750] sm:$0xff] }
  0x65   :  { %1638 = vmatpush3.bf16.msra.mxu0 %v1637_v16  ;;  %862 = vmatprep.mubr.f32.mxu0 %v360_v26  ;;  %v1645_v41 = vpack.c.bf16 %v224_v34, %v223_v42  ;;  %v280_v16 = vld [vmem:[%s2610_s1 + $0x7e8] sm:$0xff]  ;;  %v250_v26 = vld [vmem:[%s2610_s1 + $0x6f8] sm:$0xff]  ;;  %v1695_v34 = vpack.c.bf16 %v282_v28, %v281_v27 }
  0x66   :  { %793 = vmatmul.mubr.f32.vlgmr.msra.gmra.mrb[4].mxu1 %v2226_v52  ;;  %1640 = vmatprep.subr.bf16.mxu0 %v1639_v18  ;;  %v256_v52 = vld [vmem:[%s2610_s1 + $0x728] sm:$0xff]  ;;  %v1689_v18 = vpack.c.bf16 %v262_v9, %v261_v7  ;;  %v1691_v23 = vpack.c.bf16 %v280_v16, %v279_v14  ;;  %v234_v42 = vld [vmem:[%s2610_s1 + $0x678] sm:$0xff] }
  0x67   :  { %1670 = vmatpush3.bf16.msra.mxu1 %v1669_v17  ;;  %932 = vmatprep.mubr.f32.mxu1 %v361_v29  ;;  %v1677_v43 = vpack.c.bf16 %v256_v52, %v255_v35  ;;  %v1657_v17 = vpack.c.bf16 %v230_v6, %v229_v5  ;;  %v1661_v29 = vpack.c.bf16 %v232_v21, %v231_v20  ;;  %v265_v35 = vld [vmem:[%s2610_s1 + $0x770] sm:$0xff] }
  0x68   :  { %1672 = vmatprep.subr.bf16.mxu1 %v1671_v22  ;;  %v263_v22 = vld [vmem:[%s2610_s1 + $0x760] sm:$0xff] }
  0x69   :  { %1642 = vmatpush3.bf16.msra.mxu0 %v1641_v30  ;;  %v1693_v30 = vpack.c.bf16 %v264_v24, %v263_v22 }
  0x6a   :  { %1644 = vmatprep.subr.bf16.mxu0 %v1643_v32  ;;  %v233_v32 = vld [vmem:[%s2610_s1 + $0x670] sm:$0xff] }
  0x6b   :  { %1674 = vmatpush3.bf16.msra.mxu1 %v1673_v31  ;;  %v1663_v31 = vpack.c.bf16 %v250_v26, %v249_v25  ;;  %v1665_v52 = vpack.c.bf16 %v234_v42, %v233_v32 }
  0x6c   :  { %1676 = vmatprep.subr.bf16.mxu1 %v1675_v36  ;;  %v266_v36 = vld [vmem:[%s2610_s1 + $0x778] sm:$0xff] }
  0x6d   :  { %1646 = vmatpush3.bf16.msra.mxu0 %v1645_v41  ;;  %v1697_v37 = vpack.c.bf16 %v266_v36, %v265_v35 }
  0x6e   :  { %1648 = vmatprep.subr.bf16.mxu0 %v1647_v44 }
  0x6f   :  { %1678 = vmatpush3.bf16.msra.mxu1 %v1677_v43 }
  0x70   :  { %1680 = vmatprep.subr.bf16.mxu1 %v1679_v49  ;;  %v978_v49 = vld [vmem:[%s2613_s5 + $0x8] sm:$0xff] }
  0x71   :  { %1650 = vmatpush3.bf16.msra.mxu0 %v1649_v55  ;;  %v1701_v55 = vpack.c.bf16 %v981_v33, %v977_v53 }
  0x72   :  { %1652 = vmatprep.subr.bf16.mxu0 %v1651_v57  ;;  %v983_v57 = vld [vmem:[%s2613_s5 + $0x30] sm:$0xff] }
  0x73   :  { %1682 = vmatpush3.bf16.msra.mxu1 %v1681_v56  ;;  %v979_v56 = vld [vmem:[%s2613_s5 + $0x10] sm:$0xff] }
  0x74   :  { %1684 = vmatprep.subr.bf16.mxu1 %v1683_v60  ;;  %v1705_v45 = vpack.c.bf16 %v983_v57, %v979_v56 }
  0x75   :  { %1654 = vmatpush3.bf16.msra.mxu0 %v1653_v2 }
  0x76   :  { %1656 = vmatprep.subr.bf16.mxu0 %v1655_v4 }
  0x77   :  { %1686 = vmatpush3.bf16.msra.mxu1 %v1685_v3 }
  0x78   :  { %1688 = vmatprep.subr.bf16.mxu1 %v1687_v8 }
  0x79   :  { %1658 = vmatpush3.bf16.msra.mxu0 %v1657_v17 }
  0x7a   :  { %1660 = vmatprep.subr.bf16.mxu0 %v1659_v19 }
  0x7b   :  { %1690 = vmatpush3.bf16.msra.mxu1 %v1689_v18 }
  0x7c   :  { %1692 = vmatprep.subr.bf16.mxu1 %v1691_v23 }
  0x7d   :  { %1662 = vmatpush3.bf16.msra.mxu0 %v1661_v29 }
  0x7e   :  { %1664 = vmatprep.subr.bf16.mxu0 %v1663_v31 }
  0x7f   :  { %1694 = vmatpush3.bf16.msra.mxu1 %v1693_v30 }
  0x80   :  { %1696 = vmatprep.subr.bf16.mxu1 %v1695_v34 }
  0x81   :  { %1666 = vmatpush3.bf16.msra.mxu0 %v1665_v52 }
  0x83   :  { %1698 = vmatpush3.bf16.msra.mxu1 %v1697_v37 }
  0x84   :  { %863 = vmatmul.mubr.f32.vlgmr.msra.gmra.mrb[6].mxu0 %v2397_v11  ;;  %v982_v11 = vld [vmem:[%s2613_s5 + $0x28] sm:$0xff] }
  0x85   :  { %v1699_v50 = vpack.c.bf16 %v982_v11, %v978_v49  ;;  %1053 = vmatprep.mubr.f32.mxu0 %v1716_v58 }
  0x86   :  { %933 = vmatmul.mubr.f32.vlgmr.msra.gmra.mrb[6].mxu1 %v2406_v15  ;;  %v980_v15 = vld [vmem:[%s2613_s5 + $0x18] sm:$0xff] }
  0x87   :  { %v1703_v54 = vpack.c.bf16 %v984_v51, %v980_v15  ;;  %1700 = vmatprep.subr.bf16.mxu0 %v1699_v50  ;;  %1124 = vmatprep.mubr.f32.mxu1 %v1716_v58 }
  0x88   :  { %1702 = vmatpush1.bf16.msra.mxu0 %v1701_v55 }
  0x89   :  { %1704 = vmatprep.subr.bf16.mxu1 %v1703_v54 }
  0x8a   :  { %1706 = vmatpush1.bf16.msra.mxu1 %v1705_v45 }
  0xf7   :  { %v1195_v38 = vpop.f32.mrb[0].mxu0 }
  0xf8   :  { %v1196_v40 = vpop.f32.mrb[1].mxu0 }
  0xf9   :  { %v1230_v41 = vpop.f32.mrb[0].mxu1  ;;  %v1197_v43 = vadd.f32 %v1196_v40, %v1195_v38  ;;  %v1159_v40 = vld [vmem:[%s2614_s3] ss:$0 sm:$0xff] }
  0xfa   :  { %v1231_v44 = vpop.f32.mrb[1].mxu1 }
  0xfb   :  { %v1232_v46 = vadd.f32 %v1231_v44, %v1230_v41  ;;  %v445_v47 = vadd.f32 %v1197_v43, %v1158_v39  ;;  %v1160_v44 = vld [vmem:[%s2615_s4] ss:$0 sm:$0xff] }
  0xfd   :  { %v515_v48 = vadd.f32 %v1232_v46, %v445_v47 }
 0x117   :  { %v1265_v59 = vpop.f32.mrb[2].mxu0 }
 0x118   :  { %v1266_v60 = vpop.f32.mrb[3].mxu0 }
 0x119   :  { %v1300_v61 = vpop.f32.mrb[2].mxu1  ;;  %v1267_v62 = vadd.f32 %v1266_v60, %v1265_v59 }
 0x11a   :  { %v1301_v63 = vpop.f32.mrb[3].mxu1 }
 0x11b   :  { %v1302_v0 = vadd.f32 %v1301_v63, %v1300_v61  ;;  %v585_v1 = vadd.f32 %v1267_v62, %v515_v48 }
 0x11d   :  { %v655_v2 = vadd.f32 %v1302_v0, %v585_v1 }
 0x137   :  { %v1335_v3 = vpop.f32.mrb[4].mxu0 }
 0x138   :  { %v1336_v4 = vpop.f32.mrb[5].mxu0 }
 0x139   :  { %v1370_v5 = vpop.f32.mrb[4].mxu1  ;;  %v1337_v6 = vadd.f32 %v1336_v4, %v1335_v3 }
 0x13a   :  { %v1371_v7 = vpop.f32.mrb[5].mxu1 }
 0x13b   :  { %v1372_v8 = vadd.f32 %v1371_v7, %v1370_v5  ;;  %v725_v9 = vadd.f32 %v1337_v6, %v655_v2 }
 0x13d   :  { %v795_v10 = vadd.f32 %v1372_v8, %v725_v9 }
 0x157   :  { %v1405_v12 = vpop.f32.mrb[6].mxu0 }
 0x158   :  { %v1406_v14 = vpop.f32.mrb[7].mxu0 }
 0x159   :  { %v1440_v16 = vpop.f32.mrb[6].mxu1  ;;  %v1407_v17 = vadd.f32 %v1406_v14, %v1405_v12 }
 0x15a   :  { %v1441_v18 = vpop.f32.mrb[7].mxu1 }
 0x15b   :  { %v1442_v19 = vadd.f32 %v1441_v18, %v1440_v16  ;;  %v865_v20 = vadd.f32 %v1407_v17, %v795_v10 }
 0x15d   :  { %v935_v21 = vadd.f32 %v1442_v19, %v865_v20 }
 0x15f   :  { %v939_v22 = vsel %vm938_vm0, %v935_v21, 0.0 }
 0x160   :  { %v940_v23 = vrot.slane %v939_v22, 4 }
 0x162   :  { %v941_v24 = vadd.f32 %v940_v23, %v939_v22 }
 0x164   :  { %v942_v25 = vrot.slane %v941_v24, 2 }
 0x166   :  { %v943_v26 = vadd.f32 %v942_v25, %v941_v24 }
 0x168   :  { %v944_v27 = vrot.slane %v943_v26, 1 }
 0x16a   :  { %v945_v28 = vadd.f32 %v944_v27, %v943_v26 }
 0x16c   :  { %v947_v29 = vmul.f32 0.5, %v945_v28 }
 0x16e   :  { %v948_v30 = vsub.f32 %v935_v21, %v947_v29 }
 0x170   :  { %v949_v31 = vmul.f32 %v948_v30, %v948_v30  ;;  %v965_v41 = vmul.f32 %v1159_v40, %v948_v30 }
 0x172   :  { %v950_v32 = vsel %vm938_vm0, %v949_v31, 0.0 }
 0x173   :  { %v951_v42 = vrot.slane %v950_v32, 4 }
 0x175   :  { %v952_v34 = vadd.f32 %v951_v42, %v950_v32 }
 0x177   :  { %v953_v35 = vrot.slane %v952_v34, 2 }
 0x179   :  { %v954_v36 = vadd.f32 %v953_v35, %v952_v34 }
 0x17b   :  { %v955_v52 = vrot.slane %v954_v36, 1 }
 0x17d   :  { %v956_v37 = vadd.f32 %v955_v52, %v954_v36 }
 0x17f   :  { %v957_v38 = vmul.f32 0.5, %v956_v37 }
 0x181   :  { %v966_v39 = vadd.f32 1e-05, %v957_v38 }
 0x183   :  { %1713 = vrsqrt.f32 %v966_v39 }
 0x18d   :  { %v1714_v43 = vpop.eup %1713 }
 0x18e   :  { %v968_v46 = vmul.f32 %v1714_v43, %v965_v41 }
 0x190   :  { %v976_v47 = vadd.f32 %v1160_v44, %v968_v46 }
 0x192   :  { %1161 = vmatmul.mubr.msk.f32.vlgmr.msra.gmra.mrb[8].mxu0 %vm985_vm1, %v976_v47  ;;  %1162 = vmatmul.mubr.msk.f32.vlgmr.msra.gmra.mrb[8].mxu1 %vm985_vm1, %v976_v47 }
 0x265   :  { %v1055_v48 = vpop.f32.mrb[8].mxu0  ;;  %v1126_v49 = vpop.f32.mrb[8].mxu1 }
 0x266   :  { %v1057_v11 = vpop.f32.mrb[9].mxu0  ;;  %v1128_v15 = vpop.f32.mrb[9].mxu1 }
 0x267   :  { %v1135_v50 = vcombine.low %v1055_v48, %v1057_v11  ;;  %v1136_v51 = vcombine.low %v1126_v49, %v1128_v15 }
 0x269   :  { %v1143_v53 = vrot.slane %v1135_v50, %v1902_v13  ;;  %v1150_v33 = vrot.slane %v1136_v51, %v1902_v13 }
 0x26b   :  { %v1151_v54 = vcombine.low %v1143_v53, %v1150_v33 }
 0x26d   :  { %1153 = vst [vmem:[%s2616_s6] sm:$0xff] %v1151_v54 }

// kernel: baseline2_forward.6
= control target key start
LH: loop header
LB: loop body
LE: loop exit
PB: predicated region body
PF: predicated region fallthrough
CT: control target
= control target key end

     0   :  { %v8045_v3 = vmov 0.0   ;;  %s8038_s2 = inlined_call_operand.vmem [shape: f32[128,512], index: 2, kind: input, shape index: {}]   ;;  %s8039_s4 = inlined_call_operand.vmem [shape: f32[128,512], index: 4, kind: input, shape index: {}]   ;;  %s8040_s3 = inlined_call_operand.vmem [shape: f32[128,512], index: 3, kind: input, shape index: {}]   ;;  %s8041_s0 = inlined_call_operand.vmem [shape: f32[8,8,512], index: 0, kind: input, shape index: {}]   ;;  %s8042_s1 = inlined_call_operand.vmem [shape: f32[8,512], index: 1, kind: input, shape index: {}]   ;;  %s8043_s5 = inlined_call_operand.vmem [shape: f32[1,512], index: 5, kind: input, shape index: {}]   ;;  %s8044_s6 = inlined_call_operand.vmem [shape: f32[8,8,128], index: 6, kind: output, shape index: {}]  }
   0x1   :  { %v24_v0 = vld [vmem:[%s8038_s2 + $0x8] sm:$0xff]  ;;  %v23_v2 = vld [vmem:[%s8038_s2] sm:$0xff]  ;;  %292 = vmatprep.mubr.f32.mxu0 %v8045_v3  ;;  %363 = vmatprep.mubr.f32.mxu1 %v8045_v3  ;;  %v26_v19 = vld [vmem:[%s8038_s2 + $0x18] sm:$0xff] }
   0x2   :  { %v28_v1 = vld [vmem:[%s8038_s2 + $0x28] sm:$0xff]  ;;  %v27_v5 = vld [vmem:[%s8038_s2 + $0x20] sm:$0xff]  ;;  %v30_v20 = vld [vmem:[%s8038_s2 + $0x38] sm:$0xff] }
   0x3   :  { %v6150_v4 = vpack.c.bf16 %v28_v1, %v24_v0  ;;  %v32_v6 = vld [vmem:[%s8038_s2 + $0x48] sm:$0xff]  ;;  %v6161_v8 = vpack.c.bf16 %v27_v5, %v23_v2  ;;  %v31_v10 = vld [vmem:[%s8038_s2 + $0x40] sm:$0xff]  ;;  %v6202_v22 = vpack.c.bf16 %v30_v20, %v26_v19  ;;  %v25_v23 = vld [vmem:[%s8038_s2 + $0x10] sm:$0xff] }
   0x4   :  { %v36_v7 = vld [vmem:[%s8038_s2 + $0x68] sm:$0xff]  ;;  %v35_v11 = vld [vmem:[%s8038_s2 + $0x60] sm:$0xff]  ;;  %v29_v24 = vld [vmem:[%s8038_s2 + $0x30] sm:$0xff] }
   0x5   :  { %8251 = vst [vmem:[#allocation2_spill] sm:$0xff] %v6150_v4  ;;  %v6163_v9 = vpack.c.bf16 %v36_v7, %v32_v6  ;;  %v40_v12 = vld [vmem:[%s8038_s2 + $0x88] sm:$0xff]  ;;  %4271 = vmatprep.subr.bf16.mxu0 %v6150_v4  ;;  %v6179_v14 = vpack.c.bf16 %v35_v11, %v31_v10  ;;  %v39_v15 = vld [vmem:[%s8038_s2 + $0x80] sm:$0xff]  ;;  %8253 = vst [vmem:[#allocation4_spill] sm:$0xff] %v6202_v22  ;;  %v6210_v25 = vpack.c.bf16 %v29_v24, %v25_v23 }
   0x6   :  { %v44_v13 = vld [vmem:[%s8038_s2 + $0xa8] sm:$0xff]  ;;  %4273 = vmatpush1.bf16.msra.mxu0 %v6161_v8  ;;  %v43_v16 = vld [vmem:[%s8038_s2 + $0xa0] sm:$0xff]  ;;  %4303 = vmatprep.subr.bf16.mxu1 %v6202_v22  ;;  %v34_v27 = vld [vmem:[%s8038_s2 + $0x58] sm:$0xff] }
   0x7   :  { %4275 = vmatprep.subr.bf16.mxu0 %v6163_v9  ;;  %v6188_v17 = vpack.c.bf16 %v44_v13, %v40_v12  ;;  %v48_v18 = vld [vmem:[%s8038_s2 + $0xc8] sm:$0xff]  ;;  %v6213_v26 = vpack.c.bf16 %v43_v16, %v39_v15  ;;  %v38_v28 = vld [vmem:[%s8038_s2 + $0x78] sm:$0xff]  ;;  %v33_v29 = vld [vmem:[%s8038_s2 + $0x50] sm:$0xff]  ;;  %4305 = vmatpush1.bf16.msra.mxu1 %v6210_v25 }
   0x8   :  { %v52_v21 = vld [vmem:[%s8038_s2 + $0xe8] sm:$0xff]  ;;  %v47_v31 = vld [vmem:[%s8038_s2 + $0xc0] sm:$0xff]  ;;  %v6235_v33 = vpack.c.bf16 %v38_v28, %v34_v27  ;;  %v37_v34 = vld [vmem:[%s8038_s2 + $0x70] sm:$0xff] }
   0x9   :  { %8252 = vst [vmem:[#allocation3_spill] sm:$0xff] %v6188_v17  ;;  %8254 = vst [vmem:[#allocation5_spill] sm:$0xff] %v6213_v26  ;;  %v6226_v30 = vpack.c.bf16 %v52_v21, %v48_v18  ;;  %v51_v32 = vld [vmem:[%s8038_s2 + $0xe0] sm:$0xff]  ;;  %v56_v35 = vld [vmem:[%s8038_s2 + $0x108] sm:$0xff]  ;;  %v6246_v37 = vpack.c.bf16 %v37_v34, %v33_v29 }
   0xa   :  { %4277 = vmatpush1.bf16.msra.mxu0 %v6179_v14  ;;  %v60_v36 = vld [vmem:[%s8038_s2 + $0x128] sm:$0xff]  ;;  %v42_v38 = vld [vmem:[%s8038_s2 + $0x98] sm:$0xff]  ;;  %4307 = vmatprep.subr.bf16.mxu1 %v6235_v33  ;;  %v41_v40 = vld [vmem:[%s8038_s2 + $0x90] sm:$0xff]  ;;  %v6262_v42 = vpack.c.bf16 %v51_v32, %v47_v31 }
   0xb   :  { %4279 = vmatprep.subr.bf16.mxu0 %v6188_v17  ;;  %8255 = vst [vmem:[#allocation6_spill] sm:$0xff] %v6226_v30  ;;  %v46_v39 = vld [vmem:[%s8038_s2 + $0xb8] sm:$0xff]  ;;  %v45_v41 = vld [vmem:[%s8038_s2 + $0xb0] sm:$0xff]  ;;  %v55_v43 = vld [vmem:[%s8038_s2 + $0x100] sm:$0xff]  ;;  %v6273_v46 = vpack.c.bf16 %v60_v36, %v56_v35  ;;  %4309 = vmatpush1.bf16.msra.mxu1 %v6246_v37 }
   0xc   :  { %8256 = vst [vmem:[#allocation7_spill] sm:$0xff] %v6262_v42  ;;  %v59_v44 = vld [vmem:[%s8038_s2 + $0x120] sm:$0xff]  ;;  %v6270_v45 = vpack.c.bf16 %v46_v39, %v42_v38  ;;  %v64_v47 = vld [vmem:[%s8038_s2 + $0x148] sm:$0xff]  ;;  %v6279_v48 = vpack.c.bf16 %v45_v41, %v41_v40  ;;  %v50_v49 = vld [vmem:[%s8038_s2 + $0xd8] sm:$0xff] }
   0xd   :  { %8258 = vst [vmem:[#allocation9_spill] sm:$0xff] %v6273_v46  ;;  %v54_v50 = vld [vmem:[%s8038_s2 + $0xf8] sm:$0xff]  ;;  %v68_v51 = vld [vmem:[%s8038_s2 + $0x168] sm:$0xff]  ;;  %v49_v53 = vld [vmem:[%s8038_s2 + $0xd0] sm:$0xff]  ;;  %v6300_v55 = vpack.c.bf16 %v59_v44, %v55_v43 }
   0xe   :  { %4281 = vmatpush1.bf16.msra.mxu0 %v6213_v26  ;;  %8257 = vst [vmem:[#allocation8_spill] sm:$0xff] %v6270_v45  ;;  %8259 = vst [vmem:[#allocation10_spill] sm:$0xff] %v6279_v48  ;;  %4311 = vmatprep.subr.bf16.mxu1 %v6270_v45  ;;  %v6291_v52 = vpack.c.bf16 %v54_v50, %v50_v49  ;;  %v53_v54 = vld [vmem:[%s8038_s2 + $0xf0] sm:$0xff]  ;;  %v58_v56 = vld [vmem:[%s8038_s2 + $0x118] sm:$0xff]  ;;  %v6309_v58 = vpack.c.bf16 %v68_v51, %v64_v47 }
   0xf   :  { %4283 = vmatprep.subr.bf16.mxu0 %v6226_v30  ;;  %8261 = vst [vmem:[#allocation12_spill] sm:$0xff] %v6300_v55  ;;  %v62_v57 = vld [vmem:[%s8038_s2 + $0x138] sm:$0xff]  ;;  %v63_v59 = vld [vmem:[%s8038_s2 + $0x140] sm:$0xff]  ;;  %4313 = vmatpush1.bf16.msra.mxu1 %v6279_v48  ;;  %v72_v61 = vld [vmem:[%s8038_s2 + $0x188] sm:$0xff]  ;;  %v6321_v62 = vpack.c.bf16 %v53_v54, %v49_v53 }
  0x10   :  { %8260 = vst [vmem:[#allocation11_spill] sm:$0xff] %v6291_v52  ;;  %8262 = vst [vmem:[#allocation13_spill] sm:$0xff] %v6309_v58  ;;  %v67_v60 = vld [vmem:[%s8038_s2 + $0x160] sm:$0xff]  ;;  %v76_v63 = vld [vmem:[%s8038_s2 + $0x1a8] sm:$0xff]  ;;  %4315 = vmatprep.subr.bf16.mxu1 %v6291_v52  ;;  %v6327_v0 = vpack.c.bf16 %v62_v57, %v58_v56 }
  0x11   :  { %8263 = vst [vmem:[#allocation14_spill] sm:$0xff] %v6321_v62  ;;  %v57_v1 = vld [vmem:[%s8038_s2 + $0x110] sm:$0xff]  ;;  %v66_v5 = vld [vmem:[%s8038_s2 + $0x158] sm:$0xff]  ;;  %v6342_v7 = vpack.c.bf16 %v67_v60, %v63_v59  ;;  %v6345_v10 = vpack.c.bf16 %v76_v63, %v72_v61  ;;  %v71_v11 = vld [vmem:[%s8038_s2 + $0x180] sm:$0xff] }
  0x12   :  { %4285 = vmatpush1.bf16.msra.mxu0 %v6262_v42  ;;  %8264 = vst [vmem:[#allocation15_spill] sm:$0xff] %v6327_v0  ;;  %v61_v2 = vld [vmem:[%s8038_s2 + $0x130] sm:$0xff]  ;;  %v70_v6 = vld [vmem:[%s8038_s2 + $0x178] sm:$0xff]  ;;  %v75_v12 = vld [vmem:[%s8038_s2 + $0x1a0] sm:$0xff] }
  0x13   :  { %4287 = vmatprep.subr.bf16.mxu0 %v6273_v46  ;;  %8265 = vst [vmem:[#allocation16_spill] sm:$0xff] %v6342_v7  ;;  %8266 = vst [vmem:[#allocation17_spill] sm:$0xff] %v6345_v10  ;;  %4317 = vmatpush1.bf16.msra.mxu1 %v6321_v62  ;;  %v80_v13 = vld [vmem:[%s8038_s2 + $0x1c8] sm:$0xff]  ;;  %v6357_v15 = vpack.c.bf16 %v61_v2, %v57_v1  ;;  %v6363_v18 = vpack.c.bf16 %v70_v6, %v66_v5  ;;  %v65_v19 = vld [vmem:[%s8038_s2 + $0x150] sm:$0xff] }
  0x14   :  { %v84_v16 = vld [vmem:[%s8038_s2 + $0x1e8] sm:$0xff]  ;;  %4319 = vmatprep.subr.bf16.mxu1 %v6327_v0  ;;  %v69_v20 = vld [vmem:[%s8038_s2 + $0x170] sm:$0xff]  ;;  %v74_v21 = vld [vmem:[%s8038_s2 + $0x198] sm:$0xff]  ;;  %v6378_v24 = vpack.c.bf16 %v75_v12, %v71_v11 }
  0x15   :  { %8267 = vst [vmem:[#allocation18_spill] sm:$0xff] %v6357_v15  ;;  %8268 = vst [vmem:[#allocation19_spill] sm:$0xff] %v6363_v18  ;;  %v78_v23 = vld [vmem:[%s8038_s2 + $0x1b8] sm:$0xff]  ;;  %v6381_v27 = vpack.c.bf16 %v84_v16, %v80_v13  ;;  %v79_v28 = vld [vmem:[%s8038_s2 + $0x1c0] sm:$0xff]  ;;  %v6390_v31 = vpack.c.bf16 %v69_v20, %v65_v19 }
  0x16   :  { %4289 = vmatpush1.bf16.msra.mxu0 %v6300_v55  ;;  %8269 = vst [vmem:[#allocation20_spill] sm:$0xff] %v6378_v24  ;;  %v83_v29 = vld [vmem:[%s8038_s2 + $0x1e0] sm:$0xff]  ;;  %v73_v32 = vld [vmem:[%s8038_s2 + $0x190] sm:$0xff]  ;;  %v6396_v34 = vpack.c.bf16 %v78_v23, %v74_v21  ;;  %v152_v36 = vld [vmem:[%s8039_s4 + $0x8] sm:$0xff] }
  0x17   :  { %4291 = vmatprep.subr.bf16.mxu0 %v6309_v58  ;;  %8270 = vst [vmem:[#allocation21_spill] sm:$0xff] %v6381_v27  ;;  %4321 = vmatpush1.bf16.msra.mxu1 %v6357_v15  ;;  %8271 = vst [vmem:[#allocation22_spill] sm:$0xff] %v6390_v31  ;;  %v77_v35 = vld [vmem:[%s8038_s2 + $0x1b0] sm:$0xff]  ;;  %v156_v38 = vld [vmem:[%s8039_s4 + $0x28] sm:$0xff]  ;;  %v6414_v41 = vpack.c.bf16 %v83_v29, %v79_v28 }
  0x18   :  { %4323 = vmatprep.subr.bf16.mxu1 %v6363_v18  ;;  %8272 = vst [vmem:[#allocation23_spill] sm:$0xff] %v6396_v34  ;;  %v82_v39 = vld [vmem:[%s8038_s2 + $0x1d8] sm:$0xff]  ;;  %v6418_v43 = vpack.c.bf16 %v77_v35, %v73_v32  ;;  %v81_v44 = vld [vmem:[%s8038_s2 + $0x1d0] sm:$0xff]  ;;  %v6423_v47 = vpack.c.bf16 %v156_v38, %v152_v36  ;;  %v151_v49 = vld [vmem:[%s8039_s4] sm:$0xff] }
  0x19   :  { %v86_v40 = vld [vmem:[%s8038_s2 + $0x1f8] sm:$0xff]  ;;  %8273 = vst [vmem:[#allocation24_spill] sm:$0xff] %v6414_v41  ;;  %v155_v50 = vld [vmem:[%s8039_s4 + $0x20] sm:$0xff]  ;;  %v85_v53 = vld [vmem:[%s8038_s2 + $0x1f0] sm:$0xff] }
  0x1a   :  { %4293 = vmatpush1.bf16.msra.mxu0 %v6342_v7  ;;  %8274 = vst [vmem:[#allocation25_spill] sm:$0xff] %v6418_v43  ;;  %8275 = vst [vmem:[#allocation26_spill] sm:$0xff] %v6423_v47  ;;  %v6432_v51 = vpack.c.bf16 %v86_v40, %v82_v39  ;;  %v160_v54 = vld [vmem:[%s8039_s4 + $0x48] sm:$0xff]  ;;  %v154_v57 = vld [vmem:[%s8039_s4 + $0x18] sm:$0xff]  ;;  %v6450_v60 = vpack.c.bf16 %v155_v50, %v151_v49  ;;  %v6453_v61 = vpack.c.bf16 %v85_v53, %v81_v44 }
  0x1b   :  { %4295 = vmatprep.subr.bf16.mxu0 %v6345_v10  ;;  %4325 = vmatpush1.bf16.msra.mxu1 %v6390_v31  ;;  %v164_v56 = vld [vmem:[%s8039_s4 + $0x68] sm:$0xff]  ;;  %v158_v59 = vld [vmem:[%s8039_s4 + $0x38] sm:$0xff]  ;;  %v153_v63 = vld [vmem:[%s8039_s4 + $0x10] sm:$0xff] }
  0x1c   :  { %4327 = vmatprep.subr.bf16.mxu1 %v6396_v34  ;;  %8276 = vst [vmem:[#allocation27_spill] sm:$0xff] %v6432_v51  ;;  %8277 = vst [vmem:[#allocation28_spill] sm:$0xff] %v6450_v60  ;;  %v6459_v1 = vpack.c.bf16 %v164_v56, %v160_v54  ;;  %v159_v2 = vld [vmem:[%s8039_s4 + $0x40] sm:$0xff]  ;;  %v6468_v6 = vpack.c.bf16 %v158_v59, %v154_v57  ;;  %v157_v11 = vld [vmem:[%s8039_s4 + $0x30] sm:$0xff] }
  0x1d   :  { %8278 = vst [vmem:[#allocation29_spill] sm:$0xff] %v6453_v61  ;;  %v163_v5 = vld [vmem:[%s8039_s4 + $0x60] sm:$0xff]  ;;  %v168_v12 = vld [vmem:[%s8039_s4 + $0x88] sm:$0xff]  ;;  %v162_v16 = vld [vmem:[%s8039_s4 + $0x58] sm:$0xff]  ;;  %v6491_v21 = vpack.c.bf16 %v157_v11, %v153_v63 }
  0x1e   :  { %4297 = vmatpush1.bf16.msra.mxu0 %v6378_v24  ;;  %8279 = vst [vmem:[#allocation30_spill] sm:$0xff] %v6459_v1  ;;  %8280 = vst [vmem:[#allocation31_spill] sm:$0xff] %v6468_v6  ;;  %v172_v13 = vld [vmem:[%s8039_s4 + $0xa8] sm:$0xff]  ;;  %v166_v19 = vld [vmem:[%s8039_s4 + $0x78] sm:$0xff]  ;;  %v6487_v20 = vpack.c.bf16 %v163_v5, %v159_v2 }
  0x1f   :  { %4299 = vmatprep.subr.bf16.mxu0 %v6381_v27  ;;  %4329 = vmatpush1.bf16.msra.mxu1 %v6418_v43  ;;  %8282 = vst [vmem:[#allocation33_spill] sm:$0xff] %v6491_v21  ;;  %v161_v23 = vld [vmem:[%s8039_s4 + $0x50] sm:$0xff]  ;;  %v6497_v28 = vpack.c.bf16 %v172_v13, %v168_v12  ;;  %v167_v29 = vld [vmem:[%s8039_s4 + $0x80] sm:$0xff]  ;;  %v6506_v35 = vpack.c.bf16 %v166_v19, %v162_v16  ;;  %v176_v38 = vld [vmem:[%s8039_s4 + $0xc8] sm:$0xff] }
  0x20   :  { %4331 = vmatprep.subr.bf16.mxu1 %v6432_v51  ;;  %8281 = vst [vmem:[#allocation32_spill] sm:$0xff] %v6487_v20  ;;  %v171_v32 = vld [vmem:[%s8039_s4 + $0xa0] sm:$0xff]  ;;  %v165_v36 = vld [vmem:[%s8039_s4 + $0x70] sm:$0xff]  ;;  %v180_v39 = vld [vmem:[%s8039_s4 + $0xe8] sm:$0xff] }
  0x21   :  { %8283 = vst [vmem:[#allocation34_spill] sm:$0xff] %v6497_v28  ;;  %8284 = vst [vmem:[#allocation35_spill] sm:$0xff] %v6506_v35  ;;  %v170_v40 = vld [vmem:[%s8039_s4 + $0x98] sm:$0xff]  ;;  %v6525_v49 = vpack.c.bf16 %v171_v32, %v167_v29  ;;  %v6528_v50 = vpack.c.bf16 %v165_v36, %v161_v23  ;;  %v169_v53 = vld [vmem:[%s8039_s4 + $0x90] sm:$0xff]  ;;  %v6534_v54 = vpack.c.bf16 %v180_v39, %v176_v38 }
  0x22   :  { %4301 = vmatpush1.bf16.msra.mxu0 %v6414_v41  ;;  %v174_v44 = vld [vmem:[%s8039_s4 + $0xb8] sm:$0xff]  ;;  %v175_v56 = vld [vmem:[%s8039_s4 + $0xc0] sm:$0xff]  ;;  %v173_v63 = vld [vmem:[%s8039_s4 + $0xb0] sm:$0xff] }
  0x23   :  { %4335 = vmatprep.subr.bf16.mxu0 %v6423_v47  ;;  %4333 = vmatpush1.bf16.msra.mxu1 %v6453_v61  ;;  %8285 = vst [vmem:[#allocation36_spill] sm:$0xff] %v6525_v49  ;;  %8286 = vst [vmem:[#allocation37_spill] sm:$0xff] %v6528_v50  ;;  %v179_v57 = vld [vmem:[%s8039_s4 + $0xe0] sm:$0xff]  ;;  %v6543_v59 = vpack.c.bf16 %v174_v44, %v170_v40  ;;  %v184_v2 = vld [vmem:[%s8039_s4 + $0x108] sm:$0xff]  ;;  %v6565_v16 = vpack.c.bf16 %v173_v63, %v169_v53 }
  0x24   :  { %4367 = vmatprep.subr.bf16.mxu1 %v6468_v6  ;;  %8287 = vst [vmem:[#allocation38_spill] sm:$0xff] %v6534_v54  ;;  %v188_v5 = vld [vmem:[%s8039_s4 + $0x128] sm:$0xff]  ;;  %v178_v11 = vld [vmem:[%s8039_s4 + $0xd8] sm:$0xff]  ;;  %v6562_v13 = vpack.c.bf16 %v179_v57, %v175_v56  ;;  %v183_v23 = vld [vmem:[%s8039_s4 + $0x100] sm:$0xff] }
  0x25   :  { %293 = vmatmul.mubr.f32.vlgmr.msra.gmra.mrb[0].mxu0 %v8045_v3  ;;  %8288 = vst [vmem:[#allocation39_spill] sm:$0xff] %v6543_v59  ;;  %v182_v12 = vld [vmem:[%s8039_s4 + $0xf8] sm:$0xff]  ;;  %8290 = vst [vmem:[#allocation41_spill] sm:$0xff] %v6565_v16  ;;  %v6568_v19 = vpack.c.bf16 %v188_v5, %v184_v2  ;;  %v187_v29 = vld [vmem:[%s8039_s4 + $0x120] sm:$0xff] }
  0x26   :  { %4337 = vmatpush1.bf16.msra.mxu0 %v6450_v60  ;;  %462 = vmatprep.mubr.f32.mxu0 %v8045_v3  ;;  %8289 = vst [vmem:[#allocation40_spill] sm:$0xff] %v6562_v13  ;;  %v6577_v32 = vpack.c.bf16 %v182_v12, %v178_v11  ;;  %v177_v36 = vld [vmem:[%s8039_s4 + $0xd0] sm:$0xff]  ;;  %v186_v39 = vld [vmem:[%s8039_s4 + $0x118] sm:$0xff]  ;;  %v6592_v44 = vpack.c.bf16 %v187_v29, %v183_v23  ;;  %v192_v5 = vld [vmem:[%s8039_s4 + $0x148] sm:$0xff] }
  0x27   :  { %4339 = vmatprep.subr.bf16.mxu0 %v6459_v1  ;;  %364 = vmatmul.mubr.f32.vlgmr.msra.gmra.mrb[0].mxu1 %v8045_v3  ;;  %8291 = vst [vmem:[#allocation42_spill] sm:$0xff] %v6568_v19  ;;  %v181_v38 = vld [vmem:[%s8039_s4 + $0xf0] sm:$0xff]  ;;  %v190_v40 = vld [vmem:[%s8039_s4 + $0x138] sm:$0xff]  ;;  %v196_v11 = vld [vmem:[%s8039_s4 + $0x168] sm:$0xff] }
  0x28   :  { %4369 = vmatpush1.bf16.msra.mxu1 %v6491_v21  ;;  %533 = vmatprep.mubr.f32.mxu1 %v8045_v3  ;;  %8292 = vst [vmem:[#allocation43_spill] sm:$0xff] %v6577_v32  ;;  %8293 = vst [vmem:[#allocation44_spill] sm:$0xff] %v6592_v44  ;;  %v6595_v53 = vpack.c.bf16 %v181_v38, %v177_v36  ;;  %v6599_v56 = vpack.c.bf16 %v190_v40, %v186_v39  ;;  %v185_v57 = vld [vmem:[%s8039_s4 + $0x110] sm:$0xff]  ;;  %v194_v12 = vld [vmem:[%s8039_s4 + $0x158] sm:$0xff] }
  0x29   :  { %4371 = vmatprep.subr.bf16.mxu1 %v6506_v35  ;;  %v189_v63 = vld [vmem:[%s8039_s4 + $0x130] sm:$0xff]  ;;  %v198_v23 = vld [vmem:[%s8039_s4 + $0x178] sm:$0xff]  ;;  %v6625_v29 = vpack.c.bf16 %v196_v11, %v192_v5  ;;  %v191_v38 = vld [vmem:[%s8039_s4 + $0x140] sm:$0xff] }
  0x2a   :  { %4341 = vmatpush1.bf16.msra.mxu0 %v6487_v20  ;;  %8294 = vst [vmem:[#allocation45_spill] sm:$0xff] %v6595_v53  ;;  %8295 = vst [vmem:[#allocation46_spill] sm:$0xff] %v6599_v56  ;;  %v6609_v2 = vpack.c.bf16 %v189_v63, %v185_v57  ;;  %v6627_v36 = vpack.c.bf16 %v198_v23, %v194_v12  ;;  %v195_v39 = vld [vmem:[%s8039_s4 + $0x160] sm:$0xff]  ;;  %v193_v40 = vld [vmem:[%s8039_s4 + $0x150] sm:$0xff] }
  0x2b   :  { %4343 = vmatprep.subr.bf16.mxu0 %v6497_v28  ;;  %8297 = vst [vmem:[#allocation48_spill] sm:$0xff] %v6625_v29  ;;  %v6638_v57 = vpack.c.bf16 %v195_v39, %v191_v38  ;;  %v197_v63 = vld [vmem:[%s8039_s4 + $0x170] sm:$0xff]  ;;  %v200_v11 = vld [vmem:[%s8039_s4 + $0x188] sm:$0xff]  ;;  %v202_v23 = vld [vmem:[%s8039_s4 + $0x198] sm:$0xff] }
  0x2c   :  { %4373 = vmatpush1.bf16.msra.mxu1 %v6528_v50  ;;  %8296 = vst [vmem:[#allocation47_spill] sm:$0xff] %v6609_v2  ;;  %8298 = vst [vmem:[#allocation49_spill] sm:$0xff] %v6627_v36  ;;  %v6645_v5 = vpack.c.bf16 %v197_v63, %v193_v40  ;;  %v204_v12 = vld [vmem:[%s8039_s4 + $0x1a8] sm:$0xff]  ;;  %v206_v39 = vld [vmem:[%s8039_s4 + $0x1b8] sm:$0xff] }
  0x2d   :  { %4375 = vmatprep.subr.bf16.mxu1 %v6543_v59  ;;  %8299 = vst [vmem:[#allocation50_spill] sm:$0xff] %v6638_v57  ;;  %v6657_v38 = vpack.c.bf16 %v204_v12, %v200_v11  ;;  %v199_v40 = vld [vmem:[%s8039_s4 + $0x180] sm:$0xff]  ;;  %v6669_v3 = vpack.c.bf16 %v206_v39, %v202_v23  ;;  %v201_v11 = vld [vmem:[%s8039_s4 + $0x190] sm:$0xff]  ;;  %v208_v23 = vld [vmem:[%s8039_s4 + $0x1c8] sm:$0xff] }
  0x2e   :  { %4345 = vmatpush1.bf16.msra.mxu0 %v6525_v49  ;;  %8300 = vst [vmem:[#allocation51_spill] sm:$0xff] %v6645_v5  ;;  %v203_v63 = vld [vmem:[%s8039_s4 + $0x1a0] sm:$0xff]  ;;  %v205_v12 = vld [vmem:[%s8039_s4 + $0x1b0] sm:$0xff]  ;;  %v212_v39 = vld [vmem:[%s8039_s4 + $0x1e8] sm:$0xff] }
  0x2f   :  { %4347 = vmatprep.subr.bf16.mxu0 %v6534_v54  ;;  %8301 = vst [vmem:[#allocation52_spill] sm:$0xff] %v6657_v38  ;;  %8302 = vst [vmem:[#allocation53_spill] sm:$0xff] %v6669_v3 }
  0x30   :  { %4377 = vmatpush1.bf16.msra.mxu1 %v6565_v16 }
  0x31   :  { %4379 = vmatprep.subr.bf16.mxu1 %v6577_v32 }
  0x32   :  { %4349 = vmatpush1.bf16.msra.mxu0 %v6562_v13 }
  0x33   :  { %4351 = vmatprep.subr.bf16.mxu0 %v6568_v19 }
  0x34   :  { %4381 = vmatpush1.bf16.msra.mxu1 %v6595_v53 }
  0x35   :  { %4383 = vmatprep.subr.bf16.mxu1 %v6599_v56 }
  0x36   :  { %4353 = vmatpush1.bf16.msra.mxu0 %v6592_v44 }
  0x37   :  { %4355 = vmatprep.subr.bf16.mxu0 %v6625_v29 }
  0x38   :  { %4385 = vmatpush1.bf16.msra.mxu1 %v6609_v2 }
  0x39   :  { %4387 = vmatprep.subr.bf16.mxu1 %v6627_v36  ;;  %v6671_v36 = vpack.c.bf16 %v203_v63, %v199_v40  ;;  %v210_v40 = vld [vmem:[%s8039_s4 + $0x1d8] sm:$0xff]  ;;  %v6693_v63 = vpack.c.bf16 %v212_v39, %v208_v23  ;;  %v209_v23 = vld [vmem:[%s8039_s4 + $0x1d0] sm:$0xff] }
  0x3a   :  { %4357 = vmatpush1.bf16.msra.mxu0 %v6638_v57  ;;  %v6680_v57 = vpack.c.bf16 %v205_v12, %v201_v11  ;;  %v214_v11 = vld [vmem:[%s8039_s4 + $0x1f8] sm:$0xff]  ;;  %v207_v12 = vld [vmem:[%s8039_s4 + $0x1c0] sm:$0xff]  ;;  %v213_v39 = vld [vmem:[%s8039_s4 + $0x1f0] sm:$0xff] }
  0x3b   :  { %8303 = vst [vmem:[#allocation54_spill] sm:$0xff] %v6671_v36  ;;  %4359 = vmatprep.subr.bf16.mxu0 %v6657_v38  ;;  %8305 = vst [vmem:[#allocation56_spill] sm:$0xff] %v6693_v63  ;;  %v6705_v38 = vpack.c.bf16 %v214_v11, %v210_v40  ;;  %v88_v40 = vld [vmem:[%s8040_s3 + $0x8] sm:$0xff]  ;;  %v90_v11 = vld [vmem:[%s8040_s3 + $0x18] sm:$0xff] }
  0x3c   :  { %4389 = vmatpush1.bf16.msra.mxu1 %v6645_v5  ;;  %8304 = vst [vmem:[#allocation55_spill] sm:$0xff] %v6680_v57 }
  0x3d   :  { %4391 = vmatprep.subr.bf16.mxu1 %v6669_v3  ;;  %v211_v3 = vld [vmem:[%s8039_s4 + $0x1e0] sm:$0xff]  ;;  %8306 = vst [vmem:[#allocation57_spill] sm:$0xff] %v6705_v38 }
  0x3e   :  { %4361 = vmatpush1.bf16.msra.mxu0 %v6671_v36  ;;  %v6707_v5 = vpack.c.bf16 %v211_v3, %v207_v12  ;;  %v6716_v36 = vpack.c.bf16 %v213_v39, %v209_v23  ;;  %v92_v3 = vld [vmem:[%s8040_s3 + $0x28] sm:$0xff]  ;;  %v94_v23 = vld [vmem:[%s8040_s3 + $0x38] sm:$0xff]  ;;  %v87_v39 = vld [vmem:[%s8040_s3] sm:$0xff] }
  0x3f   :  { %4363 = vmatprep.subr.bf16.mxu0 %v6693_v63  ;;  %v6729_v12 = vpack.c.bf16 %v92_v3, %v88_v40  ;;  %v6741_v63 = vpack.c.bf16 %v94_v23, %v90_v11  ;;  %v89_v40 = vld [vmem:[%s8040_s3 + $0x10] sm:$0xff]  ;;  %v100_v11 = vld [vmem:[%s8040_s3 + $0x68] sm:$0xff]  ;;  %v98_v23 = vld [vmem:[%s8040_s3 + $0x58] sm:$0xff] }
  0x40   :  { %4393 = vmatpush1.bf16.msra.mxu1 %v6680_v57  ;;  %8307 = vst [vmem:[#allocation58_spill] sm:$0xff] %v6707_v5  ;;  %8308 = vst [vmem:[#allocation59_spill] sm:$0xff] %v6716_v36  ;;  %v93_v3 = vld [vmem:[%s8040_s3 + $0x30] sm:$0xff] }
  0x41   :  { %4395 = vmatprep.subr.bf16.mxu1 %v6705_v38  ;;  %8309 = vst [vmem:[#allocation60_spill] sm:$0xff] %v6729_v12  ;;  %v91_v38 = vld [vmem:[%s8040_s3 + $0x20] sm:$0xff]  ;;  %8310 = vst [vmem:[#allocation61_spill] sm:$0xff] %v6741_v63  ;;  %v6754_v29 = vpack.c.bf16 %v93_v3, %v89_v40  ;;  %v102_v40 = vld [vmem:[%s8040_s3 + $0x78] sm:$0xff] }
  0x42   :  { %4365 = vmatpush1.bf16.msra.mxu0 %v6707_v5  ;;  %v6743_v57 = vpack.c.bf16 %v91_v38, %v87_v39  ;;  %v8312_v5 = vmov 0.0   ;;  %v96_v38 = vld [vmem:[%s8040_s3 + $0x48] sm:$0xff]  ;;  %v95_v3 = vld [vmem:[%s8040_s3 + $0x40] sm:$0xff] }
  0x43   :  { %4399 = vmatprep.subr.bf16.mxu0 %v6729_v12  ;;  %8313 = vst [vmem:[#allocation63_spill] sm:$0xff] %v6754_v29  ;;  %v6767_v39 = vpack.c.bf16 %v100_v11, %v96_v38  ;;  %v6779_v12 = vpack.c.bf16 %v102_v40, %v98_v23  ;;  %v97_v38 = vld [vmem:[%s8040_s3 + $0x50] sm:$0xff]  ;;  %v108_v23 = vld [vmem:[%s8040_s3 + $0xa8] sm:$0xff]  ;;  %v106_v40 = vld [vmem:[%s8040_s3 + $0x98] sm:$0xff] }
  0x44   :  { %4397 = vmatpush1.bf16.msra.mxu1 %v6716_v36  ;;  %8311 = vst [vmem:[#allocation62_spill] sm:$0xff] %v6743_v57  ;;  %v101_v11 = vld [vmem:[%s8040_s3 + $0x70] sm:$0xff] }
  0x45   :  { %4431 = vmatprep.subr.bf16.mxu1 %v6741_v63  ;;  %463 = vmatmul.mubr.f32.vlgmr.msra.gmra.mrb[2].mxu0 %v8312_v5  ;;  %8314 = vst [vmem:[#allocation64_spill] sm:$0xff] %v6767_v39  ;;  %v99_v63 = vld [vmem:[%s8040_s3 + $0x60] sm:$0xff]  ;;  %8315 = vst [vmem:[#allocation65_spill] sm:$0xff] %v6779_v12 }
  0x46   :  { %4401 = vmatpush1.bf16.msra.mxu0 %v6743_v57  ;;  %v6781_v36 = vpack.c.bf16 %v99_v63, %v95_v3  ;;  %604 = vmatprep.mubr.f32.mxu0 %v8312_v5  ;;  %v6791_v57 = vpack.c.bf16 %v101_v11, %v97_v38  ;;  %v104_v63 = vld [vmem:[%s8040_s3 + $0x88] sm:$0xff]  ;;  %v110_v38 = vld [vmem:[%s8040_s3 + $0xb8] sm:$0xff]  ;;  %v103_v11 = vld [vmem:[%s8040_s3 + $0x80] sm:$0xff] }
  0x47   :  { %534 = vmatmul.mubr.f32.vlgmr.msra.gmra.mrb[2].mxu1 %v8312_v5  ;;  %4403 = vmatprep.subr.bf16.mxu0 %v6767_v39  ;;  %v6805_v3 = vpack.c.bf16 %v108_v23, %v104_v63  ;;  %v6817_v39 = vpack.c.bf16 %v110_v38, %v106_v40  ;;  %v105_v63 = vld [vmem:[%s8040_s3 + $0x90] sm:$0xff]  ;;  %v112_v40 = vld [vmem:[%s8040_s3 + $0xc8] sm:$0xff]  ;;  %v114_v38 = vld [vmem:[%s8040_s3 + $0xd8] sm:$0xff] }
  0x48   :  { %4433 = vmatpush1.bf16.msra.mxu1 %v6754_v29  ;;  %8316 = vst [vmem:[#allocation66_spill] sm:$0xff] %v6781_v36  ;;  %8317 = vst [vmem:[#allocation67_spill] sm:$0xff] %v6791_v57  ;;  %675 = vmatprep.mubr.f32.mxu1 %v8312_v5  ;;  %v109_v23 = vld [vmem:[%s8040_s3 + $0xb0] sm:$0xff] }
  0x49   :  { %4435 = vmatprep.subr.bf16.mxu1 %v6779_v12  ;;  %8318 = vst [vmem:[#allocation68_spill] sm:$0xff] %v6805_v3  ;;  %v107_v12 = vld [vmem:[%s8040_s3 + $0xa0] sm:$0xff]  ;;  %8319 = vst [vmem:[#allocation69_spill] sm:$0xff] %v6817_v39 }
  0x4a   :  { %4405 = vmatpush1.bf16.msra.mxu0 %v6781_v36  ;;  %v6819_v29 = vpack.c.bf16 %v107_v12, %v103_v11  ;;  %v6828_v36 = vpack.c.bf16 %v109_v23, %v105_v63  ;;  %v116_v12 = vld [vmem:[%s8040_s3 + $0xe8] sm:$0xff]  ;;  %v118_v63 = vld [vmem:[%s8040_s3 + $0xf8] sm:$0xff]  ;;  %v111_v23 = vld [vmem:[%s8040_s3 + $0xc0] sm:$0xff] }
  0x4b   :  { %4407 = vmatprep.subr.bf16.mxu0 %v6805_v3  ;;  %v6841_v11 = vpack.c.bf16 %v116_v12, %v112_v40  ;;  %v6853_v3 = vpack.c.bf16 %v118_v63, %v114_v38  ;;  %v113_v40 = vld [vmem:[%s8040_s3 + $0xd0] sm:$0xff]  ;;  %v120_v38 = vld [vmem:[%s8040_s3 + $0x108] sm:$0xff]  ;;  %v122_v63 = vld [vmem:[%s8040_s3 + $0x118] sm:$0xff] }
  0x4c   :  { %4437 = vmatpush1.bf16.msra.mxu1 %v6791_v57  ;;  %8320 = vst [vmem:[#allocation70_spill] sm:$0xff] %v6819_v29  ;;  %8321 = vst [vmem:[#allocation71_spill] sm:$0xff] %v6828_v36  ;;  %v117_v12 = vld [vmem:[%s8040_s3 + $0xf0] sm:$0xff] }
  0x4d   :  { %4439 = vmatprep.subr.bf16.mxu1 %v6817_v39  ;;  %8322 = vst [vmem:[#allocation72_spill] sm:$0xff] %v6841_v11  ;;  %v115_v39 = vld [vmem:[%s8040_s3 + $0xe0] sm:$0xff]  ;;  %8323 = vst [vmem:[#allocation73_spill] sm:$0xff] %v6853_v3 }
  0x4e   :  { %4409 = vmatpush1.bf16.msra.mxu0 %v6819_v29  ;;  %v6855_v57 = vpack.c.bf16 %v115_v39, %v111_v23  ;;  %v6864_v29 = vpack.c.bf16 %v117_v12, %v113_v40  ;;  %v124_v39 = vld [vmem:[%s8040_s3 + $0x128] sm:$0xff]  ;;  %v126_v40 = vld [vmem:[%s8040_s3 + $0x138] sm:$0xff]  ;;  %v119_v12 = vld [vmem:[%s8040_s3 + $0x100] sm:$0xff] }
  0x4f   :  { %4411 = vmatprep.subr.bf16.mxu0 %v6841_v11  ;;  %v6877_v23 = vpack.c.bf16 %v124_v39, %v120_v38  ;;  %v6889_v11 = vpack.c.bf16 %v126_v40, %v122_v63  ;;  %v121_v38 = vld [vmem:[%s8040_s3 + $0x110] sm:$0xff]  ;;  %v128_v63 = vld [vmem:[%s8040_s3 + $0x148] sm:$0xff]  ;;  %v130_v40 = vld [vmem:[%s8040_s3 + $0x158] sm:$0xff] }
  0x50   :  { %4441 = vmatpush1.bf16.msra.mxu1 %v6828_v36  ;;  %8324 = vst [vmem:[#allocation74_spill] sm:$0xff] %v6855_v57  ;;  %8325 = vst [vmem:[#allocation75_spill] sm:$0xff] %v6864_v29  ;;  %v125_v39 = vld [vmem:[%s8040_s3 + $0x130] sm:$0xff] }
  0x51   :  { %4443 = vmatprep.subr.bf16.mxu1 %v6853_v3  ;;  %8326 = vst [vmem:[#allocation76_spill] sm:$0xff] %v6877_v23  ;;  %v123_v3 = vld [vmem:[%s8040_s3 + $0x120] sm:$0xff]  ;;  %8327 = vst [vmem:[#allocation77_spill] sm:$0xff] %v6889_v11 }
  0x52   :  { %4413 = vmatpush1.bf16.msra.mxu0 %v6855_v57  ;;  %v6891_v36 = vpack.c.bf16 %v123_v3, %v119_v12  ;;  %v6900_v57 = vpack.c.bf16 %v125_v39, %v121_v38  ;;  %v132_v3 = vld [vmem:[%s8040_s3 + $0x168] sm:$0xff]  ;;  %v134_v38 = vld [vmem:[%s8040_s3 + $0x178] sm:$0xff]  ;;  %v127_v39 = vld [vmem:[%s8040_s3 + $0x140] sm:$0xff] }
  0x53   :  { %4415 = vmatprep.subr.bf16.mxu0 %v6877_v23  ;;  %v6913_v12 = vpack.c.bf16 %v132_v3, %v128_v63  ;;  %v6925_v23 = vpack.c.bf16 %v134_v38, %v130_v40  ;;  %v129_v63 = vld [vmem:[%s8040_s3 + $0x150] sm:$0xff]  ;;  %v138_v40 = vld [vmem:[%s8040_s3 + $0x198] sm:$0xff] }
  0x54   :  { %4445 = vmatpush1.bf16.msra.mxu1 %v6864_v29  ;;  %8328 = vst [vmem:[#allocation78_spill] sm:$0xff] %v6891_v36  ;;  %8329 = vst [vmem:[#allocation79_spill] sm:$0xff] %v6900_v57  ;;  %v133_v3 = vld [vmem:[%s8040_s3 + $0x170] sm:$0xff] }
  0x55   :  { %4447 = vmatprep.subr.bf16.mxu1 %v6889_v11  ;;  %8330 = vst [vmem:[#allocation80_spill] sm:$0xff] %v6913_v12  ;;  %v131_v11 = vld [vmem:[%s8040_s3 + $0x160] sm:$0xff]  ;;  %8331 = vst [vmem:[#allocation81_spill] sm:$0xff] %v6925_v23 }
  0x56   :  { %4417 = vmatpush1.bf16.msra.mxu0 %v6891_v36  ;;  %v6927_v29 = vpack.c.bf16 %v131_v11, %v127_v39  ;;  %v6936_v36 = vpack.c.bf16 %v133_v3, %v129_v63  ;;  %v140_v11 = vld [vmem:[%s8040_s3 + $0x1a8] sm:$0xff]  ;;  %v142_v39 = vld [vmem:[%s8040_s3 + $0x1b8] sm:$0xff]  ;;  %v135_v63 = vld [vmem:[%s8040_s3 + $0x180] sm:$0xff] }
  0x57   :  { %4419 = vmatprep.subr.bf16.mxu0 %v6913_v12  ;;  %v139_v3 = vld [vmem:[%s8040_s3 + $0x1a0] sm:$0xff]  ;;  %v6960_v12 = vpack.c.bf16 %v142_v39, %v138_v40  ;;  %v148_v39 = vld [vmem:[%s8040_s3 + $0x1e8] sm:$0xff] }
  0x58   :  { %4449 = vmatpush1.bf16.msra.mxu1 %v6900_v57  ;;  %8332 = vst [vmem:[#allocation82_spill] sm:$0xff] %v6927_v29  ;;  %8333 = vst [vmem:[#allocation83_spill] sm:$0xff] %v6936_v36  ;;  %v136_v57 = vld [vmem:[%s8040_s3 + $0x188] sm:$0xff]  ;;  %v6962_v2 = vpack.c.bf16 %v139_v3, %v135_v63  ;;  %v146_v63 = vld [vmem:[%s8040_s3 + $0x1d8] sm:$0xff] }
  0x59   :  { %4451 = vmatprep.subr.bf16.mxu1 %v6925_v23  ;;  %v6948_v38 = vpack.c.bf16 %v140_v11, %v136_v57  ;;  %8335 = vst [vmem:[#allocation85_spill] sm:$0xff] %v6960_v12  ;;  %v137_v57 = vld [vmem:[%s8040_s3 + $0x190] sm:$0xff]  ;;  %v144_v23 = vld [vmem:[%s8040_s3 + $0x1c8] sm:$0xff]  ;;  %v150_v3 = vld [vmem:[%s8040_s3 + $0x1f8] sm:$0xff] }
  0x5a   :  { %4421 = vmatpush1.bf16.msra.mxu0 %v6927_v29  ;;  %8336 = vst [vmem:[#allocation86_spill] sm:$0xff] %v6962_v2  ;;  %v141_v11 = vld [vmem:[%s8040_s3 + $0x1b0] sm:$0xff]  ;;  %v6987_v29 = vpack.c.bf16 %v148_v39, %v144_v23 }
  0x5b   :  { %8334 = vst [vmem:[#allocation84_spill] sm:$0xff] %v6948_v38  ;;  %4423 = vmatprep.subr.bf16.mxu0 %v6948_v38  ;;  %v6975_v40 = vpack.c.bf16 %v141_v11, %v137_v57  ;;  %v143_v57 = vld [vmem:[%s8040_s3 + $0x1c0] sm:$0xff]  ;;  %v145_v38 = vld [vmem:[%s8040_s3 + $0x1d0] sm:$0xff] }
  0x5c   :  { %4453 = vmatpush1.bf16.msra.mxu1 %v6936_v36  ;;  %8338 = vst [vmem:[#allocation88_spill] sm:$0xff] %v6987_v29  ;;  %v6989_v36 = vpack.c.bf16 %v150_v3, %v146_v63  ;;  %v147_v11 = vld [vmem:[%s8040_s3 + $0x1e0] sm:$0xff]  ;;  %v221_v3 = vld [vmem:[%s8041_s0 + $0x8] sm:$0xff] }
  0x5d   :  { %8337 = vst [vmem:[#allocation87_spill] sm:$0xff] %v6975_v40  ;;  %4455 = vmatprep.subr.bf16.mxu1 %v6960_v12  ;;  %v149_v12 = vld [vmem:[%s8040_s3 + $0x1f0] sm:$0xff]  ;;  %v7004_v23 = vpack.c.bf16 %v147_v11, %v143_v57  ;;  %v7018_v63 = vld [vmem:[%s8042_s1] sm:$0xff] }
  0x5e   :  { %8339 = vst [vmem:[#allocation89_spill] sm:$0xff] %v6989_v36  ;;  %4425 = vmatpush1.bf16.msra.mxu0 %v6962_v2  ;;  %v7008_v39 = vpack.c.bf16 %v149_v12, %v145_v38  ;;  %8342 = vst [vmem:[#allocation92_spill] sm:$0xff] %v7018_v63  ;;  %v220_v12 = vld [vmem:[%s8041_s0] sm:$0xff]  ;;  %v7026_v38 = vld [vmem:[%s8042_s1 + $0x8] sm:$0xff] }
  0x5f   :  { %8340 = vst [vmem:[#allocation90_spill] sm:$0xff] %v7004_v23  ;;  %4427 = vmatprep.subr.bf16.mxu0 %v6987_v29  ;;  %8343 = vst [vmem:[#allocation93_spill] sm:$0xff] %v7026_v38  ;;  %v224_v57 = vadd.f32 %v220_v12, %v7018_v63  ;;  %v225_v11 = vadd.f32 %v221_v3, %v7026_v38  ;;  %v7045_v12 = vld [vmem:[%s8042_s1 + $0x10] sm:$0xff] }
  0x60   :  { %4457 = vmatpush1.bf16.msra.mxu1 %v6975_v40  ;;  %8341 = vst [vmem:[#allocation91_spill] sm:$0xff] %v7008_v39  ;;  %v222_v3 = vld [vmem:[%s8041_s0 + $0x10] sm:$0xff] }
  0x61   :  { %4459 = vmatprep.subr.bf16.mxu1 %v6989_v36 }
  0x62   :  { %4429 = vmatpush1.bf16.msra.mxu0 %v7004_v23 }
  0x63   :  { %4463 = vmatprep.subr.bf16.mxu0 %v6150_v4  ;;  %v7036_v4 = vld [vmem:[%s8042_s1 + $0x18] sm:$0xff] }
  0x64   :  { %4461 = vmatpush1.bf16.msra.mxu1 %v7008_v39  ;;  %8344 = vst [vmem:[#allocation94_spill] sm:$0xff] %v7036_v4  ;;  %v223_v39 = vld [vmem:[%s8041_s0 + $0x18] sm:$0xff] }
  0x65   :  { %4495 = vmatprep.subr.bf16.mxu1 %v6202_v22  ;;  %v227_v2 = vadd.f32 %v223_v39, %v7036_v4 }
  0xf8   :  { %v294_v22 = vpop.f32.mrb[0].mxu0 }
  0xf9   :  { %v370_v23 = vadd.f32 %v294_v22, %v224_v57  ;;  %v296_v36 = vpop.f32.mrb[1].mxu0 }
  0xfa   :  { %v371_v29 = vadd.f32 %v296_v36, %v225_v11  ;;  %v365_v38 = vpop.f32.mrb[0].mxu1  ;;  %v226_v36 = vadd.f32 %v222_v3, %v7045_v12 }
  0xfb   :  { %v4187_v40 = vmul.f32 -1.442695, %v370_v23  ;;  %v367_v63 = vpop.f32.mrb[1].mxu1 }
  0xfc   :  { %v4188_v44 = vmul.f32 -1.442695, %v371_v29  ;;  %v373_v22 = vadd.f32 %v367_v63, %v227_v2  ;;  %v372_v57 = vadd.f32 %v365_v38, %v226_v36  ;;  %v8352_v36 = vld [vmem:[#allocation48_spill] sm:$0xff] }
  0xfd   :  { %5839 = vpow2.f32 %v4187_v40 }
  0xfe   :  { %5841 = vpow2.f32 %v4188_v44  ;;  %v4189_v23 = vmul.f32 -1.442695, %v373_v22  ;;  %v8351_v22 = vld [vmem:[#allocation47_spill] sm:$0xff] }
 0x100   :  { %5843 = vpow2.f32 %v4189_v23  ;;  %v8353_v23 = vld [vmem:[#allocation49_spill] sm:$0xff] }
 0x101   :  { %5845 = vtanh.f32 %v372_v57  ;;  %v8354_v57 = vld [vmem:[#allocation50_spill] sm:$0xff] }
 0x107   :  { %v5840_v39 = vpop.eup %5839 }
 0x108   :  { %v5842_v29 = vpop.eup %5841  ;;  %v377_v40 = vadd.f32 1.0, %v5840_v39  ;;  %v8355_v39 = vld [vmem:[#allocation51_spill] sm:$0xff] }
 0x109   :  { %v383_v11 = vadd.f32 1.0, %v5842_v29  ;;  %v8356_v29 = vld [vmem:[#allocation52_spill] sm:$0xff] }
 0x10a   :  { %5847 = vrcp.f32 %v377_v40  ;;  %v5844_v4 = vpop.eup %5843  ;;  %v8357_v40 = vld [vmem:[#allocation53_spill] sm:$0xff] }
 0x10b   :  { %5849 = vrcp.f32 %v383_v11  ;;  %v5846_v56 = vpop.eup %5845  ;;  %v390_v53 = vadd.f32 1.0, %v5844_v4  ;;  %v8345_v4 = vld [vmem:[#allocation43_spill] sm:$0xff]  ;;  %v8358_v11 = vld [vmem:[#allocation54_spill] sm:$0xff] }
 0x10d   :  { %5851 = vrcp.f32 %v390_v53  ;;  %v8349_v53 = vld [vmem:[#allocation46_spill] sm:$0xff] }
 0x114   :  { %v5848_v19 = vpop.eup %5847 }
 0x115   :  { %v5850_v13 = vpop.eup %5849  ;;  %v394_v44 = vmul.f32 %v5848_v19, %v5846_v56  ;;  %v8347_v19 = vld [vmem:[#allocation45_spill] sm:$0xff]  ;;  %v8350_v56 = vld [vmem:[#allocation44_spill] sm:$0xff] }
 0x116   :  { %v393_v32 = vmul.f32 0.0, %v5850_v13  ;;  %v8346_v13 = vld [vmem:[#allocation40_spill] sm:$0xff] }
 0x117   :  { %v5852_v63 = vpop.eup %5851 }
 0x118   :  { %v7051_v2 = vadd.f32 %v394_v44, %v393_v32  ;;  %v8348_v32 = vld [vmem:[#allocation42_spill] sm:$0xff]  ;;  %v8359_v44 = vld [vmem:[#allocation55_spill] sm:$0xff] }
 0x11a   :  { %5853 = vtanh.f32 %v7051_v2 }
 0x124   :  { %v5854_v38 = vpop.eup %5853 }
 0x125   :  { %v397_v3 = vmul.f32 %v5854_v38, %v5852_v63  ;;  %v8360_v63 = vld [vmem:[#allocation56_spill] sm:$0xff]  ;;  %v8361_v38 = vld [vmem:[#allocation57_spill] sm:$0xff] }
 0x127   :  { %605 = vmatmul.mubr.f32.vlgmr.msra.gmra.mrb[2].mxu0 %v397_v3  ;;  %676 = vmatmul.mubr.f32.vlgmr.msra.gmra.mrb[2].mxu1 %v397_v3 }
 0x128   :  { %4465 = vmatpush1.bf16.msra.mxu0 %v6161_v8  ;;  %4497 = vmatpush1.bf16.msra.mxu1 %v6210_v25 }
 0x129   :  { %4467 = vmatprep.subr.bf16.mxu0 %v6163_v9  ;;  %4499 = vmatprep.subr.bf16.mxu1 %v6235_v33 }
 0x12a   :  { %805 = vmatprep.mubr.f32.mxu0 %v8312_v5  ;;  %876 = vmatprep.mubr.f32.mxu1 %v8312_v5 }
 0x12c   :  { %4469 = vmatpush1.bf16.msra.mxu0 %v6179_v14  ;;  %4501 = vmatpush1.bf16.msra.mxu1 %v6246_v37 }
 0x12d   :  { %4471 = vmatprep.subr.bf16.mxu0 %v6188_v17  ;;  %4503 = vmatprep.subr.bf16.mxu1 %v6270_v45 }
 0x130   :  { %4473 = vmatpush1.bf16.msra.mxu0 %v6213_v26  ;;  %4505 = vmatpush1.bf16.msra.mxu1 %v6279_v48 }
 0x131   :  { %4475 = vmatprep.subr.bf16.mxu0 %v6226_v30  ;;  %4507 = vmatprep.subr.bf16.mxu1 %v6291_v52 }
 0x134   :  { %4477 = vmatpush1.bf16.msra.mxu0 %v6262_v42  ;;  %4509 = vmatpush1.bf16.msra.mxu1 %v6321_v62 }
 0x135   :  { %4479 = vmatprep.subr.bf16.mxu0 %v6273_v46  ;;  %4511 = vmatprep.subr.bf16.mxu1 %v6327_v0 }
 0x138   :  { %4481 = vmatpush1.bf16.msra.mxu0 %v6300_v55  ;;  %4513 = vmatpush1.bf16.msra.mxu1 %v6357_v15 }
 0x139   :  { %4483 = vmatprep.subr.bf16.mxu0 %v6309_v58  ;;  %4515 = vmatprep.subr.bf16.mxu1 %v6363_v18 }
 0x13c   :  { %4485 = vmatpush1.bf16.msra.mxu0 %v6342_v7  ;;  %4517 = vmatpush1.bf16.msra.mxu1 %v6390_v31 }
 0x13d   :  { %4487 = vmatprep.subr.bf16.mxu0 %v6345_v10  ;;  %4519 = vmatprep.subr.bf16.mxu1 %v6396_v34 }
 0x140   :  { %4489 = vmatpush1.bf16.msra.mxu0 %v6378_v24  ;;  %4521 = vmatpush1.bf16.msra.mxu1 %v6418_v43 }
 0x141   :  { %4491 = vmatprep.subr.bf16.mxu0 %v6381_v27  ;;  %4523 = vmatprep.subr.bf16.mxu1 %v6432_v51 }
 0x144   :  { %4493 = vmatpush1.bf16.msra.mxu0 %v6414_v41  ;;  %4525 = vmatpush1.bf16.msra.mxu1 %v6453_v61 }
 0x145   :  { %4527 = vmatprep.subr.bf16.mxu0 %v6423_v47  ;;  %4559 = vmatprep.subr.bf16.mxu1 %v6468_v6 }
 0x147   :  { %806 = vmatmul.mubr.f32.vlgmr.msra.gmra.mrb[4].mxu0 %v397_v3  ;;  %877 = vmatmul.mubr.f32.vlgmr.msra.gmra.mrb[4].mxu1 %v397_v3  ;;  %v8362_v3 = vld [vmem:[#allocation58_spill] sm:$0xff] }
 0x148   :  { %4529 = vmatpush1.bf16.msra.mxu0 %v6450_v60  ;;  %4561 = vmatpush1.bf16.msra.mxu1 %v6491_v21 }
 0x149   :  { %4531 = vmatprep.subr.bf16.mxu0 %v6459_v1  ;;  %4563 = vmatprep.subr.bf16.mxu1 %v6506_v35 }
 0x14a   :  { %975 = vmatprep.mubr.f32.mxu0 %v8312_v5  ;;  %1046 = vmatprep.mubr.f32.mxu1 %v8312_v5 }
 0x14c   :  { %4533 = vmatpush1.bf16.msra.mxu0 %v6487_v20  ;;  %4565 = vmatpush1.bf16.msra.mxu1 %v6528_v50 }
 0x14d   :  { %4535 = vmatprep.subr.bf16.mxu0 %v6497_v28  ;;  %4567 = vmatprep.subr.bf16.mxu1 %v6543_v59 }
 0x150   :  { %4537 = vmatpush1.bf16.msra.mxu0 %v6525_v49  ;;  %4569 = vmatpush1.bf16.msra.mxu1 %v6565_v16 }
 0x151   :  { %4539 = vmatprep.subr.bf16.mxu0 %v6534_v54  ;;  %4571 = vmatprep.subr.bf16.mxu1 %v8345_v4 }
 0x154   :  { %4541 = vmatpush1.bf16.msra.mxu0 %v8346_v13  ;;  %4573 = vmatpush1.bf16.msra.mxu1 %v8347_v19 }
 0x155   :  { %4543 = vmatprep.subr.bf16.mxu0 %v8348_v32  ;;  %4575 = vmatprep.subr.bf16.mxu1 %v8349_v53 }
 0x158   :  { %4545 = vmatpush1.bf16.msra.mxu0 %v8350_v56  ;;  %4577 = vmatpush1.bf16.msra.mxu1 %v8351_v22 }
 0x159   :  { %4547 = vmatprep.subr.bf16.mxu0 %v8352_v36  ;;  %4579 = vmatprep.subr.bf16.mxu1 %v8353_v23  ;;  %v8363_v36 = vld [vmem:[#allocation59_spill] sm:$0xff]  ;;  %v8364_v23 = vld [vmem:[#allocation60_spill] sm:$0xff] }
 0x15c   :  { %4549 = vmatpush1.bf16.msra.mxu0 %v8354_v57  ;;  %4581 = vmatpush1.bf16.msra.mxu1 %v8355_v39  ;;  %v8365_v57 = vld [vmem:[#allocation61_spill] sm:$0xff]  ;;  %v683_v39 = vlaneseq }
 0x15d   :  { %4551 = vmatprep.subr.bf16.mxu0 %v8356_v29  ;;  %4583 = vmatprep.subr.bf16.mxu1 %v8357_v40 }
 0x15e   :  { %v684_v29 = vshrl.u32 %v683_v39, 7 }
 0x160   :  { %4553 = vmatpush1.bf16.msra.mxu0 %v8358_v11  ;;  %4585 = vmatpush1.bf16.msra.mxu1 %v8359_v44  ;;  %v685_v22 = vsub.s32 0, %v684_v29  ;;  %v219_v11 = vld [vmem:[%s8043_s5] sm:$0xf]  ;;  %v689_v44 = vsub.s32 1, %v684_v29  ;;  %v697_v56 = vsub.s32 3, %v684_v29  ;;  %v693_v13 = vsub.s32 2, %v684_v29 }
 0x161   :  { %4555 = vmatprep.subr.bf16.mxu0 %v8360_v63  ;;  %4587 = vmatprep.subr.bf16.mxu1 %v8361_v38 }
 0x162   :  { %v7125_v40 = vrot.slane %v219_v11, %v685_v22  ;;  %v7127_v63 = vrot.slane %v219_v11, %v689_v44  ;;  %v7131_v19 = vrot.slane %v219_v11, %v697_v56  ;;  %v7134_v44 = vrot.slane %v219_v11, %v693_v13  ;;  %v4194_v13 = vld [vmem:[%s8041_s0 + $0x28] sm:$0xff] }
 0x164   :  { %4557 = vmatpush1.bf16.msra.mxu0 %v8362_v3  ;;  %4589 = vmatpush1.bf16.msra.mxu1 %v8363_v36  ;;  %8366 = vst [vmem:[#allocation95_spill] sm:$0xff] %v7125_v40  ;;  %8367 = vst [vmem:[#allocation96_spill] sm:$0xff] %v7127_v63 }
 0x165   :  { %4591 = vmatprep.subr.bf16.mxu0 %v8364_v23  ;;  %4623 = vmatprep.subr.bf16.mxu1 %v8365_v57  ;;  %8368 = vst [vmem:[#allocation97_spill] sm:$0xff] %v7131_v19  ;;  %8369 = vst [vmem:[#allocation98_spill] sm:$0xff] %v7134_v44 }
 0x1fa   :  { %v606_v38 = vpop.f32.mrb[2].mxu0  ;;  %v677_v3 = vpop.f32.mrb[2].mxu1 }
 0x1fb   :  { %v703_v36 = vadd.f32 %v7125_v40, %v606_v38  ;;  %v608_v23 = vpop.f32.mrb[3].mxu0  ;;  %v679_v53 = vpop.f32.mrb[3].mxu1  ;;  %v705_v54 = vadd.f32 %v7134_v44, %v677_v3  ;;  %v8371_v3 = vld [vmem:[#allocation93_spill] sm:$0xff] }
 0x1fc   :  { %v704_v57 = vadd.f32 %v7127_v63, %v608_v23  ;;  %v706_v22 = vadd.f32 %v7131_v19, %v679_v53  ;;  %v4196_v19 = vld [vmem:[%s8041_s0 + $0x38] sm:$0xff] }
 0x1fd   :  { %v4190_v39 = vmul.f32 -1.442695, %v703_v36 }
 0x1fe   :  { %v4191_v32 = vmul.f32 -1.442695, %v704_v57  ;;  %v4192_v4 = vmul.f32 -1.442695, %v706_v22 }
 0x1ff   :  { %5855 = vpow2.f32 %v4190_v39 }
 0x200   :  { %5857 = vpow2.f32 %v4191_v32  ;;  %v4193_v32 = vld [vmem:[%s8041_s0 + $0x20] sm:$0xff] }
 0x201   :  { %5859 = vpow2.f32 %v4192_v4 }
 0x202   :  { %5861 = vtanh.f32 %v705_v54 }
 0x209   :  { %v5856_v16 = vpop.eup %5855 }
 0x20a   :  { %v5858_v38 = vpop.eup %5857  ;;  %v710_v40 = vadd.f32 1.0, %v5856_v16  ;;  %v8370_v16 = vld [vmem:[#allocation92_spill] sm:$0xff] }
 0x20b   :  { %v716_v23 = vadd.f32 1.0, %v5858_v38  ;;  %v5860_v56 = vpop.eup %5859  ;;  %v737_v4 = vadd.f32 %v4193_v32, %v8370_v16 }
 0x20c   :  { %5863 = vrcp.f32 %v710_v40  ;;  %v5862_v36 = vpop.eup %5861  ;;  %v723_v11 = vadd.f32 1.0, %v5860_v56  ;;  %v738_v40 = vadd.f32 %v4194_v13, %v8371_v3  ;;  %v4195_v13 = vld [vmem:[%s8041_s0 + $0x30] sm:$0xff] }
 0x20d   :  { %5865 = vrcp.f32 %v716_v23 }
 0x20e   :  { %5867 = vrcp.f32 %v723_v11  ;;  %v739_v11 = vadd.f32 %v4195_v13, %v7045_v12  ;;  %v8384_v13 = vld [vmem:[#allocation72_spill] sm:$0xff] }
 0x216   :  { %v5864_v53 = vpop.eup %5863 }
 0x217   :  { %v5866_v57 = vpop.eup %5865  ;;  %v727_v29 = vmul.f32 %v5864_v53, %v5862_v36  ;;  %v8373_v53 = vld [vmem:[#allocation94_spill] sm:$0xff] }
 0x218   :  { %v726_v54 = vmul.f32 0.0, %v5866_v57  ;;  %v740_v57 = vadd.f32 %v4196_v19, %v8373_v53 }
 0x21a   :  { %v7145_v39 = vadd.f32 %v727_v29, %v726_v54  ;;  %v807_v22 = vpop.f32.mrb[4].mxu0  ;;  %v878_v38 = vpop.f32.mrb[4].mxu1 }
 0x21b   :  { %v883_v23 = vadd.f32 %v807_v22, %v737_v4  ;;  %v809_v44 = vpop.f32.mrb[5].mxu0  ;;  %v880_v63 = vpop.f32.mrb[5].mxu1  ;;  %v885_v3 = vadd.f32 %v878_v38, %v739_v11  ;;  %v8377_v38 = vld [vmem:[#allocation65_spill] sm:$0xff] }
 0x21c   :  { %8372 = vst [vmem:[#allocation99_spill] sm:$0xff] %v7145_v39  ;;  %5869 = vtanh.f32 %v7145_v39  ;;  %v884_v56 = vadd.f32 %v809_v44, %v738_v40  ;;  %v886_v29 = vadd.f32 %v880_v63, %v740_v57  ;;  %v5868_v4 = vpop.eup %5867  ;;  %v8374_v40 = vld [vmem:[#allocation62_spill] sm:$0xff]  ;;  %v8375_v63 = vld [vmem:[#allocation63_spill] sm:$0xff] }
 0x21d   :  { %v4197_v36 = vmul.f32 -1.442695, %v883_v23  ;;  %v8383_v57 = vld [vmem:[#allocation71_spill] sm:$0xff] }
 0x21e   :  { %v4198_v32 = vmul.f32 -1.442695, %v884_v56  ;;  %v4199_v22 = vmul.f32 -1.442695, %v886_v29  ;;  %v8376_v56 = vld [vmem:[#allocation64_spill] sm:$0xff]  ;;  %v8385_v29 = vld [vmem:[#allocation73_spill] sm:$0xff] }
 0x21f   :  { %5871 = vpow2.f32 %v4197_v36  ;;  %v8380_v36 = vld [vmem:[#allocation68_spill] sm:$0xff] }
 0x220   :  { %5873 = vpow2.f32 %v4198_v32  ;;  %v8381_v32 = vld [vmem:[#allocation69_spill] sm:$0xff] }
 0x221   :  { %5875 = vpow2.f32 %v4199_v22  ;;  %v8386_v22 = vld [vmem:[#allocation74_spill] sm:$0xff] }
 0x222   :  { %5877 = vtanh.f32 %v885_v3  ;;  %v8382_v3 = vld [vmem:[#allocation70_spill] sm:$0xff] }
 0x226   :  { %v5870_v54 = vpop.eup %5869 }
 0x227   :  { %v730_v16 = vmul.f32 %v5870_v54, %v5868_v4 }
 0x229   :  { %v5872_v39 = vpop.eup %5871  ;;  %731 = vst [vmem:[%s8044_s6] sm:$0xff] %v730_v16  ;;  %976 = vmatmul.mubr.f32.vlgmr.msra.gmra.mrb[6].mxu0 %v730_v16  ;;  %1047 = vmatmul.mubr.f32.vlgmr.msra.gmra.mrb[6].mxu1 %v730_v16  ;;  %v8378_v16 = vld [vmem:[#allocation66_spill] sm:$0xff] }
 0x22a   :  { %v5874_v19 = vpop.eup %5873  ;;  %v890_v44 = vadd.f32 1.0, %v5872_v39  ;;  %4593 = vmatpush1.bf16.msra.mxu0 %v8374_v40  ;;  %4625 = vmatpush1.bf16.msra.mxu1 %v8375_v63  ;;  %v8379_v39 = vld [vmem:[#allocation67_spill] sm:$0xff] }
 0x22b   :  { %v896_v23 = vadd.f32 1.0, %v5874_v19  ;;  %4595 = vmatprep.subr.bf16.mxu0 %v8376_v56  ;;  %4627 = vmatprep.subr.bf16.mxu1 %v8377_v38  ;;  %v5876_v11 = vpop.eup %5875  ;;  %v8387_v19 = vld [vmem:[#allocation75_spill] sm:$0xff] }
 0x22c   :  { %5879 = vrcp.f32 %v890_v44  ;;  %1117 = vmatprep.mubr.f32.mxu0 %v8312_v5  ;;  %1188 = vmatprep.mubr.f32.mxu1 %v8312_v5  ;;  %v5878_v4 = vpop.eup %5877 }
 0x22d   :  { %5881 = vrcp.f32 %v896_v23 }
 0x22e   :  { %4597 = vmatpush1.bf16.msra.mxu0 %v8378_v16  ;;  %4629 = vmatpush1.bf16.msra.mxu1 %v8379_v39  ;;  %v8388_v39 = vld [vmem:[#allocation76_spill] sm:$0xff] }
 0x22f   :  { %4599 = vmatprep.subr.bf16.mxu0 %v8380_v36  ;;  %4631 = vmatprep.subr.bf16.mxu1 %v8381_v32  ;;  %v903_v36 = vadd.f32 1.0, %v5876_v11  ;;  %v8389_v32 = vld [vmem:[#allocation77_spill] sm:$0xff]  ;;  %v8392_v16 = vld [vmem:[#allocation80_spill] sm:$0xff]  ;;  %v8394_v11 = vld [vmem:[#allocation82_spill] sm:$0xff] }
 0x231   :  { %5883 = vrcp.f32 %v903_v36  ;;  %v8401_v36 = vld [vmem:[#allocation89_spill] sm:$0xff] }
 0x232   :  { %4601 = vmatpush1.bf16.msra.mxu0 %v8382_v3  ;;  %4633 = vmatpush1.bf16.msra.mxu1 %v8383_v57 }
 0x233   :  { %4603 = vmatprep.subr.bf16.mxu0 %v8384_v13  ;;  %4635 = vmatprep.subr.bf16.mxu1 %v8385_v29  ;;  %v8390_v13 = vld [vmem:[#allocation78_spill] sm:$0xff]  ;;  %v8391_v29 = vld [vmem:[#allocation79_spill] sm:$0xff] }
 0x236   :  { %v5880_v54 = vpop.eup %5879  ;;  %4605 = vmatpush1.bf16.msra.mxu0 %v8386_v22  ;;  %4637 = vmatpush1.bf16.msra.mxu1 %v8387_v19  ;;  %v8393_v22 = vld [vmem:[#allocation81_spill] sm:$0xff] }
 0x237   :  { %v5882_v44 = vpop.eup %5881  ;;  %v907_v23 = vmul.f32 %v5880_v54, %v5878_v4  ;;  %4607 = vmatprep.subr.bf16.mxu0 %v8388_v39  ;;  %4639 = vmatprep.subr.bf16.mxu1 %v8389_v32  ;;  %v8395_v4 = vld [vmem:[#allocation83_spill] sm:$0xff]  ;;  %v8396_v54 = vld [vmem:[#allocation84_spill] sm:$0xff] }
 0x238   :  { %v906_v57 = vmul.f32 %v5882_v44, %v7051_v2  ;;  %v8397_v2 = vld [vmem:[#allocation85_spill] sm:$0xff]  ;;  %v8399_v44 = vld [vmem:[#allocation87_spill] sm:$0xff] }
 0x23a   :  { %v7178_v3 = vadd.f32 %v907_v23, %v906_v57  ;;  %4609 = vmatpush1.bf16.msra.mxu0 %v8390_v13  ;;  %4641 = vmatpush1.bf16.msra.mxu1 %v8391_v29  ;;  %v8398_v57 = vld [vmem:[#allocation86_spill] sm:$0xff]  ;;  %v8400_v23 = vld [vmem:[#allocation88_spill] sm:$0xff]  ;;  %v8403_v13 = vld [vmem:[#allocation91_spill] sm:$0xff] }
 0x23b   :  { %4611 = vmatprep.subr.bf16.mxu0 %v8392_v16  ;;  %4643 = vmatprep.subr.bf16.mxu1 %v8393_v22  ;;  %v5884_v16 = vpop.eup %5883  ;;  %v8402_v29 = vld [vmem:[#allocation90_spill] sm:$0xff] }
 0x23c   :  { %5885 = vtanh.f32 %v7178_v3 }
 0x23e   :  { %4613 = vmatpush1.bf16.msra.mxu0 %v8394_v11  ;;  %4645 = vmatpush1.bf16.msra.mxu1 %v8395_v4  ;;  %v8404_v4 = vld [vmem:[#allocation2_spill] sm:$0xff] }
 0x23f   :  { %4615 = vmatprep.subr.bf16.mxu0 %v8396_v54  ;;  %4647 = vmatprep.subr.bf16.mxu1 %v8397_v2  ;;  %v8405_v54 = vld [vmem:[#allocation4_spill] sm:$0xff] }
 0x242   :  { %4617 = vmatpush1.bf16.msra.mxu0 %v8398_v57  ;;  %4649 = vmatpush1.bf16.msra.mxu1 %v8399_v44 }
 0x243   :  { %4619 = vmatprep.subr.bf16.mxu0 %v8400_v23  ;;  %4651 = vmatprep.subr.bf16.mxu1 %v8401_v36 }
 0x246   :  { %v5886_v22 = vpop.eup %5885  ;;  %4621 = vmatpush1.bf16.msra.mxu0 %v8402_v29  ;;  %4653 = vmatpush1.bf16.msra.mxu1 %v8403_v13 }
 0x247   :  { %v910_v11 = vmul.f32 %v5886_v22, %v5884_v16  ;;  %4655 = vmatprep.subr.bf16.mxu0 %v8404_v4  ;;  %4687 = vmatprep.subr.bf16.mxu1 %v8405_v54  ;;  %v8406_v16 = vld [vmem:[#allocation41_spill] sm:$0xff]  ;;  %v8407_v22 = vld [vmem:[#allocation38_spill] sm:$0xff] }
 0x249   :  { %1118 = vmatmul.mubr.f32.vlgmr.msra.gmra.mrb[6].mxu0 %v910_v11  ;;  %1189 = vmatmul.mubr.f32.vlgmr.msra.gmra.mrb[6].mxu1 %v910_v11 }
 0x24a   :  { %4657 = vmatpush1.bf16.msra.mxu0 %v6161_v8  ;;  %4689 = vmatpush1.bf16.msra.mxu1 %v6210_v25 }
 0x24b   :  { %4659 = vmatprep.subr.bf16.mxu0 %v6163_v9  ;;  %4691 = vmatprep.subr.bf16.mxu1 %v6235_v33 }
 0x24c   :  { %1298 = vmatprep.mubr.f32.mxu0 %v8312_v5  ;;  %1369 = vmatprep.mubr.f32.mxu1 %v8312_v5 }
 0x24e   :  { %4661 = vmatpush1.bf16.msra.mxu0 %v6179_v14  ;;  %4693 = vmatpush1.bf16.msra.mxu1 %v6246_v37 }
 0x24f   :  { %4663 = vmatprep.subr.bf16.mxu0 %v6188_v17  ;;  %4695 = vmatprep.subr.bf16.mxu1 %v6270_v45 }
 0x252   :  { %4665 = vmatpush1.bf16.msra.mxu0 %v6213_v26  ;;  %4697 = vmatpush1.bf16.msra.mxu1 %v6279_v48 }
 0x253   :  { %4667 = vmatprep.subr.bf16.mxu0 %v6226_v30  ;;  %4699 = vmatprep.subr.bf16.mxu1 %v6291_v52 }
 0x256   :  { %4669 = vmatpush1.bf16.msra.mxu0 %v6262_v42  ;;  %4701 = vmatpush1.bf16.msra.mxu1 %v6321_v62 }
 0x257   :  { %4671 = vmatprep.subr.bf16.mxu0 %v6273_v46  ;;  %4703 = vmatprep.subr.bf16.mxu1 %v6327_v0 }
 0x25a   :  { %4673 = vmatpush1.bf16.msra.mxu0 %v6300_v55  ;;  %4705 = vmatpush1.bf16.msra.mxu1 %v6357_v15 }
 0x25b   :  { %4675 = vmatprep.subr.bf16.mxu0 %v6309_v58  ;;  %4707 = vmatprep.subr.bf16.mxu1 %v6363_v18 }
 0x25e   :  { %4677 = vmatpush1.bf16.msra.mxu0 %v6342_v7  ;;  %4709 = vmatpush1.bf16.msra.mxu1 %v6390_v31 }
 0x25f   :  { %4679 = vmatprep.subr.bf16.mxu0 %v6345_v10  ;;  %4711 = vmatprep.subr.bf16.mxu1 %v6396_v34 }
 0x262   :  { %4681 = vmatpush1.bf16.msra.mxu0 %v6378_v24  ;;  %4713 = vmatpush1.bf16.msra.mxu1 %v6418_v43  ;;  %v4207_v24 = vld [vmem:[%s8041_s0 + $0x58] sm:$0xff] }
 0x263   :  { %4683 = vmatprep.subr.bf16.mxu0 %v6381_v27  ;;  %4715 = vmatprep.subr.bf16.mxu1 %v6432_v51 }
 0x266   :  { %4685 = vmatpush1.bf16.msra.mxu0 %v6414_v41  ;;  %4717 = vmatpush1.bf16.msra.mxu1 %v6453_v61 }
 0x267   :  { %4719 = vmatprep.subr.bf16.mxu0 %v6423_v47  ;;  %4751 = vmatprep.subr.bf16.mxu1 %v6468_v6  ;;  %v8430_v47 = vld [vmem:[#allocation96_spill] sm:$0xff] }
 0x269   :  { %1299 = vmatmul.mubr.f32.vlgmr.msra.gmra.mrb[8].mxu0 %v910_v11  ;;  %1370 = vmatmul.mubr.f32.vlgmr.msra.gmra.mrb[8].mxu1 %v910_v11  ;;  %v8408_v11 = vld [vmem:[#allocation43_spill] sm:$0xff] }
 0x26a   :  { %4721 = vmatpush1.bf16.msra.mxu0 %v6450_v60  ;;  %4753 = vmatpush1.bf16.msra.mxu1 %v6491_v21  ;;  %v8411_v21 = vld [vmem:[#allocation42_spill] sm:$0xff]  ;;  %v8429_v60 = vld [vmem:[#allocation95_spill] sm:$0xff] }
 0x26b   :  { %4723 = vmatprep.subr.bf16.mxu0 %v6459_v1  ;;  %4755 = vmatprep.subr.bf16.mxu1 %v6506_v35  ;;  %v8409_v35 = vld [vmem:[#allocation40_spill] sm:$0xff]  ;;  %v8410_v1 = vld [vmem:[#allocation45_spill] sm:$0xff] }
 0x26c   :  { %1468 = vmatprep.mubr.f32.mxu0 %v8312_v5  ;;  %1539 = vmatprep.mubr.f32.mxu1 %v8312_v5 }
 0x26e   :  { %4725 = vmatpush1.bf16.msra.mxu0 %v6487_v20  ;;  %4757 = vmatpush1.bf16.msra.mxu1 %v6528_v50  ;;  %v8412_v20 = vld [vmem:[#allocation46_spill] sm:$0xff]  ;;  %v8413_v50 = vld [vmem:[#allocation44_spill] sm:$0xff] }
 0x26f   :  { %4727 = vmatprep.subr.bf16.mxu0 %v6497_v28  ;;  %4759 = vmatprep.subr.bf16.mxu1 %v6543_v59  ;;  %v8414_v28 = vld [vmem:[#allocation47_spill] sm:$0xff]  ;;  %v8415_v59 = vld [vmem:[#allocation48_spill] sm:$0xff] }
 0x272   :  { %4729 = vmatpush1.bf16.msra.mxu0 %v6525_v49  ;;  %4761 = vmatpush1.bf16.msra.mxu1 %v8406_v16  ;;  %v8416_v49 = vld [vmem:[#allocation49_spill] sm:$0xff]  ;;  %v8417_v16 = vld [vmem:[#allocation50_spill] sm:$0xff] }
 0x273   :  { %4731 = vmatprep.subr.bf16.mxu0 %v8407_v22  ;;  %4763 = vmatprep.subr.bf16.mxu1 %v8408_v11  ;;  %v8418_v22 = vld [vmem:[#allocation51_spill] sm:$0xff]  ;;  %v8419_v11 = vld [vmem:[#allocation52_spill] sm:$0xff] }
 0x276   :  { %4733 = vmatpush1.bf16.msra.mxu0 %v8409_v35  ;;  %4765 = vmatpush1.bf16.msra.mxu1 %v8410_v1  ;;  %v8420_v35 = vld [vmem:[#allocation53_spill] sm:$0xff]  ;;  %v8421_v1 = vld [vmem:[#allocation54_spill] sm:$0xff] }
 0x277   :  { %4735 = vmatprep.subr.bf16.mxu0 %v8411_v21  ;;  %4767 = vmatprep.subr.bf16.mxu1 %v8412_v20  ;;  %v8422_v21 = vld [vmem:[#allocation55_spill] sm:$0xff]  ;;  %v8423_v20 = vld [vmem:[#allocation56_spill] sm:$0xff] }
 0x27a   :  { %4737 = vmatpush1.bf16.msra.mxu0 %v8413_v50  ;;  %4769 = vmatpush1.bf16.msra.mxu1 %v8414_v28  ;;  %v8424_v50 = vld [vmem:[#allocation57_spill] sm:$0xff]  ;;  %v8425_v28 = vld [vmem:[#allocation58_spill] sm:$0xff] }
 0x27b   :  { %4739 = vmatprep.subr.bf16.mxu0 %v8415_v59  ;;  %4771 = vmatprep.subr.bf16.mxu1 %v8416_v49  ;;  %v8426_v59 = vld [vmem:[#allocation59_spill] sm:$0xff]  ;;  %v8427_v49 = vld [vmem:[#allocation60_spill] sm:$0xff] }
 0x27e   :  { %4741 = vmatpush1.bf16.msra.mxu0 %v8417_v16  ;;  %4773 = vmatpush1.bf16.msra.mxu1 %v8418_v22  ;;  %v8428_v16 = vld [vmem:[#allocation61_spill] sm:$0xff] }
 0x27f   :  { %4743 = vmatprep.subr.bf16.mxu0 %v8419_v11  ;;  %4775 = vmatprep.subr.bf16.mxu1 %v8420_v35 }
 0x282   :  { %4745 = vmatpush1.bf16.msra.mxu0 %v8421_v1  ;;  %4777 = vmatpush1.bf16.msra.mxu1 %v8422_v21 }
 0x283   :  { %4747 = vmatprep.subr.bf16.mxu0 %v8423_v20  ;;  %4779 = vmatprep.subr.bf16.mxu1 %v8424_v50  ;;  %v8431_v50 = vld [vmem:[#allocation97_spill] sm:$0xff] }
 0x286   :  { %4749 = vmatpush1.bf16.msra.mxu0 %v8425_v28  ;;  %4781 = vmatpush1.bf16.msra.mxu1 %v8426_v59  ;;  %v8432_v59 = vld [vmem:[#allocation98_spill] sm:$0xff] }
 0x287   :  { %4783 = vmatprep.subr.bf16.mxu0 %v8427_v49  ;;  %4815 = vmatprep.subr.bf16.mxu1 %v8428_v16 }
 0x31c   :  { %v1119_v22 = vpop.f32.mrb[6].mxu0  ;;  %v1190_v11 = vpop.f32.mrb[6].mxu1 }
 0x31d   :  { %v1195_v35 = vadd.f32 %v1119_v22, %v8429_v60  ;;  %v1121_v6 = vpop.f32.mrb[7].mxu0  ;;  %v1192_v1 = vpop.f32.mrb[7].mxu1  ;;  %v1197_v51 = vadd.f32 %v1190_v11, %v8432_v59 }
 0x31e   :  { %v1196_v21 = vadd.f32 %v1121_v6, %v8430_v47  ;;  %v1198_v28 = vadd.f32 %v1192_v1, %v8431_v50  ;;  %v4204_v6 = vld [vmem:[%s8041_s0 + $0x40] sm:$0xff]  ;;  %v4205_v1 = vld [vmem:[%s8041_s0 + $0x48] sm:$0xff] }
 0x31f   :  { %v4200_v61 = vmul.f32 -1.442695, %v1195_v35 }
 0x320   :  { %v4201_v20 = vmul.f32 -1.442695, %v1196_v21  ;;  %v4202_v41 = vmul.f32 -1.442695, %v1198_v28 }
 0x321   :  { %5887 = vpow2.f32 %v4200_v61 }
 0x322   :  { %5889 = vpow2.f32 %v4201_v20 }
 0x323   :  { %5891 = vpow2.f32 %v4202_v41 }
 0x324   :  { %5893 = vtanh.f32 %v1197_v51  ;;  %v8434_v51 = vld [vmem:[#allocation99_spill] sm:$0xff] }
 0x32b   :  { %v5888_v49 = vpop.eup %5887 }
 0x32c   :  { %v5890_v27 = vpop.eup %5889  ;;  %v1202_v16 = vadd.f32 1.0, %v5888_v49  ;;  %v8433_v49 = vld [vmem:[#allocation92_spill] sm:$0xff] }
 0x32d   :  { %v1208_v43 = vadd.f32 1.0, %v5890_v27  ;;  %v5892_v22 = vpop.eup %5891  ;;  %v1230_v41 = vadd.f32 %v4204_v6, %v8433_v49 }
 0x32e   :  { %5895 = vrcp.f32 %v1202_v16  ;;  %v5894_v61 = vpop.eup %5893  ;;  %v1215_v35 = vadd.f32 1.0, %v5892_v22  ;;  %v8435_v16 = vld [vmem:[#allocation93_spill] sm:$0xff] }
 0x32f   :  { %5897 = vrcp.f32 %v1208_v43  ;;  %v1231_v43 = vadd.f32 %v4205_v1, %v8435_v16  ;;  %v4206_v1 = vld [vmem:[%s8041_s0 + $0x50] sm:$0xff]  ;;  %v8440_v16 = vld [vmem:[#allocation70_spill] sm:$0xff] }
 0x330   :  { %5899 = vrcp.f32 %v1215_v35 }
 0x338   :  { %v5896_v20 = vpop.eup %5895 }
 0x339   :  { %v5898_v21 = vpop.eup %5897  ;;  %v1219_v28 = vmul.f32 %v5896_v20, %v5894_v61  ;;  %v1233_v20 = vadd.f32 %v4207_v24, %v8373_v53  ;;  %v8438_v53 = vld [vmem:[#allocation68_spill] sm:$0xff] }
 0x33a   :  { %v1218_v27 = vmul.f32 %v5898_v21, %v8434_v51  ;;  %v1232_v21 = vadd.f32 %v4206_v1, %v7045_v12  ;;  %v8437_v12 = vld [vmem:[#allocation67_spill] sm:$0xff] }
 0x33c   :  { %v7278_v11 = vadd.f32 %v1219_v28, %v1218_v27  ;;  %v1300_v59 = vpop.f32.mrb[8].mxu0  ;;  %v1371_v50 = vpop.f32.mrb[8].mxu1  ;;  %v8439_v27 = vld [vmem:[#allocation69_spill] sm:$0xff] }
 0x33d   :  { %v1376_v47 = vadd.f32 %v1300_v59, %v1230_v41  ;;  %v1302_v60 = vpop.f32.mrb[9].mxu0  ;;  %v1373_v34 = vpop.f32.mrb[9].mxu1  ;;  %v1378_v41 = vadd.f32 %v1371_v50, %v1232_v21  ;;  %v8436_v50 = vld [vmem:[#allocation66_spill] sm:$0xff] }
 0x33e   :  { %v1377_v61 = vadd.f32 %v1302_v60, %v1231_v43  ;;  %5901 = vtanh.f32 %v7278_v11  ;;  %v1379_v59 = vadd.f32 %v1373_v34, %v1233_v20  ;;  %v5900_v28 = vpop.eup %5899  ;;  %v8441_v43 = vld [vmem:[#allocation71_spill] sm:$0xff] }
 0x33f   :  { %v4208_v22 = vmul.f32 -1.442695, %v1376_v47 }
 0x340   :  { %v4209_v6 = vmul.f32 -1.442695, %v1377_v61  ;;  %v4210_v49 = vmul.f32 -1.442695, %v1379_v59  ;;  %v8442_v61 = vld [vmem:[#allocation72_spill] sm:$0xff]  ;;  %v8444_v59 = vld [vmem:[#allocation74_spill] sm:$0xff] }
 0x341   :  { %5903 = vpow2.f32 %v4208_v22  ;;  %v8443_v22 = vld [vmem:[#allocation73_spill] sm:$0xff] }
 0x342   :  { %5905 = vpow2.f32 %v4209_v6 }
 0x343   :  { %5907 = vpow2.f32 %v4210_v49 }
 0x344   :  { %5909 = vtanh.f32 %v1378_v41 }
 0x348   :  { %v5902_v35 = vpop.eup %5901 }
 0x349   :  { %v1222_v60 = vmul.f32 %v5902_v35, %v5900_v28 }
 0x34b   :  { %v5904_v51 = vpop.eup %5903  ;;  %4203 = vst [vmem:[%s8044_s6 + $0x8] sm:$0xff] %v1222_v60  ;;  %1469 = vmatmul.mubr.f32.vlgmr.msra.gmra.mrb[10].mxu0 %v1222_v60  ;;  %1540 = vmatmul.mubr.f32.vlgmr.msra.gmra.mrb[10].mxu1 %v1222_v60  ;;  %v8445_v60 = vld [vmem:[#allocation78_spill] sm:$0xff] }
 0x34c   :  { %v5906_v24 = vpop.eup %5905  ;;  %v1383_v47 = vadd.f32 1.0, %v5904_v51  ;;  %4785 = vmatpush1.bf16.msra.mxu0 %v8374_v40  ;;  %4817 = vmatpush1.bf16.msra.mxu1 %v8375_v63  ;;  %v8446_v51 = vld [vmem:[#allocation79_spill] sm:$0xff] }
 0x34d   :  { %v1389_v34 = vadd.f32 1.0, %v5906_v24  ;;  %4787 = vmatprep.subr.bf16.mxu0 %v8376_v56  ;;  %4819 = vmatprep.subr.bf16.mxu1 %v8377_v38  ;;  %v5908_v6 = vpop.eup %5907  ;;  %v8447_v24 = vld [vmem:[#allocation80_spill] sm:$0xff] }
 0x34e   :  { %5911 = vrcp.f32 %v1383_v47  ;;  %1610 = vmatprep.mubr.f32.mxu0 %v8312_v5  ;;  %1681 = vmatprep.mubr.f32.mxu1 %v8312_v5  ;;  %v5910_v20 = vpop.eup %5909  ;;  %v1396_v35 = vadd.f32 1.0, %v5908_v6  ;;  %v8448_v47 = vld [vmem:[#allocation81_spill] sm:$0xff]  ;;  %v8450_v6 = vld [vmem:[#allocation83_spill] sm:$0xff] }
 0x34f   :  { %5913 = vrcp.f32 %v1389_v34  ;;  %v8449_v34 = vld [vmem:[#allocation82_spill] sm:$0xff] }
 0x350   :  { %4789 = vmatpush1.bf16.msra.mxu0 %v8436_v50  ;;  %4821 = vmatpush1.bf16.msra.mxu1 %v8437_v12  ;;  %5915 = vrcp.f32 %v1396_v35  ;;  %v8453_v35 = vld [vmem:[#allocation20_spill] sm:$0xff] }
 0x351   :  { %4791 = vmatprep.subr.bf16.mxu0 %v8438_v53  ;;  %4823 = vmatprep.subr.bf16.mxu1 %v8439_v27 }
 0x354   :  { %4793 = vmatpush1.bf16.msra.mxu0 %v8440_v16  ;;  %4825 = vmatpush1.bf16.msra.mxu1 %v8441_v43 }
 0x355   :  { %4795 = vmatprep.subr.bf16.mxu0 %v8442_v61  ;;  %4827 = vmatprep.subr.bf16.mxu1 %v8443_v22 }
 0x358   :  { %v5912_v1 = vpop.eup %5911  ;;  %4797 = vmatpush1.bf16.msra.mxu0 %v8444_v59  ;;  %4829 = vmatpush1.bf16.msra.mxu1 %v8387_v19 }
 0x359   :  { %v5914_v21 = vpop.eup %5913  ;;  %v1400_v28 = vmul.f32 %v5912_v1, %v5910_v20  ;;  %4799 = vmatprep.subr.bf16.mxu0 %v8388_v39  ;;  %4831 = vmatprep.subr.bf16.mxu1 %v8389_v32  ;;  %v8451_v20 = vld [vmem:[#allocation84_spill] sm:$0xff] }
 0x35a   :  { %v1399_v49 = vmul.f32 %v5914_v21, %v7178_v3  ;;  %v5916_v3 = vpop.eup %5915 }
 0x35c   :  { %v7311_v41 = vadd.f32 %v1400_v28, %v1399_v49  ;;  %4801 = vmatpush1.bf16.msra.mxu0 %v8445_v60  ;;  %4833 = vmatpush1.bf16.msra.mxu1 %v8446_v51  ;;  %v8452_v28 = vld [vmem:[#allocation23_spill] sm:$0xff]  ;;  %v8454_v49 = vld [vmem:[#allocation25_spill] sm:$0xff] }
 0x35d   :  { %4803 = vmatprep.subr.bf16.mxu0 %v8447_v24  ;;  %4835 = vmatprep.subr.bf16.mxu1 %v8448_v47 }
 0x35e   :  { %5917 = vtanh.f32 %v7311_v41 }
 0x360   :  { %4805 = vmatpush1.bf16.msra.mxu0 %v8449_v34  ;;  %4837 = vmatpush1.bf16.msra.mxu1 %v8450_v6 }
 0x361   :  { %4807 = vmatprep.subr.bf16.mxu0 %v8451_v20  ;;  %4839 = vmatprep.subr.bf16.mxu1 %v8397_v2 }
 0x364   :  { %4809 = vmatpush1.bf16.msra.mxu0 %v8398_v57  ;;  %4841 = vmatpush1.bf16.msra.mxu1 %v8399_v44 }
 0x365   :  { %4811 = vmatprep.subr.bf16.mxu0 %v8400_v23  ;;  %4843 = vmatprep.subr.bf16.mxu1 %v8401_v36 }
 0x368   :  { %v5918_v1 = vpop.eup %5917  ;;  %4813 = vmatpush1.bf16.msra.mxu0 %v8402_v29  ;;  %4845 = vmatpush1.bf16.msra.mxu1 %v8403_v13 }
 0x369   :  { %4847 = vmatprep.subr.bf16.mxu0 %v8404_v4  ;;  %4879 = vmatprep.subr.bf16.mxu1 %v8405_v54  ;;  %v1403_v21 = vmul.f32 %v5918_v1, %v5916_v3  ;;  %v8455_v3 = vld [vmem:[#allocation21_spill] sm:$0xff]  ;;  %v8456_v1 = vld [vmem:[#allocation27_spill] sm:$0xff] }
 0x36b   :  { %1611 = vmatmul.mubr.f32.vlgmr.msra.gmra.mrb[10].mxu0 %v1403_v21  ;;  %1682 = vmatmul.mubr.f32.vlgmr.msra.gmra.mrb[10].mxu1 %v1403_v21 }
 0x36c   :  { %4849 = vmatpush1.bf16.msra.mxu0 %v6161_v8  ;;  %4881 = vmatpush1.bf16.msra.mxu1 %v6210_v25 }
 0x36d   :  { %4851 = vmatprep.subr.bf16.mxu0 %v6163_v9  ;;  %4883 = vmatprep.subr.bf16.mxu1 %v6235_v33 }
 0x36e   :  { %1791 = vmatprep.mubr.f32.mxu0 %v8312_v5  ;;  %1862 = vmatprep.mubr.f32.mxu1 %v8312_v5 }
 0x370   :  { %4853 = vmatpush1.bf16.msra.mxu0 %v6179_v14  ;;  %4885 = vmatpush1.bf16.msra.mxu1 %v6246_v37 }
 0x371   :  { %4855 = vmatprep.subr.bf16.mxu0 %v6188_v17  ;;  %4887 = vmatprep.subr.bf16.mxu1 %v6270_v45 }
 0x374   :  { %4857 = vmatpush1.bf16.msra.mxu0 %v6213_v26  ;;  %4889 = vmatpush1.bf16.msra.mxu1 %v6279_v48 }
 0x375   :  { %4859 = vmatprep.subr.bf16.mxu0 %v6226_v30  ;;  %4891 = vmatprep.subr.bf16.mxu1 %v6291_v52 }
 0x378   :  { %4861 = vmatpush1.bf16.msra.mxu0 %v6262_v42  ;;  %4893 = vmatpush1.bf16.msra.mxu1 %v6321_v62 }
 0x379   :  { %4863 = vmatprep.subr.bf16.mxu0 %v6273_v46  ;;  %4895 = vmatprep.subr.bf16.mxu1 %v6327_v0  ;;  %v8494_v0 = vld [vmem:[#allocation96_spill] sm:$0xff] }
 0x37c   :  { %4865 = vmatpush1.bf16.msra.mxu0 %v6300_v55  ;;  %4897 = vmatpush1.bf16.msra.mxu1 %v6357_v15  ;;  %v8457_v15 = vld [vmem:[#allocation24_spill] sm:$0xff] }
 0x37d   :  { %4867 = vmatprep.subr.bf16.mxu0 %v6309_v58  ;;  %4899 = vmatprep.subr.bf16.mxu1 %v6363_v18  ;;  %v8458_v58 = vld [vmem:[#allocation29_spill] sm:$0xff]  ;;  %v8459_v18 = vld [vmem:[#allocation26_spill] sm:$0xff] }
 0x380   :  { %4869 = vmatpush1.bf16.msra.mxu0 %v6342_v7  ;;  %4901 = vmatpush1.bf16.msra.mxu1 %v6390_v31  ;;  %v8460_v7 = vld [vmem:[#allocation31_spill] sm:$0xff] }
 0x381   :  { %4871 = vmatprep.subr.bf16.mxu0 %v6345_v10  ;;  %4903 = vmatprep.subr.bf16.mxu1 %v8452_v28  ;;  %v8461_v10 = vld [vmem:[#allocation28_spill] sm:$0xff]  ;;  %v8462_v28 = vld [vmem:[#allocation33_spill] sm:$0xff]  ;;  %v8493_v31 = vld [vmem:[#allocation95_spill] sm:$0xff] }
 0x384   :  { %4873 = vmatpush1.bf16.msra.mxu0 %v8453_v35  ;;  %4905 = vmatpush1.bf16.msra.mxu1 %v8454_v49  ;;  %v8463_v35 = vld [vmem:[#allocation30_spill] sm:$0xff]  ;;  %v8464_v49 = vld [vmem:[#allocation35_spill] sm:$0xff] }
 0x385   :  { %4875 = vmatprep.subr.bf16.mxu0 %v8455_v3  ;;  %4907 = vmatprep.subr.bf16.mxu1 %v8456_v1  ;;  %v8474_v1 = vld [vmem:[#allocation45_spill] sm:$0xff]  ;;  %v8475_v3 = vld [vmem:[#allocation42_spill] sm:$0xff] }
 0x388   :  { %4877 = vmatpush1.bf16.msra.mxu0 %v8457_v15  ;;  %4909 = vmatpush1.bf16.msra.mxu1 %v8458_v58  ;;  %v8465_v15 = vld [vmem:[#allocation32_spill] sm:$0xff]  ;;  %v8466_v58 = vld [vmem:[#allocation37_spill] sm:$0xff] }
 0x389   :  { %4911 = vmatprep.subr.bf16.mxu0 %v8459_v18  ;;  %4943 = vmatprep.subr.bf16.mxu1 %v8460_v7  ;;  %v8467_v18 = vld [vmem:[#allocation34_spill] sm:$0xff]  ;;  %v8468_v7 = vld [vmem:[#allocation39_spill] sm:$0xff] }
 0x38b   :  { %1792 = vmatmul.mubr.f32.vlgmr.msra.gmra.mrb[12].mxu0 %v1403_v21  ;;  %1863 = vmatmul.mubr.f32.vlgmr.msra.gmra.mrb[12].mxu1 %v1403_v21  ;;  %v8469_v21 = vld [vmem:[#allocation36_spill] sm:$0xff] }
 0x38c   :  { %4913 = vmatpush1.bf16.msra.mxu0 %v8461_v10  ;;  %4945 = vmatpush1.bf16.msra.mxu1 %v8462_v28  ;;  %v8470_v10 = vld [vmem:[#allocation41_spill] sm:$0xff]  ;;  %v8471_v28 = vld [vmem:[#allocation38_spill] sm:$0xff] }
 0x38d   :  { %4915 = vmatprep.subr.bf16.mxu0 %v8463_v35  ;;  %4947 = vmatprep.subr.bf16.mxu1 %v8464_v49  ;;  %v8472_v35 = vld [vmem:[#allocation43_spill] sm:$0xff]  ;;  %v8473_v49 = vld [vmem:[#allocation40_spill] sm:$0xff] }
 0x38e   :  { %1961 = vmatprep.mubr.f32.mxu0 %v8312_v5  ;;  %2032 = vmatprep.mubr.f32.mxu1 %v8312_v5 }
 0x390   :  { %4917 = vmatpush1.bf16.msra.mxu0 %v8465_v15  ;;  %4949 = vmatpush1.bf16.msra.mxu1 %v8466_v58  ;;  %v8476_v15 = vld [vmem:[#allocation46_spill] sm:$0xff]  ;;  %v8477_v58 = vld [vmem:[#allocation44_spill] sm:$0xff] }
 0x391   :  { %4919 = vmatprep.subr.bf16.mxu0 %v8467_v18  ;;  %4951 = vmatprep.subr.bf16.mxu1 %v8468_v7  ;;  %v8478_v18 = vld [vmem:[#allocation47_spill] sm:$0xff]  ;;  %v8479_v7 = vld [vmem:[#allocation48_spill] sm:$0xff] }
 0x394   :  { %4921 = vmatpush1.bf16.msra.mxu0 %v8469_v21  ;;  %4953 = vmatpush1.bf16.msra.mxu1 %v8470_v10  ;;  %v8480_v21 = vld [vmem:[#allocation49_spill] sm:$0xff]  ;;  %v8481_v10 = vld [vmem:[#allocation50_spill] sm:$0xff] }
 0x395   :  { %4923 = vmatprep.subr.bf16.mxu0 %v8471_v28  ;;  %4955 = vmatprep.subr.bf16.mxu1 %v8472_v35  ;;  %v8482_v28 = vld [vmem:[#allocation51_spill] sm:$0xff]  ;;  %v8483_v35 = vld [vmem:[#allocation52_spill] sm:$0xff] }
 0x398   :  { %4925 = vmatpush1.bf16.msra.mxu0 %v8473_v49  ;;  %4957 = vmatpush1.bf16.msra.mxu1 %v8474_v1  ;;  %v8484_v49 = vld [vmem:[#allocation53_spill] sm:$0xff]  ;;  %v8485_v1 = vld [vmem:[#allocation54_spill] sm:$0xff] }
 0x399   :  { %4927 = vmatprep.subr.bf16.mxu0 %v8475_v3  ;;  %4959 = vmatprep.subr.bf16.mxu1 %v8476_v15  ;;  %v8486_v3 = vld [vmem:[#allocation55_spill] sm:$0xff]  ;;  %v8487_v15 = vld [vmem:[#allocation56_spill] sm:$0xff] }
 0x39c   :  { %4929 = vmatpush1.bf16.msra.mxu0 %v8477_v58  ;;  %4961 = vmatpush1.bf16.msra.mxu1 %v8478_v18  ;;  %v8488_v58 = vld [vmem:[#allocation57_spill] sm:$0xff]  ;;  %v8489_v18 = vld [vmem:[#allocation58_spill] sm:$0xff] }
 0x39d   :  { %4931 = vmatprep.subr.bf16.mxu0 %v8479_v7  ;;  %4963 = vmatprep.subr.bf16.mxu1 %v8480_v21  ;;  %v8490_v7 = vld [vmem:[#allocation59_spill] sm:$0xff]  ;;  %v8491_v21 = vld [vmem:[#allocation60_spill] sm:$0xff] }
 0x3a0   :  { %4933 = vmatpush1.bf16.msra.mxu0 %v8481_v10  ;;  %4965 = vmatpush1.bf16.msra.mxu1 %v8482_v28  ;;  %v8492_v10 = vld [vmem:[#allocation61_spill] sm:$0xff] }
 0x3a1   :  { %4935 = vmatprep.subr.bf16.mxu0 %v8483_v35  ;;  %4967 = vmatprep.subr.bf16.mxu1 %v8484_v49 }
 0x3a4   :  { %4937 = vmatpush1.bf16.msra.mxu0 %v8485_v1  ;;  %4969 = vmatpush1.bf16.msra.mxu1 %v8486_v3 }
 0x3a5   :  { %4939 = vmatprep.subr.bf16.mxu0 %v8487_v15  ;;  %4971 = vmatprep.subr.bf16.mxu1 %v8488_v58  ;;  %v8495_v58 = vld [vmem:[#allocation97_spill] sm:$0xff] }
 0x3a8   :  { %4941 = vmatpush1.bf16.msra.mxu0 %v8489_v18  ;;  %4973 = vmatpush1.bf16.msra.mxu1 %v8490_v7  ;;  %v8496_v7 = vld [vmem:[#allocation98_spill] sm:$0xff] }
 0x3a9   :  { %4975 = vmatprep.subr.bf16.mxu0 %v8491_v21  ;;  %5007 = vmatprep.subr.bf16.mxu1 %v8492_v10 }
 0x43e   :  { %v1612_v28 = vpop.f32.mrb[10].mxu0  ;;  %v1683_v35 = vpop.f32.mrb[10].mxu1 }
 0x43f   :  { %v1688_v49 = vadd.f32 %v1612_v28, %v8493_v31  ;;  %v1614_v55 = vpop.f32.mrb[11].mxu0  ;;  %v1685_v1 = vpop.f32.mrb[11].mxu1  ;;  %v1690_v42 = vadd.f32 %v1683_v35, %v8496_v7 }
 0x440   :  { %v1689_v3 = vadd.f32 %v1614_v55, %v8494_v0  ;;  %v1691_v18 = vadd.f32 %v1685_v1, %v8495_v58  ;;  %v4215_v55 = vld [vmem:[%s8041_s0 + $0x60] sm:$0xff] }
 0x441   :  { %v4211_v46 = vmul.f32 -1.442695, %v1688_v49 }
 0x442   :  { %v4212_v15 = vmul.f32 -1.442695, %v1689_v3  ;;  %v4213_v62 = vmul.f32 -1.442695, %v1691_v18 }
 0x443   :  { %5919 = vpow2.f32 %v4211_v46 }
 0x444   :  { %5921 = vpow2.f32 %v4212_v15  ;;  %v4216_v15 = vld [vmem:[%s8041_s0 + $0x68] sm:$0xff] }
 0x445   :  { %5923 = vpow2.f32 %v4213_v62  ;;  %v7418_v62 = vld [vmem:[%s8042_s1 + $0x8] sm:$0xff] }
 0x446   :  { %5925 = vtanh.f32 %v1690_v42  ;;  %v7411_v42 = vld [vmem:[%s8042_s1] sm:$0xff]  ;;  %8498 = vst [vmem:[#allocation62_spill] sm:$0xff] %v7418_v62 }
 0x447   :  { %8497 = vst [vmem:[#allocation94_spill] sm:$0xff] %v7411_v42 }
 0x44d   :  { %v5920_v21 = vpop.eup %5919 }
 0x44e   :  { %v5922_v52 = vpop.eup %5921  ;;  %v1695_v10 = vadd.f32 1.0, %v5920_v21 }
 0x44f   :  { %v1701_v30 = vadd.f32 1.0, %v5922_v52  ;;  %v5924_v28 = vpop.eup %5923 }
 0x450   :  { %5927 = vrcp.f32 %v1695_v10  ;;  %v5926_v46 = vpop.eup %5925  ;;  %v1708_v3 = vadd.f32 1.0, %v5924_v28  ;;  %v1724_v10 = vadd.f32 %v7418_v62, %v4216_v15  ;;  %v7430_v15 = vld [vmem:[%s8042_s1 + $0x18] sm:$0xff] }
 0x451   :  { %5929 = vrcp.f32 %v1701_v30  ;;  %v1723_v30 = vadd.f32 %v7411_v42, %v4215_v55  ;;  %v4218_v55 = vld [vmem:[%s8041_s0 + $0x78] sm:$0xff] }
 0x452   :  { %5931 = vrcp.f32 %v1708_v3  ;;  %v4217_v3 = vld [vmem:[%s8041_s0 + $0x70] sm:$0xff] }
 0x45a   :  { %v5928_v18 = vpop.eup %5927 }
 0x45b   :  { %v5930_v35 = vpop.eup %5929  ;;  %v1712_v49 = vmul.f32 %v5928_v18, %v5926_v46 }
 0x45c   :  { %v1711_v52 = vmul.f32 %v5930_v35, %v7278_v11 }
 0x45e   :  { %v7421_v1 = vadd.f32 %v1712_v49, %v1711_v52  ;;  %v1793_v21 = vpop.f32.mrb[12].mxu0  ;;  %v1864_v28 = vpop.f32.mrb[12].mxu1  ;;  %v1726_v49 = vadd.f32 %v7430_v15, %v4218_v55  ;;  %v7439_v52 = vld [vmem:[%s8042_s1 + $0x10] sm:$0xff] }
 0x45f   :  { %v1869_v46 = vadd.f32 %v1793_v21, %v1723_v30  ;;  %v1795_v18 = vpop.f32.mrb[13].mxu0  ;;  %v1866_v42 = vpop.f32.mrb[13].mxu1 }
 0x460   :  { %v1870_v11 = vadd.f32 %v1795_v18, %v1724_v10  ;;  %5933 = vtanh.f32 %v7421_v1  ;;  %v1872_v30 = vadd.f32 %v1866_v42, %v1726_v49  ;;  %v1725_v10 = vadd.f32 %v7439_v52, %v4217_v3  ;;  %v5932_v21 = vpop.eup %5931 }
 0x461   :  { %v4219_v35 = vmul.f32 -1.442695, %v1869_v46 }
 0x462   :  { %v4220_v7 = vmul.f32 -1.442695, %v1870_v11  ;;  %v4221_v18 = vmul.f32 -1.442695, %v1872_v30  ;;  %v1871_v11 = vadd.f32 %v1864_v28, %v1725_v10 }
 0x463   :  { %5935 = vpow2.f32 %v4219_v35 }
 0x464   :  { %5937 = vpow2.f32 %v4220_v7 }
 0x465   :  { %5939 = vpow2.f32 %v4221_v18 }
 0x466   :  { %5941 = vtanh.f32 %v1871_v11 }
 0x46a   :  { %v5934_v46 = vpop.eup %5933 }
 0x46b   :  { %v1715_v62 = vmul.f32 %v5934_v46, %v5932_v21 }
 0x46d   :  { %v5936_v55 = vpop.eup %5935  ;;  %4214 = vst [vmem:[%s8044_s6 + $0x10] sm:$0xff] %v1715_v62  ;;  %1962 = vmatmul.mubr.f32.vlgmr.msra.gmra.mrb[14].mxu0 %v1715_v62  ;;  %2033 = vmatmul.mubr.f32.vlgmr.msra.gmra.mrb[14].mxu1 %v1715_v62 }
 0x46e   :  { %v5938_v7 = vpop.eup %5937  ;;  %v1876_v42 = vadd.f32 1.0, %v5936_v55  ;;  %4977 = vmatpush1.bf16.msra.mxu0 %v8374_v40  ;;  %5009 = vmatpush1.bf16.msra.mxu1 %v8375_v63  ;;  %v8499_v55 = vld [vmem:[#allocation6_spill] sm:$0xff] }
 0x46f   :  { %v1882_v35 = vadd.f32 1.0, %v5938_v7  ;;  %4979 = vmatprep.subr.bf16.mxu0 %v8376_v56  ;;  %5011 = vmatprep.subr.bf16.mxu1 %v8377_v38  ;;  %v5940_v62 = vpop.eup %5939  ;;  %v8500_v7 = vld [vmem:[#allocation11_spill] sm:$0xff] }
 0x470   :  { %5943 = vrcp.f32 %v1876_v42  ;;  %2103 = vmatprep.mubr.f32.mxu0 %v8312_v5  ;;  %2174 = vmatprep.mubr.f32.mxu1 %v8312_v5  ;;  %v5942_v28 = vpop.eup %5941  ;;  %v1889_v10 = vadd.f32 1.0, %v5940_v62  ;;  %v8501_v42 = vld [vmem:[#allocation7_spill] sm:$0xff]  ;;  %v8503_v62 = vld [vmem:[#allocation9_spill] sm:$0xff] }
 0x471   :  { %5945 = vrcp.f32 %v1882_v35  ;;  %v8502_v35 = vld [vmem:[#allocation14_spill] sm:$0xff] }
 0x472   :  { %4981 = vmatpush1.bf16.msra.mxu0 %v8436_v50  ;;  %5013 = vmatpush1.bf16.msra.mxu1 %v8437_v12  ;;  %5947 = vrcp.f32 %v1889_v10  ;;  %v8508_v10 = vld [vmem:[#allocation19_spill] sm:$0xff] }
 0x473   :  { %4983 = vmatprep.subr.bf16.mxu0 %v8438_v53  ;;  %5015 = vmatprep.subr.bf16.mxu1 %v8439_v27 }
 0x476   :  { %4985 = vmatpush1.bf16.msra.mxu0 %v8440_v16  ;;  %5017 = vmatpush1.bf16.msra.mxu1 %v8441_v43 }
 0x477   :  { %4987 = vmatprep.subr.bf16.mxu0 %v8442_v61  ;;  %5019 = vmatprep.subr.bf16.mxu1 %v8443_v22 }
 0x47a   :  { %v5944_v49 = vpop.eup %5943  ;;  %4989 = vmatpush1.bf16.msra.mxu0 %v8444_v59  ;;  %5021 = vmatpush1.bf16.msra.mxu1 %v8387_v19 }
 0x47b   :  { %v5946_v3 = vpop.eup %5945  ;;  %v1893_v30 = vmul.f32 %v5944_v49, %v5942_v28  ;;  %4991 = vmatprep.subr.bf16.mxu0 %v8388_v39  ;;  %5023 = vmatprep.subr.bf16.mxu1 %v8389_v32  ;;  %v8504_v28 = vld [vmem:[#allocation15_spill] sm:$0xff]  ;;  %v8505_v49 = vld [vmem:[#allocation12_spill] sm:$0xff] }
 0x47c   :  { %v1892_v21 = vmul.f32 %v5946_v3, %v7311_v41  ;;  %v5948_v41 = vpop.eup %5947  ;;  %v8506_v3 = vld [vmem:[#allocation18_spill] sm:$0xff] }
 0x47e   :  { %v7464_v46 = vadd.f32 %v1893_v30, %v1892_v21  ;;  %4993 = vmatpush1.bf16.msra.mxu0 %v8445_v60  ;;  %5025 = vmatpush1.bf16.msra.mxu1 %v8446_v51  ;;  %v8507_v30 = vld [vmem:[#allocation13_spill] sm:$0xff]  ;;  %v8509_v21 = vld [vmem:[#allocation16_spill] sm:$0xff] }
 0x47f   :  { %4995 = vmatprep.subr.bf16.mxu0 %v8447_v24  ;;  %5027 = vmatprep.subr.bf16.mxu1 %v8448_v47 }
 0x480   :  { %5949 = vtanh.f32 %v7464_v46 }
 0x482   :  { %4997 = vmatpush1.bf16.msra.mxu0 %v8449_v34  ;;  %5029 = vmatpush1.bf16.msra.mxu1 %v8450_v6 }
 0x483   :  { %4999 = vmatprep.subr.bf16.mxu0 %v8451_v20  ;;  %5031 = vmatprep.subr.bf16.mxu1 %v8397_v2 }
 0x486   :  { %5001 = vmatpush1.bf16.msra.mxu0 %v8398_v57  ;;  %5033 = vmatpush1.bf16.msra.mxu1 %v8399_v44 }
 0x487   :  { %5003 = vmatprep.subr.bf16.mxu0 %v8400_v23  ;;  %5035 = vmatprep.subr.bf16.mxu1 %v8401_v36 }
 0x48a   :  { %v5950_v18 = vpop.eup %5949  ;;  %5005 = vmatpush1.bf16.msra.mxu0 %v8402_v29  ;;  %5037 = vmatpush1.bf16.msra.mxu1 %v8403_v13 }
 0x48b   :  { %v1896_v11 = vmul.f32 %v5950_v18, %v5948_v41  ;;  %5039 = vmatprep.subr.bf16.mxu0 %v8404_v4  ;;  %5071 = vmatprep.subr.bf16.mxu1 %v8405_v54  ;;  %v8510_v41 = vld [vmem:[#allocation22_spill] sm:$0xff]  ;;  %v8511_v18 = vld [vmem:[#allocation17_spill] sm:$0xff] }
 0x48d   :  { %2104 = vmatmul.mubr.f32.vlgmr.msra.gmra.mrb[14].mxu0 %v1896_v11  ;;  %2175 = vmatmul.mubr.f32.vlgmr.msra.gmra.mrb[14].mxu1 %v1896_v11 }
 0x48e   :  { %5041 = vmatpush1.bf16.msra.mxu0 %v6161_v8  ;;  %5073 = vmatpush1.bf16.msra.mxu1 %v6210_v25 }
 0x48f   :  { %5043 = vmatprep.subr.bf16.mxu0 %v6163_v9  ;;  %5075 = vmatprep.subr.bf16.mxu1 %v6235_v33 }
 0x490   :  { %2284 = vmatprep.mubr.f32.mxu0 %v8312_v5  ;;  %2355 = vmatprep.mubr.f32.mxu1 %v8312_v5 }
 0x492   :  { %5045 = vmatpush1.bf16.msra.mxu0 %v6179_v14  ;;  %5077 = vmatpush1.bf16.msra.mxu1 %v6246_v37 }
 0x493   :  { %5047 = vmatprep.subr.bf16.mxu0 %v6188_v17  ;;  %5079 = vmatprep.subr.bf16.mxu1 %v6270_v45 }
 0x496   :  { %5049 = vmatpush1.bf16.msra.mxu0 %v6213_v26  ;;  %5081 = vmatpush1.bf16.msra.mxu1 %v6279_v48 }
 0x497   :  { %5051 = vmatprep.subr.bf16.mxu0 %v8499_v55  ;;  %5083 = vmatprep.subr.bf16.mxu1 %v8500_v7 }
 0x49a   :  { %5053 = vmatpush1.bf16.msra.mxu0 %v8501_v42  ;;  %5085 = vmatpush1.bf16.msra.mxu1 %v8502_v35  ;;  %v8512_v42 = vld [vmem:[#allocation23_spill] sm:$0xff]  ;;  %v8513_v35 = vld [vmem:[#allocation20_spill] sm:$0xff] }
 0x49b   :  { %5055 = vmatprep.subr.bf16.mxu0 %v8503_v62  ;;  %5087 = vmatprep.subr.bf16.mxu1 %v8504_v28  ;;  %v8514_v62 = vld [vmem:[#allocation25_spill] sm:$0xff] }
 0x49c   :  { %v8515_v28 = vld [vmem:[#allocation21_spill] sm:$0xff] }
 0x49e   :  { %5057 = vmatpush1.bf16.msra.mxu0 %v8505_v49  ;;  %5089 = vmatpush1.bf16.msra.mxu1 %v8506_v3  ;;  %v8516_v49 = vld [vmem:[#allocation27_spill] sm:$0xff]  ;;  %v8517_v3 = vld [vmem:[#allocation24_spill] sm:$0xff] }
 0x49f   :  { %5059 = vmatprep.subr.bf16.mxu0 %v8507_v30  ;;  %5091 = vmatprep.subr.bf16.mxu1 %v8508_v10  ;;  %v8518_v30 = vld [vmem:[#allocation29_spill] sm:$0xff]  ;;  %v8519_v10 = vld [vmem:[#allocation26_spill] sm:$0xff] }
 0x4a2   :  { %5061 = vmatpush1.bf16.msra.mxu0 %v8509_v21  ;;  %5093 = vmatpush1.bf16.msra.mxu1 %v8510_v41  ;;  %v8520_v21 = vld [vmem:[#allocation31_spill] sm:$0xff] }
 0x4a3   :  { %5063 = vmatprep.subr.bf16.mxu0 %v8511_v18  ;;  %5095 = vmatprep.subr.bf16.mxu1 %v8512_v42  ;;  %v8521_v18 = vld [vmem:[#allocation28_spill] sm:$0xff]  ;;  %v8522_v42 = vld [vmem:[#allocation33_spill] sm:$0xff] }
 0x4a6   :  { %5065 = vmatpush1.bf16.msra.mxu0 %v8513_v35  ;;  %5097 = vmatpush1.bf16.msra.mxu1 %v8514_v62  ;;  %v8523_v35 = vld [vmem:[#allocation30_spill] sm:$0xff]  ;;  %v8524_v62 = vld [vmem:[#allocation35_spill] sm:$0xff] }
 0x4a7   :  { %5067 = vmatprep.subr.bf16.mxu0 %v8515_v28  ;;  %5099 = vmatprep.subr.bf16.mxu1 %v8516_v49  ;;  %v8534_v49 = vld [vmem:[#allocation45_spill] sm:$0xff]  ;;  %v8535_v28 = vld [vmem:[#allocation42_spill] sm:$0xff] }
 0x4aa   :  { %5069 = vmatpush1.bf16.msra.mxu0 %v8517_v3  ;;  %5101 = vmatpush1.bf16.msra.mxu1 %v8518_v30  ;;  %v8525_v3 = vld [vmem:[#allocation32_spill] sm:$0xff]  ;;  %v8526_v30 = vld [vmem:[#allocation37_spill] sm:$0xff] }
 0x4ab   :  { %5103 = vmatprep.subr.bf16.mxu0 %v8519_v10  ;;  %5135 = vmatprep.subr.bf16.mxu1 %v8520_v21  ;;  %v8527_v10 = vld [vmem:[#allocation34_spill] sm:$0xff]  ;;  %v8528_v21 = vld [vmem:[#allocation39_spill] sm:$0xff] }
 0x4ad   :  { %2285 = vmatmul.mubr.f32.vlgmr.msra.gmra.mrb[16].mxu0 %v1896_v11  ;;  %2356 = vmatmul.mubr.f32.vlgmr.msra.gmra.mrb[16].mxu1 %v1896_v11  ;;  %v8529_v11 = vld [vmem:[#allocation36_spill] sm:$0xff] }
 0x4ae   :  { %5105 = vmatpush1.bf16.msra.mxu0 %v8521_v18  ;;  %5137 = vmatpush1.bf16.msra.mxu1 %v8522_v42  ;;  %v8530_v18 = vld [vmem:[#allocation41_spill] sm:$0xff]  ;;  %v8531_v42 = vld [vmem:[#allocation38_spill] sm:$0xff] }
 0x4af   :  { %5107 = vmatprep.subr.bf16.mxu0 %v8523_v35  ;;  %5139 = vmatprep.subr.bf16.mxu1 %v8524_v62  ;;  %v8532_v35 = vld [vmem:[#allocation43_spill] sm:$0xff]  ;;  %v8533_v62 = vld [vmem:[#allocation40_spill] sm:$0xff] }
 0x4b0   :  { %2454 = vmatprep.mubr.f32.mxu0 %v8312_v5  ;;  %2525 = vmatprep.mubr.f32.mxu1 %v8312_v5 }
 0x4b2   :  { %5109 = vmatpush1.bf16.msra.mxu0 %v8525_v3  ;;  %5141 = vmatpush1.bf16.msra.mxu1 %v8526_v30  ;;  %v8536_v3 = vld [vmem:[#allocation46_spill] sm:$0xff]  ;;  %v8537_v30 = vld [vmem:[#allocation44_spill] sm:$0xff] }
 0x4b3   :  { %5111 = vmatprep.subr.bf16.mxu0 %v8527_v10  ;;  %5143 = vmatprep.subr.bf16.mxu1 %v8528_v21  ;;  %v8538_v10 = vld [vmem:[#allocation47_spill] sm:$0xff]  ;;  %v8539_v21 = vld [vmem:[#allocation48_spill] sm:$0xff] }
 0x4b6   :  { %5113 = vmatpush1.bf16.msra.mxu0 %v8529_v11  ;;  %5145 = vmatpush1.bf16.msra.mxu1 %v8530_v18  ;;  %v8540_v11 = vld [vmem:[#allocation49_spill] sm:$0xff]  ;;  %v8541_v18 = vld [vmem:[#allocation50_spill] sm:$0xff] }
 0x4b7   :  { %5115 = vmatprep.subr.bf16.mxu0 %v8531_v42  ;;  %5147 = vmatprep.subr.bf16.mxu1 %v8532_v35  ;;  %v8542_v42 = vld [vmem:[#allocation51_spill] sm:$0xff]  ;;  %v8543_v35 = vld [vmem:[#allocation52_spill] sm:$0xff] }
 0x4ba   :  { %5117 = vmatpush1.bf16.msra.mxu0 %v8533_v62  ;;  %5149 = vmatpush1.bf16.msra.mxu1 %v8534_v49  ;;  %v8544_v62 = vld [vmem:[#allocation53_spill] sm:$0xff]  ;;  %v8545_v49 = vld [vmem:[#allocation54_spill] sm:$0xff] }
 0x4bb   :  { %5119 = vmatprep.subr.bf16.mxu0 %v8535_v28  ;;  %5151 = vmatprep.subr.bf16.mxu1 %v8536_v3  ;;  %v8546_v28 = vld [vmem:[#allocation55_spill] sm:$0xff]  ;;  %v8547_v3 = vld [vmem:[#allocation56_spill] sm:$0xff] }
 0x4be   :  { %5121 = vmatpush1.bf16.msra.mxu0 %v8537_v30  ;;  %5153 = vmatpush1.bf16.msra.mxu1 %v8538_v10  ;;  %v8548_v30 = vld [vmem:[#allocation57_spill] sm:$0xff]  ;;  %v8549_v10 = vld [vmem:[#allocation58_spill] sm:$0xff] }
 0x4bf   :  { %5123 = vmatprep.subr.bf16.mxu0 %v8539_v21  ;;  %5155 = vmatprep.subr.bf16.mxu1 %v8540_v11  ;;  %v8550_v21 = vld [vmem:[#allocation59_spill] sm:$0xff]  ;;  %v8551_v11 = vld [vmem:[#allocation60_spill] sm:$0xff] }
 0x4c2   :  { %5125 = vmatpush1.bf16.msra.mxu0 %v8541_v18  ;;  %5157 = vmatpush1.bf16.msra.mxu1 %v8542_v42  ;;  %v8552_v18 = vld [vmem:[#allocation61_spill] sm:$0xff] }
 0x4c3   :  { %5127 = vmatprep.subr.bf16.mxu0 %v8543_v35  ;;  %5159 = vmatprep.subr.bf16.mxu1 %v8544_v62 }
 0x4c6   :  { %5129 = vmatpush1.bf16.msra.mxu0 %v8545_v49  ;;  %5161 = vmatpush1.bf16.msra.mxu1 %v8546_v28 }
 0x4c7   :  { %5131 = vmatprep.subr.bf16.mxu0 %v8547_v3  ;;  %5163 = vmatprep.subr.bf16.mxu1 %v8548_v30 }
 0x4ca   :  { %5133 = vmatpush1.bf16.msra.mxu0 %v8549_v10  ;;  %5165 = vmatpush1.bf16.msra.mxu1 %v8550_v21  ;;  %v8553_v21 = vld [vmem:[#allocation98_spill] sm:$0xff] }
 0x4cb   :  { %5167 = vmatprep.subr.bf16.mxu0 %v8551_v11  ;;  %5199 = vmatprep.subr.bf16.mxu1 %v8552_v18 }
 0x560   :  { %v2105_v42 = vpop.f32.mrb[14].mxu0  ;;  %v2176_v35 = vpop.f32.mrb[14].mxu1 }
 0x561   :  { %v2181_v62 = vadd.f32 %v2105_v42, %v8493_v31  ;;  %v2107_v41 = vpop.f32.mrb[15].mxu0  ;;  %v2178_v49 = vpop.f32.mrb[15].mxu1  ;;  %v2183_v55 = vadd.f32 %v2176_v35, %v8553_v21  ;;  %v4229_v31 = vld [vmem:[%s8041_s0 + $0x98] sm:$0xff] }
 0x562   :  { %v2182_v28 = vadd.f32 %v2107_v41, %v8494_v0  ;;  %v2184_v10 = vadd.f32 %v2178_v49, %v8495_v58  ;;  %v8554_v41 = vld [vmem:[#allocation94_spill] sm:$0xff] }
 0x563   :  { %v4222_v7 = vmul.f32 -1.442695, %v2181_v62  ;;  %v4226_v62 = vld [vmem:[%s8041_s0 + $0x80] sm:$0xff] }
 0x564   :  { %v4223_v3 = vmul.f32 -1.442695, %v2182_v28  ;;  %v4224_v30 = vmul.f32 -1.442695, %v2184_v10  ;;  %v4227_v28 = vld [vmem:[%s8041_s0 + $0x88] sm:$0xff] }
 0x565   :  { %5951 = vpow2.f32 %v4222_v7 }
 0x566   :  { %5953 = vpow2.f32 %v4223_v3 }
 0x567   :  { %5955 = vpow2.f32 %v4224_v30  ;;  %v2216_v30 = vadd.f32 %v8554_v41, %v4226_v62 }
 0x568   :  { %5957 = vtanh.f32 %v2183_v55  ;;  %v8555_v55 = vld [vmem:[#allocation62_spill] sm:$0xff] }
 0x56f   :  { %v5952_v11 = vpop.eup %5951 }
 0x570   :  { %v5954_v48 = vpop.eup %5953  ;;  %v2188_v18 = vadd.f32 1.0, %v5952_v11 }
 0x571   :  { %v2194_v26 = vadd.f32 1.0, %v5954_v48  ;;  %v5956_v42 = vpop.eup %5955 }
 0x572   :  { %5959 = vrcp.f32 %v2188_v18  ;;  %v5958_v7 = vpop.eup %5957  ;;  %v2201_v10 = vadd.f32 1.0, %v5956_v42 }
 0x573   :  { %5961 = vrcp.f32 %v2194_v26  ;;  %v2217_v26 = vadd.f32 %v8555_v55, %v4227_v28  ;;  %v4228_v28 = vld [vmem:[%s8041_s0 + $0x90] sm:$0xff] }
 0x574   :  { %5963 = vrcp.f32 %v2201_v10 }
 0x57c   :  { %v5960_v49 = vpop.eup %5959 }
 0x57d   :  { %v5962_v35 = vpop.eup %5961  ;;  %v2205_v3 = vmul.f32 %v5960_v49, %v5958_v7 }
 0x57e   :  { %v2204_v48 = vmul.f32 %v5962_v35, %v7421_v1  ;;  %v2219_v1 = vadd.f32 %v7430_v15, %v4229_v31  ;;  %v2218_v35 = vadd.f32 %v7439_v52, %v4228_v28 }
 0x580   :  { %v7564_v18 = vadd.f32 %v2205_v3, %v2204_v48  ;;  %v2286_v11 = vpop.f32.mrb[16].mxu0  ;;  %v2357_v21 = vpop.f32.mrb[16].mxu1 }
 0x581   :  { %v2362_v58 = vadd.f32 %v2286_v11, %v2216_v30  ;;  %v2288_v0 = vpop.f32.mrb[17].mxu0  ;;  %v2359_v45 = vpop.f32.mrb[17].mxu1  ;;  %v2364_v48 = vadd.f32 %v2357_v21, %v2218_v35 }
 0x582   :  { %v2363_v7 = vadd.f32 %v2288_v0, %v2217_v26  ;;  %5965 = vtanh.f32 %v7564_v18  ;;  %v2365_v49 = vadd.f32 %v2359_v45, %v2219_v1  ;;  %v5964_v3 = vpop.eup %5963 }
 0x583   :  { %v4230_v42 = vmul.f32 -1.442695, %v2362_v58 }
 0x584   :  { %v4231_v62 = vmul.f32 -1.442695, %v2363_v7  ;;  %v4232_v30 = vmul.f32 -1.442695, %v2365_v49 }
 0x585   :  { %5967 = vpow2.f32 %v4230_v42 }
 0x586   :  { %5969 = vpow2.f32 %v4231_v62 }
 0x587   :  { %5971 = vpow2.f32 %v4232_v30  ;;  %v8557_v30 = vld [vmem:[#allocation5_spill] sm:$0xff] }
 0x588   :  { %5973 = vtanh.f32 %v2364_v48  ;;  %v8558_v48 = vld [vmem:[#allocation10_spill] sm:$0xff] }
 0x58c   :  { %v5966_v10 = vpop.eup %5965 }
 0x58d   :  { %v2208_v0 = vmul.f32 %v5966_v10, %v5964_v3  ;;  %v8556_v10 = vld [vmem:[#allocation8_spill] sm:$0xff] }
 0x58f   :  { %v5968_v26 = vpop.eup %5967  ;;  %4225 = vst [vmem:[%s8044_s6 + $0x18] sm:$0xff] %v2208_v0  ;;  %2455 = vmatmul.mubr.f32.vlgmr.msra.gmra.mrb[18].mxu0 %v2208_v0  ;;  %2526 = vmatmul.mubr.f32.vlgmr.msra.gmra.mrb[18].mxu1 %v2208_v0  ;;  %v8559_v0 = vld [vmem:[#allocation6_spill] sm:$0xff] }
 0x590   :  { %v5970_v58 = vpop.eup %5969  ;;  %v2369_v31 = vadd.f32 1.0, %v5968_v26  ;;  %5169 = vmatpush1.bf16.msra.mxu0 %v8374_v40  ;;  %5201 = vmatpush1.bf16.msra.mxu1 %v8375_v63  ;;  %v8560_v26 = vld [vmem:[#allocation11_spill] sm:$0xff] }
 0x591   :  { %v2375_v45 = vadd.f32 1.0, %v5970_v58  ;;  %5171 = vmatprep.subr.bf16.mxu0 %v8376_v56  ;;  %5203 = vmatprep.subr.bf16.mxu1 %v8377_v38  ;;  %v5972_v21 = vpop.eup %5971  ;;  %v8561_v58 = vld [vmem:[#allocation7_spill] sm:$0xff] }
 0x592   :  { %5975 = vrcp.f32 %v2369_v31  ;;  %2596 = vmatprep.mubr.f32.mxu0 %v8312_v5  ;;  %2667 = vmatprep.mubr.f32.mxu1 %v8312_v5  ;;  %v5974_v11 = vpop.eup %5973  ;;  %v2382_v1 = vadd.f32 1.0, %v5972_v21  ;;  %v8562_v31 = vld [vmem:[#allocation14_spill] sm:$0xff]  ;;  %v8564_v21 = vld [vmem:[#allocation15_spill] sm:$0xff] }
 0x593   :  { %5977 = vrcp.f32 %v2375_v45  ;;  %v8563_v45 = vld [vmem:[#allocation9_spill] sm:$0xff] }
 0x594   :  { %5173 = vmatpush1.bf16.msra.mxu0 %v8436_v50  ;;  %5205 = vmatpush1.bf16.msra.mxu1 %v8437_v12  ;;  %5979 = vrcp.f32 %v2382_v1  ;;  %v8569_v1 = vld [vmem:[#allocation16_spill] sm:$0xff] }
 0x595   :  { %5175 = vmatprep.subr.bf16.mxu0 %v8438_v53  ;;  %5207 = vmatprep.subr.bf16.mxu1 %v8439_v27 }
 0x598   :  { %5177 = vmatpush1.bf16.msra.mxu0 %v8440_v16  ;;  %5209 = vmatpush1.bf16.msra.mxu1 %v8441_v43 }
 0x599   :  { %5179 = vmatprep.subr.bf16.mxu0 %v8442_v61  ;;  %5211 = vmatprep.subr.bf16.mxu1 %v8443_v22 }
 0x59c   :  { %v5976_v7 = vpop.eup %5975  ;;  %5181 = vmatpush1.bf16.msra.mxu0 %v8444_v59  ;;  %5213 = vmatpush1.bf16.msra.mxu1 %v8387_v19 }
 0x59d   :  { %v5978_v42 = vpop.eup %5977  ;;  %v2386_v62 = vmul.f32 %v5976_v7, %v5974_v11  ;;  %5183 = vmatprep.subr.bf16.mxu0 %v8388_v39  ;;  %5215 = vmatprep.subr.bf16.mxu1 %v8389_v32  ;;  %v8565_v11 = vld [vmem:[#allocation12_spill] sm:$0xff]  ;;  %v8566_v7 = vld [vmem:[#allocation18_spill] sm:$0xff] }
 0x59e   :  { %v2385_v28 = vmul.f32 %v5978_v42, %v7464_v46  ;;  %v5980_v46 = vpop.eup %5979  ;;  %v8567_v42 = vld [vmem:[#allocation13_spill] sm:$0xff] }
 0x5a0   :  { %v7597_v49 = vadd.f32 %v2386_v62, %v2385_v28  ;;  %5185 = vmatpush1.bf16.msra.mxu0 %v8445_v60  ;;  %5217 = vmatpush1.bf16.msra.mxu1 %v8446_v51  ;;  %v8568_v62 = vld [vmem:[#allocation19_spill] sm:$0xff]  ;;  %v8570_v28 = vld [vmem:[#allocation22_spill] sm:$0xff] }
 0x5a1   :  { %5187 = vmatprep.subr.bf16.mxu0 %v8447_v24  ;;  %5219 = vmatprep.subr.bf16.mxu1 %v8448_v47 }
 0x5a2   :  { %5981 = vtanh.f32 %v7597_v49 }
 0x5a4   :  { %5189 = vmatpush1.bf16.msra.mxu0 %v8449_v34  ;;  %5221 = vmatpush1.bf16.msra.mxu1 %v8450_v6 }
 0x5a5   :  { %5191 = vmatprep.subr.bf16.mxu0 %v8451_v20  ;;  %5223 = vmatprep.subr.bf16.mxu1 %v8397_v2 }
 0x5a8   :  { %5193 = vmatpush1.bf16.msra.mxu0 %v8398_v57  ;;  %5225 = vmatpush1.bf16.msra.mxu1 %v8399_v44 }
 0x5a9   :  { %5195 = vmatprep.subr.bf16.mxu0 %v8400_v23  ;;  %5227 = vmatprep.subr.bf16.mxu1 %v8401_v36 }
 0x5ac   :  { %v5982_v35 = vpop.eup %5981  ;;  %5197 = vmatpush1.bf16.msra.mxu0 %v8402_v29  ;;  %5229 = vmatpush1.bf16.msra.mxu1 %v8403_v13 }
 0x5ad   :  { %5231 = vmatprep.subr.bf16.mxu0 %v8404_v4  ;;  %5263 = vmatprep.subr.bf16.mxu1 %v8405_v54  ;;  %v2389_v3 = vmul.f32 %v5982_v35, %v5980_v46  ;;  %v8571_v46 = vld [vmem:[#allocation17_spill] sm:$0xff]  ;;  %v8572_v35 = vld [vmem:[#allocation23_spill] sm:$0xff] }
 0x5af   :  { %2597 = vmatmul.mubr.f32.vlgmr.msra.gmra.mrb[18].mxu0 %v2389_v3  ;;  %2668 = vmatmul.mubr.f32.vlgmr.msra.gmra.mrb[18].mxu1 %v2389_v3 }
 0x5b0   :  { %5233 = vmatpush1.bf16.msra.mxu0 %v6161_v8  ;;  %5265 = vmatpush1.bf16.msra.mxu1 %v6210_v25 }
 0x5b1   :  { %5235 = vmatprep.subr.bf16.mxu0 %v6163_v9  ;;  %5267 = vmatprep.subr.bf16.mxu1 %v6235_v33 }
 0x5b2   :  { %2777 = vmatprep.mubr.f32.mxu0 %v8312_v5  ;;  %2848 = vmatprep.mubr.f32.mxu1 %v8312_v5 }
 0x5b4   :  { %5237 = vmatpush1.bf16.msra.mxu0 %v6179_v14  ;;  %5269 = vmatpush1.bf16.msra.mxu1 %v6246_v37 }
 0x5b5   :  { %5239 = vmatprep.subr.bf16.mxu0 %v6188_v17  ;;  %5271 = vmatprep.subr.bf16.mxu1 %v8556_v10 }
 0x5b8   :  { %5241 = vmatpush1.bf16.msra.mxu0 %v8557_v30  ;;  %5273 = vmatpush1.bf16.msra.mxu1 %v8558_v48 }
 0x5b9   :  { %5243 = vmatprep.subr.bf16.mxu0 %v8559_v0  ;;  %5275 = vmatprep.subr.bf16.mxu1 %v8560_v26  ;;  %v8614_v26 = vld [vmem:[#allocation96_spill] sm:$0xff] }
 0x5bc   :  { %5245 = vmatpush1.bf16.msra.mxu0 %v8561_v58  ;;  %5277 = vmatpush1.bf16.msra.mxu1 %v8562_v31  ;;  %v8573_v31 = vld [vmem:[#allocation20_spill] sm:$0xff] }
 0x5bd   :  { %5247 = vmatprep.subr.bf16.mxu0 %v8563_v45  ;;  %5279 = vmatprep.subr.bf16.mxu1 %v8564_v21  ;;  %v8574_v45 = vld [vmem:[#allocation25_spill] sm:$0xff] }
 0x5be   :  { %v8575_v21 = vld [vmem:[#allocation21_spill] sm:$0xff] }
 0x5c0   :  { %5249 = vmatpush1.bf16.msra.mxu0 %v8565_v11  ;;  %5281 = vmatpush1.bf16.msra.mxu1 %v8566_v7  ;;  %v8576_v11 = vld [vmem:[#allocation27_spill] sm:$0xff]  ;;  %v8577_v7 = vld [vmem:[#allocation24_spill] sm:$0xff] }
 0x5c1   :  { %5251 = vmatprep.subr.bf16.mxu0 %v8567_v42  ;;  %5283 = vmatprep.subr.bf16.mxu1 %v8568_v62  ;;  %v8578_v42 = vld [vmem:[#allocation29_spill] sm:$0xff]  ;;  %v8579_v62 = vld [vmem:[#allocation26_spill] sm:$0xff] }
 0x5c4   :  { %5253 = vmatpush1.bf16.msra.mxu0 %v8569_v1  ;;  %5285 = vmatpush1.bf16.msra.mxu1 %v8570_v28  ;;  %v8580_v1 = vld [vmem:[#allocation31_spill] sm:$0xff] }
 0x5c5   :  { %5255 = vmatprep.subr.bf16.mxu0 %v8571_v46  ;;  %5287 = vmatprep.subr.bf16.mxu1 %v8572_v35  ;;  %v8581_v46 = vld [vmem:[#allocation28_spill] sm:$0xff]  ;;  %v8582_v35 = vld [vmem:[#allocation33_spill] sm:$0xff]  ;;  %v8613_v28 = vld [vmem:[#allocation95_spill] sm:$0xff] }
 0x5c8   :  { %5257 = vmatpush1.bf16.msra.mxu0 %v8573_v31  ;;  %5289 = vmatpush1.bf16.msra.mxu1 %v8574_v45  ;;  %v8583_v31 = vld [vmem:[#allocation30_spill] sm:$0xff]  ;;  %v8584_v45 = vld [vmem:[#allocation35_spill] sm:$0xff] }
 0x5c9   :  { %5259 = vmatprep.subr.bf16.mxu0 %v8575_v21  ;;  %5291 = vmatprep.subr.bf16.mxu1 %v8576_v11  ;;  %v8594_v11 = vld [vmem:[#allocation45_spill] sm:$0xff]  ;;  %v8595_v21 = vld [vmem:[#allocation42_spill] sm:$0xff] }
 0x5cc   :  { %5261 = vmatpush1.bf16.msra.mxu0 %v8577_v7  ;;  %5293 = vmatpush1.bf16.msra.mxu1 %v8578_v42  ;;  %v8585_v7 = vld [vmem:[#allocation32_spill] sm:$0xff]  ;;  %v8586_v42 = vld [vmem:[#allocation37_spill] sm:$0xff] }
 0x5cd   :  { %5295 = vmatprep.subr.bf16.mxu0 %v8579_v62  ;;  %5327 = vmatprep.subr.bf16.mxu1 %v8580_v1  ;;  %v8587_v62 = vld [vmem:[#allocation34_spill] sm:$0xff]  ;;  %v8588_v1 = vld [vmem:[#allocation39_spill] sm:$0xff] }
 0x5cf   :  { %2778 = vmatmul.mubr.f32.vlgmr.msra.gmra.mrb[20].mxu0 %v2389_v3  ;;  %2849 = vmatmul.mubr.f32.vlgmr.msra.gmra.mrb[20].mxu1 %v2389_v3  ;;  %v8589_v3 = vld [vmem:[#allocation36_spill] sm:$0xff] }
 0x5d0   :  { %5297 = vmatpush1.bf16.msra.mxu0 %v8581_v46  ;;  %5329 = vmatpush1.bf16.msra.mxu1 %v8582_v35  ;;  %v8590_v46 = vld [vmem:[#allocation41_spill] sm:$0xff]  ;;  %v8591_v35 = vld [vmem:[#allocation38_spill] sm:$0xff] }
 0x5d1   :  { %5299 = vmatprep.subr.bf16.mxu0 %v8583_v31  ;;  %5331 = vmatprep.subr.bf16.mxu1 %v8584_v45  ;;  %v8592_v31 = vld [vmem:[#allocation43_spill] sm:$0xff]  ;;  %v8593_v45 = vld [vmem:[#allocation40_spill] sm:$0xff] }
 0x5d2   :  { %2947 = vmatprep.mubr.f32.mxu0 %v8312_v5  ;;  %3018 = vmatprep.mubr.f32.mxu1 %v8312_v5 }
 0x5d4   :  { %5301 = vmatpush1.bf16.msra.mxu0 %v8585_v7  ;;  %5333 = vmatpush1.bf16.msra.mxu1 %v8586_v42  ;;  %v8596_v7 = vld [vmem:[#allocation46_spill] sm:$0xff]  ;;  %v8597_v42 = vld [vmem:[#allocation44_spill] sm:$0xff] }
 0x5d5   :  { %5303 = vmatprep.subr.bf16.mxu0 %v8587_v62  ;;  %5335 = vmatprep.subr.bf16.mxu1 %v8588_v1  ;;  %v8598_v62 = vld [vmem:[#allocation47_spill] sm:$0xff]  ;;  %v8599_v1 = vld [vmem:[#allocation48_spill] sm:$0xff] }
 0x5d8   :  { %5305 = vmatpush1.bf16.msra.mxu0 %v8589_v3  ;;  %5337 = vmatpush1.bf16.msra.mxu1 %v8590_v46  ;;  %v8600_v3 = vld [vmem:[#allocation49_spill] sm:$0xff]  ;;  %v8601_v46 = vld [vmem:[#allocation50_spill] sm:$0xff] }
 0x5d9   :  { %5307 = vmatprep.subr.bf16.mxu0 %v8591_v35  ;;  %5339 = vmatprep.subr.bf16.mxu1 %v8592_v31  ;;  %v8602_v35 = vld [vmem:[#allocation51_spill] sm:$0xff]  ;;  %v8603_v31 = vld [vmem:[#allocation52_spill] sm:$0xff] }
 0x5dc   :  { %5309 = vmatpush1.bf16.msra.mxu0 %v8593_v45  ;;  %5341 = vmatpush1.bf16.msra.mxu1 %v8594_v11  ;;  %v8604_v45 = vld [vmem:[#allocation53_spill] sm:$0xff]  ;;  %v8605_v11 = vld [vmem:[#allocation54_spill] sm:$0xff] }
 0x5dd   :  { %5311 = vmatprep.subr.bf16.mxu0 %v8595_v21  ;;  %5343 = vmatprep.subr.bf16.mxu1 %v8596_v7  ;;  %v8606_v21 = vld [vmem:[#allocation55_spill] sm:$0xff]  ;;  %v8607_v7 = vld [vmem:[#allocation56_spill] sm:$0xff] }
 0x5e0   :  { %5313 = vmatpush1.bf16.msra.mxu0 %v8597_v42  ;;  %5345 = vmatpush1.bf16.msra.mxu1 %v8598_v62  ;;  %v8608_v42 = vld [vmem:[#allocation57_spill] sm:$0xff]  ;;  %v8609_v62 = vld [vmem:[#allocation58_spill] sm:$0xff] }
 0x5e1   :  { %5315 = vmatprep.subr.bf16.mxu0 %v8599_v1  ;;  %5347 = vmatprep.subr.bf16.mxu1 %v8600_v3  ;;  %v8610_v1 = vld [vmem:[#allocation59_spill] sm:$0xff]  ;;  %v8611_v3 = vld [vmem:[#allocation60_spill] sm:$0xff] }
 0x5e4   :  { %5317 = vmatpush1.bf16.msra.mxu0 %v8601_v46  ;;  %5349 = vmatpush1.bf16.msra.mxu1 %v8602_v35  ;;  %v8612_v46 = vld [vmem:[#allocation61_spill] sm:$0xff] }
 0x5e5   :  { %5319 = vmatprep.subr.bf16.mxu0 %v8603_v31  ;;  %5351 = vmatprep.subr.bf16.mxu1 %v8604_v45 }
 0x5e8   :  { %5321 = vmatpush1.bf16.msra.mxu0 %v8605_v11  ;;  %5353 = vmatpush1.bf16.msra.mxu1 %v8606_v21 }
 0x5e9   :  { %5323 = vmatprep.subr.bf16.mxu0 %v8607_v7  ;;  %5355 = vmatprep.subr.bf16.mxu1 %v8608_v42  ;;  %v8615_v42 = vld [vmem:[#allocation97_spill] sm:$0xff] }
 0x5ec   :  { %5325 = vmatpush1.bf16.msra.mxu0 %v8609_v62  ;;  %5357 = vmatpush1.bf16.msra.mxu1 %v8610_v1  ;;  %v8616_v1 = vld [vmem:[#allocation98_spill] sm:$0xff] }
 0x5ed   :  { %5359 = vmatprep.subr.bf16.mxu0 %v8611_v3  ;;  %5391 = vmatprep.subr.bf16.mxu1 %v8612_v46 }
 0x682   :  { %v2598_v35 = vpop.f32.mrb[18].mxu0  ;;  %v2669_v31 = vpop.f32.mrb[18].mxu1 }
 0x683   :  { %v2674_v45 = vadd.f32 %v2598_v35, %v8613_v28  ;;  %v2600_v58 = vpop.f32.mrb[19].mxu0  ;;  %v2671_v11 = vpop.f32.mrb[19].mxu1  ;;  %v2676_v30 = vadd.f32 %v2669_v31, %v8616_v1 }
 0x684   :  { %v2675_v21 = vadd.f32 %v2600_v58, %v8614_v26  ;;  %v2677_v62 = vadd.f32 %v2671_v11, %v8615_v42  ;;  %v4237_v58 = vld [vmem:[%s8041_s0 + $0xa0] sm:$0xff]  ;;  %v4240_v42 = vld [vmem:[%s8041_s0 + $0xb8] sm:$0xff] }
 0x685   :  { %v4233_v0 = vmul.f32 -1.442695, %v2674_v45  ;;  %v4238_v45 = vld [vmem:[%s8041_s0 + $0xa8] sm:$0xff] }
 0x686   :  { %v4234_v7 = vmul.f32 -1.442695, %v2675_v21  ;;  %v4235_v48 = vmul.f32 -1.442695, %v2677_v62 }
 0x687   :  { %5983 = vpow2.f32 %v4233_v0 }
 0x688   :  { %5985 = vpow2.f32 %v4234_v7 }
 0x689   :  { %5987 = vpow2.f32 %v4235_v48  ;;  %v2709_v48 = vadd.f32 %v8554_v41, %v4237_v58 }
 0x68a   :  { %5989 = vtanh.f32 %v2676_v30 }
 0x691   :  { %v5984_v3 = vpop.eup %5983 }
 0x692   :  { %v5986_v10 = vpop.eup %5985  ;;  %v2681_v46 = vadd.f32 1.0, %v5984_v3 }
 0x693   :  { %v2687_v17 = vadd.f32 1.0, %v5986_v10  ;;  %v5988_v35 = vpop.eup %5987 }
 0x694   :  { %5991 = vrcp.f32 %v2681_v46  ;;  %v5990_v0 = vpop.eup %5989  ;;  %v2694_v7 = vadd.f32 1.0, %v5988_v35 }
 0x695   :  { %5993 = vrcp.f32 %v2687_v17  ;;  %v2710_v17 = vadd.f32 %v8555_v55, %v4238_v45  ;;  %v4239_v55 = vld [vmem:[%s8041_s0 + $0xb0] sm:$0xff] }
 0x696   :  { %5995 = vrcp.f32 %v2694_v7  ;;  %v2711_v45 = vadd.f32 %v7439_v52, %v4239_v55  ;;  %v8617_v55 = vld [vmem:[#allocation3_spill] sm:$0xff] }
 0x69e   :  { %v5992_v21 = vpop.eup %5991 }
 0x69f   :  { %v5994_v31 = vpop.eup %5993  ;;  %v2698_v11 = vmul.f32 %v5992_v21, %v5990_v0 }
 0x6a0   :  { %v2697_v10 = vmul.f32 %v5994_v31, %v7564_v18  ;;  %v2712_v18 = vadd.f32 %v7430_v15, %v4240_v42  ;;  %v5996_v21 = vpop.eup %5995 }
 0x6a2   :  { %v7697_v30 = vadd.f32 %v2698_v11, %v2697_v10  ;;  %v2779_v62 = vpop.f32.mrb[20].mxu0  ;;  %v2850_v46 = vpop.f32.mrb[20].mxu1 }
 0x6a3   :  { %v2855_v3 = vadd.f32 %v2779_v62, %v2709_v48  ;;  %v2781_v1 = vpop.f32.mrb[21].mxu0  ;;  %v2852_v26 = vpop.f32.mrb[21].mxu1  ;;  %v2857_v7 = vadd.f32 %v2850_v46, %v2711_v45  ;;  %v8619_v45 = vld [vmem:[#allocation5_spill] sm:$0xff] }
 0x6a4   :  { %v2856_v0 = vadd.f32 %v2781_v1, %v2710_v17  ;;  %5997 = vtanh.f32 %v7697_v30  ;;  %v2858_v58 = vadd.f32 %v2852_v26, %v2712_v18 }
 0x6a5   :  { %v4241_v41 = vmul.f32 -1.442695, %v2855_v3 }
 0x6a6   :  { %v4242_v35 = vmul.f32 -1.442695, %v2856_v0  ;;  %v4243_v11 = vmul.f32 -1.442695, %v2858_v58  ;;  %v8618_v58 = vld [vmem:[#allocation8_spill] sm:$0xff] }
 0x6a7   :  { %5999 = vpow2.f32 %v4241_v41 }
 0x6a8   :  { %6001 = vpow2.f32 %v4242_v35 }
 0x6a9   :  { %6003 = vpow2.f32 %v4243_v11  ;;  %v8622_v11 = vld [vmem:[#allocation11_spill] sm:$0xff] }
 0x6aa   :  { %6005 = vtanh.f32 %v2857_v7  ;;  %v8623_v7 = vld [vmem:[#allocation7_spill] sm:$0xff] }
 0x6ae   :  { %v5998_v31 = vpop.eup %5997 }
 0x6af   :  { %v2701_v1 = vmul.f32 %v5998_v31, %v5996_v21  ;;  %v8620_v21 = vld [vmem:[#allocation10_spill] sm:$0xff] }
 0x6b0   :  { %v8621_v31 = vld [vmem:[#allocation6_spill] sm:$0xff] }
 0x6b1   :  { %v6000_v48 = vpop.eup %5999  ;;  %4236 = vst [vmem:[%s8044_s6 + $0x20] sm:$0xff] %v2701_v1  ;;  %2948 = vmatmul.mubr.f32.vlgmr.msra.gmra.mrb[22].mxu0 %v2701_v1  ;;  %3019 = vmatmul.mubr.f32.vlgmr.msra.gmra.mrb[22].mxu1 %v2701_v1  ;;  %v8624_v1 = vld [vmem:[#allocation14_spill] sm:$0xff] }
 0x6b2   :  { %v6002_v15 = vpop.eup %6001  ;;  %v2862_v42 = vadd.f32 1.0, %v6000_v48  ;;  %5361 = vmatpush1.bf16.msra.mxu0 %v8374_v40  ;;  %5393 = vmatpush1.bf16.msra.mxu1 %v8375_v63  ;;  %v8625_v48 = vld [vmem:[#allocation9_spill] sm:$0xff] }
 0x6b3   :  { %v2868_v52 = vadd.f32 1.0, %v6002_v15  ;;  %5363 = vmatprep.subr.bf16.mxu0 %v8376_v56  ;;  %5395 = vmatprep.subr.bf16.mxu1 %v8377_v38  ;;  %v6004_v26 = vpop.eup %6003  ;;  %v8626_v15 = vld [vmem:[#allocation15_spill] sm:$0xff] }
 0x6b4   :  { %6007 = vrcp.f32 %v2862_v42  ;;  %3089 = vmatprep.mubr.f32.mxu0 %v8312_v5  ;;  %3160 = vmatprep.mubr.f32.mxu1 %v8312_v5  ;;  %v6006_v10 = vpop.eup %6005  ;;  %v2875_v3 = vadd.f32 1.0, %v6004_v26  ;;  %v8627_v42 = vld [vmem:[#allocation12_spill] sm:$0xff]  ;;  %v8629_v26 = vld [vmem:[#allocation13_spill] sm:$0xff] }
 0x6b5   :  { %6009 = vrcp.f32 %v2868_v52  ;;  %v8628_v52 = vld [vmem:[#allocation18_spill] sm:$0xff] }
 0x6b6   :  { %5365 = vmatpush1.bf16.msra.mxu0 %v8436_v50  ;;  %5397 = vmatpush1.bf16.msra.mxu1 %v8437_v12  ;;  %6011 = vrcp.f32 %v2875_v3  ;;  %v8634_v3 = vld [vmem:[#allocation23_spill] sm:$0xff] }
 0x6b7   :  { %5367 = vmatprep.subr.bf16.mxu0 %v8438_v53  ;;  %5399 = vmatprep.subr.bf16.mxu1 %v8439_v27 }
 0x6ba   :  { %5369 = vmatpush1.bf16.msra.mxu0 %v8440_v16  ;;  %5401 = vmatpush1.bf16.msra.mxu1 %v8441_v43 }
 0x6bb   :  { %5371 = vmatprep.subr.bf16.mxu0 %v8442_v61  ;;  %5403 = vmatprep.subr.bf16.mxu1 %v8443_v22 }
 0x6be   :  { %v6008_v17 = vpop.eup %6007  ;;  %5373 = vmatpush1.bf16.msra.mxu0 %v8444_v59  ;;  %5405 = vmatpush1.bf16.msra.mxu1 %v8387_v19 }
 0x6bf   :  { %v6010_v62 = vpop.eup %6009  ;;  %v2879_v46 = vmul.f32 %v6008_v17, %v6006_v10  ;;  %5375 = vmatprep.subr.bf16.mxu0 %v8388_v39  ;;  %5407 = vmatprep.subr.bf16.mxu1 %v8389_v32  ;;  %v8630_v10 = vld [vmem:[#allocation19_spill] sm:$0xff]  ;;  %v8631_v17 = vld [vmem:[#allocation16_spill] sm:$0xff] }
 0x6c0   :  { %v2878_v0 = vmul.f32 %v6010_v62, %v7597_v49  ;;  %v6012_v49 = vpop.eup %6011  ;;  %v8632_v62 = vld [vmem:[#allocation22_spill] sm:$0xff] }
 0x6c2   :  { %v7730_v41 = vadd.f32 %v2879_v46, %v2878_v0  ;;  %5377 = vmatpush1.bf16.msra.mxu0 %v8445_v60  ;;  %5409 = vmatpush1.bf16.msra.mxu1 %v8446_v51  ;;  %v8633_v46 = vld [vmem:[#allocation17_spill] sm:$0xff]  ;;  %v8635_v0 = vld [vmem:[#allocation20_spill] sm:$0xff] }
 0x6c3   :  { %5379 = vmatprep.subr.bf16.mxu0 %v8447_v24  ;;  %5411 = vmatprep.subr.bf16.mxu1 %v8448_v47 }
 0x6c4   :  { %6013 = vtanh.f32 %v7730_v41 }
 0x6c6   :  { %5381 = vmatpush1.bf16.msra.mxu0 %v8449_v34  ;;  %5413 = vmatpush1.bf16.msra.mxu1 %v8450_v6 }
 0x6c7   :  { %5383 = vmatprep.subr.bf16.mxu0 %v8451_v20  ;;  %5415 = vmatprep.subr.bf16.mxu1 %v8397_v2 }
 0x6ca   :  { %5385 = vmatpush1.bf16.msra.mxu0 %v8398_v57  ;;  %5417 = vmatpush1.bf16.msra.mxu1 %v8399_v44 }
 0x6cb   :  { %5387 = vmatprep.subr.bf16.mxu0 %v8400_v23  ;;  %5419 = vmatprep.subr.bf16.mxu1 %v8401_v36 }
 0x6ce   :  { %v6014_v35 = vpop.eup %6013  ;;  %5389 = vmatpush1.bf16.msra.mxu0 %v8402_v29  ;;  %5421 = vmatpush1.bf16.msra.mxu1 %v8403_v13 }
 0x6cf   :  { %v2882_v18 = vmul.f32 %v6014_v35, %v6012_v49  ;;  %5423 = vmatprep.subr.bf16.mxu0 %v8404_v4  ;;  %5455 = vmatprep.subr.bf16.mxu1 %v8405_v54  ;;  %v8636_v49 = vld [vmem:[#allocation25_spill] sm:$0xff] }
 0x6d0   :  { %v8637_v35 = vld [vmem:[#allocation21_spill] sm:$0xff] }
 0x6d1   :  { %3090 = vmatmul.mubr.f32.vlgmr.msra.gmra.mrb[22].mxu0 %v2882_v18  ;;  %3161 = vmatmul.mubr.f32.vlgmr.msra.gmra.mrb[22].mxu1 %v2882_v18 }
 0x6d2   :  { %5425 = vmatpush1.bf16.msra.mxu0 %v6161_v8  ;;  %5457 = vmatpush1.bf16.msra.mxu1 %v6210_v25 }
 0x6d3   :  { %5427 = vmatprep.subr.bf16.mxu0 %v6163_v9  ;;  %5459 = vmatprep.subr.bf16.mxu1 %v6235_v33 }
 0x6d4   :  { %3270 = vmatprep.mubr.f32.mxu0 %v8312_v5  ;;  %3341 = vmatprep.mubr.f32.mxu1 %v8312_v5 }
 0x6d6   :  { %5429 = vmatpush1.bf16.msra.mxu0 %v6179_v14  ;;  %5461 = vmatpush1.bf16.msra.mxu1 %v6246_v37 }
 0x6d7   :  { %5431 = vmatprep.subr.bf16.mxu0 %v8617_v55  ;;  %5463 = vmatprep.subr.bf16.mxu1 %v8618_v58 }
 0x6da   :  { %5433 = vmatpush1.bf16.msra.mxu0 %v8619_v45  ;;  %5465 = vmatpush1.bf16.msra.mxu1 %v8620_v21 }
 0x6db   :  { %5435 = vmatprep.subr.bf16.mxu0 %v8621_v31  ;;  %5467 = vmatprep.subr.bf16.mxu1 %v8622_v11 }
 0x6de   :  { %5437 = vmatpush1.bf16.msra.mxu0 %v8623_v7  ;;  %5469 = vmatpush1.bf16.msra.mxu1 %v8624_v1 }
 0x6df   :  { %5439 = vmatprep.subr.bf16.mxu0 %v8625_v48  ;;  %5471 = vmatprep.subr.bf16.mxu1 %v8626_v15  ;;  %v8675_v15 = vld [vmem:[#allocation96_spill] sm:$0xff] }
 0x6e2   :  { %5441 = vmatpush1.bf16.msra.mxu0 %v8627_v42  ;;  %5473 = vmatpush1.bf16.msra.mxu1 %v8628_v52  ;;  %v8638_v42 = vld [vmem:[#allocation27_spill] sm:$0xff]  ;;  %v8639_v52 = vld [vmem:[#allocation24_spill] sm:$0xff] }
 0x6e3   :  { %5443 = vmatprep.subr.bf16.mxu0 %v8629_v26  ;;  %5475 = vmatprep.subr.bf16.mxu1 %v8630_v10  ;;  %v8640_v26 = vld [vmem:[#allocation29_spill] sm:$0xff]  ;;  %v8641_v10 = vld [vmem:[#allocation26_spill] sm:$0xff] }
 0x6e6   :  { %5445 = vmatpush1.bf16.msra.mxu0 %v8631_v17  ;;  %5477 = vmatpush1.bf16.msra.mxu1 %v8632_v62  ;;  %v8642_v17 = vld [vmem:[#allocation31_spill] sm:$0xff] }
 0x6e7   :  { %5447 = vmatprep.subr.bf16.mxu0 %v8633_v46  ;;  %5479 = vmatprep.subr.bf16.mxu1 %v8634_v3  ;;  %v8643_v46 = vld [vmem:[#allocation28_spill] sm:$0xff]  ;;  %v8644_v3 = vld [vmem:[#allocation33_spill] sm:$0xff] }
 0x6ea   :  { %5449 = vmatpush1.bf16.msra.mxu0 %v8635_v0  ;;  %5481 = vmatpush1.bf16.msra.mxu1 %v8636_v49  ;;  %v8645_v0 = vld [vmem:[#allocation30_spill] sm:$0xff]  ;;  %v8646_v49 = vld [vmem:[#allocation35_spill] sm:$0xff] }
 0x6eb   :  { %5451 = vmatprep.subr.bf16.mxu0 %v8637_v35  ;;  %5483 = vmatprep.subr.bf16.mxu1 %v8638_v42  ;;  %v8656_v42 = vld [vmem:[#allocation45_spill] sm:$0xff]  ;;  %v8657_v35 = vld [vmem:[#allocation42_spill] sm:$0xff] }
 0x6ee   :  { %5453 = vmatpush1.bf16.msra.mxu0 %v8639_v52  ;;  %5485 = vmatpush1.bf16.msra.mxu1 %v8640_v26  ;;  %v8647_v52 = vld [vmem:[#allocation32_spill] sm:$0xff]  ;;  %v8648_v26 = vld [vmem:[#allocation37_spill] sm:$0xff] }
 0x6ef   :  { %5487 = vmatprep.subr.bf16.mxu0 %v8641_v10  ;;  %5519 = vmatprep.subr.bf16.mxu1 %v8642_v17  ;;  %v8649_v10 = vld [vmem:[#allocation34_spill] sm:$0xff]  ;;  %v8650_v17 = vld [vmem:[#allocation39_spill] sm:$0xff] }
 0x6f1   :  { %3271 = vmatmul.mubr.f32.vlgmr.msra.gmra.mrb[24].mxu0 %v2882_v18  ;;  %3342 = vmatmul.mubr.f32.vlgmr.msra.gmra.mrb[24].mxu1 %v2882_v18  ;;  %v8651_v18 = vld [vmem:[#allocation36_spill] sm:$0xff] }
 0x6f2   :  { %5489 = vmatpush1.bf16.msra.mxu0 %v8643_v46  ;;  %5521 = vmatpush1.bf16.msra.mxu1 %v8644_v3  ;;  %v8652_v46 = vld [vmem:[#allocation41_spill] sm:$0xff]  ;;  %v8653_v3 = vld [vmem:[#allocation38_spill] sm:$0xff] }
 0x6f3   :  { %5491 = vmatprep.subr.bf16.mxu0 %v8645_v0  ;;  %5523 = vmatprep.subr.bf16.mxu1 %v8646_v49  ;;  %v8654_v0 = vld [vmem:[#allocation43_spill] sm:$0xff]  ;;  %v8655_v49 = vld [vmem:[#allocation40_spill] sm:$0xff] }
 0x6f4   :  { %3440 = vmatprep.mubr.f32.mxu0 %v8312_v5  ;;  %3511 = vmatprep.mubr.f32.mxu1 %v8312_v5 }
 0x6f6   :  { %5493 = vmatpush1.bf16.msra.mxu0 %v8647_v52  ;;  %5525 = vmatpush1.bf16.msra.mxu1 %v8648_v26  ;;  %v8658_v52 = vld [vmem:[#allocation46_spill] sm:$0xff]  ;;  %v8659_v26 = vld [vmem:[#allocation44_spill] sm:$0xff] }
 0x6f7   :  { %5495 = vmatprep.subr.bf16.mxu0 %v8649_v10  ;;  %5527 = vmatprep.subr.bf16.mxu1 %v8650_v17  ;;  %v8660_v10 = vld [vmem:[#allocation47_spill] sm:$0xff]  ;;  %v8661_v17 = vld [vmem:[#allocation48_spill] sm:$0xff] }
 0x6fa   :  { %5497 = vmatpush1.bf16.msra.mxu0 %v8651_v18  ;;  %5529 = vmatpush1.bf16.msra.mxu1 %v8652_v46  ;;  %v8662_v18 = vld [vmem:[#allocation49_spill] sm:$0xff]  ;;  %v8663_v46 = vld [vmem:[#allocation50_spill] sm:$0xff] }
 0x6fb   :  { %5499 = vmatprep.subr.bf16.mxu0 %v8653_v3  ;;  %5531 = vmatprep.subr.bf16.mxu1 %v8654_v0  ;;  %v8664_v3 = vld [vmem:[#allocation51_spill] sm:$0xff]  ;;  %v8665_v0 = vld [vmem:[#allocation52_spill] sm:$0xff] }
 0x6fe   :  { %5501 = vmatpush1.bf16.msra.mxu0 %v8655_v49  ;;  %5533 = vmatpush1.bf16.msra.mxu1 %v8656_v42  ;;  %v8666_v49 = vld [vmem:[#allocation53_spill] sm:$0xff]  ;;  %v8667_v42 = vld [vmem:[#allocation54_spill] sm:$0xff] }
 0x6ff   :  { %5503 = vmatprep.subr.bf16.mxu0 %v8657_v35  ;;  %5535 = vmatprep.subr.bf16.mxu1 %v8658_v52  ;;  %v8668_v35 = vld [vmem:[#allocation55_spill] sm:$0xff]  ;;  %v8669_v52 = vld [vmem:[#allocation56_spill] sm:$0xff] }
 0x702   :  { %5505 = vmatpush1.bf16.msra.mxu0 %v8659_v26  ;;  %5537 = vmatpush1.bf16.msra.mxu1 %v8660_v10  ;;  %v8670_v26 = vld [vmem:[#allocation57_spill] sm:$0xff]  ;;  %v8671_v10 = vld [vmem:[#allocation58_spill] sm:$0xff] }
 0x703   :  { %5507 = vmatprep.subr.bf16.mxu0 %v8661_v17  ;;  %5539 = vmatprep.subr.bf16.mxu1 %v8662_v18  ;;  %v8672_v17 = vld [vmem:[#allocation59_spill] sm:$0xff]  ;;  %v8673_v18 = vld [vmem:[#allocation60_spill] sm:$0xff] }
 0x706   :  { %5509 = vmatpush1.bf16.msra.mxu0 %v8663_v46  ;;  %5541 = vmatpush1.bf16.msra.mxu1 %v8664_v3  ;;  %v8674_v46 = vld [vmem:[#allocation61_spill] sm:$0xff] }
 0x707   :  { %5511 = vmatprep.subr.bf16.mxu0 %v8665_v0  ;;  %5543 = vmatprep.subr.bf16.mxu1 %v8666_v49 }
 0x70a   :  { %5513 = vmatpush1.bf16.msra.mxu0 %v8667_v42  ;;  %5545 = vmatpush1.bf16.msra.mxu1 %v8668_v35 }
 0x70b   :  { %5515 = vmatprep.subr.bf16.mxu0 %v8669_v52  ;;  %5547 = vmatprep.subr.bf16.mxu1 %v8670_v26  ;;  %v8676_v26 = vld [vmem:[#allocation97_spill] sm:$0xff] }
 0x70e   :  { %5517 = vmatpush1.bf16.msra.mxu0 %v8671_v10  ;;  %5549 = vmatpush1.bf16.msra.mxu1 %v8672_v17  ;;  %v8677_v17 = vld [vmem:[#allocation98_spill] sm:$0xff] }
 0x70f   :  { %5551 = vmatprep.subr.bf16.mxu0 %v8673_v18  ;;  %5583 = vmatprep.subr.bf16.mxu1 %v8674_v46 }
 0x7a4   :  { %v3091_v3 = vpop.f32.mrb[22].mxu0  ;;  %v3162_v0 = vpop.f32.mrb[22].mxu1 }
 0x7a5   :  { %v3167_v49 = vadd.f32 %v3091_v3, %v8613_v28  ;;  %v3093_v62 = vpop.f32.mrb[23].mxu0  ;;  %v3164_v42 = vpop.f32.mrb[23].mxu1  ;;  %v3169_v7 = vadd.f32 %v3162_v0, %v8677_v17 }
 0x7a6   :  { %v3168_v35 = vadd.f32 %v3093_v62, %v8675_v15  ;;  %v3170_v10 = vadd.f32 %v3164_v42, %v8676_v26  ;;  %v4248_v62 = vld [vmem:[%s8041_s0 + $0xc0] sm:$0xff]  ;;  %v4249_v42 = vld [vmem:[%s8041_s0 + $0xc8] sm:$0xff] }
 0x7a7   :  { %v4244_v48 = vmul.f32 -1.442695, %v3167_v49 }
 0x7a8   :  { %v4245_v52 = vmul.f32 -1.442695, %v3168_v35  ;;  %v4246_v1 = vmul.f32 -1.442695, %v3170_v10 }
 0x7a9   :  { %6015 = vpow2.f32 %v4244_v48 }
 0x7aa   :  { %6017 = vpow2.f32 %v4245_v52 }
 0x7ab   :  { %6019 = vpow2.f32 %v4246_v1  ;;  %v7837_v1 = vld [vmem:[%s8042_s1 + $0x8] sm:$0xff] }
 0x7ac   :  { %6021 = vtanh.f32 %v3169_v7  ;;  %8679 = vst [vmem:[#allocation64_spill] sm:$0xff] %v7837_v1 }
 0x7b3   :  { %v6016_v18 = vpop.eup %6015 }
 0x7b4   :  { %v6018_v11 = vpop.eup %6017  ;;  %v3174_v46 = vadd.f32 1.0, %v6016_v18 }
 0x7b5   :  { %v3180_v31 = vadd.f32 1.0, %v6018_v11  ;;  %v6020_v3 = vpop.eup %6019  ;;  %v7830_v11 = vld [vmem:[%s8042_s1] sm:$0xff] }
 0x7b6   :  { %6023 = vrcp.f32 %v3174_v46  ;;  %v6022_v48 = vpop.eup %6021  ;;  %v3187_v49 = vadd.f32 1.0, %v6020_v3  ;;  %8678 = vst [vmem:[#allocation63_spill] sm:$0xff] %v7830_v11  ;;  %v3203_v46 = vadd.f32 %v7837_v1, %v4249_v42  ;;  %v7849_v42 = vld [vmem:[%s8042_s1 + $0x18] sm:$0xff] }
 0x7b7   :  { %6025 = vrcp.f32 %v3180_v31  ;;  %v3202_v31 = vadd.f32 %v7830_v11, %v4248_v62  ;;  %v4251_v62 = vld [vmem:[%s8041_s0 + $0xd8] sm:$0xff] }
 0x7b8   :  { %6027 = vrcp.f32 %v3187_v49  ;;  %v4250_v49 = vld [vmem:[%s8041_s0 + $0xd0] sm:$0xff] }
 0x7c0   :  { %v6024_v52 = vpop.eup %6023 }
 0x7c1   :  { %v6026_v10 = vpop.eup %6025  ;;  %v3191_v0 = vmul.f32 %v6024_v52, %v6022_v48 }
 0x7c2   :  { %v3190_v7 = vmul.f32 %v6026_v10, %v7697_v30 }
 0x7c4   :  { %v7840_v35 = vadd.f32 %v3191_v0, %v3190_v7  ;;  %v3272_v18 = vpop.f32.mrb[24].mxu0  ;;  %v3343_v3 = vpop.f32.mrb[24].mxu1  ;;  %v3205_v0 = vadd.f32 %v7849_v42, %v4251_v62  ;;  %v7858_v7 = vld [vmem:[%s8042_s1 + $0x10] sm:$0xff] }
 0x7c5   :  { %v3348_v48 = vadd.f32 %v3272_v18, %v3202_v31  ;;  %v3274_v52 = vpop.f32.mrb[25].mxu0  ;;  %v3345_v11 = vpop.f32.mrb[25].mxu1 }
 0x7c6   :  { %v3349_v30 = vadd.f32 %v3274_v52, %v3203_v46  ;;  %6029 = vtanh.f32 %v7840_v35  ;;  %v3351_v31 = vadd.f32 %v3345_v11, %v3205_v0  ;;  %v3204_v46 = vadd.f32 %v7858_v7, %v4250_v49  ;;  %v6028_v18 = vpop.eup %6027 }
 0x7c7   :  { %v4252_v10 = vmul.f32 -1.442695, %v3348_v48 }
 0x7c8   :  { %v4253_v17 = vmul.f32 -1.442695, %v3349_v30  ;;  %v4254_v52 = vmul.f32 -1.442695, %v3351_v31  ;;  %v3350_v30 = vadd.f32 %v3343_v3, %v3204_v46 }
 0x7c9   :  { %6031 = vpow2.f32 %v4252_v10 }
 0x7ca   :  { %6033 = vpow2.f32 %v4253_v17 }
 0x7cb   :  { %6035 = vpow2.f32 %v4254_v52 }
 0x7cc   :  { %6037 = vtanh.f32 %v3350_v30 }
 0x7d0   :  { %v6030_v48 = vpop.eup %6029 }
 0x7d1   :  { %v3194_v1 = vmul.f32 %v6030_v48, %v6028_v18 }
 0x7d3   :  { %v6032_v62 = vpop.eup %6031  ;;  %4247 = vst [vmem:[%s8044_s6 + $0x28] sm:$0xff] %v3194_v1  ;;  %3441 = vmatmul.mubr.f32.vlgmr.msra.gmra.mrb[26].mxu0 %v3194_v1  ;;  %3512 = vmatmul.mubr.f32.vlgmr.msra.gmra.mrb[26].mxu1 %v3194_v1 }
 0x7d4   :  { %v6034_v17 = vpop.eup %6033  ;;  %v3355_v11 = vadd.f32 1.0, %v6032_v62  ;;  %5553 = vmatpush1.bf16.msra.mxu0 %v8374_v40  ;;  %5585 = vmatpush1.bf16.msra.mxu1 %v8375_v63  ;;  %v8692_v62 = vld [vmem:[#allocation17_spill] sm:$0xff] }
 0x7d5   :  { %v3361_v10 = vadd.f32 1.0, %v6034_v17  ;;  %5555 = vmatprep.subr.bf16.mxu0 %v8376_v56  ;;  %5587 = vmatprep.subr.bf16.mxu1 %v8377_v38  ;;  %v6036_v1 = vpop.eup %6035  ;;  %v8693_v17 = vld [vmem:[#allocation23_spill] sm:$0xff] }
 0x7d6   :  { %6039 = vrcp.f32 %v3355_v11  ;;  %3582 = vmatprep.mubr.f32.mxu0 %v8312_v5  ;;  %3653 = vmatprep.mubr.f32.mxu1 %v8312_v5  ;;  %v6038_v3 = vpop.eup %6037  ;;  %v3368_v46 = vadd.f32 1.0, %v6036_v1  ;;  %v8694_v11 = vld [vmem:[#allocation20_spill] sm:$0xff]  ;;  %v8696_v1 = vld [vmem:[#allocation21_spill] sm:$0xff] }
 0x7d7   :  { %6041 = vrcp.f32 %v3361_v10  ;;  %v8695_v10 = vld [vmem:[#allocation25_spill] sm:$0xff] }
 0x7d8   :  { %5557 = vmatpush1.bf16.msra.mxu0 %v8436_v50  ;;  %5589 = vmatpush1.bf16.msra.mxu1 %v8437_v12  ;;  %6043 = vrcp.f32 %v3368_v46  ;;  %v8701_v46 = vld [vmem:[#allocation31_spill] sm:$0xff] }
 0x7d9   :  { %5559 = vmatprep.subr.bf16.mxu0 %v8438_v53  ;;  %5591 = vmatprep.subr.bf16.mxu1 %v8439_v27 }
 0x7dc   :  { %5561 = vmatpush1.bf16.msra.mxu0 %v8440_v16  ;;  %5593 = vmatpush1.bf16.msra.mxu1 %v8441_v43 }
 0x7dd   :  { %5563 = vmatprep.subr.bf16.mxu0 %v8442_v61  ;;  %5595 = vmatprep.subr.bf16.mxu1 %v8443_v22 }
 0x7e0   :  { %v6040_v0 = vpop.eup %6039  ;;  %5565 = vmatpush1.bf16.msra.mxu0 %v8444_v59  ;;  %5597 = vmatpush1.bf16.msra.mxu1 %v8387_v19 }
 0x7e1   :  { %v6042_v49 = vpop.eup %6041  ;;  %v3372_v31 = vmul.f32 %v6040_v0, %v6038_v3  ;;  %5567 = vmatprep.subr.bf16.mxu0 %v8388_v39  ;;  %5599 = vmatprep.subr.bf16.mxu1 %v8389_v32  ;;  %v8697_v3 = vld [vmem:[#allocation27_spill] sm:$0xff]  ;;  %v8698_v0 = vld [vmem:[#allocation24_spill] sm:$0xff] }
 0x7e2   :  { %v3371_v18 = vmul.f32 %v6042_v49, %v7730_v41  ;;  %v6044_v41 = vpop.eup %6043  ;;  %v8699_v49 = vld [vmem:[#allocation29_spill] sm:$0xff] }
 0x7e4   :  { %v7883_v48 = vadd.f32 %v3372_v31, %v3371_v18  ;;  %5569 = vmatpush1.bf16.msra.mxu0 %v8445_v60  ;;  %5601 = vmatpush1.bf16.msra.mxu1 %v8446_v51  ;;  %v8700_v31 = vld [vmem:[#allocation26_spill] sm:$0xff]  ;;  %v8702_v18 = vld [vmem:[#allocation28_spill] sm:$0xff] }
 0x7e5   :  { %5571 = vmatprep.subr.bf16.mxu0 %v8447_v24  ;;  %5603 = vmatprep.subr.bf16.mxu1 %v8448_v47 }
 0x7e6   :  { %6045 = vtanh.f32 %v7883_v48 }
 0x7e8   :  { %5573 = vmatpush1.bf16.msra.mxu0 %v8449_v34  ;;  %5605 = vmatpush1.bf16.msra.mxu1 %v8450_v6 }
 0x7e9   :  { %5575 = vmatprep.subr.bf16.mxu0 %v8451_v20  ;;  %5607 = vmatprep.subr.bf16.mxu1 %v8397_v2 }
 0x7ec   :  { %5577 = vmatpush1.bf16.msra.mxu0 %v8398_v57  ;;  %5609 = vmatpush1.bf16.msra.mxu1 %v8399_v44 }
 0x7ed   :  { %5579 = vmatprep.subr.bf16.mxu0 %v8400_v23  ;;  %5611 = vmatprep.subr.bf16.mxu1 %v8401_v36 }
 0x7f0   :  { %v6046_v52 = vpop.eup %6045  ;;  %5581 = vmatpush1.bf16.msra.mxu0 %v8402_v29  ;;  %5613 = vmatpush1.bf16.msra.mxu1 %v8403_v13 }
 0x7f1   :  { %5615 = vmatprep.subr.bf16.mxu0 %v8404_v4  ;;  %5647 = vmatprep.subr.bf16.mxu1 %v8405_v54  ;;  %v3375_v30 = vmul.f32 %v6046_v52, %v6044_v41  ;;  %v8684_v4 = vld [vmem:[#allocation9_spill] sm:$0xff]  ;;  %v8687_v54 = vld [vmem:[#allocation18_spill] sm:$0xff] }
 0x7f2   :  { %v8703_v41 = vld [vmem:[#allocation33_spill] sm:$0xff]  ;;  %v8704_v52 = vld [vmem:[#allocation30_spill] sm:$0xff] }
 0x7f3   :  { %3583 = vmatmul.mubr.f32.vlgmr.msra.gmra.mrb[26].mxu0 %v3375_v30  ;;  %3654 = vmatmul.mubr.f32.vlgmr.msra.gmra.mrb[26].mxu1 %v3375_v30 }
 0x7f4   :  { %5617 = vmatpush1.bf16.msra.mxu0 %v6161_v8  ;;  %5649 = vmatpush1.bf16.msra.mxu1 %v6210_v25  ;;  %v8680_v8 = vld [vmem:[#allocation6_spill] sm:$0xff]  ;;  %v8682_v25 = vld [vmem:[#allocation7_spill] sm:$0xff] }
 0x7f5   :  { %5619 = vmatprep.subr.bf16.mxu0 %v6163_v9  ;;  %5651 = vmatprep.subr.bf16.mxu1 %v6235_v33  ;;  %v8681_v9 = vld [vmem:[#allocation11_spill] sm:$0xff]  ;;  %v8683_v33 = vld [vmem:[#allocation14_spill] sm:$0xff] }
 0x7f6   :  { %3763 = vmatprep.mubr.f32.mxu0 %v8312_v5  ;;  %3834 = vmatprep.mubr.f32.mxu1 %v8312_v5 }
 0x7f8   :  { %5621 = vmatpush1.bf16.msra.mxu0 %v6179_v14  ;;  %5653 = vmatpush1.bf16.msra.mxu1 %v6246_v37  ;;  %v8685_v14 = vld [vmem:[#allocation15_spill] sm:$0xff]  ;;  %v8686_v37 = vld [vmem:[#allocation12_spill] sm:$0xff] }
 0x7f9   :  { %5623 = vmatprep.subr.bf16.mxu0 %v8617_v55  ;;  %5655 = vmatprep.subr.bf16.mxu1 %v8618_v58  ;;  %v8688_v55 = vld [vmem:[#allocation13_spill] sm:$0xff]  ;;  %v8689_v58 = vld [vmem:[#allocation19_spill] sm:$0xff] }
 0x7fc   :  { %5625 = vmatpush1.bf16.msra.mxu0 %v8619_v45  ;;  %5657 = vmatpush1.bf16.msra.mxu1 %v8620_v21  ;;  %v8690_v45 = vld [vmem:[#allocation16_spill] sm:$0xff]  ;;  %v8691_v21 = vld [vmem:[#allocation22_spill] sm:$0xff] }
 0x7fd   :  { %5627 = vmatprep.subr.bf16.mxu0 %v8680_v8  ;;  %5659 = vmatprep.subr.bf16.mxu1 %v8681_v9  ;;  %v8705_v8 = vld [vmem:[#allocation35_spill] sm:$0xff]  ;;  %v8706_v9 = vld [vmem:[#allocation32_spill] sm:$0xff] }
 0x800   :  { %5629 = vmatpush1.bf16.msra.mxu0 %v8682_v25  ;;  %5661 = vmatpush1.bf16.msra.mxu1 %v8683_v33  ;;  %v8707_v25 = vld [vmem:[#allocation37_spill] sm:$0xff]  ;;  %v8708_v33 = vld [vmem:[#allocation34_spill] sm:$0xff] }
 0x801   :  { %5631 = vmatprep.subr.bf16.mxu0 %v8684_v4  ;;  %5663 = vmatprep.subr.bf16.mxu1 %v8685_v14  ;;  %v8709_v4 = vld [vmem:[#allocation39_spill] sm:$0xff]  ;;  %v8711_v14 = vld [vmem:[#allocation41_spill] sm:$0xff] }
 0x804   :  { %5633 = vmatpush1.bf16.msra.mxu0 %v8686_v37  ;;  %5665 = vmatpush1.bf16.msra.mxu1 %v8687_v54  ;;  %v8712_v37 = vld [vmem:[#allocation38_spill] sm:$0xff]  ;;  %v8713_v54 = vld [vmem:[#allocation43_spill] sm:$0xff] }
 0x805   :  { %5635 = vmatprep.subr.bf16.mxu0 %v8688_v55  ;;  %5667 = vmatprep.subr.bf16.mxu1 %v8689_v58  ;;  %v8714_v55 = vld [vmem:[#allocation40_spill] sm:$0xff]  ;;  %v8715_v58 = vld [vmem:[#allocation45_spill] sm:$0xff] }
 0x808   :  { %5637 = vmatpush1.bf16.msra.mxu0 %v8690_v45  ;;  %5669 = vmatpush1.bf16.msra.mxu1 %v8691_v21  ;;  %v8716_v45 = vld [vmem:[#allocation42_spill] sm:$0xff] }
 0x809   :  { %5639 = vmatprep.subr.bf16.mxu0 %v8692_v62  ;;  %5671 = vmatprep.subr.bf16.mxu1 %v8693_v17  ;;  %v8717_v21 = vld [vmem:[#allocation46_spill] sm:$0xff]  ;;  %v8718_v62 = vld [vmem:[#allocation44_spill] sm:$0xff]  ;;  %v8719_v17 = vld [vmem:[#allocation47_spill] sm:$0xff] }
 0x80c   :  { %5641 = vmatpush1.bf16.msra.mxu0 %v8694_v11  ;;  %5673 = vmatpush1.bf16.msra.mxu1 %v8695_v10  ;;  %v8720_v11 = vld [vmem:[#allocation48_spill] sm:$0xff]  ;;  %v8721_v10 = vld [vmem:[#allocation49_spill] sm:$0xff] }
 0x80d   :  { %5643 = vmatprep.subr.bf16.mxu0 %v8696_v1  ;;  %5675 = vmatprep.subr.bf16.mxu1 %v8697_v3  ;;  %v8722_v1 = vld [vmem:[#allocation50_spill] sm:$0xff]  ;;  %v8723_v3 = vld [vmem:[#allocation51_spill] sm:$0xff] }
 0x810   :  { %5645 = vmatpush1.bf16.msra.mxu0 %v8698_v0  ;;  %5677 = vmatpush1.bf16.msra.mxu1 %v8699_v49  ;;  %v8724_v0 = vld [vmem:[#allocation52_spill] sm:$0xff]  ;;  %v8725_v49 = vld [vmem:[#allocation53_spill] sm:$0xff] }
 0x811   :  { %5679 = vmatprep.subr.bf16.mxu0 %v8700_v31  ;;  %5711 = vmatprep.subr.bf16.mxu1 %v8701_v46  ;;  %v8726_v31 = vld [vmem:[#allocation54_spill] sm:$0xff]  ;;  %v8727_v46 = vld [vmem:[#allocation55_spill] sm:$0xff] }
 0x813   :  { %3764 = vmatmul.mubr.f32.vlgmr.msra.gmra.mrb[28].mxu0 %v3375_v30  ;;  %3835 = vmatmul.mubr.f32.vlgmr.msra.gmra.mrb[28].mxu1 %v3375_v30  ;;  %v8710_v30 = vld [vmem:[#allocation36_spill] sm:$0xff] }
 0x814   :  { %5681 = vmatpush1.bf16.msra.mxu0 %v8702_v18  ;;  %5713 = vmatpush1.bf16.msra.mxu1 %v8703_v41  ;;  %v8728_v18 = vld [vmem:[#allocation56_spill] sm:$0xff]  ;;  %v8729_v41 = vld [vmem:[#allocation57_spill] sm:$0xff] }
 0x815   :  { %5683 = vmatprep.subr.bf16.mxu0 %v8704_v52  ;;  %5715 = vmatprep.subr.bf16.mxu1 %v8705_v8  ;;  %v8730_v52 = vld [vmem:[#allocation58_spill] sm:$0xff]  ;;  %v8731_v8 = vld [vmem:[#allocation59_spill] sm:$0xff] }
 0x816   :  { %3933 = vmatprep.mubr.f32.mxu0 %v8312_v5  ;;  %4004 = vmatprep.mubr.f32.mxu1 %v8312_v5 }
 0x818   :  { %5685 = vmatpush1.bf16.msra.mxu0 %v8706_v9  ;;  %5717 = vmatpush1.bf16.msra.mxu1 %v8707_v25  ;;  %v8732_v9 = vld [vmem:[#allocation60_spill] sm:$0xff]  ;;  %v8733_v25 = vld [vmem:[#allocation61_spill] sm:$0xff] }
 0x819   :  { %5687 = vmatprep.subr.bf16.mxu0 %v8708_v33  ;;  %5719 = vmatprep.subr.bf16.mxu1 %v8709_v4 }
 0x81c   :  { %5689 = vmatpush1.bf16.msra.mxu0 %v8710_v30  ;;  %5721 = vmatpush1.bf16.msra.mxu1 %v8711_v14 }
 0x81d   :  { %5691 = vmatprep.subr.bf16.mxu0 %v8712_v37  ;;  %5723 = vmatprep.subr.bf16.mxu1 %v8713_v54 }
 0x820   :  { %5693 = vmatpush1.bf16.msra.mxu0 %v8714_v55  ;;  %5725 = vmatpush1.bf16.msra.mxu1 %v8715_v58 }
 0x821   :  { %5695 = vmatprep.subr.bf16.mxu0 %v8716_v45  ;;  %5727 = vmatprep.subr.bf16.mxu1 %v8717_v21 }
 0x824   :  { %5697 = vmatpush1.bf16.msra.mxu0 %v8718_v62  ;;  %5729 = vmatpush1.bf16.msra.mxu1 %v8719_v17  ;;  %v8734_v62 = vld [vmem:[#allocation98_spill] sm:$0xff] }
 0x825   :  { %5699 = vmatprep.subr.bf16.mxu0 %v8720_v11  ;;  %5731 = vmatprep.subr.bf16.mxu1 %v8721_v10 }
 0x828   :  { %5701 = vmatpush1.bf16.msra.mxu0 %v8722_v1  ;;  %5733 = vmatpush1.bf16.msra.mxu1 %v8723_v3 }
 0x829   :  { %5703 = vmatprep.subr.bf16.mxu0 %v8724_v0  ;;  %5735 = vmatprep.subr.bf16.mxu1 %v8725_v49  ;;  %v4259_v49 = vld [vmem:[%s8041_s0 + $0xe0] sm:$0xff] }
 0x82c   :  { %5705 = vmatpush1.bf16.msra.mxu0 %v8726_v31  ;;  %5737 = vmatpush1.bf16.msra.mxu1 %v8727_v46  ;;  %v4260_v46 = vld [vmem:[%s8041_s0 + $0xe8] sm:$0xff] }
 0x82d   :  { %5707 = vmatprep.subr.bf16.mxu0 %v8728_v18  ;;  %5739 = vmatprep.subr.bf16.mxu1 %v8729_v41 }
 0x830   :  { %5709 = vmatpush1.bf16.msra.mxu0 %v8730_v52  ;;  %5741 = vmatpush1.bf16.msra.mxu1 %v8731_v8 }
 0x831   :  { %5743 = vmatprep.subr.bf16.mxu0 %v8732_v9  ;;  %5775 = vmatprep.subr.bf16.mxu1 %v8733_v25  ;;  %v8735_v9 = vld [vmem:[#allocation63_spill] sm:$0xff] }
 0x832   :  { %v3695_v25 = vadd.f32 %v8735_v9, %v4259_v49 }
 0x8c6   :  { %v3584_v33 = vpop.f32.mrb[26].mxu0  ;;  %v3655_v4 = vpop.f32.mrb[26].mxu1 }
 0x8c7   :  { %v3660_v30 = vadd.f32 %v3584_v33, %v8613_v28  ;;  %v3586_v14 = vpop.f32.mrb[27].mxu0  ;;  %v3657_v37 = vpop.f32.mrb[27].mxu1  ;;  %v3662_v17 = vadd.f32 %v3655_v4, %v8734_v62  ;;  %v8736_v4 = vld [vmem:[#allocation64_spill] sm:$0xff] }
 0x8c8   :  { %v3661_v54 = vadd.f32 %v3586_v14, %v8675_v15  ;;  %v3663_v45 = vadd.f32 %v3657_v37, %v8676_v26 }
 0x8c9   :  { %v4255_v55 = vmul.f32 -1.442695, %v3660_v30  ;;  %v3696_v30 = vadd.f32 %v8736_v4, %v4260_v46 }
 0x8ca   :  { %v4256_v58 = vmul.f32 -1.442695, %v3661_v54  ;;  %v4257_v21 = vmul.f32 -1.442695, %v3663_v45  ;;  %v4262_v45 = vld [vmem:[%s8041_s0 + $0xf8] sm:$0xff] }
 0x8cb   :  { %6047 = vpow2.f32 %v4255_v55 }
 0x8cc   :  { %6049 = vpow2.f32 %v4256_v58 }
 0x8cd   :  { %6051 = vpow2.f32 %v4257_v21 }
 0x8ce   :  { %6053 = vtanh.f32 %v3662_v17 }
 0x8d5   :  { %v6048_v11 = vpop.eup %6047 }
 0x8d6   :  { %v6050_v10 = vpop.eup %6049  ;;  %v3667_v1 = vadd.f32 1.0, %v6048_v11 }
 0x8d7   :  { %v3673_v3 = vadd.f32 1.0, %v6050_v10  ;;  %v6052_v0 = vpop.eup %6051 }
 0x8d8   :  { %6055 = vrcp.f32 %v3667_v1  ;;  %v6054_v31 = vpop.eup %6053  ;;  %v3680_v8 = vadd.f32 1.0, %v6052_v0  ;;  %v4261_v1 = vld [vmem:[%s8041_s0 + $0xf0] sm:$0xff] }
 0x8d9   :  { %6057 = vrcp.f32 %v3673_v3  ;;  %v3697_v0 = vadd.f32 %v7858_v7, %v4261_v1 }
 0x8da   :  { %6059 = vrcp.f32 %v3680_v8 }
 0x8e2   :  { %v6056_v18 = vpop.eup %6055 }
 0x8e3   :  { %v6058_v41 = vpop.eup %6057  ;;  %v3684_v52 = vmul.f32 %v6056_v18, %v6054_v31 }
 0x8e4   :  { %v3683_v33 = vmul.f32 %v6058_v41, %v7840_v35  ;;  %v3698_v35 = vadd.f32 %v7849_v42, %v4262_v45  ;;  %v6060_v49 = vpop.eup %6059 }
 0x8e6   :  { %v7983_v14 = vadd.f32 %v3684_v52, %v3683_v33  ;;  %v3765_v37 = vpop.f32.mrb[28].mxu0  ;;  %v3836_v54 = vpop.f32.mrb[28].mxu1 }
 0x8e7   :  { %v3841_v55 = vadd.f32 %v3765_v37, %v3695_v25  ;;  %v3767_v58 = vpop.f32.mrb[29].mxu0  ;;  %v3838_v21 = vpop.f32.mrb[29].mxu1  ;;  %v3843_v18 = vadd.f32 %v3836_v54, %v3697_v0 }
 0x8e8   :  { %v3842_v17 = vadd.f32 %v3767_v58, %v3696_v30  ;;  %6061 = vtanh.f32 %v7983_v14  ;;  %v3844_v3 = vadd.f32 %v3838_v21, %v3698_v35 }
 0x8e9   :  { %v4263_v11 = vmul.f32 -1.442695, %v3841_v55 }
 0x8ea   :  { %v4264_v10 = vmul.f32 -1.442695, %v3842_v17  ;;  %v4265_v46 = vmul.f32 -1.442695, %v3844_v3 }
 0x8eb   :  { %6063 = vpow2.f32 %v4263_v11 }
 0x8ec   :  { %6065 = vpow2.f32 %v4264_v10 }
 0x8ed   :  { %6067 = vpow2.f32 %v4265_v46 }
 0x8ee   :  { %6069 = vtanh.f32 %v3843_v18 }
 0x8f2   :  { %v6062_v31 = vpop.eup %6061 }
 0x8f3   :  { %v3687_v41 = vmul.f32 %v6062_v31, %v6060_v49 }
 0x8f5   :  { %v6064_v52 = vpop.eup %6063  ;;  %4258 = vst [vmem:[%s8044_s6 + $0x30] sm:$0xff] %v3687_v41  ;;  %3934 = vmatmul.mubr.f32.vlgmr.msra.gmra.mrb[30].mxu0 %v3687_v41  ;;  %4005 = vmatmul.mubr.f32.vlgmr.msra.gmra.mrb[30].mxu1 %v3687_v41 }
 0x8f6   :  { %v6066_v42 = vpop.eup %6065  ;;  %v3848_v8 = vadd.f32 1.0, %v6064_v52  ;;  %5745 = vmatpush1.bf16.msra.mxu0 %v8374_v40  ;;  %5777 = vmatpush1.bf16.msra.mxu1 %v8375_v63 }
 0x8f7   :  { %v3854_v7 = vadd.f32 1.0, %v6066_v42  ;;  %5747 = vmatprep.subr.bf16.mxu0 %v8376_v56  ;;  %5779 = vmatprep.subr.bf16.mxu1 %v8377_v38  ;;  %v6068_v40 = vpop.eup %6067 }
 0x8f8   :  { %6071 = vrcp.f32 %v3848_v8  ;;  %4075 = vmatprep.mubr.f32.mxu0 %v8312_v5  ;;  %4146 = vmatprep.mubr.f32.mxu1 %v8312_v5  ;;  %v6070_v63 = vpop.eup %6069 }
 0x8f9   :  { %6073 = vrcp.f32 %v3854_v7 }
 0x8fa   :  { %5749 = vmatpush1.bf16.msra.mxu0 %v8436_v50  ;;  %5781 = vmatpush1.bf16.msra.mxu1 %v8437_v12  ;;  %v3861_v50 = vadd.f32 1.0, %v6068_v40 }
 0x8fb   :  { %5751 = vmatprep.subr.bf16.mxu0 %v8438_v53  ;;  %5783 = vmatprep.subr.bf16.mxu1 %v8439_v27 }
 0x8fc   :  { %6075 = vrcp.f32 %v3861_v50 }
 0x8fe   :  { %5753 = vmatpush1.bf16.msra.mxu0 %v8440_v16  ;;  %5785 = vmatpush1.bf16.msra.mxu1 %v8441_v43 }
 0x8ff   :  { %5755 = vmatprep.subr.bf16.mxu0 %v8442_v61  ;;  %5787 = vmatprep.subr.bf16.mxu1 %v8443_v22 }
 0x902   :  { %v6072_v5 = vpop.eup %6071  ;;  %5757 = vmatpush1.bf16.msra.mxu0 %v8444_v59  ;;  %5789 = vmatpush1.bf16.msra.mxu1 %v8387_v19 }
 0x903   :  { %v6074_v56 = vpop.eup %6073  ;;  %v3865_v38 = vmul.f32 %v6072_v5, %v6070_v63  ;;  %5759 = vmatprep.subr.bf16.mxu0 %v8388_v39  ;;  %5791 = vmatprep.subr.bf16.mxu1 %v8389_v32 }
 0x904   :  { %v3864_v12 = vmul.f32 %v6074_v56, %v7883_v48 }
 0x906   :  { %v3866_v53 = vadd.f32 %v3865_v38, %v3864_v12  ;;  %5761 = vmatpush1.bf16.msra.mxu0 %v8445_v60  ;;  %5793 = vmatpush1.bf16.msra.mxu1 %v8446_v51  ;;  %v6076_v39 = vpop.eup %6075 }
 0x907   :  { %5763 = vmatprep.subr.bf16.mxu0 %v8447_v24  ;;  %5795 = vmatprep.subr.bf16.mxu1 %v8448_v47 }
 0x908   :  { %6077 = vtanh.f32 %v3866_v53 }
 0x90a   :  { %5765 = vmatpush1.bf16.msra.mxu0 %v8449_v34  ;;  %5797 = vmatpush1.bf16.msra.mxu1 %v8450_v6 }
 0x90b   :  { %5767 = vmatprep.subr.bf16.mxu0 %v8451_v20  ;;  %5799 = vmatprep.subr.bf16.mxu1 %v8397_v2 }
 0x90e   :  { %5769 = vmatpush1.bf16.msra.mxu0 %v8398_v57  ;;  %5801 = vmatpush1.bf16.msra.mxu1 %v8399_v44 }
 0x90f   :  { %5771 = vmatprep.subr.bf16.mxu0 %v8400_v23  ;;  %5803 = vmatprep.subr.bf16.mxu1 %v8401_v36 }
 0x912   :  { %v6078_v32 = vpop.eup %6077  ;;  %5773 = vmatpush1.bf16.msra.mxu0 %v8402_v29  ;;  %5805 = vmatpush1.bf16.msra.mxu1 %v8403_v13 }
 0x913   :  { %v3868_v19 = vmul.f32 %v6078_v32, %v6076_v39 }
 0x915   :  { %4076 = vmatmul.mubr.f32.vlgmr.msra.gmra.mrb[30].mxu0 %v3868_v19  ;;  %4147 = vmatmul.mubr.f32.vlgmr.msra.gmra.mrb[30].mxu1 %v3868_v19 }
 0x9e8   :  { %v4077_v27 = vpop.f32.mrb[30].mxu0  ;;  %v4148_v16 = vpop.f32.mrb[30].mxu1 }
 0x9e9   :  { %v4153_v2 = vadd.f32 %v4077_v27, %v8613_v28  ;;  %v4079_v57 = vpop.f32.mrb[31].mxu0  ;;  %v4150_v43 = vpop.f32.mrb[31].mxu1  ;;  %v4155_v13 = vadd.f32 %v4148_v16, %v8734_v62 }
 0x9ea   :  { %v4154_v44 = vadd.f32 %v4079_v57, %v8675_v15  ;;  %v4156_v36 = vadd.f32 %v4150_v43, %v8676_v26 }
 0x9eb   :  { %v4266_v23 = vmul.f32 -1.442695, %v4153_v2 }
 0x9ec   :  { %v4267_v61 = vmul.f32 -1.442695, %v4154_v44  ;;  %v4268_v29 = vmul.f32 -1.442695, %v4156_v36 }
 0x9ed   :  { %6079 = vpow2.f32 %v4266_v23 }
 0x9ee   :  { %6081 = vpow2.f32 %v4267_v61 }
 0x9ef   :  { %6083 = vpow2.f32 %v4268_v29 }
 0x9f0   :  { %6085 = vtanh.f32 %v4155_v13 }
 0x9f7   :  { %v6080_v22 = vpop.eup %6079 }
 0x9f8   :  { %v6082_v59 = vpop.eup %6081  ;;  %v4160_v60 = vadd.f32 1.0, %v6080_v22 }
 0x9f9   :  { %v4166_v51 = vadd.f32 1.0, %v6082_v59  ;;  %v6084_v24 = vpop.eup %6083 }
 0x9fa   :  { %6087 = vrcp.f32 %v4160_v60  ;;  %v6086_v47 = vpop.eup %6085  ;;  %v4173_v28 = vadd.f32 1.0, %v6084_v24 }
 0x9fb   :  { %6089 = vrcp.f32 %v4166_v51 }
 0x9fc   :  { %6091 = vrcp.f32 %v4173_v28 }
 0xa04   :  { %v6088_v34 = vpop.eup %6087 }
 0xa05   :  { %v6090_v6 = vpop.eup %6089  ;;  %v4177_v20 = vmul.f32 %v6088_v34, %v6086_v47 }
 0xa06   :  { %v4176_v15 = vmul.f32 %v6090_v6, %v7983_v14  ;;  %v6092_v48 = vpop.eup %6091 }
 0xa08   :  { %v4178_v26 = vadd.f32 %v4177_v20, %v4176_v15 }
 0xa0a   :  { %6093 = vtanh.f32 %v4178_v26 }
 0xa14   :  { %v6094_v62 = vpop.eup %6093 }
 0xa15   :  { %v4180_v9 = vmul.f32 %v6094_v62, %v6092_v48 }
 0xa17   :  { %4269 = vst [vmem:[%s8044_s6 + $0x38] sm:$0xff] %v4180_v9 }

</bundles_post_ra>
